<compile_context>
chip_gen: v5e
topology: v5e:2x2
jax: 0.10.0
libtpu: 0.0.40
codegen_flags: <defaults>
</compile_context>

<pallas_src>
import functools

import jax
import jax.numpy as jnp
from jax.experimental import pallas as pl
from jax.experimental.pallas import tpu as pltpu


# ----------------------------------------------------------------------------
# Pallas kernel: direct conv (shifted-row taps) + bias + fused BN statistics
# ----------------------------------------------------------------------------
def _conv2d_taps_kernel(x_ref, w_ref, b_ref, mask_ref,
                        o_ref, sum_ref, ssq_ref,
                        *, c_in, kh, kw, dil, wp, out_rows):
    """One (channel-tile, batch) grid step.

    x_ref:    (rows_in, c_in)   bf16  row-flattened padded image (resident)
    w_ref:    (kh*kw*c_in, tn)  bf16  full-K weight block
    b_ref:    (1, tn)           f32
    mask_ref: (out_rows, 1)     f32   1.0 for valid columns of the padded grid
    o_ref:    (out_rows, tn)    bf16  conv output on the padded-width grid
    sum_ref / ssq_ref: (1, tn)  f32   per-channel batch statistics
    """
    tn = o_ref.shape[-1]
    acc = jnp.zeros((out_rows, tn), jnp.float32)
    for i in range(kh):
        for j in range(kw):
            shift = (i * wp + j) * dil
            a = x_ref[shift:shift + out_rows, :]                       # bf16
            wk = w_ref[(i * kw + j) * c_in:(i * kw + j + 1) * c_in, :]  # bf16
            acc += jnp.dot(a, wk, preferred_element_type=jnp.float32)  # MXU
    out_val = acc + b_ref[...]
    o_ref[...] = out_val.astype(o_ref.dtype)

    # Fused BatchNorm batch statistics (scratch columns masked out).
    masked = out_val * mask_ref[...]
    sum_ref[...] = jnp.sum(masked, axis=0, keepdims=True)
    ssq_ref[...] = jnp.sum(masked * masked, axis=0, keepdims=True)


def pallas_conv2d_bn_stats(x, w_flat, bias, kh, kw, padding, dilation=1):
    """Conv2d + bias with fused per-channel sum / sum-of-squares.

    x:      (N, H, W, Cin)  float (cast to bf16 internally)
    w_flat: (kh*kw*Cin, Cout) bf16, rows ordered (kh, kw, cin)  [preprocessed]
    bias:   (1, Cout) f32
    Returns (y, col_sum, col_sumsq) with y: (N, H, W, Cout) bf16.
    """
    n_b, height, width, c_in = x.shape
    k_dim, c_out = w_flat.shape
    assert k_dim == kh * kw * c_in
    p, d = padding, dilation
    hp, wp = height + 2 * p, width + 2 * p
    out_rows = height * wp                    # conv computed on padded-width grid
    max_shift = (kh - 1) * d * wp + (kw - 1) * d

    # One padding pass: spatial padding + enough trailing zero rows so every
    # shifted window stays in bounds after row-flattening.
    extra_rows = max(0, out_rows + max_shift - hp * wp)
    extra_h = -(-extra_rows // wp)            # ceil division
    xp = jnp.pad(x.astype(jnp.bfloat16),
                 ((0, 0), (p, p + extra_h), (p, p), (0, 0)))
    rows_in = (hp + extra_h) * wp
    xf = xp.reshape(n_b, rows_in, c_in)

    # Validity mask for the scratch columns (w >= W) of the padded-width grid.
    mask = jnp.tile(
        jnp.concatenate([jnp.ones((width,), jnp.float32),
                         jnp.zeros((wp - width,), jnp.float32)]),
        height).reshape(out_rows, 1)

    # Output-channel tiling: full Cout when small, else lane-dense 256 tiles.
    tn = 256 if (c_out > 256 and c_out % 256 == 0) else c_out
    n_ct = c_out // tn

    kernel = functools.partial(
        _conv2d_taps_kernel, c_in=c_in, kh=kh, kw=kw, dil=d, wp=wp,
        out_rows=out_rows)

    y, psum, pssq = pl.pallas_call(
        kernel,
        out_shape=(
            jax.ShapeDtypeStruct((n_b, out_rows, c_out), jnp.bfloat16),
            jax.ShapeDtypeStruct((n_b, 1, c_out), jnp.float32),
            jax.ShapeDtypeStruct((n_b, 1, c_out), jnp.float32),
        ),
        grid_spec=pltpu.PrefetchScalarGridSpec(
            num_scalar_prefetch=0,
            grid=(n_ct, n_b),
            in_specs=[
                pl.BlockSpec((None, rows_in, c_in), lambda j, n: (n, 0, 0)),
                pl.BlockSpec((k_dim, tn), lambda j, n: (0, j)),
                pl.BlockSpec((1, tn), lambda j, n: (0, j)),
                pl.BlockSpec((out_rows, 1), lambda j, n: (0, 0)),
            ],
            out_specs=[
                pl.BlockSpec((None, out_rows, tn), lambda j, n: (n, 0, j)),
                pl.BlockSpec((None, 1, tn), lambda j, n: (n, 0, j)),
                pl.BlockSpec((None, 1, tn), lambda j, n: (n, 0, j)),
            ],
        ),
        compiler_params=pltpu.CompilerParams(
            dimension_semantics=("parallel", "parallel")),
    )(xf, w_flat, bias, mask)

    y = y.reshape(n_b, height, wp, c_out)
    if wp > width:
        y = y[:, :, :width, :]                # drop scratch columns
    return y, jnp.sum(psum, axis=(0, 1)), jnp.sum(pssq, axis=(0, 1))


# ----------------------------------------------------------------------------
# Module forward (ResBlock + SEBlock -> CSEBlock), NHWC internally
# ----------------------------------------------------------------------------
def batchnorm_apply(y, col_sum, col_sumsq, count, gamma, beta,
                    eps=1e-5, relu=False):
    """Training-mode BatchNorm2d (biased batch stats) from fused statistics."""
    mean = col_sum / count
    var = jnp.maximum(col_sumsq / count - mean * mean, 0.0)
    scale = gamma * jax.lax.rsqrt(var + eps)
    shift = beta - mean * scale
    out = y.astype(jnp.float32) * scale + shift
    return jnp.maximum(out, 0.0) if relu else out


def resblock_fwd(p, x):
    n_b, height, width, _ = x.shape
    count = n_b * height * width
    y1, s1, q1 = pallas_conv2d_bn_stats(x, p['conv1']['w_flat'],
                                        p['conv1']['b'], 3, 3, 1)
    h1 = batchnorm_apply(y1, s1, q1, count,
                         p['bn1']['gamma'], p['bn1']['beta'], relu=True)
    y2, s2, q2 = pallas_conv2d_bn_stats(h1, p['conv2']['w_flat'],
                                        p['conv2']['b'], 3, 3, 1)
    main = batchnorm_apply(y2, s2, q2, count,
                           p['bn2']['gamma'], p['bn2']['beta'])
    ys, ss, qs = pallas_conv2d_bn_stats(x, p['skip']['w_flat'],
                                        p['skip']['b'], 1, 1, 0)
    skip = batchnorm_apply(ys, ss, qs, count,
                           p['bnskip']['gamma'], p['bnskip']['beta'])
    return jnp.maximum(main + skip, 0.0)


def seblock_fwd(p, x):
    # Tiny GEMVs: plain jnp.dot per the perf review (padding to MXU tiles and
    # pallas_call overhead cost more than the handful of FLOPs).
    y = jnp.mean(x, axis=(1, 2))                        # (N, C)
    if p:
        h = jnp.maximum(jnp.dot(y, p['w1'].T), 0.0)
        gate = jax.nn.sigmoid(jnp.dot(h, p['w2'].T))
    else:
        # channel // reduction == 0: Linear(C,0) -> Linear(0,C) yields zeros,
        # so sigmoid(0) = 0.5 — matches PyTorch in this degenerate case.
        gate = jnp.full_like(y, 0.5)
    return x * gate[:, None, None, :]


def cseblock_fwd(params, x_nchw):
    x = jnp.transpose(x_nchw, (0, 2, 3, 1))             # NCHW -> NHWC
    out = resblock_fwd(params['res'], x)
    out = seblock_fwd(params['se'], out)
    return jnp.transpose(out, (0, 3, 1, 2))             # NHWC -> NCHW


# ----------------------------------------------------------------------------
# Deterministic parameter init (weights preprocessed for the kernel ONCE here)
# ----------------------------------------------------------------------------
class _KeyGen:
    def __init__(self, key):
        self.key = key

    def __call__(self):
        self.key, sub = jax.random.split(self.key)
        return sub


def init_conv(kg, c_out, c_in, k):
    fan_in = c_in * k * k
    w = jax.random.normal(kg(), (c_out, c_in, k, k), jnp.float32) / jnp.sqrt(fan_in)
    b = jax.random.normal(kg(), (c_out,), jnp.float32) * 0.01
    # One-time preprocessing: (kh, kw, cin)-major K rows, bf16 (no per-forward
    # transpose / pad / cast of weights).
    w_flat = jnp.transpose(w, (2, 3, 1, 0)).reshape(k * k * c_in, c_out)
    return {'w': w, 'b': b.reshape(1, c_out),
            'w_flat': w_flat.astype(jnp.bfloat16)}


def init_bn(c):
    return {'gamma': jnp.ones((c,), jnp.float32),
            'beta': jnp.zeros((c,), jnp.float32)}


def init_resblock(kg, c_in, c_out):
    return {'conv1': init_conv(kg, c_out, c_in, 3), 'bn1': init_bn(c_out),
            'conv2': init_conv(kg, c_out, c_out, 3), 'bn2': init_bn(c_out),
            'skip': init_conv(kg, c_out, c_in, 1), 'bnskip': init_bn(c_out)}


def init_se(kg, channel, reduction=16):
    hidden = channel // reduction
    if hidden == 0:
        return {}
    w1 = jax.random.normal(kg(), (hidden, channel), jnp.float32) / jnp.sqrt(channel)
    w2 = jax.random.normal(kg(), (channel, hidden), jnp.float32) / jnp.sqrt(hidden)
    return {'w1': w1, 'w2': w2}


def init_cseblock(key, channel_in, channel_mid):
    kg = _KeyGen(key)
    return {'res': init_resblock(kg, channel_in, channel_mid),
            'se': init_se(kg, channel_mid)}


# ----------------------------------------------------------------------------
# Pure-JAX f32 reference (for a loose numerical sanity check)
# ----------------------------------------------------------------------------
def _ref_conv(x, w, b, padding):
    out = jax.lax.conv_general_dilated(
        x, jnp.transpose(w, (2, 3, 1, 0)), window_strides=(1, 1),
        padding=((padding, padding), (padding, padding)),
        dimension_numbers=('NHWC', 'HWIO', 'NHWC'))
    return out + b


def _ref_bn(x, gamma, beta, eps=1e-5):
    mean = jnp.mean(x, axis=(0, 1, 2))
    var = jnp.mean((x - mean) ** 2, axis=(0, 1, 2))
    return (x - mean) * jax.lax.rsqrt(var + eps) * gamma + beta


def ref_cseblock(p, x_nchw):
    x = jnp.transpose(x_nchw, (0, 2, 3, 1))
    r = p['res']
    h = jnp.maximum(_ref_bn(_ref_conv(x, r['conv1']['w'], r['conv1']['b'], 1),
                            r['bn1']['gamma'], r['bn1']['beta']), 0.0)
    main = _ref_bn(_ref_conv(h, r['conv2']['w'], r['conv2']['b'], 1),
                   r['bn2']['gamma'], r['bn2']['beta'])
    skip = _ref_bn(_ref_conv(x, r['skip']['w'], r['skip']['b'], 0),
                   r['bnskip']['gamma'], r['bnskip']['beta'])
    out = jnp.maximum(main + skip, 0.0)
    y = jnp.mean(out, axis=(1, 2))
    se = p['se']
    if se:
        gate = jax.nn.sigmoid(jnp.maximum(y @ se['w1'].T, 0.0) @ se['w2'].T)
    else:
        gate = jnp.full_like(y, 0.5)
    out = out * gate[:, None, None, :]
    return jnp.transpose(out, (0, 3, 1, 2))


# ----------------------------------------------------------------------------
if __name__ == "__main__":
    key = jax.random.PRNGKey(0)
    k_param, k_input = jax.random.split(key)

    channel_in, channel_mid = 4, 32          # SE hidden = 32 // 16 = 2
    batch, spatial = 2, 16

    params = init_cseblock(k_param, channel_in, channel_mid)
    x = jax.random.normal(k_input, (batch, channel_in, spatial, spatial),
                          jnp.float32)

    fwd = jax.jit(cseblock_fwd)
    out = fwd(params, x)
    jax.block_until_ready(out)

    assert out.shape == (batch, channel_mid, spatial, spatial), out.shape
    assert bool(jnp.all(jnp.isfinite(out)))

    # Loose sanity check vs a pure-JAX f32 reference (kernel math is bf16).
    ref = ref_cseblock(params, x)
    max_err = float(jnp.max(jnp.abs(out - ref)))
    assert max_err < 0.35, f"max abs error vs f32 reference: {max_err}"

    print("KERNEL_OK")
</pallas_src>

<mosaic_0001>
module attributes {stable_mosaic.version = 11 : i64} {
  func.func @_conv2d_taps_kernel(%arg0: i32, %arg1: i32, %arg2: memref<1x342x4xbf16, #tpu.memory_space<vmem>>, %arg3: memref<36x32xbf16, #tpu.memory_space<vmem>>, %arg4: memref<1x32xf32, #tpu.memory_space<vmem>>, %arg5: memref<288x1xf32, #tpu.memory_space<vmem>>, %arg6: memref<1x288x32xbf16, #tpu.memory_space<vmem>>, %arg7: memref<1x1x32xf32, #tpu.memory_space<vmem>>, %arg8: memref<1x1x32xf32, #tpu.memory_space<vmem>>) attributes {dimension_semantics = [#tpu.dimension_semantics<parallel>, #tpu.dimension_semantics<parallel>], iteration_bounds = array<i64: 1, 2>, scalar_prefetch = 0 : i64, scratch_operands = 0 : i64, tpu.core_type = #tpu.core_type<tc>, window_params = [{transform_indices = @transform_0, window_bounds = array<i64: 1, 342, 4>}, {transform_indices = @transform_1, window_bounds = array<i64: 36, 32>}, {transform_indices = @transform_2, window_bounds = array<i64: 1, 32>}, {pipeline_mode = #tpu.pipeline_mode<synchronous>, transform_indices = @transform_3, window_bounds = array<i64: 288, 1>}, {transform_indices = @transform_4, window_bounds = array<i64: 1, 288, 32>}, {transform_indices = @transform_5, window_bounds = array<i64: 1, 1, 32>}, {transform_indices = @transform_6, window_bounds = array<i64: 1, 1, 32>}]} {
    %cst = arith.constant 0.000000e+00 : f32
    %0 = vector.broadcast %cst : f32 to vector<288x32xf32>
    %c0 = arith.constant 0 : index
    %c0_0 = arith.constant 0 : index
    %c0_1 = arith.constant 0 : index
    %1 = vector.load %arg2[%c0, %c0_0, %c0_1] : memref<1x342x4xbf16, #tpu.memory_space<vmem>>, vector<1x288x4xbf16>
    %2 = vector.shape_cast %1 : vector<1x288x4xbf16> to vector<288x4xbf16>
    %c0_2 = arith.constant 0 : index
    %c0_3 = arith.constant 0 : index
    %3 = vector.load %arg3[%c0_2, %c0_3] : memref<36x32xbf16, #tpu.memory_space<vmem>>, vector<4x32xbf16>
    %cst_4 = arith.constant dense<0.000000e+00> : vector<288x32xf32>
    %4 = tpu.matmul %2, %3, %cst_4 {dimension_numbers = #tpu.dot_dimension_numbers<[1], [0], [0], [1], [0, 0, 1, 1], [], []>} : vector<288x4xbf16>, vector<4x32xbf16>, vector<288x32xf32> -> vector<288x32xf32>
    %5 = arith.addf %0, %4 : vector<288x32xf32>
    %c0_5 = arith.constant 0 : index
    %c1 = arith.constant 1 : index
    %c0_6 = arith.constant 0 : index
    %6 = vector.load %arg2[%c0_5, %c1, %c0_6] : memref<1x342x4xbf16, #tpu.memory_space<vmem>>, vector<1x288x4xbf16>
    %7 = vector.shape_cast %6 : vector<1x288x4xbf16> to vector<288x4xbf16>
    %c4 = arith.constant 4 : index
    %c0_7 = arith.constant 0 : index
    %8 = vector.load %arg3[%c4, %c0_7] : memref<36x32xbf16, #tpu.memory_space<vmem>>, vector<4x32xbf16>
    %cst_8 = arith.constant dense<0.000000e+00> : vector<288x32xf32>
    %9 = tpu.matmul %7, %8, %cst_8 {dimension_numbers = #tpu.dot_dimension_numbers<[1], [0], [0], [1], [0, 0, 1, 1], [], []>} : vector<288x4xbf16>, vector<4x32xbf16>, vector<288x32xf32> -> vector<288x32xf32>
    %10 = arith.addf %5, %9 : vector<288x32xf32>
    %c0_9 = arith.constant 0 : index
    %c2 = arith.constant 2 : index
    %c0_10 = arith.constant 0 : index
    %11 = vector.load %arg2[%c0_9, %c2, %c0_10] : memref<1x342x4xbf16, #tpu.memory_space<vmem>>, vector<1x288x4xbf16>
    %12 = vector.shape_cast %11 : vector<1x288x4xbf16> to vector<288x4xbf16>
    %c8 = arith.constant 8 : index
    %c0_11 = arith.constant 0 : index
    %13 = vector.load %arg3[%c8, %c0_11] : memref<36x32xbf16, #tpu.memory_space<vmem>>, vector<4x32xbf16>
    %cst_12 = arith.constant dense<0.000000e+00> : vector<288x32xf32>
    %14 = tpu.matmul %12, %13, %cst_12 {dimension_numbers = #tpu.dot_dimension_numbers<[1], [0], [0], [1], [0, 0, 1, 1], [], []>} : vector<288x4xbf16>, vector<4x32xbf16>, vector<288x32xf32> -> vector<288x32xf32>
    %15 = arith.addf %10, %14 : vector<288x32xf32>
    %c0_13 = arith.constant 0 : index
    %c18 = arith.constant 18 : index
    %c0_14 = arith.constant 0 : index
    %16 = vector.load %arg2[%c0_13, %c18, %c0_14] : memref<1x342x4xbf16, #tpu.memory_space<vmem>>, vector<1x288x4xbf16>
    %17 = vector.shape_cast %16 : vector<1x288x4xbf16> to vector<288x4xbf16>
    %c12 = arith.constant 12 : index
    %c0_15 = arith.constant 0 : index
    %18 = vector.load %arg3[%c12, %c0_15] : memref<36x32xbf16, #tpu.memory_space<vmem>>, vector<4x32xbf16>
    %cst_16 = arith.constant dense<0.000000e+00> : vector<288x32xf32>
    %19 = tpu.matmul %17, %18, %cst_16 {dimension_numbers = #tpu.dot_dimension_numbers<[1], [0], [0], [1], [0, 0, 1, 1], [], []>} : vector<288x4xbf16>, vector<4x32xbf16>, vector<288x32xf32> -> vector<288x32xf32>
    %20 = arith.addf %15, %19 : vector<288x32xf32>
    %c0_17 = arith.constant 0 : index
    %c19 = arith.constant 19 : index
    %c0_18 = arith.constant 0 : index
    %21 = vector.load %arg2[%c0_17, %c19, %c0_18] : memref<1x342x4xbf16, #tpu.memory_space<vmem>>, vector<1x288x4xbf16>
    %22 = vector.shape_cast %21 : vector<1x288x4xbf16> to vector<288x4xbf16>
    %c16 = arith.constant 16 : index
    %c0_19 = arith.constant 0 : index
    %23 = vector.load %arg3[%c16, %c0_19] : memref<36x32xbf16, #tpu.memory_space<vmem>>, vector<4x32xbf16>
    %cst_20 = arith.constant dense<0.000000e+00> : vector<288x32xf32>
    %24 = tpu.matmul %22, %23, %cst_20 {dimension_numbers = #tpu.dot_dimension_numbers<[1], [0], [0], [1], [0, 0, 1, 1], [], []>} : vector<288x4xbf16>, vector<4x32xbf16>, vector<288x32xf32> -> vector<288x32xf32>
    %25 = arith.addf %20, %24 : vector<288x32xf32>
    %c0_21 = arith.constant 0 : index
    %c20 = arith.constant 20 : index
    %c0_22 = arith.constant 0 : index
    %26 = vector.load %arg2[%c0_21, %c20, %c0_22] : memref<1x342x4xbf16, #tpu.memory_space<vmem>>, vector<1x288x4xbf16>
    %27 = vector.shape_cast %26 : vector<1x288x4xbf16> to vector<288x4xbf16>
    %c20_23 = arith.constant 20 : index
    %c0_24 = arith.constant 0 : index
    %28 = vector.load %arg3[%c20_23, %c0_24] : memref<36x32xbf16, #tpu.memory_space<vmem>>, vector<4x32xbf16>
    %cst_25 = arith.constant dense<0.000000e+00> : vector<288x32xf32>
    %29 = tpu.matmul %27, %28, %cst_25 {dimension_numbers = #tpu.dot_dimension_numbers<[1], [0], [0], [1], [0, 0, 1, 1], [], []>} : vector<288x4xbf16>, vector<4x32xbf16>, vector<288x32xf32> -> vector<288x32xf32>
    %30 = arith.addf %25, %29 : vector<288x32xf32>
    %c0_26 = arith.constant 0 : index
    %c36 = arith.constant 36 : index
    %c0_27 = arith.constant 0 : index
    %31 = vector.load %arg2[%c0_26, %c36, %c0_27] : memref<1x342x4xbf16, #tpu.memory_space<vmem>>, vector<1x288x4xbf16>
    %32 = vector.shape_cast %31 : vector<1x288x4xbf16> to vector<288x4xbf16>
    %c24 = arith.constant 24 : index
    %c0_28 = arith.constant 0 : index
    %33 = vector.load %arg3[%c24, %c0_28] : memref<36x32xbf16, #tpu.memory_space<vmem>>, vector<4x32xbf16>
    %cst_29 = arith.constant dense<0.000000e+00> : vector<288x32xf32>
    %34 = tpu.matmul %32, %33, %cst_29 {dimension_numbers = #tpu.dot_dimension_numbers<[1], [0], [0], [1], [0, 0, 1, 1], [], []>} : vector<288x4xbf16>, vector<4x32xbf16>, vector<288x32xf32> -> vector<288x32xf32>
    %35 = arith.addf %30, %34 : vector<288x32xf32>
    %c0_30 = arith.constant 0 : index
    %c37 = arith.constant 37 : index
    %c0_31 = arith.constant 0 : index
    %36 = vector.load %arg2[%c0_30, %c37, %c0_31] : memref<1x342x4xbf16, #tpu.memory_space<vmem>>, vector<1x288x4xbf16>
    %37 = vector.shape_cast %36 : vector<1x288x4xbf16> to vector<288x4xbf16>
    %c28 = arith.constant 28 : index
    %c0_32 = arith.constant 0 : index
    %38 = vector.load %arg3[%c28, %c0_32] : memref<36x32xbf16, #tpu.memory_space<vmem>>, vector<4x32xbf16>
    %cst_33 = arith.constant dense<0.000000e+00> : vector<288x32xf32>
    %39 = tpu.matmul %37, %38, %cst_33 {dimension_numbers = #tpu.dot_dimension_numbers<[1], [0], [0], [1], [0, 0, 1, 1], [], []>} : vector<288x4xbf16>, vector<4x32xbf16>, vector<288x32xf32> -> vector<288x32xf32>
    %40 = arith.addf %35, %39 : vector<288x32xf32>
    %c0_34 = arith.constant 0 : index
    %c38 = arith.constant 38 : index
    %c0_35 = arith.constant 0 : index
    %41 = vector.load %arg2[%c0_34, %c38, %c0_35] : memref<1x342x4xbf16, #tpu.memory_space<vmem>>, vector<1x288x4xbf16>
    %42 = vector.shape_cast %41 : vector<1x288x4xbf16> to vector<288x4xbf16>
    %c32 = arith.constant 32 : index
    %c0_36 = arith.constant 0 : index
    %43 = vector.load %arg3[%c32, %c0_36] : memref<36x32xbf16, #tpu.memory_space<vmem>>, vector<4x32xbf16>
    %cst_37 = arith.constant dense<0.000000e+00> : vector<288x32xf32>
    %44 = tpu.matmul %42, %43, %cst_37 {dimension_numbers = #tpu.dot_dimension_numbers<[1], [0], [0], [1], [0, 0, 1, 1], [], []>} : vector<288x4xbf16>, vector<4x32xbf16>, vector<288x32xf32> -> vector<288x32xf32>
    %45 = arith.addf %40, %44 : vector<288x32xf32>
    %c0_38 = arith.constant 0 : index
    %c0_39 = arith.constant 0 : index
    %46 = vector.load %arg4[%c0_38, %c0_39] : memref<1x32xf32, #tpu.memory_space<vmem>>, vector<1x32xf32>
    %47 = vector.broadcast %46 : vector<1x32xf32> to vector<288x32xf32>
    %48 = arith.addf %45, %47 : vector<288x32xf32>
    %49 = arith.truncf %48 : vector<288x32xf32> to vector<288x32xbf16>
    %c0_40 = arith.constant 0 : index
    %c0_41 = arith.constant 0 : index
    %c0_42 = arith.constant 0 : index
    %50 = vector.load %arg6[%c0_40, %c0_41, %c0_42] : memref<1x288x32xbf16, #tpu.memory_space<vmem>>, vector<1x288x32xbf16>
    %51 = vector.shape_cast %50 : vector<1x288x32xbf16> to vector<288x32xbf16>
    %52 = vector.shape_cast %49 : vector<288x32xbf16> to vector<1x288x32xbf16>
    tpu.vector_store %arg6[%c0_40, %c0_41, %c0_42], %52 {strides = array<i32>} : memref<1x288x32xbf16, #tpu.memory_space<vmem>>, vector<1x288x32xbf16>,
    %c0_43 = arith.constant 0 : index
    %c0_44 = arith.constant 0 : index
    %53 = vector.load %arg5[%c0_43, %c0_44] : memref<288x1xf32, #tpu.memory_space<vmem>>, vector<288x1xf32>
    %54 = vector.broadcast %53 : vector<288x1xf32> to vector<288x32xf32>
    %55 = arith.mulf %48, %54 : vector<288x32xf32>
    %cst_45 = arith.constant dense<0.000000e+00> : vector<32xf32>
    %56 = vector.multi_reduction <add>, %55, %cst_45 [0] : vector<288x32xf32> to vector<32xf32>
    %57 = vector.shape_cast %56 : vector<32xf32> to vector<1x32xf32>
    %c0_46 = arith.constant 0 : index
    %c0_47 = arith.constant 0 : index
    %c0_48 = arith.constant 0 : index
    %58 = vector.load %arg7[%c0_46, %c0_47, %c0_48] : memref<1x1x32xf32, #tpu.memory_space<vmem>>, vector<1x1x32xf32>
    %59 = vector.shape_cast %58 : vector<1x1x32xf32> to vector<1x32xf32>
    %60 = vector.shape_cast %57 : vector<1x32xf32> to vector<1x1x32xf32>
    tpu.vector_store %arg7[%c0_46, %c0_47, %c0_48], %60 {strides = array<i32>} : memref<1x1x32xf32, #tpu.memory_space<vmem>>, vector<1x1x32xf32>,
    %61 = arith.mulf %55, %55 : vector<288x32xf32>
    %cst_49 = arith.constant dense<0.000000e+00> : vector<32xf32>
    %62 = vector.multi_reduction <add>, %61, %cst_49 [0] : vector<288x32xf32> to vector<32xf32>
    %63 = vector.shape_cast %62 : vector<32xf32> to vector<1x32xf32>
    %c0_50 = arith.constant 0 : index
    %c0_51 = arith.constant 0 : index
    %c0_52 = arith.constant 0 : index
    %64 = vector.load %arg8[%c0_50, %c0_51, %c0_52] : memref<1x1x32xf32, #tpu.memory_space<vmem>>, vector<1x1x32xf32>
    %65 = vector.shape_cast %64 : vector<1x1x32xf32> to vector<1x32xf32>
    %66 = vector.shape_cast %63 : vector<1x32xf32> to vector<1x1x32xf32>
    tpu.vector_store %arg8[%c0_50, %c0_51, %c0_52], %66 {strides = array<i32>} : memref<1x1x32xf32, #tpu.memory_space<vmem>>, vector<1x1x32xf32>,
    return
  }
  func.func @transform_0(%arg0: i32, %arg1: i32) -> (i32, i32, i32) {
    %c0_i32 = arith.constant 0 : i32
    %c0_i32_0 = arith.constant 0 : i32
    %c0_i32_1 = arith.constant 0 : i32
    return %arg1, %c0_i32, %c0_i32_0 : i32, i32, i32
  }
  func.func @transform_1(%arg0: i32, %arg1: i32) -> (i32, i32) {
    %c0_i32 = arith.constant 0 : i32
    %c0_i32_0 = arith.constant 0 : i32
    return %c0_i32, %arg0 : i32, i32
  }
  func.func @transform_2(%arg0: i32, %arg1: i32) -> (i32, i32) {
    %c0_i32 = arith.constant 0 : i32
    %c0_i32_0 = arith.constant 0 : i32
    return %c0_i32, %arg0 : i32, i32
  }
  func.func @transform_3(%arg0: i32, %arg1: i32) -> (i32, i32) {
    %c0_i32 = arith.constant 0 : i32
    %c0_i32_0 = arith.constant 0 : i32
    %c0_i32_1 = arith.constant 0 : i32
    return %c0_i32, %c0_i32_0 : i32, i32
  }
  func.func @transform_4(%arg0: i32, %arg1: i32) -> (i32, i32, i32) {
    %c0_i32 = arith.constant 0 : i32
    %c0_i32_0 = arith.constant 0 : i32
    return %arg1, %c0_i32, %arg0 : i32, i32, i32
  }
  func.func @transform_5(%arg0: i32, %arg1: i32) -> (i32, i32, i32) {
    %c0_i32 = arith.constant 0 : i32
    %c0_i32_0 = arith.constant 0 : i32
    return %arg1, %c0_i32, %arg0 : i32, i32, i32
  }
  func.func @transform_6(%arg0: i32, %arg1: i32) -> (i32, i32, i32) {
    %c0_i32 = arith.constant 0 : i32
    %c0_i32_0 = arith.constant 0 : i32
    return %arg1, %c0_i32, %arg0 : i32, i32, i32
  }
}

module attributes {stable_mosaic.version = 11 : i64} {
  func.func @_conv2d_taps_kernel(%arg0: i32, %arg1: i32, %arg2: memref<1x342x32xbf16, #tpu.memory_space<vmem>>, %arg3: memref<288x32xbf16, #tpu.memory_space<vmem>>, %arg4: memref<1x32xf32, #tpu.memory_space<vmem>>, %arg5: memref<288x1xf32, #tpu.memory_space<vmem>>, %arg6: memref<1x288x32xbf16, #tpu.memory_space<vmem>>, %arg7: memref<1x1x32xf32, #tpu.memory_space<vmem>>, %arg8: memref<1x1x32xf32, #tpu.memory_space<vmem>>) attributes {dimension_semantics = [#tpu.dimension_semantics<parallel>, #tpu.dimension_semantics<parallel>], iteration_bounds = array<i64: 1, 2>, scalar_prefetch = 0 : i64, scratch_operands = 0 : i64, tpu.core_type = #tpu.core_type<tc>, window_params = [{transform_indices = @transform_0, window_bounds = array<i64: 1, 342, 32>}, {transform_indices = @transform_1, window_bounds = array<i64: 288, 32>}, {transform_indices = @transform_2, window_bounds = array<i64: 1, 32>}, {pipeline_mode = #tpu.pipeline_mode<synchronous>, transform_indices = @transform_3, window_bounds = array<i64: 288, 1>}, {transform_indices = @transform_4, window_bounds = array<i64: 1, 288, 32>}, {transform_indices = @transform_5, window_bounds = array<i64: 1, 1, 32>}, {transform_indices = @transform_6, window_bounds = array<i64: 1, 1, 32>}]} {
    %cst = arith.constant 0.000000e+00 : f32
    %0 = vector.broadcast %cst : f32 to vector<288x32xf32>
    %c0 = arith.constant 0 : index
    %c0_0 = arith.constant 0 : index
    %c0_1 = arith.constant 0 : index
    %1 = vector.load %arg2[%c0, %c0_0, %c0_1] : memref<1x342x32xbf16, #tpu.memory_space<vmem>>, vector<1x288x32xbf16>
    %2 = vector.shape_cast %1 : vector<1x288x32xbf16> to vector<288x32xbf16>
    %c0_2 = arith.constant 0 : index
    %c0_3 = arith.constant 0 : index
    %3 = vector.load %arg3[%c0_2, %c0_3] : memref<288x32xbf16, #tpu.memory_space<vmem>>, vector<32x32xbf16>
    %cst_4 = arith.constant dense<0.000000e+00> : vector<288x32xf32>
    %4 = tpu.matmul %2, %3, %cst_4 {dimension_numbers = #tpu.dot_dimension_numbers<[1], [0], [0], [1], [0, 0, 1, 1], [], []>} : vector<288x32xbf16>, vector<32x32xbf16>, vector<288x32xf32> -> vector<288x32xf32>
    %5 = arith.addf %0, %4 : vector<288x32xf32>
    %c0_5 = arith.constant 0 : index
    %c1 = arith.constant 1 : index
    %c0_6 = arith.constant 0 : index
    %6 = vector.load %arg2[%c0_5, %c1, %c0_6] : memref<1x342x32xbf16, #tpu.memory_space<vmem>>, vector<1x288x32xbf16>
    %7 = vector.shape_cast %6 : vector<1x288x32xbf16> to vector<288x32xbf16>
    %c32 = arith.constant 32 : index
    %c0_7 = arith.constant 0 : index
    %8 = vector.load %arg3[%c32, %c0_7] : memref<288x32xbf16, #tpu.memory_space<vmem>>, vector<32x32xbf16>
    %cst_8 = arith.constant dense<0.000000e+00> : vector<288x32xf32>
    %9 = tpu.matmul %7, %8, %cst_8 {dimension_numbers = #tpu.dot_dimension_numbers<[1], [0], [0], [1], [0, 0, 1, 1], [], []>} : vector<288x32xbf16>, vector<32x32xbf16>, vector<288x32xf32> -> vector<288x32xf32>
    %10 = arith.addf %5, %9 : vector<288x32xf32>
    %c0_9 = arith.constant 0 : index
    %c2 = arith.constant 2 : index
    %c0_10 = arith.constant 0 : index
    %11 = vector.load %arg2[%c0_9, %c2, %c0_10] : memref<1x342x32xbf16, #tpu.memory_space<vmem>>, vector<1x288x32xbf16>
    %12 = vector.shape_cast %11 : vector<1x288x32xbf16> to vector<288x32xbf16>
    %c64 = arith.constant 64 : index
    %c0_11 = arith.constant 0 : index
    %13 = vector.load %arg3[%c64, %c0_11] : memref<288x32xbf16, #tpu.memory_space<vmem>>, vector<32x32xbf16>
    %cst_12 = arith.constant dense<0.000000e+00> : vector<288x32xf32>
    %14 = tpu.matmul %12, %13, %cst_12 {dimension_numbers = #tpu.dot_dimension_numbers<[1], [0], [0], [1], [0, 0, 1, 1], [], []>} : vector<288x32xbf16>, vector<32x32xbf16>, vector<288x32xf32> -> vector<288x32xf32>
    %15 = arith.addf %10, %14 : vector<288x32xf32>
    %c0_13 = arith.constant 0 : index
    %c18 = arith.constant 18 : index
    %c0_14 = arith.constant 0 : index
    %16 = vector.load %arg2[%c0_13, %c18, %c0_14] : memref<1x342x32xbf16, #tpu.memory_space<vmem>>, vector<1x288x32xbf16>
    %17 = vector.shape_cast %16 : vector<1x288x32xbf16> to vector<288x32xbf16>
    %c96 = arith.constant 96 : index
    %c0_15 = arith.constant 0 : index
    %18 = vector.load %arg3[%c96, %c0_15] : memref<288x32xbf16, #tpu.memory_space<vmem>>, vector<32x32xbf16>
    %cst_16 = arith.constant dense<0.000000e+00> : vector<288x32xf32>
    %19 = tpu.matmul %17, %18, %cst_16 {dimension_numbers = #tpu.dot_dimension_numbers<[1], [0], [0], [1], [0, 0, 1, 1], [], []>} : vector<288x32xbf16>, vector<32x32xbf16>, vector<288x32xf32> -> vector<288x32xf32>
    %20 = arith.addf %15, %19 : vector<288x32xf32>
    %c0_17 = arith.constant 0 : index
    %c19 = arith.constant 19 : index
    %c0_18 = arith.constant 0 : index
    %21 = vector.load %arg2[%c0_17, %c19, %c0_18] : memref<1x342x32xbf16, #tpu.memory_space<vmem>>, vector<1x288x32xbf16>
    %22 = vector.shape_cast %21 : vector<1x288x32xbf16> to vector<288x32xbf16>
    %c128 = arith.constant 128 : index
    %c0_19 = arith.constant 0 : index
    %23 = vector.load %arg3[%c128, %c0_19] : memref<288x32xbf16, #tpu.memory_space<vmem>>, vector<32x32xbf16>
    %cst_20 = arith.constant dense<0.000000e+00> : vector<288x32xf32>
    %24 = tpu.matmul %22, %23, %cst_20 {dimension_numbers = #tpu.dot_dimension_numbers<[1], [0], [0], [1], [0, 0, 1, 1], [], []>} : vector<288x32xbf16>, vector<32x32xbf16>, vector<288x32xf32> -> vector<288x32xf32>
    %25 = arith.addf %20, %24 : vector<288x32xf32>
    %c0_21 = arith.constant 0 : index
    %c20 = arith.constant 20 : index
    %c0_22 = arith.constant 0 : index
    %26 = vector.load %arg2[%c0_21, %c20, %c0_22] : memref<1x342x32xbf16, #tpu.memory_space<vmem>>, vector<1x288x32xbf16>
    %27 = vector.shape_cast %26 : vector<1x288x32xbf16> to vector<288x32xbf16>
    %c160 = arith.constant 160 : index
    %c0_23 = arith.constant 0 : index
    %28 = vector.load %arg3[%c160, %c0_23] : memref<288x32xbf16, #tpu.memory_space<vmem>>, vector<32x32xbf16>
    %cst_24 = arith.constant dense<0.000000e+00> : vector<288x32xf32>
    %29 = tpu.matmul %27, %28, %cst_24 {dimension_numbers = #tpu.dot_dimension_numbers<[1], [0], [0], [1], [0, 0, 1, 1], [], []>} : vector<288x32xbf16>, vector<32x32xbf16>, vector<288x32xf32> -> vector<288x32xf32>
    %30 = arith.addf %25, %29 : vector<288x32xf32>
    %c0_25 = arith.constant 0 : index
    %c36 = arith.constant 36 : index
    %c0_26 = arith.constant 0 : index
    %31 = vector.load %arg2[%c0_25, %c36, %c0_26] : memref<1x342x32xbf16, #tpu.memory_space<vmem>>, vector<1x288x32xbf16>
    %32 = vector.shape_cast %31 : vector<1x288x32xbf16> to vector<288x32xbf16>
    %c192 = arith.constant 192 : index
    %c0_27 = arith.constant 0 : index
    %33 = vector.load %arg3[%c192, %c0_27] : memref<288x32xbf16, #tpu.memory_space<vmem>>, vector<32x32xbf16>
    %cst_28 = arith.constant dense<0.000000e+00> : vector<288x32xf32>
    %34 = tpu.matmul %32, %33, %cst_28 {dimension_numbers = #tpu.dot_dimension_numbers<[1], [0], [0], [1], [0, 0, 1, 1], [], []>} : vector<288x32xbf16>, vector<32x32xbf16>, vector<288x32xf32> -> vector<288x32xf32>
    %35 = arith.addf %30, %34 : vector<288x32xf32>
    %c0_29 = arith.constant 0 : index
    %c37 = arith.constant 37 : index
    %c0_30 = arith.constant 0 : index
    %36 = vector.load %arg2[%c0_29, %c37, %c0_30] : memref<1x342x32xbf16, #tpu.memory_space<vmem>>, vector<1x288x32xbf16>
    %37 = vector.shape_cast %36 : vector<1x288x32xbf16> to vector<288x32xbf16>
    %c224 = arith.constant 224 : index
    %c0_31 = arith.constant 0 : index
    %38 = vector.load %arg3[%c224, %c0_31] : memref<288x32xbf16, #tpu.memory_space<vmem>>, vector<32x32xbf16>
    %cst_32 = arith.constant dense<0.000000e+00> : vector<288x32xf32>
    %39 = tpu.matmul %37, %38, %cst_32 {dimension_numbers = #tpu.dot_dimension_numbers<[1], [0], [0], [1], [0, 0, 1, 1], [], []>} : vector<288x32xbf16>, vector<32x32xbf16>, vector<288x32xf32> -> vector<288x32xf32>
    %40 = arith.addf %35, %39 : vector<288x32xf32>
    %c0_33 = arith.constant 0 : index
    %c38 = arith.constant 38 : index
    %c0_34 = arith.constant 0 : index
    %41 = vector.load %arg2[%c0_33, %c38, %c0_34] : memref<1x342x32xbf16, #tpu.memory_space<vmem>>, vector<1x288x32xbf16>
    %42 = vector.shape_cast %41 : vector<1x288x32xbf16> to vector<288x32xbf16>
    %c256 = arith.constant 256 : index
    %c0_35 = arith.constant 0 : index
    %43 = vector.load %arg3[%c256, %c0_35] : memref<288x32xbf16, #tpu.memory_space<vmem>>, vector<32x32xbf16>
    %cst_36 = arith.constant dense<0.000000e+00> : vector<288x32xf32>
    %44 = tpu.matmul %42, %43, %cst_36 {dimension_numbers = #tpu.dot_dimension_numbers<[1], [0], [0], [1], [0, 0, 1, 1], [], []>} : vector<288x32xbf16>, vector<32x32xbf16>, vector<288x32xf32> -> vector<288x32xf32>
    %45 = arith.addf %40, %44 : vector<288x32xf32>
    %c0_37 = arith.constant 0 : index
    %c0_38 = arith.constant 0 : index
    %46 = vector.load %arg4[%c0_37, %c0_38] : memref<1x32xf32, #tpu.memory_space<vmem>>, vector<1x32xf32>
    %47 = vector.broadcast %46 : vector<1x32xf32> to vector<288x32xf32>
    %48 = arith.addf %45, %47 : vector<288x32xf32>
    %49 = arith.truncf %48 : vector<288x32xf32> to vector<288x32xbf16>
    %c0_39 = arith.constant 0 : index
    %c0_40 = arith.constant 0 : index
    %c0_41 = arith.constant 0 : index
    %50 = vector.load %arg6[%c0_39, %c0_40, %c0_41] : memref<1x288x32xbf16, #tpu.memory_space<vmem>>, vector<1x288x32xbf16>
    %51 = vector.shape_cast %50 : vector<1x288x32xbf16> to vector<288x32xbf16>
    %52 = vector.shape_cast %49 : vector<288x32xbf16> to vector<1x288x32xbf16>
    tpu.vector_store %arg6[%c0_39, %c0_40, %c0_41], %52 {strides = array<i32>} : memref<1x288x32xbf16, #tpu.memory_space<vmem>>, vector<1x288x32xbf16>,
    %c0_42 = arith.constant 0 : index
    %c0_43 = arith.constant 0 : index
    %53 = vector.load %arg5[%c0_42, %c0_43] : memref<288x1xf32, #tpu.memory_space<vmem>>, vector<288x1xf32>
    %54 = vector.broadcast %53 : vector<288x1xf32> to vector<288x32xf32>
    %55 = arith.mulf %48, %54 : vector<288x32xf32>
    %cst_44 = arith.constant dense<0.000000e+00> : vector<32xf32>
    %56 = vector.multi_reduction <add>, %55, %cst_44 [0] : vector<288x32xf32> to vector<32xf32>
    %57 = vector.shape_cast %56 : vector<32xf32> to vector<1x32xf32>
    %c0_45 = arith.constant 0 : index
    %c0_46 = arith.constant 0 : index
    %c0_47 = arith.constant 0 : index
    %58 = vector.load %arg7[%c0_45, %c0_46, %c0_47] : memref<1x1x32xf32, #tpu.memory_space<vmem>>, vector<1x1x32xf32>
    %59 = vector.shape_cast %58 : vector<1x1x32xf32> to vector<1x32xf32>
    %60 = vector.shape_cast %57 : vector<1x32xf32> to vector<1x1x32xf32>
    tpu.vector_store %arg7[%c0_45, %c0_46, %c0_47], %60 {strides = array<i32>} : memref<1x1x32xf32, #tpu.memory_space<vmem>>, vector<1x1x32xf32>,
    %61 = arith.mulf %55, %55 : vector<288x32xf32>
    %cst_48 = arith.constant dense<0.000000e+00> : vector<32xf32>
    %62 = vector.multi_reduction <add>, %61, %cst_48 [0] : vector<288x32xf32> to vector<32xf32>
    %63 = vector.shape_cast %62 : vector<32xf32> to vector<1x32xf32>
    %c0_49 = arith.constant 0 : index
    %c0_50 = arith.constant 0 : index
    %c0_51 = arith.constant 0 : index
    %64 = vector.load %arg8[%c0_49, %c0_50, %c0_51] : memref<1x1x32xf32, #tpu.memory_space<vmem>>, vector<1x1x32xf32>
    %65 = vector.shape_cast %64 : vector<1x1x32xf32> to vector<1x32xf32>
    %66 = vector.shape_cast %63 : vector<1x32xf32> to vector<1x1x32xf32>
    tpu.vector_store %arg8[%c0_49, %c0_50, %c0_51], %66 {strides = array<i32>} : memref<1x1x32xf32, #tpu.memory_space<vmem>>, vector<1x1x32xf32>,
    return
  }
  func.func @transform_0(%arg0: i32, %arg1: i32) -> (i32, i32, i32) {
    %c0_i32 = arith.constant 0 : i32
    %c0_i32_0 = arith.constant 0 : i32
    %c0_i32_1 = arith.constant 0 : i32
    return %arg1, %c0_i32, %c0_i32_0 : i32, i32, i32
  }
  func.func @transform_1(%arg0: i32, %arg1: i32) -> (i32, i32) {
    %c0_i32 = arith.constant 0 : i32
    %c0_i32_0 = arith.constant 0 : i32
    return %c0_i32, %arg0 : i32, i32
  }
  func.func @transform_2(%arg0: i32, %arg1: i32) -> (i32, i32) {
    %c0_i32 = arith.constant 0 : i32
    %c0_i32_0 = arith.constant 0 : i32
    return %c0_i32, %arg0 : i32, i32
  }
  func.func @transform_3(%arg0: i32, %arg1: i32) -> (i32, i32) {
    %c0_i32 = arith.constant 0 : i32
    %c0_i32_0 = arith.constant 0 : i32
    %c0_i32_1 = arith.constant 0 : i32
    return %c0_i32, %c0_i32_0 : i32, i32
  }
  func.func @transform_4(%arg0: i32, %arg1: i32) -> (i32, i32, i32) {
    %c0_i32 = arith.constant 0 : i32
    %c0_i32_0 = arith.constant 0 : i32
    return %arg1, %c0_i32, %arg0 : i32, i32, i32
  }
  func.func @transform_5(%arg0: i32, %arg1: i32) -> (i32, i32, i32) {
    %c0_i32 = arith.constant 0 : i32
    %c0_i32_0 = arith.constant 0 : i32
    return %arg1, %c0_i32, %arg0 : i32, i32, i32
  }
  func.func @transform_6(%arg0: i32, %arg1: i32) -> (i32, i32, i32) {
    %c0_i32 = arith.constant 0 : i32
    %c0_i32_0 = arith.constant 0 : i32
    return %arg1, %c0_i32, %arg0 : i32, i32, i32
  }
}

module attributes {stable_mosaic.version = 11 : i64} {
  func.func @_conv2d_taps_kernel(%arg0: i32, %arg1: i32, %arg2: memref<1x256x4xbf16, #tpu.memory_space<vmem>>, %arg3: memref<4x32xbf16, #tpu.memory_space<vmem>>, %arg4: memref<1x32xf32, #tpu.memory_space<vmem>>, %arg5: memref<256x1xf32, #tpu.memory_space<vmem>>, %arg6: memref<1x256x32xbf16, #tpu.memory_space<vmem>>, %arg7: memref<1x1x32xf32, #tpu.memory_space<vmem>>, %arg8: memref<1x1x32xf32, #tpu.memory_space<vmem>>) attributes {dimension_semantics = [#tpu.dimension_semantics<parallel>, #tpu.dimension_semantics<parallel>], iteration_bounds = array<i64: 1, 2>, scalar_prefetch = 0 : i64, scratch_operands = 0 : i64, tpu.core_type = #tpu.core_type<tc>, window_params = [{transform_indices = @transform_0, window_bounds = array<i64: 1, 256, 4>}, {transform_indices = @transform_1, window_bounds = array<i64: 4, 32>}, {transform_indices = @transform_2, window_bounds = array<i64: 1, 32>}, {pipeline_mode = #tpu.pipeline_mode<synchronous>, transform_indices = @transform_3, window_bounds = array<i64: 256, 1>}, {transform_indices = @transform_4, window_bounds = array<i64: 1, 256, 32>}, {transform_indices = @transform_5, window_bounds = array<i64: 1, 1, 32>}, {transform_indices = @transform_6, window_bounds = array<i64: 1, 1, 32>}]} {
    %cst = arith.constant 0.000000e+00 : f32
    %0 = vector.broadcast %cst : f32 to vector<256x32xf32>
    %c0 = arith.constant 0 : index
    %c0_0 = arith.constant 0 : index
    %c0_1 = arith.constant 0 : index
    %1 = vector.load %arg2[%c0, %c0_0, %c0_1] : memref<1x256x4xbf16, #tpu.memory_space<vmem>>, vector<1x256x4xbf16>
    %2 = vector.shape_cast %1 : vector<1x256x4xbf16> to vector<256x4xbf16>
    %c0_2 = arith.constant 0 : index
    %c0_3 = arith.constant 0 : index
    %3 = vector.load %arg3[%c0_2, %c0_3] : memref<4x32xbf16, #tpu.memory_space<vmem>>, vector<4x32xbf16>
    %cst_4 = arith.constant dense<0.000000e+00> : vector<256x32xf32>
    %4 = tpu.matmul %2, %3, %cst_4 {dimension_numbers = #tpu.dot_dimension_numbers<[1], [0], [0], [1], [0, 0, 1, 1], [], []>} : vector<256x4xbf16>, vector<4x32xbf16>, vector<256x32xf32> -> vector<256x32xf32>
    %5 = arith.addf %0, %4 : vector<256x32xf32>
    %c0_5 = arith.constant 0 : index
    %c0_6 = arith.constant 0 : index
    %6 = vector.load %arg4[%c0_5, %c0_6] : memref<1x32xf32, #tpu.memory_space<vmem>>, vector<1x32xf32>
    %7 = vector.broadcast %6 : vector<1x32xf32> to vector<256x32xf32>
    %8 = arith.addf %5, %7 : vector<256x32xf32>
    %9 = arith.truncf %8 : vector<256x32xf32> to vector<256x32xbf16>
    %c0_7 = arith.constant 0 : index
    %c0_8 = arith.constant 0 : index
    %c0_9 = arith.constant 0 : index
    %10 = vector.load %arg6[%c0_7, %c0_8, %c0_9] : memref<1x256x32xbf16, #tpu.memory_space<vmem>>, vector<1x256x32xbf16>
    %11 = vector.shape_cast %10 : vector<1x256x32xbf16> to vector<256x32xbf16>
    %12 = vector.shape_cast %9 : vector<256x32xbf16> to vector<1x256x32xbf16>
    tpu.vector_store %arg6[%c0_7, %c0_8, %c0_9], %12 {strides = array<i32>} : memref<1x256x32xbf16, #tpu.memory_space<vmem>>, vector<1x256x32xbf16>,
    %c0_10 = arith.constant 0 : index
    %c0_11 = arith.constant 0 : index
    %13 = vector.load %arg5[%c0_10, %c0_11] : memref<256x1xf32, #tpu.memory_space<vmem>>, vector<256x1xf32>
    %14 = vector.broadcast %13 : vector<256x1xf32> to vector<256x32xf32>
    %15 = arith.mulf %8, %14 : vector<256x32xf32>
    %cst_12 = arith.constant dense<0.000000e+00> : vector<32xf32>
    %16 = vector.multi_reduction <add>, %15, %cst_12 [0] : vector<256x32xf32> to vector<32xf32>
    %17 = vector.shape_cast %16 : vector<32xf32> to vector<1x32xf32>
    %c0_13 = arith.constant 0 : index
    %c0_14 = arith.constant 0 : index
    %c0_15 = arith.constant 0 : index
    %18 = vector.load %arg7[%c0_13, %c0_14, %c0_15] : memref<1x1x32xf32, #tpu.memory_space<vmem>>, vector<1x1x32xf32>
    %19 = vector.shape_cast %18 : vector<1x1x32xf32> to vector<1x32xf32>
    %20 = vector.shape_cast %17 : vector<1x32xf32> to vector<1x1x32xf32>
    tpu.vector_store %arg7[%c0_13, %c0_14, %c0_15], %20 {strides = array<i32>} : memref<1x1x32xf32, #tpu.memory_space<vmem>>, vector<1x1x32xf32>,
    %21 = arith.mulf %15, %15 : vector<256x32xf32>
    %cst_16 = arith.constant dense<0.000000e+00> : vector<32xf32>
    %22 = vector.multi_reduction <add>, %21, %cst_16 [0] : vector<256x32xf32> to vector<32xf32>
    %23 = vector.shape_cast %22 : vector<32xf32> to vector<1x32xf32>
    %c0_17 = arith.constant 0 : index
    %c0_18 = arith.constant 0 : index
    %c0_19 = arith.constant 0 : index
    %24 = vector.load %arg8[%c0_17, %c0_18, %c0_19] : memref<1x1x32xf32, #tpu.memory_space<vmem>>, vector<1x1x32xf32>
    %25 = vector.shape_cast %24 : vector<1x1x32xf32> to vector<1x32xf32>
    %26 = vector.shape_cast %23 : vector<1x32xf32> to vector<1x1x32xf32>
    tpu.vector_store %arg8[%c0_17, %c0_18, %c0_19], %26 {strides = array<i32>} : memref<1x1x32xf32, #tpu.memory_space<vmem>>, vector<1x1x32xf32>,
    return
  }
  func.func @transform_0(%arg0: i32, %arg1: i32) -> (i32, i32, i32) {
    %c0_i32 = arith.constant 0 : i32
    %c0_i32_0 = arith.constant 0 : i32
    %c0_i32_1 = arith.constant 0 : i32
    return %arg1, %c0_i32, %c0_i32_0 : i32, i32, i32
  }
  func.func @transform_1(%arg0: i32, %arg1: i32) -> (i32, i32) {
    %c0_i32 = arith.constant 0 : i32
    %c0_i32_0 = arith.constant 0 : i32
    return %c0_i32, %arg0 : i32, i32
  }
  func.func @transform_2(%arg0: i32, %arg1: i32) -> (i32, i32) {
    %c0_i32 = arith.constant 0 : i32
    %c0_i32_0 = arith.constant 0 : i32
    return %c0_i32, %arg0 : i32, i32
  }
  func.func @transform_3(%arg0: i32, %arg1: i32) -> (i32, i32) {
    %c0_i32 = arith.constant 0 : i32
    %c0_i32_0 = arith.constant 0 : i32
    %c0_i32_1 = arith.constant 0 : i32
    return %c0_i32, %c0_i32_0 : i32, i32
  }
  func.func @transform_4(%arg0: i32, %arg1: i32) -> (i32, i32, i32) {
    %c0_i32 = arith.constant 0 : i32
    %c0_i32_0 = arith.constant 0 : i32
    return %arg1, %c0_i32, %arg0 : i32, i32, i32
  }
  func.func @transform_5(%arg0: i32, %arg1: i32) -> (i32, i32, i32) {
    %c0_i32 = arith.constant 0 : i32
    %c0_i32_0 = arith.constant 0 : i32
    return %arg1, %c0_i32, %arg0 : i32, i32, i32
  }
  func.func @transform_6(%arg0: i32, %arg1: i32) -> (i32, i32, i32) {
    %c0_i32 = arith.constant 0 : i32
    %c0_i32_0 = arith.constant 0 : i32
    return %arg1, %c0_i32, %arg0 : i32, i32, i32
  }
}

</mosaic_0001>

<bundles_post_ra>
// kernel: tile.12
= control target key start
LH: loop header
LB: loop body
LE: loop exit
PB: predicated region body
PF: predicated region fallthrough
CT: control target
= control target key end

     0   :  { %s28_s0 = inlined_call_operand.vmem [shape: f32[18], index: 0, kind: input, shape index: {}]   ;;  %s29_s1 = inlined_call_operand.vmem [shape: f32[16,18], index: 1, kind: output, shape index: {}]  }
   0x1   :  { %v4_v0 = vld [vmem:[%s28_s0] ss:$0 sm:$0xff] }
   0x2   :  { %5 = vst [vmem:[%s29_s1] sm:$0xff] %v4_v0 }
   0x3   :  { %8 = vst [vmem:[%s29_s1 + $0x8] sm:$0xff] %v4_v0 }

// kernel: tile.0
= control target key start
LH: loop header
LB: loop body
LE: loop exit
PB: predicated region body
PF: predicated region fallthrough
CT: control target
= control target key end

     0   :  { %s607_s10 = smov 127   ;;  %s608_s11 = smov 126   ;;  %vm3_vm0 = vcmask 7168   ;;  %s1245_s0 = inlined_call_operand.vmem [shape: f32[16,18], index: 0, kind: input, shape index: {}]   ;;  %s1246_s1 = inlined_call_operand.vmem [shape: f32[288,1], index: 1, kind: output, shape index: {}]  }
   0x1   :  { %v637_v0 = vld.sshfl [vmem:[%s1245_s0] sm:$0xff pattern:$0xf6d4b290]   ;;  %s609_s12 = smov 125   ;;  %s610_s21 = smov 124  }
   0x2   :  { %v35_v1 = vld.sshfl [vmem:[%s1245_s0] sm:$0xff pattern:$0x6d4b2907]   ;;  %11 = vrot.lane.b32.xlu0 %v637_v0, %s607_s10  ;;  %v450_v3 = vld.sshfl [vmem:[%s1245_s0 + $0x1] sm:$0xff pattern:$0xd4b2907e]  }
   0x3   :  { %36 = vrot.lane.b32.xlu1 %v35_v1, %s608_s11  ;;  %61 = vrot.lane.b32.xlu2 %v35_v1, %s609_s12  ;;  %v441_v2 = vld.sshfl [vmem:[%s1245_s0 + $0x1] sm:$0xff pattern:$0x6d4b2907]   ;;  %s611_s22 = smov 123   ;;  %s612_s25 = smov 122  }
   0x4   :  { %v85_v4 = vld.sshfl [vmem:[%s1245_s0] sm:$0xff pattern:$0xd4b2907e]   ;;  %v468_v5 = vld.sshfl [vmem:[%s1245_s0 + $0x1] sm:$0xff pattern:$0x4b2907e5]  }
   0x5   :  { %v135_v6 = vld.sshfl [vmem:[%s1245_s0] sm:$0xff pattern:$0x4b2907e5]   ;;  %v495_v7 = vld.sshfl [vmem:[%s1245_s0 + $0x1] sm:$0xff pattern:$0xb2907e5c]  }
   0x6   :  { %s613_s28 = smov 121   ;;  %v210_v8 = vld.sshfl [vmem:[%s1245_s0] sm:$0xff pattern:$0xb2907e5c]   ;;  %s614_s2 = smov 120  }
   0x7   :  { %v504_v9 = vld.sshfl [vmem:[%s1245_s0 + $0x1] sm:$0xff pattern:$0x2907e5c3]   ;;  %s615_s5 = smov 119   ;;  %s618_s14 = smov 116  }
   0x8   :  { %v235_v10 = vld.sshfl [vmem:[%s1245_s0] sm:$0xff pattern:$0x2907e5c3]   ;;  %v522_v11 = vld.sshfl [vmem:[%s1245_s0 + $0x1] sm:$0xff pattern:$0x907e5c3a]  }
   0x9   :  { %v285_v12 = vld.sshfl [vmem:[%s1245_s0] sm:$0xff pattern:$0x907e5c3a]   ;;  %v549_v13 = vld.sshfl [vmem:[%s1245_s0 + $0x1] sm:$0xff pattern:$0x7e5c3a1]  }
   0xa   :  { %24 = vrot.lane.b32.xlu0 %v441_v2, %s607_s10  ;;  %s616_s10 = smov 118   ;;  %s619_s17 = smov 115   ;;  %v360_v14 = vld.sshfl [vmem:[%s1245_s0] sm:$0xff pattern:$0x7e5c3a1]  }
   0xb   :  { %49 = vrot.lane.b32.xlu1 %v450_v3, %s608_s11  ;;  %74 = vrot.lane.b32.xlu2 %v450_v3, %s609_s12  ;;  %s617_s11 = smov 117   ;;  %s620_s20 = smov 114   ;;  %v558_v15 = vld.sshfl [vmem:[%s1245_s0 + $0x2] sm:$0xff pattern:$0x6d4b2907]  }
   0xc   :  { %s621_s23 = smov 113   ;;  %s622_s24 = smov 112   ;;  %v2_v50 = vld [vmem:[%s1245_s0] sm:$0xff]   ;;  %v435_v51 = vld [vmem:[%s1245_s0 + $0x8] sm:$0xff]  }
   0xd   :  { %4 = vst.msk [vmem:[%s1246_s1] ss:$18 sm:$0xff] %vm3_vm0, %v2_v50  }
   0xe   :  { %436 = vst.msk [vmem:[%s1246_s1 + $0x90] ss:$18 sm:$0xff] %vm3_vm0, %v435_v51  }
  0x12   :  { %86 = vrot.lane.b32.xlu0 %v85_v4, %s610_s21 }
  0x13   :  { %99 = vrot.lane.b32.xlu1 %v468_v5, %s610_s21  ;;  %111 = vrot.lane.b32.xlu2 %v85_v4, %s611_s22 }
  0x1a   :  { %124 = vrot.lane.b32.xlu0 %v468_v5, %s611_s22 }
  0x1b   :  { %136 = vrot.lane.b32.xlu1 %v135_v6, %s612_s25  ;;  %149 = vrot.lane.b32.xlu2 %v495_v7, %s612_s25  ;;  %s623_s25 = smov 111  }
  0x22   :  { %161 = vrot.lane.b32.xlu0 %v135_v6, %s613_s28 }
  0x23   :  { %174 = vrot.lane.b32.xlu1 %v495_v7, %s613_s28  ;;  %186 = vrot.lane.b32.xlu2 %v210_v8, %s614_s2 }
  0x2a   :  { %199 = vrot.lane.b32.xlu0 %v504_v9, %s614_s2 }
  0x2b   :  { %211 = vrot.lane.b32.xlu1 %v210_v8, %s615_s5  ;;  %224 = vrot.lane.b32.xlu2 %v504_v9, %s615_s5 }
  0x32   :  { %236 = vrot.lane.b32.xlu0 %v235_v10, %s616_s10 }
  0x33   :  { %249 = vrot.lane.b32.xlu1 %v522_v11, %s616_s10  ;;  %261 = vrot.lane.b32.xlu2 %v235_v10, %s617_s11 }
  0x3a   :  { %274 = vrot.lane.b32.xlu0 %v522_v11, %s617_s11 }
  0x3b   :  { %286 = vrot.lane.b32.xlu1 %v285_v12, %s618_s14  ;;  %299 = vrot.lane.b32.xlu2 %v549_v13, %s618_s14 }
  0x42   :  { %311 = vrot.lane.b32.xlu0 %v285_v12, %s619_s17 }
  0x43   :  { %324 = vrot.lane.b32.xlu1 %v549_v13, %s619_s17  ;;  %336 = vrot.lane.b32.xlu2 %v360_v14, %s620_s20 }
  0x4a   :  { %349 = vrot.lane.b32.xlu0 %v558_v15, %s620_s20 }
  0x4b   :  { %361 = vrot.lane.b32.xlu1 %v360_v14, %s621_s23  ;;  %374 = vrot.lane.b32.xlu2 %v558_v15, %s621_s23 }
  0x52   :  { %387 = vrot.lane.b32.xlu0 %v441_v2, %s622_s24 }
  0x53   :  { %399 = vrot.lane.b32.xlu1 %v637_v0, %s622_s24  ;;  %412 = vrot.lane.b32.xlu2 %v441_v2, %s623_s25 }
  0x5a   :  { %424 = vrot.lane.b32.xlu0 %v637_v0, %s623_s25 }
  0x5d   :  { %v62_v16 = vpop.permute.xlu2 %61  }
  0x5e   :  { %455 = vst.msk [vmem:[%s1246_s1 + $0x81] ss:$-126 sm:$0x3] %vm3_vm0, %v62_v16  }
  0x5f   :  { %456 = vst.msk [vmem:[%s1246_s1 + $0x1a1] ss:$-126 sm:$0xc] %vm3_vm0, %v62_v16  }
  0x60   :  { %457 = vst.msk [vmem:[%s1246_s1 + $0x2c1] ss:$-126 sm:$0x30] %vm3_vm0, %v62_v16  }
  0x61   :  { %458 = vst.msk [vmem:[%s1246_s1 + $0x3e1] ss:$-126 sm:$0xc0] %vm3_vm0, %v62_v16  }
  0x65   :  { %v75_v17 = vpop.permute.xlu2 %74  }
  0x66   :  { %460 = vst.msk [vmem:[%s1246_s1 + $0x111] ss:$-126 sm:$0x7] %vm3_vm0, %v75_v17  }
  0x67   :  { %461 = vst.msk [vmem:[%s1246_s1 + $0x231] ss:$-126 sm:$0x18] %vm3_vm0, %v75_v17  }
  0x68   :  { %462 = vst.msk [vmem:[%s1246_s1 + $0x351] ss:$-126 sm:$0x60] %vm3_vm0, %v75_v17  }
  0x69   :  { %463 = vst.msk [vmem:[%s1246_s1 + $0xf8] sm:$0x80] %vm3_vm0, %v75_v17  }
  0x6d   :  { %v112_v18 = vpop.permute.xlu2 %111  }
  0x6e   :  { %473 = vst.msk [vmem:[%s1246_s1 + $0x101] ss:$-126 sm:$0x7] %vm3_vm0, %v112_v18  }
  0x6f   :  { %474 = vst.msk [vmem:[%s1246_s1 + $0x221] ss:$-126 sm:$0x18] %vm3_vm0, %v112_v18  }
  0x70   :  { %475 = vst.msk [vmem:[%s1246_s1 + $0x341] ss:$-126 sm:$0x60] %vm3_vm0, %v112_v18  }
  0x71   :  { %476 = vst.msk [vmem:[%s1246_s1 + $0xe8] sm:$0x80] %vm3_vm0, %v112_v18  }
  0x74   :  { %v12_v19 = vpop.permute.xlu0 %11  }
  0x75   :  { %v37_v20 = vpop.permute.xlu1 %36   ;;  %437 = vst.msk [vmem:[%s1246_s1 + $0x1] ss:$162 sm:$0x3] %vm3_vm0, %v12_v19   ;;  %v150_v21 = vpop.permute.xlu2 %149  }
  0x76   :  { %438 = vst.msk [vmem:[%s1246_s1 - $0x11f] ss:$162 sm:$0xc] %vm3_vm0, %v12_v19  }
  0x77   :  { %439 = vst.msk [vmem:[%s1246_s1 - $0x23f] ss:$162 sm:$0x30] %vm3_vm0, %v12_v19  }
  0x78   :  { %440 = vst.msk [vmem:[%s1246_s1 - $0x35f] ss:$162 sm:$0xc0] %vm3_vm0, %v12_v19  }
  0x79   :  { %446 = vst.msk [vmem:[%s1246_s1 + $0x80] ss:$-126 sm:$0x3] %vm3_vm0, %v37_v20  }
  0x7a   :  { %447 = vst.msk [vmem:[%s1246_s1 + $0x1a0] ss:$-126 sm:$0xc] %vm3_vm0, %v37_v20  }
  0x7b   :  { %448 = vst.msk [vmem:[%s1246_s1 + $0x2c0] ss:$-126 sm:$0x30] %vm3_vm0, %v37_v20  }
  0x7c   :  { %449 = vst.msk [vmem:[%s1246_s1 + $0x3e0] ss:$-126 sm:$0xc0] %vm3_vm0, %v37_v20   ;;  %v25_v22 = vpop.permute.xlu0 %24  }
  0x7d   :  { %v50_v23 = vpop.permute.xlu1 %49   ;;  %442 = vst.msk [vmem:[%s1246_s1 + $0x91] ss:$-126 sm:$0x3] %vm3_vm0, %v25_v22   ;;  %v187_v24 = vpop.permute.xlu2 %186  }
  0x7e   :  { %443 = vst.msk [vmem:[%s1246_s1 + $0x1b1] ss:$-126 sm:$0xc] %vm3_vm0, %v25_v22  }
  0x7f   :  { %444 = vst.msk [vmem:[%s1246_s1 + $0x2d1] ss:$-126 sm:$0x30] %vm3_vm0, %v25_v22  }
  0x80   :  { %445 = vst.msk [vmem:[%s1246_s1 + $0x3f1] ss:$-126 sm:$0xc0] %vm3_vm0, %v25_v22  }
  0x81   :  { %451 = vst.msk [vmem:[%s1246_s1 + $0x110] ss:$-126 sm:$0x7] %vm3_vm0, %v50_v23  }
  0x82   :  { %452 = vst.msk [vmem:[%s1246_s1 + $0x230] ss:$-126 sm:$0x18] %vm3_vm0, %v50_v23  }
  0x83   :  { %453 = vst.msk [vmem:[%s1246_s1 + $0x350] ss:$-126 sm:$0x60] %vm3_vm0, %v50_v23  }
  0x84   :  { %454 = vst.msk [vmem:[%s1246_s1 + $0xf7] sm:$0x80] %vm3_vm0, %v50_v23   ;;  %v87_v25 = vpop.permute.xlu0 %86  }
  0x85   :  { %v100_v26 = vpop.permute.xlu1 %99   ;;  %464 = vst.msk [vmem:[%s1246_s1 + $0x100] ss:$-126 sm:$0x7] %vm3_vm0, %v87_v25   ;;  %v225_v27 = vpop.permute.xlu2 %224  }
  0x86   :  { %465 = vst.msk [vmem:[%s1246_s1 + $0x220] ss:$-126 sm:$0x18] %vm3_vm0, %v87_v25  }
  0x87   :  { %466 = vst.msk [vmem:[%s1246_s1 + $0x340] ss:$-126 sm:$0x60] %vm3_vm0, %v87_v25  }
  0x88   :  { %467 = vst.msk [vmem:[%s1246_s1 + $0xe7] sm:$0x80] %vm3_vm0, %v87_v25  }
  0x89   :  { %469 = vst.msk [vmem:[%s1246_s1 + $0x70] ss:$162 sm:$0x3] %vm3_vm0, %v100_v26  }
  0x8a   :  { %470 = vst.msk [vmem:[%s1246_s1 + $0x190] ss:$-126 sm:$0xc] %vm3_vm0, %v100_v26  }
  0x8b   :  { %471 = vst.msk [vmem:[%s1246_s1 + $0x2b0] ss:$-126 sm:$0x30] %vm3_vm0, %v100_v26  }
  0x8c   :  { %472 = vst.msk [vmem:[%s1246_s1 + $0x3d0] ss:$-126 sm:$0xc0] %vm3_vm0, %v100_v26   ;;  %v125_v28 = vpop.permute.xlu0 %124  }
  0x8d   :  { %v137_v29 = vpop.permute.xlu1 %136   ;;  %478 = vst.msk [vmem:[%s1246_s1 + $0x71] ss:$162 sm:$0x3] %vm3_vm0, %v125_v28   ;;  %v262_v32 = vpop.permute.xlu2 %261  }
  0x8e   :  { %479 = vst.msk [vmem:[%s1246_s1 + $0x191] ss:$-126 sm:$0xc] %vm3_vm0, %v125_v28  }
  0x8f   :  { %480 = vst.msk [vmem:[%s1246_s1 + $0x2b1] ss:$-126 sm:$0x30] %vm3_vm0, %v125_v28  }
  0x90   :  { %481 = vst.msk [vmem:[%s1246_s1 + $0x3d1] ss:$-126 sm:$0xc0] %vm3_vm0, %v125_v28  }
  0x91   :  { %487 = vst.msk [vmem:[%s1246_s1 + $0xf0] ss:$-126 sm:$0x3] %vm3_vm0, %v150_v21  }
  0x92   :  { %488 = vst.msk [vmem:[%s1246_s1 + $0x210] ss:$-126 sm:$0x1c] %vm3_vm0, %v150_v21  }
  0x93   :  { %489 = vst.msk [vmem:[%s1246_s1 + $0x330] ss:$-126 sm:$0x60] %vm3_vm0, %v150_v21  }
  0x94   :  { %490 = vst.msk [vmem:[%s1246_s1 + $0xd7] sm:$0x80] %vm3_vm0, %v150_v21   ;;  %v162_v30 = vpop.permute.xlu0 %161  }
  0x95   :  { %v175_v31 = vpop.permute.xlu1 %174   ;;  %482 = vst.msk [vmem:[%s1246_s1 + $0x60] ss:$162 sm:$0x3] %vm3_vm0, %v137_v29   ;;  %v300_v35 = vpop.permute.xlu2 %299  }
  0x96   :  { %483 = vst.msk [vmem:[%s1246_s1 + $0x180] ss:$-126 sm:$0xc] %vm3_vm0, %v137_v29  }
  0x97   :  { %484 = vst.msk [vmem:[%s1246_s1 + $0x2a0] ss:$-126 sm:$0x30] %vm3_vm0, %v137_v29  }
  0x98   :  { %485 = vst.msk [vmem:[%s1246_s1 + $0x3c0] ss:$-126 sm:$0xc0] %vm3_vm0, %v137_v29  }
  0x99   :  { %491 = vst.msk [vmem:[%s1246_s1 + $0x61] ss:$162 sm:$0x3] %vm3_vm0, %v162_v30  }
  0x9a   :  { %492 = vst.msk [vmem:[%s1246_s1 + $0x181] ss:$-126 sm:$0xc] %vm3_vm0, %v162_v30  }
  0x9b   :  { %493 = vst.msk [vmem:[%s1246_s1 + $0x2a1] ss:$-126 sm:$0x30] %vm3_vm0, %v162_v30  }
  0x9c   :  { %494 = vst.msk [vmem:[%s1246_s1 + $0x3c1] ss:$-126 sm:$0xc0] %vm3_vm0, %v162_v30   ;;  %v200_v33 = vpop.permute.xlu0 %199  }
  0x9d   :  { %v212_v34 = vpop.permute.xlu1 %211   ;;  %500 = vst.msk [vmem:[%s1246_s1 + $0xe0] ss:$-126 sm:$0x3] %vm3_vm0, %v187_v24   ;;  %v337_v40 = vpop.permute.xlu2 %336  }
  0x9e   :  { %501 = vst.msk [vmem:[%s1246_s1 + $0x200] ss:$-126 sm:$0x1c] %vm3_vm0, %v187_v24  }
  0x9f   :  { %502 = vst.msk [vmem:[%s1246_s1 + $0x320] ss:$-126 sm:$0x60] %vm3_vm0, %v187_v24  }
  0xa0   :  { %503 = vst.msk [vmem:[%s1246_s1 + $0xc7] sm:$0x80] %vm3_vm0, %v187_v24  }
  0xa1   :  { %496 = vst.msk [vmem:[%s1246_s1 + $0xf1] ss:$-126 sm:$0x3] %vm3_vm0, %v175_v31  }
  0xa2   :  { %497 = vst.msk [vmem:[%s1246_s1 + $0x211] ss:$-126 sm:$0x1c] %vm3_vm0, %v175_v31  }
  0xa3   :  { %498 = vst.msk [vmem:[%s1246_s1 + $0x331] ss:$-126 sm:$0x60] %vm3_vm0, %v175_v31  }
  0xa4   :  { %499 = vst.msk [vmem:[%s1246_s1 + $0xd8] sm:$0x80] %vm3_vm0, %v175_v31   ;;  %v237_v36 = vpop.permute.xlu0 %236  }
  0xa5   :  { %v250_v37 = vpop.permute.xlu1 %249   ;;  %505 = vst.msk [vmem:[%s1246_s1 + $0x50] ss:$162 sm:$0x3] %vm3_vm0, %v200_v33   ;;  %v375_v43 = vpop.permute.xlu2 %374  }
  0xa6   :  { %506 = vst.msk [vmem:[%s1246_s1 - $0xd0] ss:$162 sm:$0xc] %vm3_vm0, %v200_v33  }
  0xa7   :  { %507 = vst.msk [vmem:[%s1246_s1 + $0x290] ss:$-126 sm:$0x30] %vm3_vm0, %v200_v33  }
  0xa8   :  { %508 = vst.msk [vmem:[%s1246_s1 + $0x3b0] ss:$-126 sm:$0xc0] %vm3_vm0, %v200_v33  }
  0xa9   :  { %514 = vst.msk [vmem:[%s1246_s1 + $0x51] ss:$162 sm:$0x3] %vm3_vm0, %v225_v27  }
  0xaa   :  { %515 = vst.msk [vmem:[%s1246_s1 - $0xcf] ss:$162 sm:$0xc] %vm3_vm0, %v225_v27  }
  0xab   :  { %516 = vst.msk [vmem:[%s1246_s1 + $0x291] ss:$-126 sm:$0x30] %vm3_vm0, %v225_v27  }
  0xac   :  { %517 = vst.msk [vmem:[%s1246_s1 + $0x3b1] ss:$-126 sm:$0xc0] %vm3_vm0, %v225_v27   ;;  %v275_v38 = vpop.permute.xlu0 %274  }
  0xad   :  { %v287_v39 = vpop.permute.xlu1 %286   ;;  %509 = vst.msk [vmem:[%s1246_s1 + $0xe1] ss:$-126 sm:$0x3] %vm3_vm0, %v212_v34   ;;  %v413_v47 = vpop.permute.xlu2 %412  }
  0xae   :  { %510 = vst.msk [vmem:[%s1246_s1 + $0x201] ss:$-126 sm:$0x1c] %vm3_vm0, %v212_v34  }
  0xaf   :  { %511 = vst.msk [vmem:[%s1246_s1 + $0x321] ss:$-126 sm:$0x60] %vm3_vm0, %v212_v34  }
  0xb0   :  { %512 = vst.msk [vmem:[%s1246_s1 + $0xc8] sm:$0x80] %vm3_vm0, %v212_v34  }
  0xb1   :  { %518 = vst.msk [vmem:[%s1246_s1 + $0x40] ss:$162 sm:$0x3] %vm3_vm0, %v237_v36  }
  0xb2   :  { %519 = vst.msk [vmem:[%s1246_s1 - $0xe0] ss:$162 sm:$0xc] %vm3_vm0, %v237_v36  }
  0xb3   :  { %520 = vst.msk [vmem:[%s1246_s1 + $0x280] ss:$-126 sm:$0x30] %vm3_vm0, %v237_v36  }
  0xb4   :  { %521 = vst.msk [vmem:[%s1246_s1 + $0x3a0] ss:$-126 sm:$0xc0] %vm3_vm0, %v237_v36   ;;  %v312_v41 = vpop.permute.xlu0 %311  }
  0xb5   :  { %v325_v42 = vpop.permute.xlu1 %324   ;;  %527 = vst.msk [vmem:[%s1246_s1 + $0x41] ss:$162 sm:$0x3] %vm3_vm0, %v262_v32  }
  0xb6   :  { %528 = vst.msk [vmem:[%s1246_s1 - $0xdf] ss:$162 sm:$0xc] %vm3_vm0, %v262_v32  }
  0xb7   :  { %529 = vst.msk [vmem:[%s1246_s1 + $0x281] ss:$-126 sm:$0x30] %vm3_vm0, %v262_v32  }
  0xb8   :  { %530 = vst.msk [vmem:[%s1246_s1 + $0x3a1] ss:$-126 sm:$0xc0] %vm3_vm0, %v262_v32  }
  0xb9   :  { %523 = vst.msk [vmem:[%s1246_s1 + $0xd0] ss:$-126 sm:$0x3] %vm3_vm0, %v250_v37  }
  0xba   :  { %524 = vst.msk [vmem:[%s1246_s1 + $0x1f0] ss:$-126 sm:$0xc] %vm3_vm0, %v250_v37  }
  0xbb   :  { %525 = vst.msk [vmem:[%s1246_s1 + $0x310] ss:$-126 sm:$0x70] %vm3_vm0, %v250_v37  }
  0xbc   :  { %526 = vst.msk [vmem:[%s1246_s1 + $0xb7] sm:$0x80] %vm3_vm0, %v250_v37   ;;  %v350_v44 = vpop.permute.xlu0 %349  }
  0xbd   :  { %v362_v45 = vpop.permute.xlu1 %361   ;;  %532 = vst.msk [vmem:[%s1246_s1 + $0xd1] ss:$-126 sm:$0x3] %vm3_vm0, %v275_v38  }
  0xbe   :  { %533 = vst.msk [vmem:[%s1246_s1 + $0x1f1] ss:$-126 sm:$0xc] %vm3_vm0, %v275_v38  }
  0xbf   :  { %534 = vst.msk [vmem:[%s1246_s1 + $0x311] ss:$-126 sm:$0x70] %vm3_vm0, %v275_v38  }
  0xc0   :  { %535 = vst.msk [vmem:[%s1246_s1 + $0xb8] sm:$0x80] %vm3_vm0, %v275_v38  }
  0xc1   :  { %541 = vst.msk [vmem:[%s1246_s1 + $0x30] ss:$162 sm:$0x3] %vm3_vm0, %v300_v35  }
  0xc2   :  { %542 = vst.msk [vmem:[%s1246_s1 - $0xf0] ss:$162 sm:$0xc] %vm3_vm0, %v300_v35  }
  0xc3   :  { %543 = vst.msk [vmem:[%s1246_s1 - $0x210] ss:$162 sm:$0x30] %vm3_vm0, %v300_v35  }
  0xc4   :  { %544 = vst.msk [vmem:[%s1246_s1 + $0x390] ss:$-126 sm:$0xc0] %vm3_vm0, %v300_v35   ;;  %v388_v46 = vpop.permute.xlu0 %387  }
  0xc5   :  { %536 = vst.msk [vmem:[%s1246_s1 + $0xc0] ss:$-126 sm:$0x3] %vm3_vm0, %v287_v39   ;;  %v400_v48 = vpop.permute.xlu1 %399  }
  0xc6   :  { %537 = vst.msk [vmem:[%s1246_s1 + $0x1e0] ss:$-126 sm:$0xc] %vm3_vm0, %v287_v39  }
  0xc7   :  { %538 = vst.msk [vmem:[%s1246_s1 + $0x300] ss:$-126 sm:$0x70] %vm3_vm0, %v287_v39  }
  0xc8   :  { %539 = vst.msk [vmem:[%s1246_s1 + $0xa7] sm:$0x80] %vm3_vm0, %v287_v39  }
  0xc9   :  { %545 = vst.msk [vmem:[%s1246_s1 + $0xc1] ss:$-126 sm:$0x3] %vm3_vm0, %v312_v41  }
  0xca   :  { %546 = vst.msk [vmem:[%s1246_s1 + $0x1e1] ss:$-126 sm:$0xc] %vm3_vm0, %v312_v41  }
  0xcb   :  { %547 = vst.msk [vmem:[%s1246_s1 + $0x301] ss:$-126 sm:$0x70] %vm3_vm0, %v312_v41  }
  0xcc   :  { %548 = vst.msk [vmem:[%s1246_s1 + $0xa8] sm:$0x80] %vm3_vm0, %v312_v41   ;;  %v425_v49 = vpop.permute.xlu0 %424  }
  0xcd   :  { %554 = vst.msk [vmem:[%s1246_s1 + $0x20] ss:$162 sm:$0x3] %vm3_vm0, %v337_v40  }
  0xce   :  { %555 = vst.msk [vmem:[%s1246_s1 - $0x100] ss:$162 sm:$0xc] %vm3_vm0, %v337_v40  }
  0xcf   :  { %556 = vst.msk [vmem:[%s1246_s1 - $0x220] ss:$162 sm:$0x30] %vm3_vm0, %v337_v40  }
  0xd0   :  { %557 = vst.msk [vmem:[%s1246_s1 + $0x380] ss:$-126 sm:$0xc0] %vm3_vm0, %v337_v40  }
  0xd1   :  { %550 = vst.msk [vmem:[%s1246_s1 + $0x31] ss:$162 sm:$0x3] %vm3_vm0, %v325_v42  }
  0xd2   :  { %551 = vst.msk [vmem:[%s1246_s1 - $0xef] ss:$162 sm:$0xc] %vm3_vm0, %v325_v42  }
  0xd3   :  { %552 = vst.msk [vmem:[%s1246_s1 - $0x20f] ss:$162 sm:$0x30] %vm3_vm0, %v325_v42  }
  0xd4   :  { %553 = vst.msk [vmem:[%s1246_s1 + $0x391] ss:$-126 sm:$0xc0] %vm3_vm0, %v325_v42  }
  0xd5   :  { %559 = vst.msk [vmem:[%s1246_s1 + $0xb0] ss:$-126 sm:$0x3] %vm3_vm0, %v350_v44  }
  0xd6   :  { %560 = vst.msk [vmem:[%s1246_s1 + $0x1d0] ss:$-126 sm:$0xc] %vm3_vm0, %v350_v44  }
  0xd7   :  { %561 = vst.msk [vmem:[%s1246_s1 + $0x2f0] ss:$-126 sm:$0x30] %vm3_vm0, %v350_v44  }
  0xd8   :  { %562 = vst.msk [vmem:[%s1246_s1 + $0x410] ss:$-126 sm:$0xc0] %vm3_vm0, %v350_v44  }
  0xd9   :  { %568 = vst.msk [vmem:[%s1246_s1 + $0xb1] ss:$-126 sm:$0x3] %vm3_vm0, %v375_v43  }
  0xda   :  { %569 = vst.msk [vmem:[%s1246_s1 + $0x1d1] ss:$-126 sm:$0xc] %vm3_vm0, %v375_v43  }
  0xdb   :  { %570 = vst.msk [vmem:[%s1246_s1 + $0x2f1] ss:$-126 sm:$0x30] %vm3_vm0, %v375_v43  }
  0xdc   :  { %571 = vst.msk [vmem:[%s1246_s1 + $0x411] ss:$-126 sm:$0xc0] %vm3_vm0, %v375_v43  }
  0xdd   :  { %563 = vst.msk [vmem:[%s1246_s1 + $0x21] ss:$162 sm:$0x3] %vm3_vm0, %v362_v45  }
  0xde   :  { %564 = vst.msk [vmem:[%s1246_s1 - $0xff] ss:$162 sm:$0xc] %vm3_vm0, %v362_v45  }
  0xdf   :  { %565 = vst.msk [vmem:[%s1246_s1 - $0x21f] ss:$162 sm:$0x30] %vm3_vm0, %v362_v45  }
  0xe0   :  { %566 = vst.msk [vmem:[%s1246_s1 + $0x381] ss:$-126 sm:$0xc0] %vm3_vm0, %v362_v45  }
  0xe1   :  { %573 = vst.msk [vmem:[%s1246_s1 + $0xa0] ss:$-126 sm:$0x3] %vm3_vm0, %v388_v46  }
  0xe2   :  { %574 = vst.msk [vmem:[%s1246_s1 + $0x1c0] ss:$-126 sm:$0xc] %vm3_vm0, %v388_v46  }
  0xe3   :  { %575 = vst.msk [vmem:[%s1246_s1 + $0x2e0] ss:$-126 sm:$0x30] %vm3_vm0, %v388_v46  }
  0xe4   :  { %576 = vst.msk [vmem:[%s1246_s1 + $0x400] ss:$-126 sm:$0xc0] %vm3_vm0, %v388_v46  }
  0xe5   :  { %582 = vst.msk [vmem:[%s1246_s1 + $0xa1] ss:$-126 sm:$0x3] %vm3_vm0, %v413_v47  }
  0xe6   :  { %583 = vst.msk [vmem:[%s1246_s1 + $0x1c1] ss:$-126 sm:$0xc] %vm3_vm0, %v413_v47  }
  0xe7   :  { %584 = vst.msk [vmem:[%s1246_s1 + $0x2e1] ss:$-126 sm:$0x30] %vm3_vm0, %v413_v47  }
  0xe8   :  { %585 = vst.msk [vmem:[%s1246_s1 + $0x401] ss:$-126 sm:$0xc0] %vm3_vm0, %v413_v47  }
  0xe9   :  { %577 = vst.msk [vmem:[%s1246_s1 + $0x10] ss:$162 sm:$0x3] %vm3_vm0, %v400_v48  }
  0xea   :  { %578 = vst.msk [vmem:[%s1246_s1 - $0x110] ss:$162 sm:$0xc] %vm3_vm0, %v400_v48  }
  0xeb   :  { %579 = vst.msk [vmem:[%s1246_s1 - $0x230] ss:$162 sm:$0x30] %vm3_vm0, %v400_v48  }
  0xec   :  { %580 = vst.msk [vmem:[%s1246_s1 - $0x350] ss:$162 sm:$0xc0] %vm3_vm0, %v400_v48  }
  0xed   :  { %586 = vst.msk [vmem:[%s1246_s1 + $0x11] ss:$162 sm:$0x3] %vm3_vm0, %v425_v49  }
  0xee   :  { %587 = vst.msk [vmem:[%s1246_s1 - $0x10f] ss:$162 sm:$0xc] %vm3_vm0, %v425_v49  }
  0xef   :  { %588 = vst.msk [vmem:[%s1246_s1 - $0x22f] ss:$162 sm:$0x30] %vm3_vm0, %v425_v49  }
  0xf0   :  { %589 = vst.msk [vmem:[%s1246_s1 - $0x34f] ss:$162 sm:$0xc0] %vm3_vm0, %v425_v49  }

// kernel: tile.9
= control target key start
LH: loop header
LB: loop body
LE: loop exit
PB: predicated region body
PF: predicated region fallthrough
CT: control target
= control target key end

     0   :  { %s206_s0 = inlined_call_operand.<no memory space> [shape: f32[], index: 0, kind: input, shape index: {}]   ;;  %s207_s1 = inlined_call_operand.vmem [shape: f32[256,1], index: 1, kind: output, shape index: {}]  }
   0x1   :  { %v2_v0 = vstv %s206_s0 }
   0x2   :  { %3 = vst [vmem:[%s207_s1] sm:$0xff] %v2_v0 }
   0x3   :  { %66 = vst [vmem:[%s207_s1 + $0x8] sm:$0xff] %v2_v0 }
   0x4   :  { %67 = vst [vmem:[%s207_s1 + $0x10] sm:$0xff] %v2_v0 }
   0x5   :  { %68 = vst [vmem:[%s207_s1 + $0x18] sm:$0xff] %v2_v0 }
   0x6   :  { %69 = vst [vmem:[%s207_s1 + $0x20] sm:$0xff] %v2_v0 }
   0x7   :  { %70 = vst [vmem:[%s207_s1 + $0x28] sm:$0xff] %v2_v0 }
   0x8   :  { %71 = vst [vmem:[%s207_s1 + $0x30] sm:$0xff] %v2_v0 }
   0x9   :  { %72 = vst [vmem:[%s207_s1 + $0x38] sm:$0xff] %v2_v0 }
   0xa   :  { %73 = vst [vmem:[%s207_s1 + $0x40] sm:$0xff] %v2_v0 }
   0xb   :  { %74 = vst [vmem:[%s207_s1 + $0x48] sm:$0xff] %v2_v0 }
   0xc   :  { %75 = vst [vmem:[%s207_s1 + $0x50] sm:$0xff] %v2_v0 }
   0xd   :  { %76 = vst [vmem:[%s207_s1 + $0x58] sm:$0xff] %v2_v0 }
   0xe   :  { %77 = vst [vmem:[%s207_s1 + $0x60] sm:$0xff] %v2_v0 }
   0xf   :  { %78 = vst [vmem:[%s207_s1 + $0x68] sm:$0xff] %v2_v0 }
  0x10   :  { %79 = vst [vmem:[%s207_s1 + $0x70] sm:$0xff] %v2_v0 }
  0x11   :  { %80 = vst [vmem:[%s207_s1 + $0x78] sm:$0xff] %v2_v0 }
  0x12   :  { %81 = vst [vmem:[%s207_s1 + $0x80] sm:$0xff] %v2_v0 }
  0x13   :  { %82 = vst [vmem:[%s207_s1 + $0x88] sm:$0xff] %v2_v0 }
  0x14   :  { %83 = vst [vmem:[%s207_s1 + $0x90] sm:$0xff] %v2_v0 }
  0x15   :  { %84 = vst [vmem:[%s207_s1 + $0x98] sm:$0xff] %v2_v0 }
  0x16   :  { %85 = vst [vmem:[%s207_s1 + $0xa0] sm:$0xff] %v2_v0 }
  0x17   :  { %86 = vst [vmem:[%s207_s1 + $0xa8] sm:$0xff] %v2_v0 }
  0x18   :  { %87 = vst [vmem:[%s207_s1 + $0xb0] sm:$0xff] %v2_v0 }
  0x19   :  { %88 = vst [vmem:[%s207_s1 + $0xb8] sm:$0xff] %v2_v0 }
  0x1a   :  { %89 = vst [vmem:[%s207_s1 + $0xc0] sm:$0xff] %v2_v0 }
  0x1b   :  { %90 = vst [vmem:[%s207_s1 + $0xc8] sm:$0xff] %v2_v0 }
  0x1c   :  { %91 = vst [vmem:[%s207_s1 + $0xd0] sm:$0xff] %v2_v0 }
  0x1d   :  { %92 = vst [vmem:[%s207_s1 + $0xd8] sm:$0xff] %v2_v0 }
  0x1e   :  { %93 = vst [vmem:[%s207_s1 + $0xe0] sm:$0xff] %v2_v0 }
  0x1f   :  { %94 = vst [vmem:[%s207_s1 + $0xe8] sm:$0xff] %v2_v0 }
  0x20   :  { %95 = vst [vmem:[%s207_s1 + $0xf0] sm:$0xff] %v2_v0 }
  0x21   :  { %96 = vst [vmem:[%s207_s1 + $0xf8] sm:$0xff] %v2_v0 }

// kernel: cseblock_fwd.5
= control target key start
LH: loop header
LB: loop body
LE: loop exit
PB: predicated region body
PF: predicated region fallthrough
CT: control target
= control target key end

     0   :  { %s1437_s21 = smov 0   ;;  %s1439_s22 = smov 0   ;;  %s1975_s0 = inlined_call_operand.vmem [shape: bf16[2,256,4], index: 0, kind: input, shape index: {}]   ;;  %s1976_s1 = inlined_call_operand.vmem [shape: bf16[4,32], index: 1, kind: input, shape index: {}]   ;;  %s1977_s2 = inlined_call_operand.vmem [shape: f32[1,32], index: 2, kind: input, shape index: {}]   ;;  %s1978_s3 = inlined_call_operand.vmem [shape: f32[256,1], index: 3, kind: input, shape index: {}]   ;;  %s1979_s4 = inlined_call_operand.vmem [shape: bf16[2,256,32], index: 4, kind: output, shape index: {0}]   ;;  %s1980_s5 = inlined_call_operand.vmem [shape: f32[2,1,32], index: 5, kind: output, shape index: {1}]   ;;  %s1981_s6 = inlined_call_operand.vmem [shape: f32[2,1,32], index: 6, kind: output, shape index: {2}]  }
   0x1   :  { %s1441_s23 = smov 0  }
   0x2 LB: > { %s26_s24 = sadd.s32 1, %s1395_s22  ;;  %p1240_p0 = scmp.ge.s32.totalorder %s1399_s23, 1  ;;  %s1399_s23 = sphi %s1441_s23, %s17_s23   ;;  %s1395_s22 = sphi %s1439_s22, %s1983_s22   ;;  %s1391_s21 = sphi %s1437_s21, %s1982_s21  }
   0x3   : > { %p27_p1 = scmp.ge.s32.totalorder %s26_s24, 2  ;;  %p252_p2 = scmp.lt.s32.totalorder %s1399_s23, 3 }
   0x5   : > { %s1985_s24 = smov (%p27_p1, %s26_s24), 0  ;;  %p253_p3 = pnand %p1240_p0, %p252_p2 }
   0x6   : > { %p304_p4 = scmp.lt.s32.totalorder (!%p253_p3), %s1391_s21, 1 }
   0x7   : > { %256 = sbr.rel (%p253_p3) target bundleno = 271 (0x10f), region = 36 }
   0xc   : > { %v665_v0 = vld [vmem:[%s1978_s3 + $0x20] sm:$0xff]  ;;  %v663_v1 = vld [vmem:[%s1978_s3 + $0x10] sm:$0xff]  ;;  %vm503_vm0 = vcmask 1041408   ;;  %v1401_v3 = vmov 0   ;;  %s1987_s21 = smov (!%p304_p4, %s1391_s21), 1  ;;  %vm454_vm1 = vcmask 31744  }
   0xd   : > { %v661_v2 = vld [vmem:[%s1978_s3] sm:$0xff]  ;;  %1375 = vset.pattern.permute.xlu2 %v1401_v3  ;;  %1374 = vset.pattern.permute.xlu1 %v1401_v3  ;;  %s1327_s9 = sshll.u32 %s1987_s21, 7  ;;  %v666_v10 = vld [vmem:[%s1978_s3 + $0x28] sm:$0xff]  ;;  %v664_v11 = vld [vmem:[%s1978_s3 + $0x18] sm:$0xff]  ;;  %vm628_vm2 = vcmask 257024   ;;  %vm885_vm3 = vcmask 261120   ;;  %s329_s25 = scalar_lea.vmem %s1980_s5, %s1987_s21 }
   0xe   : > { %v369_v4 = vld [vmem:[%s1976_s1] sm:$0x3]  ;;  %1373 = vset.pattern.permute.xlu0 %v1401_v3  ;;  %715 = vperm.xlu2 %1375, %v665_v0   ;;  %s1475_s12 = scalar_lea.vmem %s1975_s0, %s1327_s9  ;;  %v662_v12 = vld [vmem:[%s1978_s3 + $0x8] sm:$0xff]  ;;  %v668_v14 = vld [vmem:[%s1978_s3 + $0x38] sm:$0xff]  ;;  %s1614_s19 = scalar_lea.vmem %s1979_s4, %s1327_s9  ;;  %vm955_vm4 = vcmask 253952  }
   0xf   : > { %v505_v5 = vsel %vm503_vm0, %v369_v4, 0  ;;  %705 = vperm.xlu1 %1374, %v663_v1   ;;  %695 = vperm.xlu0 %1373, %v661_v2   ;;  %v1329_v6 = vld [vmem:[%s1475_s12] sm:$0xff]  ;;  %v667_v15 = vld [vmem:[%s1978_s3 + $0x30] sm:$0xff]  ;;  %v1330_v16 = vld [vmem:[%s1475_s12 + $0x8] sm:$0xff]  ;;  %s335_s28 = scalar_lea.vmem %s1981_s6, %s1987_s21 }
  0x10   : > { %514 = vmatpush.bf16.msra.mxu0 %v505_v5  ;;  %1345 = vmatpush.bf16.msra.mxu1 %v505_v5  ;;  %v1333_v7 = vld [vmem:[%s1475_s12 + $0x20] sm:$0xff]  ;;  %v1334_v17 = vld [vmem:[%s1475_s12 + $0x28] sm:$0xff]  ;;  %v672_v20 = vld [vmem:[%s1978_s3 + $0x58] sm:$0xff] }
  0x11   : > { %1346 = vmatpush.bf16.msra.mxu2 %v505_v5  ;;  %1347 = vmatpush.bf16.msra.mxu3 %v505_v5  ;;  %v1337_v8 = vld [vmem:[%s1475_s12 + $0x40] sm:$0xff]  ;;  %v1338_v18 = vld [vmem:[%s1475_s12 + $0x48] sm:$0xff]  ;;  %v671_v21 = vld [vmem:[%s1978_s3 + $0x50] sm:$0xff] }
  0x12   : > { %v1341_v9 = vld [vmem:[%s1475_s12 + $0x60] sm:$0xff]  ;;  %v1342_v19 = vld [vmem:[%s1475_s12 + $0x68] sm:$0xff]  ;;  %v675_v23 = vld [vmem:[%s1978_s3 + $0x70] sm:$0xff] }
  0x13   : > { %1309 = vmatmul.msk.bf16.vlgmr.msra.gmra.mxu0 %vm454_vm1, %v1329_v6  ;;  %1313 = vmatmul.msk.bf16.vlgmr.msra.gmra.mxu1 %vm454_vm1, %v1333_v7  ;;  %v669_v13 = vld [vmem:[%s1978_s3 + $0x40] sm:$0xff]  ;;  %v670_v22 = vld [vmem:[%s1978_s3 + $0x48] sm:$0xff]  ;;  %v1331_v26 = vld [vmem:[%s1475_s12 + $0x10] sm:$0xff] }
  0x14   : > { %1317 = vmatmul.msk.bf16.vlgmr.msra.gmra.mxu2 %vm454_vm1, %v1337_v8  ;;  %1321 = vmatmul.msk.bf16.vlgmr.msra.gmra.mxu3 %vm454_vm1, %v1341_v9  ;;  %v674_v24 = vld [vmem:[%s1978_s3 + $0x68] sm:$0xff]  ;;  %v673_v25 = vld [vmem:[%s1978_s3 + $0x60] sm:$0xff]  ;;  %v1335_v27 = vld [vmem:[%s1475_s12 + $0x30] sm:$0xff] }
  0x15   : > { %v1339_v28 = vld [vmem:[%s1475_s12 + $0x50] sm:$0xff]  ;;  %v678_v30 = vld [vmem:[%s1978_s3 + $0x88] sm:$0xff]  ;;  %v677_v31 = vld [vmem:[%s1978_s3 + $0x80] sm:$0xff] }
  0x16   : > { %720 = vperm.xlu2 %1375, %v666_v10   ;;  %v1343_v29 = vld [vmem:[%s1475_s12 + $0x70] sm:$0xff]  ;;  %v676_v32 = vld [vmem:[%s1978_s3 + $0x78] sm:$0xff]  ;;  %v681_v33 = vld [vmem:[%s1978_s3 + $0xa0] sm:$0xff] }
  0x17   : > { %710 = vperm.xlu1 %1374, %v664_v11   ;;  %700 = vperm.xlu0 %1373, %v662_v12   ;;  %v680_v34 = vld [vmem:[%s1978_s3 + $0x98] sm:$0xff]  ;;  %v679_v35 = vld [vmem:[%s1978_s3 + $0x90] sm:$0xff]  ;;  %v682_v42 = vld [vmem:[%s1978_s3 + $0xa8] sm:$0xff] }
  0x18   : > { %v1332_v36 = vld [vmem:[%s1475_s12 + $0x18] sm:$0xff]  ;;  %v683_v41 = vld [vmem:[%s1978_s3 + $0xb0] sm:$0xff]  ;;  %v686_v44 = vld [vmem:[%s1978_s3 + $0xc8] sm:$0xff] }
  0x19   : > { %v1336_v37 = vld [vmem:[%s1475_s12 + $0x38] sm:$0xff]  ;;  %v687_v43 = vld [vmem:[%s1978_s3 + $0xd0] sm:$0xff]  ;;  %v685_v45 = vld [vmem:[%s1978_s3 + $0xc0] sm:$0xff] }
  0x1a   : > { %v1340_v38 = vld [vmem:[%s1475_s12 + $0x58] sm:$0xff]  ;;  %v690_v46 = vld [vmem:[%s1978_s3 + $0xe8] sm:$0xff]  ;;  %v689_v47 = vld [vmem:[%s1978_s3 + $0xe0] sm:$0xff] }
  0x1b   : > { %v1344_v39 = vld [vmem:[%s1475_s12 + $0x78] sm:$0xff]  ;;  %v691_v50 = vld [vmem:[%s1978_s3 + $0xf0] sm:$0xff]  ;;  %v1599_v51 = vld [vmem:[%s1977_s2] ss:$0 sm:$0xff] }
  0x1c   : > { %v684_v40 = vld [vmem:[%s1978_s3 + $0xb8] sm:$0xff] }
  0x1d   : > { %v688_v48 = vld [vmem:[%s1978_s3 + $0xd8] sm:$0xff] }
  0x1e   : > { %735 = vperm.xlu2 %1375, %v669_v13   ;;  %v692_v49 = vld [vmem:[%s1978_s3 + $0xf8] sm:$0xff] }
  0x1f   : > { %730 = vperm.xlu1 %1374, %v668_v14   ;;  %725 = vperm.xlu0 %1373, %v667_v15  }
  0x23   : > { %1310 = vmatmul.msk.bf16.gmra.mxu0 %vm454_vm1, %v1330_v16  ;;  %1314 = vmatmul.msk.bf16.gmra.mxu1 %vm454_vm1, %v1334_v17 }
  0x24   : > { %1318 = vmatmul.msk.bf16.gmra.mxu2 %vm454_vm1, %v1338_v18  ;;  %1322 = vmatmul.msk.bf16.gmra.mxu3 %vm454_vm1, %v1342_v19 }
  0x26   : > { %750 = vperm.xlu2 %1375, %v672_v20  }
  0x27   : > { %745 = vperm.xlu1 %1374, %v671_v21   ;;  %740 = vperm.xlu0 %1373, %v670_v22  }
  0x2e   : > { %765 = vperm.xlu2 %1375, %v675_v23  }
  0x2f   : > { %760 = vperm.xlu1 %1374, %v674_v24   ;;  %755 = vperm.xlu0 %1373, %v673_v25  }
  0x33   : > { %1311 = vmatmul.msk.bf16.gmra.mxu0 %vm454_vm1, %v1331_v26  ;;  %1315 = vmatmul.msk.bf16.gmra.mxu1 %vm454_vm1, %v1335_v27 }
  0x34   : > { %1319 = vmatmul.msk.bf16.gmra.mxu2 %vm454_vm1, %v1339_v28  ;;  %1323 = vmatmul.msk.bf16.gmra.mxu3 %vm454_vm1, %v1343_v29 }
  0x36   : > { %780 = vperm.xlu2 %1375, %v678_v30  }
  0x37   : > { %775 = vperm.xlu1 %1374, %v677_v31   ;;  %770 = vperm.xlu0 %1373, %v676_v32  }
  0x3e   : > { %795 = vperm.xlu2 %1375, %v681_v33  }
  0x3f   : > { %790 = vperm.xlu1 %1374, %v680_v34   ;;  %785 = vperm.xlu0 %1373, %v679_v35  }
  0x43   : > { %1312 = vmatmul.msk.bf16.gmra.mxu0 %vm454_vm1, %v1332_v36  ;;  %1316 = vmatmul.msk.bf16.gmra.mxu1 %vm454_vm1, %v1336_v37 }
  0x44   : > { %1320 = vmatmul.msk.bf16.gmra.mxu2 %vm454_vm1, %v1340_v38  ;;  %1324 = vmatmul.msk.bf16.gmra.mxu3 %vm454_vm1, %v1344_v39 }
  0x46   : > { %810 = vperm.xlu2 %1375, %v684_v40  }
  0x47   : > { %805 = vperm.xlu1 %1374, %v683_v41   ;;  %800 = vperm.xlu0 %1373, %v682_v42  }
  0x4e   : > { %825 = vperm.xlu2 %1375, %v687_v43  }
  0x4f   : > { %820 = vperm.xlu1 %1374, %v686_v44   ;;  %815 = vperm.xlu0 %1373, %v685_v45  }
  0x56   : > { %840 = vperm.xlu2 %1375, %v690_v46  }
  0x57   : > { %835 = vperm.xlu1 %1374, %v689_v47   ;;  %830 = vperm.xlu0 %1373, %v688_v48  }
  0x5f   : > { %850 = vperm.xlu1 %1374, %v692_v49   ;;  %845 = vperm.xlu0 %1373, %v691_v50  }
  0x68   : > { %v1640_v5 = vpop.permute.xlu2 %715 }
  0x70   : > { %v1682_v23 = vpop.permute.xlu2 %720 }
  0x78   : > { %v1716_v39 = vpop.permute.xlu2 %735 }
  0x81   : > { %v1601_v54 = vpop.permute.xlu0 %695  ;;  %v1616_v57 = vpop.permute.xlu1 %705 }
  0x89   : > { %v1642_v6 = vpop.permute.xlu0 %700  ;;  %v1652_v10 = vpop.permute.xlu1 %710 }
  0x90   : > { %v516_v52 = vpop.f32.mrf.mxu0  ;;  %v536_v53 = vpop.f32.mrf.mxu1 }
  0x91   : > { %v1604_v55 = vadd.f32 %v1599_v51, %v516_v52  ;;  %v1607_v56 = vadd.f32 %v1599_v51, %v536_v53  ;;  %v1684_v24 = vpop.permute.xlu0 %725  ;;  %v1690_v26 = vpop.permute.xlu1 %730 }
  0x93   : > { %v596_v58 = vpack.c.bf16 %v1604_v55, %v1604_v55  ;;  %v604_v59 = vpack.c.bf16 %v1607_v56, %v1607_v56 }
  0x95   : > { %629 = vst.msk [vmem:[%s1614_s19] sm:$0xf] %vm628_vm2, %v596_v58 }
  0x96   : > { %637 = vst.msk [vmem:[%s1614_s19 + $0x20] sm:$0xf] %vm628_vm2, %v604_v59 }
  0x97   : > { %v556_v60 = vpop.f32.mrf.mxu2  ;;  %v576_v62 = vpop.f32.mrf.mxu3 }
  0x98   : > { %v1627_v61 = vadd.f32 %v1599_v51, %v556_v60  ;;  %v518_v63 = vpop.f32.mrf.mxu0  ;;  %v1632_v1 = vadd.f32 %v1599_v51, %v576_v62  ;;  %v538_v3 = vpop.f32.mrf.mxu1 }
  0x99   : > { %v1635_v2 = vadd.f32 %v1599_v51, %v518_v63  ;;  %v1638_v4 = vadd.f32 %v1599_v51, %v538_v3  ;;  %v1718_v40 = vpop.permute.xlu0 %740  ;;  %v1731_v48 = vpop.permute.xlu1 %745 }
  0x9a   : > { %v612_v0 = vpack.c.bf16 %v1627_v61, %v1627_v61  ;;  %v620_v7 = vpack.c.bf16 %v1632_v1, %v1632_v1  ;;  %v1751_v63 = vpop.permute.xlu2 %750 }
  0x9b   : > { %v597_v8 = vpack.c.bf16 %v1635_v2, %v1635_v2  ;;  %v605_v9 = vpack.c.bf16 %v1638_v4, %v1638_v4 }
  0x9c   : > { %645 = vst.msk [vmem:[%s1614_s19 + $0x40] sm:$0xf] %vm628_vm2, %v612_v0 }
  0x9d   : > { %653 = vst.msk [vmem:[%s1614_s19 + $0x60] sm:$0xf] %vm628_vm2, %v620_v7 }
  0x9e   : > { %630 = vst.msk [vmem:[%s1614_s19 + $0x4] sm:$0xf] %vm628_vm2, %v597_v8 }
  0x9f   : > { %v558_v11 = vpop.f32.mrf.mxu2  ;;  %638 = vst.msk [vmem:[%s1614_s19 + $0x24] sm:$0xf] %vm628_vm2, %v605_v9  ;;  %v578_v13 = vpop.f32.mrf.mxu3 }
  0xa0   : > { %v1661_v12 = vadd.f32 %v1599_v51, %v558_v11  ;;  %v521_v14 = vpop.f32.mrf.mxu0  ;;  %v1666_v16 = vadd.f32 %v1599_v51, %v578_v13  ;;  %v541_v18 = vpop.f32.mrf.mxu1 }
  0xa1   : > { %v1669_v17 = vadd.f32 %v1599_v51, %v521_v14  ;;  %v1672_v19 = vadd.f32 %v1599_v51, %v541_v18  ;;  %v1758_v8 = vpop.permute.xlu0 %755  ;;  %v853_v14 = vmul.f32 %v1601_v54, %v1604_v55 }
  0xa2   : > { %v613_v15 = vpack.c.bf16 %v1661_v12, %v1661_v12  ;;  %v621_v20 = vpack.c.bf16 %v1666_v16, %v1666_v16 }
  0xa3   : > { %v598_v21 = vpack.c.bf16 %v1669_v17, %v1669_v17  ;;  %v606_v22 = vpack.c.bf16 %v1672_v19, %v1672_v19  ;;  %v957_v55 = vmul.f32 %v853_v14, %v853_v14 }
  0xa4   : > { %646 = vst.msk [vmem:[%s1614_s19 + $0x44] sm:$0xf] %vm628_vm2, %v613_v15  ;;  %v1770_v15 = vpop.permute.xlu1 %760 }
  0xa5   : > { %654 = vst.msk [vmem:[%s1614_s19 + $0x64] sm:$0xf] %vm628_vm2, %v621_v20 }
  0xa6   : > { %631 = vst.msk [vmem:[%s1614_s19 + $0x8] sm:$0xf] %vm628_vm2, %v598_v21  ;;  %v854_v21 = vmul.f32 %v1642_v6, %v1635_v2 }
  0xa7   : > { %v561_v25 = vpop.f32.mrf.mxu2  ;;  %639 = vst.msk [vmem:[%s1614_s19 + $0x28] sm:$0xf] %vm628_vm2, %v606_v22  ;;  %v581_v28 = vpop.f32.mrf.mxu3  ;;  %v855_v22 = vmul.f32 %v1616_v57, %v1669_v17 }
  0xa8   : > { %v1695_v27 = vadd.f32 %v1599_v51, %v561_v25  ;;  %v523_v29 = vpop.f32.mrf.mxu0  ;;  %v1700_v31 = vadd.f32 %v1599_v51, %v581_v28  ;;  %v543_v33 = vpop.f32.mrf.mxu1 }
  0xa9   : > { %v524_v32 = vadd.f32 %v1599_v51, %v523_v29  ;;  %v1704_v34 = vadd.f32 %v1599_v51, %v543_v33  ;;  %v959_v33 = vmul.f32 %v855_v22, %v855_v22 }
  0xaa   : > { %v614_v30 = vpack.c.bf16 %v1695_v27, %v1695_v27  ;;  %v622_v35 = vpack.c.bf16 %v1700_v31, %v1700_v31 }
  0xab   : > { %v599_v36 = vpack.c.bf16 %v524_v32, %v524_v32  ;;  %v607_v37 = vpack.c.bf16 %v1704_v34, %v1704_v34  ;;  %v856_v2 = vmul.f32 %v1652_v10, %v524_v32  ;;  %v886_v32 = vsel %vm885_vm3, %v853_v14, 0.0 }
  0xac   : > { %647 = vst.msk [vmem:[%s1614_s19 + $0x48] sm:$0xf] %vm628_vm2, %v614_v30  ;;  %v958_v30 = vmul.f32 %v854_v21, %v854_v21 }
  0xad   : > { %655 = vst.msk [vmem:[%s1614_s19 + $0x68] sm:$0xf] %vm628_vm2, %v622_v35  ;;  %v1793_v35 = vpop.permute.xlu2 %765 }
  0xae   : > { %632 = vst.msk [vmem:[%s1614_s19 + $0xc] sm:$0xf] %vm628_vm2, %v599_v36  ;;  %v887_v36 = vsel %vm885_vm3, %v854_v21, 0.0 }
  0xaf   : > { %v563_v38 = vpop.f32.mrf.mxu2  ;;  %640 = vst.msk [vmem:[%s1614_s19 + $0x2c] sm:$0xf] %vm628_vm2, %v607_v37  ;;  %v583_v42 = vpop.f32.mrf.mxu3 }
  0xb0   : > { %v1723_v41 = vadd.f32 %v1599_v51, %v563_v38  ;;  %v526_v43 = vpop.f32.mrf.mxu0  ;;  %v1728_v45 = vadd.f32 %v1599_v51, %v583_v42  ;;  %v546_v47 = vpop.f32.mrf.mxu1  ;;  %v989_v38 = vsel %vm885_vm3, %v957_v55, 0.0 }
  0xb1   : > { %v527_v46 = vadd.f32 %v1599_v51, %v526_v43  ;;  %v1734_v49 = vadd.f32 %v1599_v51, %v546_v47  ;;  %v1803_v42 = vpop.permute.xlu0 %770  ;;  %v990_v47 = vsel %vm885_vm3, %v958_v30, 0.0 }
  0xb2   : > { %v615_v44 = vpack.c.bf16 %v1723_v41, %v1723_v41  ;;  %v623_v50 = vpack.c.bf16 %v1728_v45, %v1728_v45 }
  0xb3   : > { %v600_v52 = vpack.c.bf16 %v527_v46, %v527_v46  ;;  %v608_v53 = vpack.c.bf16 %v1734_v49, %v1734_v49  ;;  %v857_v37 = vmul.f32 %v1640_v5, %v527_v46  ;;  %v889_v5 = vsel %vm885_vm3, %v855_v22, 0.0 }
  0xb4   : > { %648 = vst.msk [vmem:[%s1614_s19 + $0x4c] sm:$0xf] %vm628_vm2, %v615_v44  ;;  %v960_v46 = vmul.f32 %v856_v2, %v856_v2 }
  0xb5   : > { %656 = vst.msk [vmem:[%s1614_s19 + $0x6c] sm:$0xf] %vm628_vm2, %v623_v50  ;;  %v893_v22 = vsel %vm885_vm3, %v857_v37, 0.0 }
  0xb6   : > { %633 = vst.msk [vmem:[%s1614_s19 + $0x10] sm:$0xf] %vm628_vm2, %v600_v52  ;;  %v888_v52 = vadd.f32 %v887_v36, %v886_v32  ;;  %v994_v21 = vsel %vm885_vm3, %v960_v46, 0.0  ;;  %v861_v36 = vmul.f32 %v1716_v39, %v1607_v56 }
  0xb7   : > { %v566_v58 = vpop.f32.mrf.mxu2  ;;  %641 = vst.msk [vmem:[%s1614_s19 + $0x30] sm:$0xf] %vm628_vm2, %v608_v53  ;;  %v586_v60 = vpop.f32.mrf.mxu3  ;;  %v992_v53 = vsel %vm885_vm3, %v959_v33, 0.0 }
  0xb8   : > { %v1749_v59 = vadd.f32 %v1599_v51, %v566_v58  ;;  %v528_v62 = vpop.f32.mrf.mxu0  ;;  %v1756_v3 = vadd.f32 %v1599_v51, %v586_v60  ;;  %v548_v7 = vpop.f32.mrf.mxu1 }
  0xb9   : > { %v529_v9 = vadd.f32 %v1599_v51, %v528_v62  ;;  %v1762_v11 = vadd.f32 %v1599_v51, %v548_v7  ;;  %v1815_v58 = vpop.permute.xlu1 %775  ;;  %v891_v7 = vsel %vm885_vm3, %v856_v2, 0.0  ;;  %v1851_v56 = vpop.permute.xlu0 %785 }
  0xba   : > { %v616_v0 = vpack.c.bf16 %v1749_v59, %v1749_v59  ;;  %v624_v13 = vpack.c.bf16 %v1756_v3, %v1756_v3 }
  0xbb   : > { %v601_v18 = vpack.c.bf16 %v529_v9, %v529_v9  ;;  %v609_v20 = vpack.c.bf16 %v1762_v11, %v1762_v11  ;;  %v858_v50 = vmul.f32 %v1682_v23, %v529_v9  ;;  %v991_v9 = vadd.f32 %v990_v47, %v989_v38  ;;  %v1843_v38 = vpop.permute.xlu2 %780 }
  0xbc   : > { %649 = vst.msk [vmem:[%s1614_s19 + $0x50] sm:$0xf] %vm628_vm2, %v616_v0 }
  0xbd   : > { %657 = vst.msk [vmem:[%s1614_s19 + $0x70] sm:$0xf] %vm628_vm2, %v624_v13  ;;  %v961_v13 = vmul.f32 %v857_v37, %v857_v37 }
  0xbe   : > { %634 = vst.msk [vmem:[%s1614_s19 + $0x14] sm:$0xf] %vm628_vm2, %v601_v18  ;;  %v890_v18 = vadd.f32 %v889_v5, %v888_v52 }
  0xbf   : > { %v568_v25 = vpop.f32.mrf.mxu2  ;;  %642 = vst.msk [vmem:[%s1614_s19 + $0x34] sm:$0xf] %vm628_vm2, %v609_v20  ;;  %v588_v28 = vpop.f32.mrf.mxu3 }
  0xc0   : > { %v1785_v54 = vadd.f32 %v1599_v51, %v568_v25  ;;  %v531_v29 = vpop.f32.mrf.mxu0  ;;  %v1791_v57 = vadd.f32 %v1599_v51, %v588_v28  ;;  %v551_v17 = vpop.f32.mrf.mxu1  ;;  %v962_v25 = vmul.f32 %v858_v50, %v858_v50  ;;  %v892_v28 = vadd.f32 %v891_v7, %v890_v18 }
  0xc1   : > { %v532_v43 = vadd.f32 %v1599_v51, %v531_v29  ;;  %v1807_v44 = vadd.f32 %v1599_v51, %v551_v17  ;;  %v895_v17 = vsel %vm885_vm3, %v858_v50, 0.0  ;;  %v862_v50 = vmul.f32 %v1718_v40, %v1638_v4 }
  0xc2   : > { %v617_v6 = vpack.c.bf16 %v1785_v54, %v1785_v54  ;;  %v625_v10 = vpack.c.bf16 %v1791_v57, %v1791_v57  ;;  %v863_v18 = vmul.f32 %v1731_v48, %v1672_v19  ;;  %v864_v19 = vmul.f32 %v1751_v63, %v1704_v34 }
  0xc3   : > { %v602_v60 = vpack.c.bf16 %v532_v43, %v532_v43  ;;  %v610_v62 = vpack.c.bf16 %v1807_v44, %v1807_v44  ;;  %v859_v14 = vmul.f32 %v1684_v24, %v532_v43  ;;  %v993_v24 = vadd.f32 %v992_v53, %v991_v9 }
  0xc4   : > { %650 = vst.msk [vmem:[%s1614_s19 + $0x54] sm:$0xf] %vm628_vm2, %v617_v6  ;;  %v996_v6 = vsel %vm885_vm3, %v961_v13, 0.0  ;;  %v998_v43 = vsel %vm885_vm3, %v962_v25, 0.0  ;;  %v965_v13 = vmul.f32 %v861_v36, %v861_v36 }
  0xc5   : > { %658 = vst.msk [vmem:[%s1614_s19 + $0x74] sm:$0xf] %vm628_vm2, %v625_v10  ;;  %v963_v33 = vmul.f32 %v859_v14, %v859_v14  ;;  %v995_v37 = vadd.f32 %v994_v21, %v993_v24  ;;  %v894_v10 = vadd.f32 %v893_v22, %v892_v28  ;;  %v897_v47 = vsel %vm885_vm3, %v859_v14, 0.0  ;;  %v1857_v14 = vpop.permute.xlu1 %790 }
  0xc6   : > { %635 = vst.msk [vmem:[%s1614_s19 + $0x18] sm:$0xf] %vm628_vm2, %v602_v60  ;;  %v966_v22 = vmul.f32 %v862_v50, %v862_v50  ;;  %v901_v28 = vsel %vm885_vm3, %v861_v36, 0.0 }
  0xc7   : > { %v571_v0 = vpop.f32.mrf.mxu2  ;;  %v591_v20 = vpop.f32.mrf.mxu3  ;;  %643 = vst.msk [vmem:[%s1614_s19 + $0x38] sm:$0xf] %vm628_vm2, %v610_v62  ;;  %v997_v39 = vadd.f32 %v996_v6, %v995_v37  ;;  %v896_v52 = vadd.f32 %v895_v17, %v894_v10  ;;  %v1000_v60 = vsel %vm885_vm3, %v963_v33, 0.0  ;;  %v903_v17 = vsel %vm885_vm3, %v862_v50, 0.0 }
  0xc8   : > { %v1822_v23 = vadd.f32 %v1599_v51, %v571_v0  ;;  %v1833_v29 = vadd.f32 %v1599_v51, %v591_v20  ;;  %v533_v30 = vpop.f32.mrf.mxu0  ;;  %v553_v2 = vpop.f32.mrf.mxu1  ;;  %v967_v33 = vmul.f32 %v863_v18, %v863_v18  ;;  %v865_v37 = vmul.f32 %v1758_v8, %v1734_v49 }
  0xc9   : > { %v534_v5 = vadd.f32 %v1599_v51, %v533_v30  ;;  %v554_v46 = vadd.f32 %v1599_v51, %v553_v2  ;;  %v999_v9 = vadd.f32 %v998_v43, %v997_v39  ;;  %v898_v4 = vadd.f32 %v897_v47, %v896_v52  ;;  %v796_v50 = vpop.permute.xlu2 %795  ;;  %v801_v39 = vpop.permute.xlu0 %800 }
  0xca   : > { %v618_v55 = vpack.c.bf16 %v1822_v23, %v1822_v23  ;;  %v626_v32 = vpack.c.bf16 %v1833_v29, %v1833_v29  ;;  %v1004_v30 = vsel %vm885_vm3, %v965_v13, 0.0  ;;  %v1006_v34 = vsel %vm885_vm3, %v966_v22, 0.0 }
  0xcb   : > { %v603_v62 = vpack.c.bf16 %v534_v5, %v534_v5  ;;  %v860_v0 = vmul.f32 %v1690_v26, %v534_v5  ;;  %v611_v7 = vpack.c.bf16 %v554_v46, %v554_v46  ;;  %v1001_v26 = vadd.f32 %v1000_v60, %v999_v9 }
  0xcc   : > { %651 = vst.msk [vmem:[%s1614_s19 + $0x58] sm:$0xf] %vm628_vm2, %v618_v55  ;;  %v968_v43 = vmul.f32 %v864_v19, %v864_v19  ;;  %v866_v47 = vmul.f32 %v1770_v15, %v1762_v11  ;;  %v907_v52 = vsel %vm885_vm3, %v864_v19, 0.0  ;;  %v867_v60 = vmul.f32 %v1793_v35, %v1807_v44 }
  0xcd   : > { %659 = vst.msk [vmem:[%s1614_s19 + $0x78] sm:$0xf] %vm628_vm2, %v626_v32  ;;  %v899_v20 = vsel %vm885_vm3, %v860_v0, 0.0  ;;  %v964_v21 = vmul.f32 %v860_v0, %v860_v0  ;;  %v905_v32 = vsel %vm885_vm3, %v863_v18, 0.0  ;;  %v868_v9 = vmul.f32 %v1803_v42, %v554_v46 }
  0xce   : > { %636 = vst.msk [vmem:[%s1614_s19 + $0x1c] sm:$0xf] %vm628_vm2, %v603_v62  ;;  %v900_v25 = vadd.f32 %v899_v20, %v898_v4  ;;  %v806_v62 = vpop.permute.xlu1 %805  ;;  %v1010_v15 = vsel %vm885_vm3, %v968_v43, 0.0  ;;  %v970_v13 = vmul.f32 %v866_v47, %v866_v47  ;;  %v869_v20 = vmul.f32 %v1815_v58, %v1627_v61 }
  0xcf   : > { %v573_v53 = vpop.f32.mrf.mxu2  ;;  %644 = vst.msk [vmem:[%s1614_s19 + $0x3c] sm:$0xf] %vm628_vm2, %v611_v7  ;;  %v593_v24 = vpop.f32.mrf.mxu3  ;;  %v1002_v48 = vsel %vm885_vm3, %v964_v21, 0.0  ;;  %v909_v7 = vsel %vm885_vm3, %v865_v37, 0.0  ;;  %v911_v35 = vsel %vm885_vm3, %v866_v47, 0.0  ;;  %v971_v44 = vmul.f32 %v867_v60, %v867_v60 }
  0xd0   : > { %v1860_v40 = vadd.f32 %v1599_v51, %v573_v53  ;;  %v902_v2 = vadd.f32 %v901_v28, %v900_v25  ;;  %v1003_v6 = vadd.f32 %v1002_v48, %v1001_v26  ;;  %v1882_v10 = vadd.f32 %v1599_v51, %v593_v24 }
  0xd1   : > { %v1008_v51 = vsel %vm885_vm3, %v967_v33, 0.0  ;;  %v969_v53 = vmul.f32 %v865_v37, %v865_v37  ;;  %v870_v25 = vmul.f32 %v1843_v38, %v1661_v12  ;;  %v913_v24 = vsel %vm885_vm3, %v867_v60, 0.0 }
  0xd2   : > { %v619_v55 = vpack.c.bf16 %v1860_v40, %v1860_v40  ;;  %v904_v63 = vadd.f32 %v903_v17, %v902_v2  ;;  %v1005_v36 = vadd.f32 %v1004_v30, %v1003_v6  ;;  %v627_v5 = vpack.c.bf16 %v1882_v10, %v1882_v10  ;;  %v811_v30 = vpop.permute.xlu2 %810  ;;  %v816_v2 = vpop.permute.xlu0 %815 }
  0xd3   : > { %v1012_v21 = vsel %vm885_vm3, %v969_v53, 0.0  ;;  %v972_v42 = vmul.f32 %v868_v9, %v868_v9  ;;  %v973_v19 = vmul.f32 %v869_v20, %v869_v20  ;;  %v871_v61 = vmul.f32 %v1851_v56, %v1695_v27 }
  0xd4   : > { %652 = vst.msk [vmem:[%s1614_s19 + $0x5c] sm:$0xf] %vm628_vm2, %v619_v55  ;;  %v906_v49 = vadd.f32 %v905_v32, %v904_v63  ;;  %v1007_v8 = vadd.f32 %v1006_v34, %v1005_v36  ;;  %v1014_v55 = vsel %vm885_vm3, %v970_v13, 0.0  ;;  %v1016_v58 = vsel %vm885_vm3, %v971_v44, 0.0 }
  0xd5   : > { %660 = vst.msk [vmem:[%s1614_s19 + $0x7c] sm:$0xf] %vm628_vm2, %v627_v5  ;;  %v915_v48 = vsel %vm885_vm3, %v868_v9, 0.0  ;;  %v974_v12 = vmul.f32 %v870_v25, %v870_v25  ;;  %v917_v38 = vsel %vm885_vm3, %v869_v20, 0.0  ;;  %v872_v33 = vmul.f32 %v1857_v14, %v1723_v41 }
  0xd6   : > { %v1009_v0 = vadd.f32 %v1008_v51, %v1007_v8  ;;  %v908_v11 = vadd.f32 %v907_v52, %v906_v49  ;;  %v1018_v37 = vsel %vm885_vm3, %v972_v42, 0.0  ;;  %v821_v34 = vpop.permute.xlu1 %820  ;;  %v919_v27 = vsel %vm885_vm3, %v870_v25, 0.0 }
  0xd7   : > { %v1020_v56 = vsel %vm885_vm3, %v973_v19, 0.0  ;;  %v975_v32 = vmul.f32 %v871_v61, %v871_v61  ;;  %v873_v43 = vmul.f32 %v796_v50, %v1749_v59  ;;  %v1022_v49 = vsel %vm885_vm3, %v974_v12, 0.0 }
  0xd8   : > { %v910_v4 = vadd.f32 %v909_v7, %v908_v11  ;;  %v1011_v18 = vadd.f32 %v1010_v15, %v1009_v0  ;;  %v921_v8 = vsel %vm885_vm3, %v871_v61, 0.0  ;;  %v976_v51 = vmul.f32 %v872_v33, %v872_v33 }
  0xd9   : > { %v874_v41 = vmul.f32 %v801_v39, %v1785_v54  ;;  %v1024_v53 = vsel %vm885_vm3, %v975_v32, 0.0  ;;  %v923_v60 = vsel %vm885_vm3, %v872_v33, 0.0  ;;  %v977_v0 = vmul.f32 %v873_v43, %v873_v43 }
  0xda   : > { %v912_v22 = vadd.f32 %v911_v35, %v910_v4  ;;  %v1013_v26 = vadd.f32 %v1012_v21, %v1011_v18  ;;  %v875_v11 = vmul.f32 %v806_v62, %v1822_v23  ;;  %v1026_v50 = vsel %vm885_vm3, %v976_v51, 0.0  ;;  %v826_v4 = vpop.permute.xlu2 %825  ;;  %v831_v54 = vpop.permute.xlu0 %830 }
  0xdb   : > { %v925_v7 = vsel %vm885_vm3, %v873_v43, 0.0  ;;  %v978_v13 = vmul.f32 %v874_v41, %v874_v41  ;;  %v876_v9 = vmul.f32 %v811_v30, %v1860_v40  ;;  %v1028_v20 = vsel %vm885_vm3, %v977_v0, 0.0 }
  0xdc   : > { %v914_v46 = vadd.f32 %v913_v24, %v912_v22  ;;  %v1015_v28 = vadd.f32 %v1014_v55, %v1013_v26  ;;  %v877_v21 = vmul.f32 %v816_v2, %v1632_v1  ;;  %v927_v35 = vsel %vm885_vm3, %v874_v41, 0.0 }
  0xdd   : > { %v979_v23 = vmul.f32 %v875_v11, %v875_v11  ;;  %v878_v26 = vmul.f32 %v821_v34, %v1666_v16  ;;  %v1030_v25 = vsel %vm885_vm3, %v978_v13, 0.0  ;;  %v929_v40 = vsel %vm885_vm3, %v875_v11, 0.0 }
  0xde   : > { %v916_v6 = vadd.f32 %v915_v48, %v914_v46  ;;  %v1017_v17 = vadd.f32 %v1016_v58, %v1015_v28  ;;  %v836_v62 = vpop.permute.xlu1 %835  ;;  %v980_v55 = vmul.f32 %v876_v9, %v876_v9  ;;  %v879_v46 = vmul.f32 %v826_v4, %v1700_v31 }
  0xdf   : > { %v981_v28 = vmul.f32 %v877_v21, %v877_v21  ;;  %v1032_v1 = vsel %vm885_vm3, %v979_v23, 0.0  ;;  %v931_v19 = vsel %vm885_vm3, %v876_v9, 0.0  ;;  %v982_v48 = vmul.f32 %v878_v26, %v878_v26 }
  0xe0   : > { %v918_v63 = vadd.f32 %v917_v38, %v916_v6  ;;  %v1019_v36 = vadd.f32 %v1018_v37, %v1017_v17  ;;  %v933_v30 = vsel %vm885_vm3, %v877_v21, 0.0  ;;  %v880_v16 = vmul.f32 %v831_v54, %v1728_v45 }
  0xe1   : > { %v1034_v2 = vsel %vm885_vm3, %v980_v55, 0.0  ;;  %v983_v12 = vmul.f32 %v879_v46, %v879_v46  ;;  %v935_v38 = vsel %vm885_vm3, %v878_v26, 0.0  ;;  %v1036_v31 = vsel %vm885_vm3, %v981_v28, 0.0 }
  0xe2   : > { %v920_v47 = vadd.f32 %v919_v27, %v918_v63  ;;  %v1021_v5 = vadd.f32 %v1020_v56, %v1019_v36  ;;  %v881_v33 = vmul.f32 %v836_v62, %v1756_v3  ;;  %v841_v37 = vpop.permute.xlu2 %840  ;;  %v846_v34 = vpop.permute.xlu0 %845  ;;  %v937_v27 = vsel %vm885_vm3, %v879_v46, 0.0 }
  0xe3   : > { %v1038_v56 = vsel %vm885_vm3, %v982_v48, 0.0  ;;  %v882_v45 = vmul.f32 %v841_v37, %v1791_v57  ;;  %v984_v32 = vmul.f32 %v880_v16, %v880_v16  ;;  %v939_v51 = vsel %vm885_vm3, %v880_v16, 0.0 }
  0xe4   : > { %v922_v14 = vadd.f32 %v921_v8, %v920_v47  ;;  %v1023_v52 = vadd.f32 %v1022_v49, %v1021_v5  ;;  %v1040_v49 = vsel %vm885_vm3, %v983_v12, 0.0  ;;  %v985_v8 = vmul.f32 %v881_v33, %v881_v33 }
  0xe5   : > { %v883_v3 = vmul.f32 %v846_v34, %v1833_v29 }
  0xe6   : > { %v1025_v15 = vadd.f32 %v1024_v53, %v1023_v52  ;;  %v924_v59 = vadd.f32 %v923_v60, %v922_v14  ;;  %v851_v43 = vpop.permute.xlu1 %850  ;;  %v986_v52 = vmul.f32 %v882_v45, %v882_v45  ;;  %v941_v53 = vsel %vm885_vm3, %v881_v33, 0.0 }
  0xe7   : > { %v1042_v60 = vsel %vm885_vm3, %v984_v32, 0.0  ;;  %v884_v57 = vmul.f32 %v851_v43, %v1882_v10  ;;  %v945_v9 = vsel %vm885_vm3, %v883_v3, 0.0 }
  0xe8   : > { %v926_v39 = vadd.f32 %v925_v7, %v924_v59  ;;  %v1027_v18 = vadd.f32 %v1026_v50, %v1025_v15  ;;  %v943_v15 = vsel %vm885_vm3, %v882_v45, 0.0  ;;  %v1044_v59 = vsel %vm885_vm3, %v985_v8, 0.0 }
  0xe9   : > { %v987_v50 = vmul.f32 %v883_v3, %v883_v3  ;;  %v1046_v29 = vsel %vm885_vm3, %v986_v52, 0.0  ;;  %v988_v4 = vmul.f32 %v884_v57, %v884_v57  ;;  %v947_v10 = vsel %vm885_vm3, %v884_v57, 0.0 }
  0xea   : > { %v928_v44 = vadd.f32 %v927_v35, %v926_v39  ;;  %v1029_v22 = vadd.f32 %v1028_v20, %v1027_v18 }
  0xeb   : > { %v1048_v18 = vsel %vm885_vm3, %v987_v50, 0.0  ;;  %v1050_v35 = vsel %vm885_vm3, %v988_v4, 0.0 }
  0xec   : > { %v930_v24 = vadd.f32 %v929_v40, %v928_v44  ;;  %v1031_v42 = vadd.f32 %v1030_v25, %v1029_v22 }
  0xee   : > { %v932_v61 = vadd.f32 %v931_v19, %v930_v24  ;;  %v1033_v58 = vadd.f32 %v1032_v1, %v1031_v42 }
  0xf0   : > { %v934_v6 = vadd.f32 %v933_v30, %v932_v61  ;;  %v1035_v17 = vadd.f32 %v1034_v2, %v1033_v58 }
  0xf2   : > { %v936_v63 = vadd.f32 %v935_v38, %v934_v6  ;;  %v1037_v36 = vadd.f32 %v1036_v31, %v1035_v17 }
  0xf4   : > { %v938_v47 = vadd.f32 %v937_v27, %v936_v63  ;;  %v1039_v5 = vadd.f32 %v1038_v56, %v1037_v36 }
  0xf6   : > { %v1041_v41 = vadd.f32 %v1040_v49, %v1039_v5  ;;  %v940_v14 = vadd.f32 %v939_v51, %v938_v47 }
  0xf8   : > { %v942_v0 = vadd.f32 %v941_v53, %v940_v14  ;;  %v1043_v11 = vadd.f32 %v1042_v60, %v1041_v41 }
  0xfa   : > { %v944_v7 = vadd.f32 %v943_v15, %v942_v0  ;;  %v1045_v13 = vadd.f32 %v1044_v59, %v1043_v11 }
  0xfc   : > { %v946_v54 = vadd.f32 %v945_v9, %v944_v7  ;;  %v1047_v39 = vadd.f32 %v1046_v29, %v1045_v13 }
  0xfe   : > { %v948_v20 = vadd.f32 %v947_v10, %v946_v54  ;;  %v1049_v21 = vadd.f32 %v1048_v18, %v1047_v39 }
 0x100   : > { %v949_v23 = vrot.slane %v948_v20, 4  ;;  %v1051_v62 = vadd.f32 %v1050_v35, %v1049_v21 }
 0x102   : > { %v950_v44 = vadd.f32 %v949_v23, %v948_v20  ;;  %v1052_v22 = vrot.slane %v1051_v62, 4 }
 0x104   : > { %v951_v26 = vrot.slane %v950_v44, 2  ;;  %v1053_v25 = vadd.f32 %v1052_v22, %v1051_v62 }
 0x106   : > { %v952_v40 = vadd.f32 %v951_v26, %v950_v44  ;;  %v1054_v55 = vrot.slane %v1053_v25, 2 }
 0x108   : > { %v953_v24 = vrot.slane %v952_v40, 1  ;;  %v1055_v42 = vadd.f32 %v1054_v55, %v1053_v25 }
 0x10a   : > { %v954_v46 = vadd.f32 %v953_v24, %v952_v40  ;;  %v1056_v28 = vrot.slane %v1055_v42, 1 }
 0x10c   : > { %956 = vst.msk [vmem:[%s329_s25] sm:$0x1] %vm955_vm4, %v954_v46  ;;  %v1057_v1 = vadd.f32 %v1056_v28, %v1055_v42 }
 0x10e   : > { %1058 = vst.msk [vmem:[%s335_s28] sm:$0x1] %vm955_vm4, %v1057_v1 }
 0x10f PF: > { %s17_s23 = sadd.s32 1, %s1399_s23   ;;  %s1982_s21 = smov %s1395_s22 }
 0x110   : > { %p14_p5 = scmp.ge.s32.totalorder %s17_s23, 4   ;;  %s1983_s22 = smov %s1985_s24 }
 0x112   :  { %16 = sbr.rel (!%p14_p5) target bundleno = 2 (0x2), region = 96 }

// kernel: cseblock_fwd.3
= control target key start
LH: loop header
LB: loop body
LE: loop exit
PB: predicated region body
PF: predicated region fallthrough
CT: control target
= control target key end

     0   :  { %s4375_s21 = smov 0   ;;  %s4377_s22 = smov 0   ;;  %s5849_s0 = inlined_call_operand.vmem [shape: bf16[2,342,4], index: 0, kind: input, shape index: {}]   ;;  %s5850_s1 = inlined_call_operand.vmem [shape: bf16[36,32], index: 1, kind: input, shape index: {}]   ;;  %s5851_s2 = inlined_call_operand.vmem [shape: f32[1,32], index: 2, kind: input, shape index: {}]   ;;  %s5852_s3 = inlined_call_operand.vmem [shape: f32[288,1], index: 3, kind: input, shape index: {}]   ;;  %s5853_s4 = inlined_call_operand.vmem [shape: bf16[2,288,32], index: 4, kind: output, shape index: {0}]   ;;  %s5854_s5 = inlined_call_operand.vmem [shape: f32[2,1,32], index: 5, kind: output, shape index: {1}]   ;;  %s5855_s6 = inlined_call_operand.vmem [shape: f32[2,1,32], index: 6, kind: output, shape index: {2}]  }
   0x1   :  { %s4379_s23 = smov 0  }
   0x2 LB: > { %s26_s24 = sadd.s32 1, %s4333_s22  ;;  %p3831_p0 = scmp.ge.s32.totalorder %s4337_s23, 1  ;;  %s4337_s23 = sphi %s4379_s23, %s17_s23   ;;  %s4333_s22 = sphi %s4377_s22, %s5889_s22   ;;  %s4329_s21 = sphi %s4375_s21, %s5888_s21  }
   0x3   : > { %p27_p1 = scmp.ge.s32.totalorder %s26_s24, 2  ;;  %p252_p2 = scmp.lt.s32.totalorder %s4337_s23, 3 }
   0x5   : > { %s5891_s24 = smov (%p27_p1, %s26_s24), 0  ;;  %p253_p3 = pnand %p3831_p0, %p252_p2 }
   0x7   : > { %256 = sbr.rel (%p253_p3) target bundleno = 835 (0x343), region = 36 }
   0xc   : > { %v375_v0 = vld [vmem:[%s5850_s1] sm:$0xc]  ;;  %p304_p4 = scmp.lt.s32.totalorder %s4329_s21, 1  ;;  %v919_v3 = vld [vmem:[%s5850_s1 + $0x4] sm:$0x3]  ;;  %vm677_vm0 = vcmask 1041408  }
   0xd   : > { %v619_v1 = vunpack.c.l.b16 %v375_v0  ;;  %v373_v4 = vld [vmem:[%s5850_s1] sm:$0x3]  ;;  %v1518_v5 = vld [vmem:[%s5850_s1 + $0x8] sm:$0x3]  ;;  %v1016_v7 = vsel %vm677_vm0, %v919_v3, 0  ;;  %vm622_vm2 = vcmask 31744  }
   0xe   : > { %s5893_s21 = smov (!%p304_p4, %s4329_s21), 1  ;;  %v817_v12 = vsel %vm677_vm0, %v373_v4, 0  ;;  %v1748_v13 = vsel %vm677_vm0, %v1518_v5, 0  ;;  %vm469_vm1 = vsmask.f32 7424  ;;  %vm923_vm3 = vcmask 1046528  }
   0xf   : > { %v620_v2 = vpack.c.b16 %v619_v1, %v619_v1  ;;  %s4263_s29 = smul.u32 172, %s5893_s21  ;;  %v1190_v48 = vld [vmem:[%s5850_s1 + $0x4] sm:$0xc]  ;;  %vm1522_vm4 = vsmask.f32 6400  ;;  %vm1890_vm6 = vcmask 1045504   ;;  %s335_s13 = scalar_lea.vmem %s5855_s6, %s5893_s21 }
  0x10   : > { %v1322_v56 = vunpack.c.l.b16 %v1190_v48  ;;  %vm2489_vm5 = vsmask.f32 5376  ;;  %vm2861_vm7 = vcmask 1044480   ;;  %s4264_s25 = smul.u32 144, %s5893_s21  ;;  %vm3167_vm8 = vcmask 257024  }
  0x11   : > { %v621_v6 = vrot.slane %v620_v2, 2  ;;  %s4411_s12 = scalar_lea.vmem %s5849_s0, %s4263_s29  ;;  %vm3456_vm9 = vcmask 261120   ;;  %vm3534_vm10 = vcmask 253952  }
  0x12   : > { %v4416_v9 = vld [vmem:[%s4411_s12 + $0x28] sm:$0xff]  ;;  %v4419_v10 = vld [vmem:[%s4411_s12 + $0x30] sm:$0xff]  ;;  %v4427_v14 = vld [vmem:[%s4411_s12 + $0x58] sm:$0xff]  ;;  %v1323_v60 = vpack.c.b16 %v1322_v56, %v1322_v56  ;;  %s5252_s30 = scalar_lea.vmem %s5853_s4, %s4264_s25 }
  0x13   : > { %v679_v8 = vsel %vm677_vm0, %v621_v6, 0  ;;  %v4422_v11 = vld [vmem:[%s4411_s12 + $0x50] sm:$0xff]  ;;  %v4430_v15 = vld [vmem:[%s4411_s12] sm:$0xff]   ;;  %v4433_v16 = vld [vmem:[%s4411_s12 + $0x8] sm:$0xff]  ;;  %v510_v17 = vshll.u32 %v4416_v9, 16  ;;  %v514_v18 = vshrl.u32 %v4416_v9, 16 }
  0x14   : > { %4260 = vmatpush.bf16.msra.mxu1 %v679_v8  ;;  %4261 = vmatpush.bf16.msra.mxu2 %v679_v8  ;;  %v518_v19 = vshll.u32 %v4419_v10, 16  ;;  %v550_v20 = vshll.u32 %v4422_v11, 16  ;;  %v554_v21 = vshrl.u32 %v4422_v11, 16  ;;  %v558_v22 = vshll.u32 %v4427_v14, 16  ;;  %v4451_v34 = vld [vmem:[%s4411_s12 + $0x78] sm:$0xff]  ;;  %v4217_v35 = vld [vmem:[%s4411_s12 + $0x80] sm:$0xff] }
  0x15   : > { %688 = vmatpush.bf16.msra.mxu0 %v679_v8  ;;  %v471_v23 = vshrl.u32 %v4430_v15, 16  ;;  %v473_v24 = vshll.u32 %v4430_v15, 16  ;;  %v4443_v25 = vrot.slane %v510_v17, 1  ;;  %v478_v28 = vshll.u32 %v4433_v16, 16  ;;  %4262 = vmatpush.bf16.msra.mxu3 %v679_v8  ;;  %v4460_v40 = vld [vmem:[%s4411_s12 + $0x38] sm:$0xff]  ;;  %v4464_v41 = vld [vmem:[%s4411_s12 + $0x60] sm:$0xff] }
  0x16   : > { %v520_v26 = vrot.slane %v518_v19, 1  ;;  %v4445_v27 = vrot.slane %v550_v20, 1  ;;  %v560_v29 = vrot.slane %v558_v22, 1  ;;  %v590_v42 = vshll.u32 %v4451_v34, 16  ;;  %v4469_v45 = vld [vmem:[%s4411_s12 + $0x10] sm:$0xff]  ;;  %v4218_v63 = vld [vmem:[%s4411_s12 + $0x88] sm:$0xff] }
  0x17   : > { %v475_v30 = vrot.slane %v473_v24, 1  ;;  %v516_v31 = vor.u32 %v514_v18, %v4443_v25  ;;  %v480_v33 = vrot.slane %v478_v28, 1  ;;  %v594_v43 = vshrl.u32 %v4451_v34, 16  ;;  %v4487_v0 = vld [vmem:[%s4411_s12 + $0x48] sm:$0xff]  ;;  %v4497_v17 = vld [vmem:[%s4411_s12 + $0x40] sm:$0xff] }
  0x18   : > { %1025 = vmatpush.bf16.msrb.mxu2 %v1016_v7  ;;  %826 = vmatpush.bf16.msrb.mxu1 %v817_v12  ;;  %v556_v32 = vor.u32 %v554_v21, %v4445_v27  ;;  %v598_v44 = vshll.u32 %v4217_v35, 16  ;;  %v4471_v46 = vrot.slane %v590_v42, 1  ;;  %v522_v49 = vshrl.u32 %v4419_v10, 16  ;;  %v4500_v18 = vld [vmem:[%s4411_s12 + $0x68] sm:$0xff]  ;;  %v374_v24 = vld [vmem:[%s4411_s12 + $0x90] sm:$0x1] }
  0x19   : > { %1757 = vmatpush.bf16.msrb.mxu0 %v1748_v13  ;;  %v476_v36 = vor.u32 %v475_v30, %v471_v23  ;;  %v521_v37 = vsel %vm469_vm1, %v516_v31, %v520_v26  ;;  %v526_v50 = vshll.u32 %v4460_v40, 16  ;;  %v562_v51 = vshrl.u32 %v4427_v14, 16  ;;  %v4505_v23 = vld [vmem:[%s4411_s12 + $0x18] sm:$0xff] }
  0x1a   : > { %v561_v38 = vsel %vm469_vm1, %v556_v32, %v560_v29  ;;  %3907 = vmatmul.msk.bf16.vlgmr.msra.gmra.mxu1 %vm622_vm2, %v521_v37  ;;  %v600_v47 = vrot.slane %v598_v44, 1  ;;  %v566_v52 = vshll.u32 %v4464_v41, 16  ;;  %v596_v53 = vor.u32 %v594_v43, %v4471_v46 }
  0x1b   : > { %3912 = vmatmul.msk.bf16.vlgmr.msra.gmra.mxu2 %vm622_vm2, %v561_v38  ;;  %v481_v39 = vsel %vm469_vm1, %v476_v36, %v480_v33  ;;  %v482_v54 = vshrl.u32 %v4433_v16, 16  ;;  %v486_v55 = vshll.u32 %v4469_v45, 16  ;;  %v524_v58 = vor.u32 %v522_v49, %v520_v26 }
  0x1c   : > { %3902 = vmatmul.msk.bf16.vlgmr.msra.gmra.mxu0 %vm622_vm2, %v481_v39  ;;  %v601_v57 = vsel %vm469_vm1, %v596_v53, %v600_v47  ;;  %v528_v59 = vrot.slane %v526_v50, 1  ;;  %v564_v61 = vor.u32 %v562_v51, %v560_v29  ;;  %v568_v62 = vrot.slane %v566_v52, 1 }
  0x1d   : > { %3917 = vmatmul.msk.bf16.vlgmr.msra.gmra.mxu3 %vm622_vm2, %v601_v57  ;;  %v484_v1 = vor.u32 %v482_v54, %v480_v33  ;;  %v488_v2 = vrot.slane %v486_v55, 1  ;;  %v1324_v3 = vrot.slane %v1323_v60, 2  ;;  %v602_v7 = vshrl.u32 %v4217_v35, 16  ;;  %v4514_v33 = vld [vmem:[%s4411_s12 + $0x20] sm:$0xff] }
  0x1e   : > { %v529_v4 = vsel %vm469_vm1, %v524_v58, %v528_v59  ;;  %v569_v6 = vsel %vm469_vm1, %v564_v61, %v568_v62  ;;  %v606_v8 = vshll.u32 %v4218_v63, 16  ;;  %v542_v12 = vshll.u32 %v4487_v0, 16  ;;  %v4535_v58 = vld [vmem:[%s4411_s12 + $0x70] sm:$0xff] }
  0x1f   : > { %v1380_v5 = vsel %vm677_vm0, %v1324_v3, 0  ;;  %v489_v13 = vsel %vm469_vm1, %v484_v1, %v488_v2  ;;  %v604_v19 = vor.u32 %v602_v7, %v600_v47  ;;  %v546_v22 = vshrl.u32 %v4487_v0, 16 }
  0x20   : > { %1389 = vmatpush.bf16.msrb.mxu3 %v1380_v5  ;;  %v608_v20 = vrot.slane %v606_v8, 1  ;;  %v544_v21 = vrot.slane %v542_v12, 1  ;;  %v530_v28 = vshrl.u32 %v4460_v40, 16  ;;  %v534_v29 = vshll.u32 %v4497_v17, 16  ;;  %v4546_v5 = vld [vmem:[%s4411_s12 + $0xc] sm:$0xf] }
  0x21   : > { %v570_v30 = vshrl.u32 %v4464_v41, 16  ;;  %v574_v31 = vshll.u32 %v4500_v18, 16  ;;  %v449_v35 = vunpack.c.l.b16 %v374_v24  ;;  %v490_v37 = vshrl.u32 %v4469_v45, 16 }
  0x22   : > { %v548_v26 = vor.u32 %v546_v22, %v544_v21  ;;  %v609_v32 = vsel %vm469_vm1, %v604_v19, %v608_v20  ;;  %v494_v38 = vshll.u32 %v4505_v23, 16  ;;  %v532_v39 = vor.u32 %v530_v28, %v528_v59  ;;  %v4219_v19 = vld [vmem:[%s4411_s12 + $0x10] sm:$0xff] }
  0x23   : > { %v536_v42 = vrot.slane %v534_v29, 1  ;;  %v572_v43 = vor.u32 %v570_v30, %v568_v62  ;;  %v576_v44 = vrot.slane %v574_v31, 1  ;;  %v502_v47 = vshll.u32 %v4514_v33, 16  ;;  %v2161_v29 = vld [vmem:[%s5850_s1 + $0xc] sm:$0x3] }
  0x24   : > { %v4518_v36 = vsel %vm469_vm1, %v548_v26, %v4445_v27  ;;  %v4524_v48 = vpack.c.b16 %v449_v35, %v449_v35  ;;  %v492_v49 = vor.u32 %v490_v37, %v488_v2  ;;  %v496_v50 = vrot.slane %v494_v38, 1  ;;  %v2485_v31 = vld [vmem:[%s5850_s1 + $0xc] sm:$0xc]  ;;  %v2857_v38 = vld [vmem:[%s5850_s1 + $0x10] sm:$0x3] }
  0x25   : > { %v537_v27 = vsel %vm469_vm1, %v532_v39, %v536_v42  ;;  %v577_v51 = vsel %vm469_vm1, %v572_v43, %v576_v44  ;;  %v504_v52 = vrot.slane %v502_v47, 1  ;;  %v610_v53 = vshrl.u32 %v4218_v63, 16 }
  0x26   : > { %v614_v54 = vshll.u32 %v4524_v48, 16  ;;  %v506_v55 = vshrl.u32 %v4514_v33, 16  ;;  %v497_v56 = vsel %vm469_vm1, %v492_v49, %v496_v50  ;;  %v538_v62 = vshrl.u32 %v4497_v17, 16 }
  0x27   : > { %v612_v59 = vor.u32 %v610_v53, %v608_v20  ;;  %v578_v63 = vshrl.u32 %v4500_v18, 16  ;;  %v582_v1 = vshll.u32 %v4535_v58, 16  ;;  %v498_v3 = vshrl.u32 %v4505_v23, 16 }
  0x28   : > { %v508_v57 = vor.u32 %v506_v55, %v504_v52  ;;  %v616_v60 = vrot.slane %v614_v54, 1  ;;  %v1285_v28 = vrot.slane %v4219_v19, 1  ;;  %v2661_v35 = vunpack.c.l.b16 %v2485_v31  ;;  %v4220_v54 = vld [vmem:[%s4411_s12 + $0x18] sm:$0xff]  ;;  %v4257_v55 = vld [vmem:[%s4411_s12] sm:$0xf0] }
  0x29   : > { %v580_v7 = vor.u32 %v578_v63, %v576_v44  ;;  %v584_v8 = vrot.slane %v582_v1, 1  ;;  %v2954_v39 = vsel %vm677_vm0, %v2857_v38, 0  ;;  %v586_v44 = vshrl.u32 %v4535_v58, 16 }
  0x2a   : > { %3908 = vmatmul.msk.bf16.gmra.mxu1 %vm622_vm2, %v529_v4  ;;  %v513_v61 = vsel %vm469_vm1, %v508_v57, %v4443_v25  ;;  %v617_v2 = vsel %vm469_vm1, %v612_v59, %v616_v60  ;;  %v1153_v4 = vld [vmem:[%s4411_s12 + $0x8] sm:$0xe]  ;;  %v5856_v25 = vunpack.c.l.b16 %v4546_v5  ;;  %2963 = vmatpush.bf16.msra.mxu0 %v2954_v39  ;;  %v4258_v57 = vld [vmem:[%s4411_s12] sm:$0xe]  ;;  %v1535_v63 = vshll.u32 %v4219_v19, 16 }
  0x2b   : > { %3913 = vmatmul.msk.bf16.gmra.mxu2 %vm622_vm2, %v569_v6  ;;  %v540_v6 = vor.u32 %v538_v62, %v536_v42  ;;  %v1228_v12 = vunpack.c.l.b16 %v1153_v4  ;;  %v585_v22 = vsel %vm469_vm1, %v580_v7, %v584_v8  ;;  %v2662_v42 = vpack.c.b16 %v2661_v35, %v2661_v35 }
  0x2c   : > { %3903 = vmatmul.msk.bf16.gmra.mxu0 %vm622_vm2, %v489_v13  ;;  %v500_v13 = vor.u32 %v498_v3, %v496_v50  ;;  %v1532_v62 = vshrl.u32 %v4219_v19, 16  ;;  %v4259_v1 = vor.u32 %v4258_v57, %v4257_v55 }
  0x2d   : > { %3918 = vmatmul.msk.bf16.gmra.mxu3 %vm622_vm2, %v609_v32  ;;  %v545_v20 = vsel %vm469_vm1, %v540_v6, %v544_v21  ;;  %v1265_v24 = vpack.c.b16 %v5856_v25, %v1228_v12  ;;  %v2347_v21 = vsel %vm677_vm0, %v2161_v29, 0  ;;  %v1886_v32 = vld [vmem:[%s5850_s1 + $0x8] sm:$0xc]  ;;  %v2663_v49 = vrot.slane %v2662_v42, 2  ;;  %v4229_v25 = vld [vmem:[%s4411_s12 + $0x60] sm:$0xff] }
  0x2e   : > { %v505_v26 = vsel %vm469_vm1, %v500_v13, %v504_v52  ;;  %2356 = vmatpush.bf16.msra.mxu2 %v2347_v21  ;;  %v1929_v37 = vunpack.c.l.b16 %v1886_v32  ;;  %v588_v52 = vor.u32 %v586_v44, %v584_v8  ;;  %v1534_v4 = vrot.slane %v1532_v62, 1  ;;  %v4221_v13 = vld [vmem:[%s4411_s12 + $0x20] sm:$0xff] }
  0x2f   : > { %v1284_v30 = vrot.slane %v1265_v24, 1  ;;  %v1524_v59 = vshrl.u32 %v1265_v24, 16  ;;  %v1527_v60 = vshll.u32 %v1265_v24, 16  ;;  %v1537_v6 = vrot.slane %v1535_v63, 2 }
  0x30   : > { %v1930_v43 = vpack.c.b16 %v1929_v37, %v1929_v37  ;;  %v593_v53 = vsel %vm469_vm1, %v588_v52, %v4471_v46  ;;  %v1544_v24 = vshll.u32 %v4220_v54, 16  ;;  %v1550_v37 = vshrl.u32 %v4221_v13, 16 }
  0x31   : > { %v1286_v47 = vsel %vm923_vm3, %v1284_v30, %v1285_v28  ;;  %v1526_v46 = vrot.slane %v1524_v59, 1  ;;  %v1529_v3 = vrot.slane %v1527_v60, 2  ;;  %v1538_v8 = vor.u32 %v1537_v6, %v1534_v4  ;;  %v4224_v60 = vld [vmem:[%s4411_s12 + $0x38] sm:$0xff] }
  0x32   : > { %v1931_v50 = vrot.slane %v1930_v43, 2  ;;  %v1546_v29 = vrot.slane %v1544_v24, 2  ;;  %v927_v30 = vrot.slane %v4469_v45, 1  ;;  %v1553_v38 = vshll.u32 %v4221_v13, 16 }
  0x33   : > { %v1530_v7 = vor.u32 %v1529_v3, %v1526_v46  ;;  %v1552_v42 = vrot.slane %v1550_v37, 1  ;;  %v929_v44 = vrot.slane %v4505_v23, 1 }
  0x34   : > { %v1555_v43 = vrot.slane %v1553_v38, 2  ;;  %v935_v38 = vrot.slane %v4419_v10, 1 }
  0x35   : > { %v1539_v19 = vsel %vm1522_vm4, %v1530_v7, %v1538_v8 }
  0x3a   : > { %3909 = vmatmul.msk.bf16.gmra.mxu1 %vm622_vm2, %v537_v27  ;;  %v2719_v27 = vsel %vm677_vm0, %v2663_v49, 0  ;;  %v930_v49 = vsel %vm923_vm3, %v927_v30, %v929_v44 }
  0x3b   : > { %3914 = vmatmul.msk.bf16.gmra.mxu2 %vm622_vm2, %v577_v51  ;;  %v1987_v51 = vsel %vm677_vm0, %v1931_v50, 0  ;;  %2728 = vmatpush.bf16.msra.mxu3 %v2719_v27  ;;  %v4223_v50 = vld [vmem:[%s4411_s12 + $0x30] sm:$0xff] }
  0x3c   : > { %3904 = vmatmul.msk.bf16.gmra.mxu0 %vm622_vm2, %v497_v56  ;;  %1996 = vmatpush.bf16.msra.mxu1 %v1987_v51  ;;  %v1287_v56 = vrot.slane %v4220_v54, 1  ;;  %v1293_v27 = vrot.slane %v4223_v50, 1  ;;  %v1571_v46 = vshll.u32 %v4223_v50, 16 }
  0x3d   : > { %3919 = vmatmul.msk.bf16.gmra.mxu3 %vm622_vm2, %v617_v2 }
  0x3e   : > { %v1288_v2 = vsel %vm923_vm3, %v1285_v28, %v1287_v56  ;;  %v1573_v7 = vrot.slane %v1571_v46, 2 }
  0x4a   : > { %3910 = vmatmul.msk.bf16.gmra.mxu1 %vm622_vm2, %v545_v20  ;;  %v1289_v20 = vrot.slane %v4221_v13, 1 }
  0x4b   : > { %3915 = vmatmul.msk.bf16.gmra.mxu2 %vm622_vm2, %v585_v22  ;;  %v1541_v22 = vshrl.u32 %v4220_v54, 16 }
  0x4c   : > { %3905 = vmatmul.msk.bf16.gmra.mxu0 %vm622_vm2, %v505_v26  ;;  %v1290_v26 = vsel %vm923_vm3, %v1287_v56, %v1289_v20  ;;  %v931_v56 = vrot.slane %v4514_v33, 1 }
  0x4d   : > { %4024 = vmatmul.msk.bf16.vlgmr.msrb.gmra.mxu3 %vm622_vm2, %v1286_v47  ;;  %v1543_v28 = vrot.slane %v1541_v22, 1  ;;  %v1556_v47 = vor.u32 %v1555_v43, %v1552_v42  ;;  %v4225_v22 = vld [vmem:[%s4411_s12 + $0x40] sm:$0xff] }
  0x4f   : > { %v1547_v21 = vor.u32 %v1546_v29, %v1543_v28  ;;  %v1297_v28 = vrot.slane %v4225_v22, 1  ;;  %v1577_v29 = vshrl.u32 %v4224_v60, 16 }
  0x51   : > { %v1548_v32 = vsel %vm1522_vm4, %v1538_v8, %v1547_v21  ;;  %v1579_v37 = vrot.slane %v1577_v29, 1 }
  0x5a   : > { %3911 = vmatmul.msk.bf16.gmra.mxu1 %vm622_vm2, %v4518_v36  ;;  %v924_v36 = vrot.slane %v4259_v1, 1  ;;  %v1295_v1 = vrot.slane %v4224_v60, 1 }
  0x5b   : > { %3916 = vmatmul.msk.bf16.gmra.mxu2 %vm622_vm2, %v593_v53 }
  0x5c   : > { %3906 = vmatmul.msk.bf16.gmra.mxu0 %vm622_vm2, %v513_v61  ;;  %v925_v61 = vrot.slane %v4433_v16, 1  ;;  %v1296_v6 = vsel %vm923_vm3, %v1293_v27, %v1295_v1 }
  0x5d   : > { %4025 = vmatmul.msk.bf16.gmra.mxu3 %vm622_vm2, %v1288_v2  ;;  %v1568_v2 = vshrl.u32 %v4223_v50, 16 }
  0x5e   : > { %v926_v12 = vsel %vm923_vm3, %v924_v36, %v925_v61  ;;  %v928_v31 = vsel %vm923_vm3, %v925_v61, %v927_v30  ;;  %v1580_v30 = vshll.u32 %v4224_v60, 16  ;;  %v937_v60 = vrot.slane %v4460_v40, 1 }
  0x5f   : > { %v1570_v61 = vrot.slane %v1568_v2, 1 }
  0x61   : > { %v1574_v8 = vor.u32 %v1573_v7, %v1570_v61  ;;  %v4227_v61 = vld [vmem:[%s4411_s12 + $0x50] sm:$0xff] }
  0x6a   : > { %3920 = vmatmul.msk.bf16.vlgmr.msrb.gmra.mxu1 %vm622_vm2, %v4430_v15  ;;  %v4222_v15 = vld [vmem:[%s4411_s12 + $0x28] sm:$0xff] }
  0x6b   : > { %3938 = vmatmul.msk.bf16.vlgmr.msrb.gmra.mxu2 %vm622_vm2, %v926_v12  ;;  %v1291_v35 = vrot.slane %v4222_v15, 1  ;;  %v1559_v51 = vshrl.u32 %v4222_v15, 16  ;;  %v1562_v52 = vshll.u32 %v4222_v15, 16 }
  0x6c   : > { %4042 = vmatmul.msk.bf16.vlgmr.msrb.gmra.mxu0 %vm622_vm2, %v1539_v19 }
  0x6d   : > { %4026 = vmatmul.msk.bf16.gmra.mxu3 %vm622_vm2, %v1290_v26  ;;  %v1292_v39 = vsel %vm923_vm3, %v1289_v20, %v1291_v35  ;;  %v1294_v53 = vsel %vm923_vm3, %v1291_v35, %v1293_v27  ;;  %v1561_v54 = vrot.slane %v1559_v51, 1  ;;  %v1564_v55 = vrot.slane %v1562_v52, 2 }
  0x6e   : > { %v1586_v51 = vshrl.u32 %v4225_v22, 16  ;;  %v1589_v52 = vshll.u32 %v4225_v22, 16 }
  0x6f   : > { %v1565_v57 = vor.u32 %v1564_v55, %v1561_v54 }
  0x71   : > { %v1566_v63 = vsel %vm1522_vm4, %v1556_v47, %v1565_v57  ;;  %v1575_v26 = vsel %vm1522_vm4, %v1565_v57, %v1574_v8 }
  0x7a   : > { %3921 = vmatmul.msk.bf16.gmra.mxu1 %vm622_vm2, %v4433_v16  ;;  %v1557_v16 = vsel %vm1522_vm4, %v1547_v21, %v1556_v47 }
  0x7b   : > { %3939 = vmatmul.msk.bf16.gmra.mxu2 %vm622_vm2, %v928_v31 }
  0x7c   : > { %4043 = vmatmul.msk.bf16.gmra.mxu0 %vm622_vm2, %v1548_v32  ;;  %v1298_v32 = vsel %vm923_vm3, %v1295_v1, %v1297_v28 }
  0x7d   : > { %4027 = vmatmul.msk.bf16.gmra.mxu3 %vm622_vm2, %v1292_v39 }
  0x8a   : > { %3922 = vmatmul.msk.bf16.gmra.mxu1 %vm622_vm2, %v4469_v45  ;;  %v932_v45 = vsel %vm923_vm3, %v929_v44, %v931_v56 }
  0x8b   : > { %3940 = vmatmul.msk.bf16.gmra.mxu2 %vm622_vm2, %v930_v49  ;;  %v4226_v49 = vld [vmem:[%s4411_s12 + $0x48] sm:$0xff] }
  0x8c   : > { %4044 = vmatmul.msk.bf16.gmra.mxu0 %vm622_vm2, %v1557_v16  ;;  %v1299_v27 = vrot.slane %v4226_v49, 1  ;;  %v1598_v22 = vshll.u32 %v4226_v49, 16 }
  0x8d   : > { %4028 = vmatmul.msk.bf16.gmra.mxu3 %vm622_vm2, %v1294_v53 }
  0x97   : > { %v4620_v59 = vpop.f32.mrf.mxu1 }
  0x99   : > { %v4624_v62 = vpop.f32.mrf.mxu0 }
  0x9a   : > { %3923 = vmatmul.msk.bf16.gmra.mxu1 %vm622_vm2, %v4505_v23  ;;  %v933_v23 = vrot.slane %v4416_v9, 1 }
  0x9b   : > { %3941 = vmatmul.msk.bf16.gmra.mxu2 %vm622_vm2, %v932_v45  ;;  %v1588_v45 = vrot.slane %v1586_v51, 1  ;;  %v4228_v51 = vld [vmem:[%s4411_s12 + $0x58] sm:$0xff] }
  0x9c   : > { %4045 = vmatmul.msk.bf16.gmra.mxu0 %vm622_vm2, %v1566_v63  ;;  %v934_v20 = vsel %vm923_vm3, %v931_v56, %v933_v23  ;;  %v936_v47 = vsel %vm923_vm3, %v933_v23, %v935_v38  ;;  %v1300_v56 = vsel %vm923_vm3, %v1297_v28, %v1299_v27 }
  0x9d   : > { %4029 = vmatmul.msk.bf16.gmra.mxu3 %vm622_vm2, %v1296_v6  ;;  %v938_v6 = vsel %vm923_vm3, %v935_v38, %v937_v60 }
  0x9e   : > { %v4631_v3 = vpop.f32.mrf.mxu2 }
  0x9f   : > { %v4633_v4 = vpop.f32.mrf.mxu1 }
  0xa0   : > { %v4642_v13 = vpop.f32.mrf.mxu3 }
  0xa1   : > { %v4636_v36 = vpop.f32.mrf.mxu0  ;;  %5859 = vst [vmem:[#allocation2_spill] sm:$0xff] %v4642_v13 }
  0xa6   : > { %v4640_v12 = vpop.f32.mrf.mxu2 }
  0xa7   : > { %v4644_v19 = vpop.f32.mrf.mxu1 }
  0xa8   : > { %v4657_v31 = vpop.f32.mrf.mxu3 }
  0xa9   : > { %v4648_v24 = vpop.f32.mrf.mxu0  ;;  %5860 = vst [vmem:[#allocation3_spill] sm:$0xff] %v4657_v31 }
  0xaa   : > { %3924 = vmatmul.msk.bf16.gmra.mxu1 %vm622_vm2, %v4514_v33  ;;  %v1582_v33 = vrot.slane %v1580_v30, 2 }
  0xab   : > { %3942 = vmatmul.msk.bf16.gmra.mxu2 %vm622_vm2, %v934_v20  ;;  %v1595_v20 = vshrl.u32 %v4226_v49, 16 }
  0xac   : > { %4046 = vmatmul.msk.bf16.gmra.mxu0 %vm622_vm2, %v1575_v26  ;;  %v1583_v39 = vor.u32 %v1582_v33, %v1579_v37  ;;  %v939_v33 = vrot.slane %v4497_v17, 1 }
  0xad   : > { %4030 = vmatmul.msk.bf16.gmra.mxu3 %vm622_vm2, %v1298_v32  ;;  %v1597_v37 = vrot.slane %v1595_v20, 1 }
  0xae   : > { %v4655_v21 = vpop.f32.mrf.mxu2  ;;  %v1584_v16 = vsel %vm1522_vm4, %v1574_v8, %v1583_v39  ;;  %v1301_v8 = vrot.slane %v4227_v61, 1 }
  0xaf   : > { %v4659_v15 = vpop.f32.mrf.mxu1 }
  0xb0   : > { %v4668_v43 = vpop.f32.mrf.mxu3  ;;  %v1302_v30 = vsel %vm923_vm3, %v1299_v27, %v1301_v8 }
  0xb1   : > { %v4662_v35 = vpop.f32.mrf.mxu0  ;;  %5861 = vst [vmem:[#allocation4_spill] sm:$0xff] %v4668_v43 }
  0xb6   : > { %v4666_v42 = vpop.f32.mrf.mxu2 }
  0xb7   : > { %v4670_v44 = vpop.f32.mrf.mxu1 }
  0xb8   : > { %v4683_v54 = vpop.f32.mrf.mxu3 }
  0xb9   : > { %v4674_v50 = vpop.f32.mrf.mxu0  ;;  %5862 = vst [vmem:[#allocation5_spill] sm:$0xff] %v4683_v54 }
  0xba   : > { %3925 = vmatmul.msk.bf16.gmra.mxu1 %vm622_vm2, %v4416_v9  ;;  %v1591_v9 = vrot.slane %v1589_v52, 2 }
  0xbb   : > { %3943 = vmatmul.msk.bf16.gmra.mxu2 %vm622_vm2, %v936_v47 }
  0xbc   : > { %4047 = vmatmul.msk.bf16.gmra.mxu0 %vm622_vm2, %v1584_v16  ;;  %v1592_v63 = vor.u32 %v1591_v9, %v1588_v45  ;;  %v940_v16 = vsel %vm923_vm3, %v937_v60, %v939_v33  ;;  %v1604_v45 = vshrl.u32 %v4227_v61, 16  ;;  %v1607_v9 = vshll.u32 %v4227_v61, 16 }
  0xbd   : > { %4031 = vmatmul.msk.bf16.gmra.mxu3 %vm622_vm2, %v1300_v56  ;;  %v1303_v56 = vrot.slane %v4228_v51, 1 }
  0xbe   : > { %v4681_v53 = vpop.f32.mrf.mxu2  ;;  %v1593_v23 = vsel %vm1522_vm4, %v1583_v39, %v1592_v63 }
  0xbf   : > { %v4685_v55 = vpop.f32.mrf.mxu1  ;;  %v1304_v20 = vsel %vm923_vm3, %v1301_v8, %v1303_v56  ;;  %v1305_v8 = vrot.slane %v4229_v25, 1 }
  0xc0   : > { %v4694_v2 = vpop.f32.mrf.mxu3 }
  0xc1   : > { %v4688_v57 = vpop.f32.mrf.mxu0  ;;  %5863 = vst [vmem:[#allocation6_spill] sm:$0xff] %v4694_v2  ;;  %v1306_v43 = vsel %vm923_vm3, %v1303_v56, %v1305_v8  ;;  %v4230_v56 = vld [vmem:[%s4411_s12 + $0x68] sm:$0xff] }
  0xc6   : > { %v4692_v1 = vpop.f32.mrf.mxu2 }
  0xc7   : > { %v4696_v46 = vpop.f32.mrf.mxu1 }
  0xc8   : > { %v4709_v28 = vpop.f32.mrf.mxu3 }
  0xc9   : > { %v4700_v7 = vpop.f32.mrf.mxu0  ;;  %5864 = vst [vmem:[#allocation7_spill] sm:$0xff] %v4709_v28 }
  0xca   : > { %3926 = vmatmul.msk.bf16.gmra.mxu1 %vm622_vm2, %v4419_v10  ;;  %v1600_v10 = vrot.slane %v1598_v22, 2 }
  0xcb   : > { %3944 = vmatmul.msk.bf16.gmra.mxu2 %vm622_vm2, %v938_v6 }
  0xcc   : > { %4048 = vmatmul.msk.bf16.gmra.mxu0 %vm622_vm2, %v1593_v23  ;;  %v1601_v38 = vor.u32 %v1600_v10, %v1597_v37 }
  0xcd   : > { %4032 = vmatmul.msk.bf16.gmra.mxu3 %vm622_vm2, %v1302_v30  ;;  %v1609_v30 = vrot.slane %v1607_v9, 2  ;;  %v1613_v9 = vshrl.u32 %v4228_v51, 16 }
  0xce   : > { %v4707_v26 = vpop.f32.mrf.mxu2  ;;  %v1602_v27 = vsel %vm1522_vm4, %v1592_v63, %v1601_v38  ;;  %v1606_v63 = vrot.slane %v1604_v45, 1 }
  0xcf   : > { %v4711_v29 = vpop.f32.mrf.mxu1  ;;  %v1615_v13 = vrot.slane %v1613_v9, 1 }
  0xd0   : > { %v1391_v47 = vpop.f32.mrf.mxu3  ;;  %v1610_v37 = vor.u32 %v1609_v30, %v1606_v63 }
  0xd1   : > { %v4714_v32 = vpop.f32.mrf.mxu0 }
  0xd2   : > { %v1611_v2 = vsel %vm1522_vm4, %v1601_v38, %v1610_v37 }
  0xd6   : > { %v4718_v39 = vpop.f32.mrf.mxu2 }
  0xd7   : > { %v4720_v49 = vpop.f32.mrf.mxu1 }
  0xd8   : > { %v1393_v23 = vpop.f32.mrf.mxu3 }
  0xd9   : > { %v4724_v52 = vpop.f32.mrf.mxu0 }
  0xda   : > { %3927 = vmatmul.msk.bf16.gmra.mxu1 %vm622_vm2, %v4460_v40  ;;  %v941_v40 = vrot.slane %v4487_v0, 1 }
  0xdb   : > { %3945 = vmatmul.msk.bf16.gmra.mxu2 %vm622_vm2, %v940_v16 }
  0xdc   : > { %4049 = vmatmul.msk.bf16.gmra.mxu0 %vm622_vm2, %v1602_v27  ;;  %v942_v27 = vsel %vm923_vm3, %v939_v33, %v941_v40 }
  0xdd   : > { %4033 = vmatmul.msk.bf16.gmra.mxu3 %vm622_vm2, %v1304_v20  ;;  %v1616_v20 = vshll.u32 %v4228_v51, 16 }
  0xde   : > { %v4731_v6 = vpop.f32.mrf.mxu2 }
  0xdf   : > { %5865 = vst [vmem:[#allocation8_spill] sm:$0xff] %v4731_v6  ;;  %v4733_v60 = vpop.f32.mrf.mxu1 }
  0xe0   : > { %v1396_v16 = vpop.f32.mrf.mxu3 }
  0xe1   : > { %v4736_v22 = vpop.f32.mrf.mxu0 }
  0xe6   : > { %v4740_v10 = vpop.f32.mrf.mxu2 }
  0xe7   : > { %5866 = vst [vmem:[#allocation9_spill] sm:$0xff] %v4740_v10  ;;  %v828_v61 = vpop.f32.mrf.mxu1 }
  0xe8   : > { %v829_v45 = vadd.f32 %v828_v61, %v4624_v62  ;;  %v1398_v30 = vpop.f32.mrf.mxu3 }
  0xe9   : > { %v1759_v28 = vpop.f32.mrf.mxu0 }
  0xea   : > { %3928 = vmatmul.msk.bf16.gmra.mxu1 %vm622_vm2, %v4497_v17  ;;  %v1618_v17 = vrot.slane %v1616_v20, 2  ;;  %v1625_v20 = vshll.u32 %v4229_v25, 16 }
  0xeb   : > { %3946 = vmatmul.msk.bf16.gmra.mxu2 %vm622_vm2, %v942_v27 }
  0xec   : > { %4050 = vmatmul.msk.bf16.gmra.mxu0 %vm622_vm2, %v1611_v2  ;;  %v943_v2 = vrot.slane %v4422_v11, 1  ;;  %v1619_v51 = vor.u32 %v1618_v17, %v1615_v13 }
  0xed   : > { %4034 = vmatmul.msk.bf16.gmra.mxu3 %vm622_vm2, %v1306_v43 }
  0xee   : > { %v1027_v63 = vpop.f32.mrf.mxu2  ;;  %v944_v6 = vsel %vm923_vm3, %v941_v40, %v943_v2  ;;  %v1620_v9 = vsel %vm1522_vm4, %v1610_v37, %v1619_v51 }
  0xef   : > { %v1117_v54 = vadd.f32 %v1027_v63, %v829_v45  ;;  %v830_v33 = vpop.f32.mrf.mxu1 }
  0xf0   : > { %v831_v62 = vadd.f32 %v830_v33, %v4636_v36  ;;  %v1401_v10 = vpop.f32.mrf.mxu3  ;;  %v1307_v36 = vrot.slane %v4230_v56, 1 }
  0xf1   : > { %v1481_v38 = vadd.f32 %v1391_v47, %v1117_v54  ;;  %v1761_v31 = vpop.f32.mrf.mxu0 }
  0xf2   : > { %v1308_v37 = vsel %vm923_vm3, %v1305_v8, %v1307_v36  ;;  %v4231_v8 = vld [vmem:[%s4411_s12 + $0x70] sm:$0xff] }
  0xf3   : > { %v4752_v27 = vadd.f32 %v1759_v28, %v1481_v38  ;;  %v1622_v28 = vshrl.u32 %v4229_v25, 16 }
  0xf6   : > { %v1029_v61 = vpop.f32.mrf.mxu2 }
  0xf7   : > { %v1118_v45 = vadd.f32 %v1029_v61, %v831_v62  ;;  %v833_v63 = vpop.f32.mrf.mxu1  ;;  %v1624_v62 = vrot.slane %v1622_v28, 1  ;;  %v945_v61 = vrot.slane %v4427_v14, 1 }
  0xf8   : > { %v834_v13 = vadd.f32 %v833_v63, %v4648_v24  ;;  %v1403_v33 = vpop.f32.mrf.mxu3 }
  0xf9   : > { %v1482_v54 = vadd.f32 %v1393_v23, %v1118_v45  ;;  %v1764_v47 = vpop.f32.mrf.mxu0 }
  0xfa   : > { %3929 = vmatmul.msk.bf16.gmra.mxu1 %vm622_vm2, %v4487_v0 }
  0xfb   : > { %3947 = vmatmul.msk.bf16.gmra.mxu2 %vm622_vm2, %v944_v6  ;;  %v4762_v43 = vadd.f32 %v1761_v31, %v1482_v54  ;;  %v1627_v6 = vrot.slane %v1625_v20, 2 }
  0xfc   : > { %4051 = vmatmul.msk.bf16.gmra.mxu0 %vm622_vm2, %v1620_v9 }
  0xfd   : > { %4035 = vmatmul.msk.bf16.gmra.mxu3 %vm622_vm2, %v1308_v37  ;;  %v1628_v25 = vor.u32 %v1627_v6, %v1624_v62 }
  0xfe   : > { %v1032_v40 = vpop.f32.mrf.mxu2 }
  0xff   : > { %v1119_v23 = vadd.f32 %v1032_v40, %v834_v13  ;;  %v835_v38 = vpop.f32.mrf.mxu1  ;;  %v946_v13 = vsel %vm923_vm3, %v943_v2, %v945_v61  ;;  %v1629_v28 = vsel %vm1522_vm4, %v1619_v51, %v1628_v25 }
 0x100   : > { %v836_v24 = vadd.f32 %v835_v38, %v4662_v35  ;;  %v1406_v63 = vpop.f32.mrf.mxu3  ;;  %v1309_v35 = vrot.slane %v4231_v8, 1  ;;  %v1634_v38 = vshll.u32 %v4230_v56, 16 }
 0x101   : > { %v1483_v17 = vadd.f32 %v1396_v16, %v1119_v23  ;;  %v1766_v0 = vpop.f32.mrf.mxu0  ;;  %v1631_v23 = vshrl.u32 %v4230_v56, 16 }
 0x102   : > { %v1310_v51 = vsel %vm923_vm3, %v1307_v36, %v1309_v35  ;;  %v4232_v36 = vld [vmem:[%s4411_s12 + $0x78] sm:$0xff] }
 0x103   : > { %v4768_v31 = vadd.f32 %v1764_v47, %v1483_v17  ;;  %v1633_v6 = vrot.slane %v1631_v23, 1 }
 0x106   : > { %v1034_v45 = vpop.f32.mrf.mxu2 }
 0x107   : > { %v1120_v54 = vadd.f32 %v1034_v45, %v836_v24  ;;  %v838_v9 = vpop.f32.mrf.mxu1  ;;  %v1636_v24 = vrot.slane %v1634_v38, 2  ;;  %v947_v45 = vrot.slane %v4464_v41, 1 }
 0x108   : > { %v839_v20 = vadd.f32 %v838_v9, %v4674_v50  ;;  %v1408_v37 = vpop.f32.mrf.mxu3 }
 0x109   : > { %v1484_v16 = vadd.f32 %v1398_v30, %v1120_v54  ;;  %v1769_v40 = vpop.f32.mrf.mxu0  ;;  %v1637_v56 = vor.u32 %v1636_v24, %v1633_v6 }
 0x10a   : > { %3930 = vmatmul.msk.bf16.gmra.mxu1 %vm622_vm2, %v4422_v11 }
 0x10b   : > { %3948 = vmatmul.msk.bf16.gmra.mxu2 %vm622_vm2, %v946_v13  ;;  %v4778_v47 = vadd.f32 %v1766_v0, %v1484_v16  ;;  %v1638_v23 = vsel %vm1522_vm4, %v1628_v25, %v1637_v56 }
 0x10c   : > { %4052 = vmatmul.msk.bf16.gmra.mxu0 %vm622_vm2, %v1629_v28  ;;  %v948_v28 = vsel %vm923_vm3, %v945_v61, %v947_v45 }
 0x10d   : > { %4036 = vmatmul.msk.bf16.gmra.mxu3 %vm622_vm2, %v1310_v51 }
 0x10e   : > { %v1037_v2 = vpop.f32.mrf.mxu2 }
 0x10f   : > { %v1121_v30 = vadd.f32 %v1037_v2, %v839_v20  ;;  %v840_v17 = vpop.f32.mrf.mxu1  ;;  %v1640_v2 = vshrl.u32 %v4231_v8, 16 }
 0x110   : > { %v841_v50 = vadd.f32 %v840_v17, %v4688_v57  ;;  %v1411_v9 = vpop.f32.mrf.mxu3  ;;  %v1311_v57 = vrot.slane %v4232_v36, 1 }
 0x111   : > { %v1485_v62 = vadd.f32 %v1401_v10, %v1121_v30  ;;  %v1771_v11 = vpop.f32.mrf.mxu0  ;;  %v1643_v30 = vshll.u32 %v4231_v8, 16  ;;  %v1642_v6 = vrot.slane %v1640_v2, 1 }
 0x112   : > { %v1312_v25 = vsel %vm923_vm3, %v1309_v35, %v1311_v57  ;;  %v4233_v35 = vld [vmem:[%s4411_s12 + $0x80] sm:$0xff] }
 0x113   : > { %v4784_v0 = vadd.f32 %v1769_v40, %v1485_v62  ;;  %v1645_v24 = vrot.slane %v1643_v30, 2  ;;  %v1649_v30 = vshrl.u32 %v4232_v36, 16 }
 0x115   : > { %v1646_v8 = vor.u32 %v1645_v24, %v1642_v6  ;;  %v951_v24 = vrot.slane %v4535_v58, 1 }
 0x116   : > { %v1039_v54 = vpop.f32.mrf.mxu2 }
 0x117   : > { %v1122_v13 = vadd.f32 %v1039_v54, %v841_v50  ;;  %v843_v16 = vpop.f32.mrf.mxu1  ;;  %v949_v50 = vrot.slane %v4500_v18, 1 }
 0x118   : > { %v844_v38 = vadd.f32 %v843_v16, %v4700_v7  ;;  %v1413_v17 = vpop.f32.mrf.mxu3 }
 0x119   : > { %v1486_v10 = vadd.f32 %v1403_v33, %v1122_v13  ;;  %v1774_v20 = vpop.f32.mrf.mxu0 }
 0x11a   : > { %3931 = vmatmul.msk.bf16.gmra.mxu1 %vm622_vm2, %v4427_v14 }
 0x11b   : > { %3949 = vmatmul.msk.bf16.gmra.mxu2 %vm622_vm2, %v948_v28  ;;  %v4794_v40 = vadd.f32 %v1771_v11, %v1486_v10  ;;  %v950_v10 = vsel %vm923_vm3, %v947_v45, %v949_v50 }
 0x11c   : > { %4053 = vmatmul.msk.bf16.gmra.mxu0 %vm622_vm2, %v1638_v23 }
 0x11d   : > { %4037 = vmatmul.msk.bf16.gmra.mxu3 %vm622_vm2, %v1312_v25 }
 0x11e   : > { %v1042_v61 = vpop.f32.mrf.mxu2 }
 0x11f   : > { %v1123_v33 = vadd.f32 %v1042_v61, %v844_v38  ;;  %v845_v51 = vpop.f32.mrf.mxu1  ;;  %v1647_v38 = vsel %vm1522_vm4, %v1637_v56, %v1646_v8  ;;  %v1652_v61 = vshll.u32 %v4232_v36, 16 }
 0x120   : > { %v846_v7 = vadd.f32 %v845_v51, %v4714_v32  ;;  %v1416_v13 = vpop.f32.mrf.mxu3  ;;  %v1313_v32 = vrot.slane %v4233_v35, 1 }
 0x121   : > { %v1487_v62 = vadd.f32 %v1406_v63, %v1123_v33  ;;  %v1776_v14 = vpop.f32.mrf.mxu0  ;;  %v1654_v6 = vrot.slane %v1652_v61, 2  ;;  %v1661_v61 = vshll.u32 %v4233_v35, 16 }
 0x122   : > { %v1314_v56 = vsel %vm923_vm3, %v1311_v57, %v1313_v32  ;;  %v4234_v57 = vld [vmem:[%s4411_s12 + $0x88] sm:$0xff] }
 0x123   : > { %v4800_v11 = vadd.f32 %v1774_v20, %v1487_v62  ;;  %v1651_v62 = vrot.slane %v1649_v30, 1  ;;  %v1658_v30 = vshrl.u32 %v4233_v35, 16 }
 0x125   : > { %v1655_v36 = vor.u32 %v1654_v6, %v1651_v62  ;;  %v953_v62 = vrot.slane %v4451_v34, 1 }
 0x126   : > { %v1044_v54 = vpop.f32.mrf.mxu2 }
 0x127   : > { %v1124_v16 = vadd.f32 %v1044_v54, %v846_v7  ;;  %v848_v28 = vpop.f32.mrf.mxu1 }
 0x128   : > { %v849_v2 = vadd.f32 %v848_v28, %v4724_v52  ;;  %v1418_v33 = vpop.f32.mrf.mxu3 }
 0x129   : > { %v1488_v63 = vadd.f32 %v1408_v37, %v1124_v16  ;;  %v1779_v23 = vpop.f32.mrf.mxu0 }
 0x12a   : > { %3932 = vmatmul.msk.bf16.gmra.mxu1 %vm622_vm2, %v4464_v41 }
 0x12b   : > { %3950 = vmatmul.msk.bf16.gmra.mxu2 %vm622_vm2, %v950_v10  ;;  %v4810_v20 = vadd.f32 %v1776_v14, %v1488_v63  ;;  %v952_v10 = vsel %vm923_vm3, %v949_v50, %v951_v24 }
 0x12c   : > { %4054 = vmatmul.msk.bf16.gmra.mxu0 %vm622_vm2, %v1647_v38  ;;  %v1656_v38 = vsel %vm1522_vm4, %v1646_v8, %v1655_v36 }
 0x12d   : > { %4038 = vmatmul.msk.bf16.gmra.mxu3 %vm622_vm2, %v1314_v56  ;;  %v1660_v56 = vrot.slane %v1658_v30, 1 }
 0x12e   : > { %v1047_v45 = vpop.f32.mrf.mxu2 }
 0x12f   : > { %v1125_v37 = vadd.f32 %v1047_v45, %v849_v2  ;;  %v850_v51 = vpop.f32.mrf.mxu1 }
 0x130   : > { %v851_v52 = vadd.f32 %v850_v51, %v4736_v22  ;;  %v1421_v54 = vpop.f32.mrf.mxu3  ;;  %v1315_v22 = vrot.slane %v4234_v57, 1 }
 0x131   : > { %v1489_v25 = vadd.f32 %v1411_v9, %v1125_v37  ;;  %v1781_v41 = vpop.f32.mrf.mxu0 }
 0x132   : > { %v1316_v8 = vsel %vm923_vm3, %v1313_v32, %v1315_v22  ;;  %v4235_v32 = vld [vmem:[%s4411_s12 + $0x90] sm:$0xff] }
 0x133   : > { %v4816_v14 = vadd.f32 %v1779_v23, %v1489_v25  ;;  %v1663_v25 = vrot.slane %v1661_v61, 2 }
 0x135   : > { %v1664_v35 = vor.u32 %v1663_v25, %v1660_v56 }
 0x136   : > { %v1049_v7 = vpop.f32.mrf.mxu2 }
 0x137   : > { %v1126_v16 = vadd.f32 %v1049_v7, %v851_v52  ;;  %v853_v28 = vpop.f32.mrf.mxu1 }
 0x138   : > { %v854_v2 = vadd.f32 %v853_v28, %v4620_v59  ;;  %v1423_v45 = vpop.f32.mrf.mxu3  ;;  %v954_v28 = vsel %vm923_vm3, %v951_v24, %v953_v62  ;;  %v1667_v24 = vshrl.u32 %v4234_v57, 16 }
 0x139   : > { %v1490_v9 = vadd.f32 %v1413_v17, %v1126_v16  ;;  %v1784_v63 = vpop.f32.mrf.mxu0 }
 0x13a   : > { %3933 = vmatmul.msk.bf16.gmra.mxu1 %vm622_vm2, %v4500_v18 }
 0x13b   : > { %3951 = vmatmul.msk.bf16.gmra.mxu2 %vm622_vm2, %v952_v10  ;;  %v4826_v23 = vadd.f32 %v1781_v41, %v1490_v9  ;;  %v1665_v9 = vsel %vm1522_vm4, %v1655_v36, %v1664_v35 }
 0x13c   : > { %4055 = vmatmul.msk.bf16.gmra.mxu0 %vm622_vm2, %v1656_v38  ;;  %v1670_v38 = vshll.u32 %v4234_v57, 16 }
 0x13d   : > { %4039 = vmatmul.msk.bf16.gmra.mxu3 %vm622_vm2, %v1316_v8  ;;  %v1189_v8 = vld [vmem:[%s4411_s12 + $0x98] sm:$0x1] }
 0x13e   : > { %v1052_v50 = vpop.f32.mrf.mxu2 }
 0x13f   : > { %v1127_v17 = vadd.f32 %v1052_v50, %v854_v2  ;;  %v855_v37 = vpop.f32.mrf.mxu1 }
 0x140   : > { %v856_v59 = vadd.f32 %v855_v37, %v4633_v4  ;;  %v1426_v52 = vpop.f32.mrf.mxu3  ;;  %v1317_v4 = vrot.slane %v4235_v32, 1  ;;  %v1672_v37 = vrot.slane %v1670_v38, 2 }
 0x141   : > { %v1491_v51 = vadd.f32 %v1416_v13, %v1127_v17  ;;  %v1786_v18 = vpop.f32.mrf.mxu0  ;;  %v1669_v17 = vrot.slane %v1667_v24, 1  ;;  %v4295_v24 = vld [vmem:[%s4411_s12 + $0x78] sm:$0xff] }
 0x143   : > { %v4832_v41 = vadd.f32 %v1784_v63, %v1491_v51 }
 0x146   : > { %v1054_v6 = vpop.f32.mrf.mxu2 }
 0x147   : > { %v1128_v7 = vadd.f32 %v1054_v6, %v856_v59  ;;  %v858_v16 = vpop.f32.mrf.mxu1 }
 0x148   : > { %v859_v63 = vadd.f32 %v858_v16, %v4644_v19  ;;  %v4846_v2 = vpop.f32.mrf.mxu3  ;;  %v4854_v19 = vld [vmem:[%s4411_s12 + $0x80] sm:$0xff] }
 0x149   : > { %v1492_v13 = vadd.f32 %v1418_v33, %v1128_v7  ;;  %v1789_v10 = vpop.f32.mrf.mxu0  ;;  %v955_v57 = vrot.slane %v4854_v19, 1 }
 0x14a   : > { %3934 = vmatmul.msk.bf16.gmra.mxu1 %vm622_vm2, %v4535_v58  ;;  %v1318_v58 = vsel %vm923_vm3, %v1315_v22, %v1317_v4  ;;  %v1673_v22 = vor.u32 %v1672_v37, %v1669_v17  ;;  %v4878_v37 = vld [vmem:[%s4411_s12 + $0x18] sm:$0xff] }
 0x14b   : > { %3952 = vmatmul.msk.bf16.gmra.mxu2 %vm622_vm2, %v954_v28  ;;  %v4842_v34 = vadd.f32 %v1786_v18, %v1492_v13  ;;  %v1264_v18 = vunpack.c.l.b16 %v1189_v8  ;;  %v956_v7 = vsel %vm923_vm3, %v953_v62, %v955_v57 }
 0x14c   : > { %4056 = vmatmul.msk.bf16.gmra.mxu0 %vm622_vm2, %v1665_v9  ;;  %v2124_v9 = vld [vmem:[%s4411_s12 + $0x10] sm:$0xc] }
 0x14d   : > { %4040 = vmatmul.msk.bf16.gmra.mxu3 %vm622_vm2, %v1318_v58  ;;  %v1283_v16 = vpack.c.b16 %v1264_v18, %v1264_v18  ;;  %v2199_v62 = vunpack.c.l.b16 %v2124_v9 }
 0x14e   : > { %v1057_v33 = vpop.f32.mrf.mxu2 }
 0x14f   : > { %v1129_v36 = vadd.f32 %v1057_v33, %v859_v63  ;;  %v860_v30 = vpop.f32.mrf.mxu1  ;;  %v4864_v63 = vld [vmem:[%s4411_s12 + $0x14] sm:$0xf]  ;;  %v1319_v38 = vrot.slane %v1283_v16, 1  ;;  %v1676_v33 = vshrl.u32 %v4235_v32, 16 }
 0x150   : > { %v861_v56 = vadd.f32 %v860_v30, %v4659_v15  ;;  %v4858_v25 = vpop.f32.mrf.mxu3 }
 0x151   : > { %v1493_v61 = vadd.f32 %v1421_v54, %v1129_v36  ;;  %v1791_v50 = vpop.f32.mrf.mxu0  ;;  %v1679_v36 = vshll.u32 %v4235_v32, 16 }
 0x153   : > { %v4851_v51 = vadd.f32 %v1789_v10, %v1493_v61  ;;  %v1674_v10 = vsel %vm1522_vm4, %v1664_v35, %v1673_v22 }
 0x156   : > { %v1059_v54 = vpop.f32.mrf.mxu2 }
 0x157   : > { %v1130_v59 = vadd.f32 %v1059_v54, %v861_v56  ;;  %v863_v6 = vpop.f32.mrf.mxu1  ;;  %v1678_v54 = vrot.slane %v1676_v33, 1 }
 0x158   : > { %v864_v35 = vadd.f32 %v863_v6, %v4670_v44  ;;  %v4874_v58 = vpop.f32.mrf.mxu3  ;;  %v1517_v44 = vld [vmem:[%s4411_s12 + $0x98] sm:$0x3]  ;;  %v4886_v6 = vld [vmem:[%s4411_s12 + $0x88] sm:$0xff] }
 0x159   : > { %v1494_v28 = vadd.f32 %v1423_v45, %v1130_v59  ;;  %v1794_v13 = vpop.f32.mrf.mxu0  ;;  %v5857_v45 = vunpack.c.l.b16 %v4864_v63  ;;  %v1681_v59 = vrot.slane %v1679_v36, 2  ;;  %v957_v32 = vrot.slane %v4886_v6, 1 }
 0x15a   : > { %3935 = vmatmul.msk.bf16.gmra.mxu1 %vm622_vm2, %v4295_v24  ;;  %v1520_v24 = vunpack.c.l.b16 %v1517_v44 }
 0x15b   : > { %3953 = vmatmul.msk.bf16.gmra.mxu2 %vm622_vm2, %v956_v7  ;;  %v4869_v15 = vadd.f32 %v1791_v50, %v1494_v28  ;;  %v1320_v50 = vsel %vm923_vm3, %v1317_v4, %v1319_v38  ;;  %v4882_v8 = vpack.c.b16 %v5857_v45, %v2199_v62  ;;  %v2499_v28 = vshrl.u32 %v4878_v37, 16 }
 0x15c   : > { %4057 = vmatmul.msk.bf16.gmra.mxu0 %vm622_vm2, %v1674_v10  ;;  %v1682_v9 = vor.u32 %v1681_v59, %v1678_v54  ;;  %v958_v33 = vsel %vm923_vm3, %v955_v57, %v957_v32 }
 0x15d   : > { %5867 = vst [vmem:[#allocation10_spill] sm:$0xff] %v4869_v15  ;;  %4041 = vmatmul.msk.bf16.gmra.mxu3 %vm622_vm2, %v1320_v50  ;;  %v2491_v4 = vshrl.u32 %v4882_v8, 16  ;;  %v2494_v16 = vshll.u32 %v4882_v8, 16  ;;  %v4902_v15 = vpack.c.b16 %v1520_v24, %v1520_v24  ;;  %v959_v24 = vrot.slane %v4524_v48, 1 }
 0x15e   : > { %v1062_v30 = vpop.f32.mrf.mxu2 }
 0x15f   : > { %v1131_v61 = vadd.f32 %v1062_v30, %v864_v35  ;;  %v865_v17 = vpop.f32.mrf.mxu1  ;;  %v2493_v36 = vrot.slane %v2491_v4, 2  ;;  %v2496_v30 = vrot.slane %v2494_v16, 3 }
 0x160   : > { %v866_v10 = vadd.f32 %v865_v17, %v4685_v55  ;;  %v4897_v62 = vpop.f32.mrf.mxu3 }
 0x161   : > { %v1495_v18 = vadd.f32 %v1426_v52, %v1131_v61  ;;  %v1796_v56 = vpop.f32.mrf.mxu0  ;;  %v2502_v52 = vshll.u32 %v4878_v37, 16  ;;  %v2501_v61 = vrot.slane %v2499_v28, 2  ;;  %v2497_v57 = vor.u32 %v2496_v30, %v2493_v36 }
 0x163   : > { %v4890_v7 = vadd.f32 %v1794_v13, %v1495_v18  ;;  %v2504_v50 = vrot.slane %v2502_v52, 3 }
 0x165   : > { %5868 = vst [vmem:[#allocation11_spill] sm:$0xff] %v4890_v7  ;;  %v1683_v7 = vsel %vm1522_vm4, %v1673_v22, %v1682_v9  ;;  %v2505_v17 = vor.u32 %v2504_v50, %v2501_v61  ;;  %v1688_v22 = vshll.u32 %v4902_v15, 16  ;;  %v960_v50 = vsel %vm923_vm3, %v957_v32, %v959_v24  ;;  %v4947_v24 = vld [vmem:[%s4411_s12 + $0x28] sm:$0xff] }
 0x166   : > { %v1064_v38 = vpop.f32.mrf.mxu2 }
 0x167   : > { %v1132_v35 = vadd.f32 %v1064_v38, %v866_v10  ;;  %v868_v13 = vpop.f32.mrf.mxu1  ;;  %v2506_v16 = vsel %vm2489_vm5, %v2497_v57, %v2505_v17 }
 0x168   : > { %v869_v54 = vadd.f32 %v868_v13, %v4696_v46  ;;  %v4913_v44 = vpop.f32.mrf.mxu3  ;;  %v1690_v46 = vrot.slane %v1688_v22, 2  ;;  %v2856_v22 = vld [vmem:[%s4411_s12 + $0x10] sm:$0x8] }
 0x169   : > { %v1496_v18 = vadd.f32 %v4846_v2, %v1132_v35  ;;  %v1799_v45 = vpop.f32.mrf.mxu0  ;;  %v1685_v2 = vshrl.u32 %v4902_v15, 16 }
 0x16a   : > { %3936 = vmatmul.msk.bf16.gmra.mxu1 %vm622_vm2, %v4854_v19 }
 0x16b   : > { %3954 = vmatmul.msk.bf16.gmra.mxu2 %vm622_vm2, %v958_v33  ;;  %v4907_v55 = vadd.f32 %v1796_v56, %v1496_v18  ;;  %v4917_v56 = vld [vmem:[%s4411_s12 + $0x20] sm:$0xff]  ;;  %v1687_v52 = vrot.slane %v1685_v2, 1  ;;  %v1885_v18 = vld [vmem:[%s4411_s12 + $0x8] sm:$0xc] }
 0x16c   : > { %4058 = vmatmul.msk.bf16.gmra.mxu0 %vm622_vm2, %v1683_v7  ;;  %v2508_v38 = vshrl.u32 %v4917_v56, 16  ;;  %v2511_v35 = vshll.u32 %v4917_v56, 16 }
 0x16d   : > { %4164 = vmatmul.msk.bf16.vlgmr.msra.gmra.mxu3 %vm622_vm2, %v2506_v16  ;;  %v1691_v13 = vor.u32 %v1690_v46, %v1687_v52 }
 0x16e   : > { %v1067_v59 = vpop.f32.mrf.mxu2  ;;  %v2513_v57 = vrot.slane %v2511_v35, 3  ;;  %v5870_v35 = vunpack.c.l.b16 %v4864_v63  ;;  %v2256_v63 = vrot.slane %v4878_v37, 2 }
 0x16f   : > { %v1133_v4 = vadd.f32 %v1067_v59, %v869_v54  ;;  %v870_v19 = vpop.f32.mrf.mxu1  ;;  %v1692_v2 = vsel %vm1522_vm4, %v1682_v9, %v1691_v13  ;;  %v4339_v13 = vmov 0  }
 0x170   : > { %v871_v33 = vadd.f32 %v870_v19, %v4711_v29  ;;  %v1888_v29 = vunpack.c.l.b16 %v1885_v18  ;;  %v2859_v19 = vunpack.c.l.b16 %v2856_v22  ;;  %4290 = vset.pattern.permute.xlu0 %v4339_v13  ;;  %4291 = vset.pattern.permute.xlu1 %v4339_v13 }
 0x171   : > { %v1497_v7 = vadd.f32 %v4858_v25, %v1133_v4  ;;  %v1801_v28 = vpop.f32.mrf.mxu0  ;;  %v4927_v25 = vpop.f32.mrf.mxu3  ;;  %4292 = vset.pattern.permute.xlu2 %v4339_v13 }
 0x173   : > { %v4921_v10 = vadd.f32 %v1799_v45, %v1497_v7  ;;  %v2510_v45 = vrot.slane %v2508_v38, 2  ;;  %v5869_v7 = vunpack.c.l.b16 %v4546_v5 }
 0x175   : > { %v2514_v32 = vor.u32 %v2513_v57, %v2510_v45  ;;  %v1889_v52 = vpack.c.b16 %v5869_v7, %v1888_v29  ;;  %v2863_v57 = vrot.slane %v4878_v37, 3  ;;  %v3205_v37 = vld [vmem:[%s5852_s3 + $0x8] sm:$0xff] }
 0x176   : > { %v1069_v36 = vpop.f32.mrf.mxu2 }
 0x177   : > { %v1134_v30 = vadd.f32 %v1069_v36, %v871_v33  ;;  %v873_v61 = vpop.f32.mrf.mxu1  ;;  %v2515_v46 = vsel %vm2489_vm5, %v2505_v17, %v2514_v32  ;;  %v3204_v33 = vld [vmem:[%s5852_s3] sm:$0xff]  ;;  %v1891_v5 = vrot.slane %v1889_v52, 2  ;;  %v4297_v36 = vld [vmem:[%s4411_s12 + $0x10] sm:$0xff] }
 0x178   : > { %v874_v4 = vadd.f32 %v873_v61, %v4720_v49  ;;  %v2860_v49 = vpack.c.b16 %v5870_v35, %v2859_v19  ;;  %3242 = vperm.xlu0 %4290, %v3204_v33   ;;  %v2517_v61 = vshrl.u32 %v4947_v24, 16  ;;  %v4980_v33 = vld [vmem:[%s4411_s12 + $0x30] sm:$0xff] }
 0x179   : > { %v1498_v48 = vadd.f32 %v4874_v58, %v1134_v30  ;;  %v1804_v54 = vpop.f32.mrf.mxu0  ;;  %v4941_v16 = vpop.f32.mrf.mxu3  ;;  %v1892_v30 = vrot.slane %v4297_v36, 2 }
 0x17a   : > { %3937 = vmatmul.msk.bf16.gmra.mxu1 %vm622_vm2, %v4886_v6  ;;  %v2862_v45 = vrot.slane %v2860_v49, 3 }
 0x17b   : > { %3955 = vmatmul.msk.bf16.gmra.mxu2 %vm622_vm2, %v960_v50  ;;  %v4937_v59 = vadd.f32 %v1801_v28, %v1498_v48  ;;  %v2520_v50 = vshll.u32 %v4947_v24, 16 }
 0x17c   : > { %4059 = vmatmul.msk.bf16.gmra.mxu0 %vm622_vm2, %v1692_v2 }
 0x17d   : > { %4165 = vmatmul.msk.bf16.gmra.mxu3 %vm622_vm2, %v2515_v46  ;;  %v2522_v19 = vrot.slane %v2520_v50, 3  ;;  %v2529_v50 = vshll.u32 %v4980_v33, 16 }
 0x17e   : > { %v1072_v58 = vpop.f32.mrf.mxu2 }
 0x17f   : > { %v1135_v9 = vadd.f32 %v1072_v58, %v874_v4  ;;  %v875_v6 = vpop.f32.mrf.mxu1  ;;  %v2519_v4 = vrot.slane %v2517_v61, 2  ;;  %v2258_v61 = vrot.slane %v4917_v56, 2 }
 0x180   : > { %v876_v18 = vadd.f32 %v875_v6, %v4733_v60  ;;  %v2864_v60 = vsel %vm2861_vm7, %v2862_v45, %v2863_v57  ;;  %3247 = vperm.xlu0 %4290, %v3205_v37  }
 0x181   : > { %v1499_v28 = vadd.f32 %v4897_v62, %v1135_v9  ;;  %v1806_v38 = vpop.f32.mrf.mxu0  ;;  %v2255_v62 = vrot.slane %v4882_v8, 2  ;;  %v1446_v2 = vpop.f32.mrf.mxu3  ;;  %v1893_v8 = vsel %vm1890_vm6, %v1891_v5, %v1892_v30  ;;  %v2523_v52 = vor.u32 %v2522_v19, %v2519_v4 }
 0x182   : > { %v2531_v19 = vrot.slane %v2529_v50, 3 }
 0x183   : > { %v4957_v17 = vadd.f32 %v1804_v54, %v1499_v28  ;;  %v2257_v29 = vsel %vm1890_vm6, %v2255_v62, %v2256_v63  ;;  %v2524_v49 = vsel %vm2489_vm5, %v2514_v32, %v2523_v52  ;;  %v2526_v32 = vshrl.u32 %v4980_v33, 16 }
 0x185   : > { %v2528_v4 = vrot.slane %v2526_v32, 2 }
 0x186   : > { %v1074_v48 = vpop.f32.mrf.mxu2 }
 0x187   : > { %v1136_v54 = vadd.f32 %v1074_v48, %v876_v18  ;;  %v878_v22 = vpop.f32.mrf.mxu1  ;;  %v2865_v18 = vrot.slane %v4917_v56, 3 }
 0x189   : > { %v1500_v58 = vadd.f32 %v4913_v44, %v1136_v54  ;;  %v1809_v9 = vpop.f32.mrf.mxu0  ;;  %v879_v44 = vadd.f32 %v878_v22, %v4631_v3  ;;  %v1448_v46 = vpop.f32.mrf.mxu3  ;;  %v4298_v3 = vld [vmem:[%s4411_s12 + $0x18] sm:$0xff] }
 0x18a   : > { %4060 = vmatmul.msk.bf16.vlgmr.msra.gmra.mxu1 %vm622_vm2, %v1893_v8  ;;  %v1894_v62 = vrot.slane %v4298_v3, 2  ;;  %v2260_v3 = vrot.slane %v4947_v24, 2 }
 0x18b   : > { %4146 = vmatmul.msk.bf16.vlgmr.msra.gmra.mxu2 %vm622_vm2, %v2257_v29  ;;  %v4974_v7 = vadd.f32 %v1806_v38, %v1500_v58  ;;  %v3206_v38 = vld [vmem:[%s5852_s3 + $0x10] sm:$0xff]  ;;  %v2259_v29 = vsel %vm1890_vm6, %v2256_v63, %v2258_v61 }
 0x18c   : > { %4182 = vmatmul.msk.bf16.vlgmr.msra.gmra.mxu0 %vm622_vm2, %v2864_v60  ;;  %3252 = vperm.xlu1 %4291, %v3206_v38   ;;  %v1895_v8 = vsel %vm1890_vm6, %v1892_v30, %v1894_v62  ;;  %v2866_v60 = vsel %vm2861_vm7, %v2863_v57, %v2865_v18  ;;  %v2532_v30 = vor.u32 %v2531_v19, %v2528_v4 }
 0x18d   : > { %4166 = vmatmul.msk.bf16.gmra.mxu3 %vm622_vm2, %v2524_v49 }
 0x18e   : > { %v1077_v6 = vpop.f32.mrf.mxu2 }
 0x18f   : > { %v1137_v28 = vadd.f32 %v1077_v6, %v879_v44  ;;  %v880_v35 = vpop.f32.mrf.mxu1  ;;  %v2533_v6 = vsel %vm2489_vm5, %v2523_v52, %v2532_v30  ;;  %v2867_v52 = vrot.slane %v4947_v24, 3 }
 0x191   : > { %v1501_v13 = vadd.f32 %v4927_v25, %v1137_v28  ;;  %v1811_v5 = vpop.f32.mrf.mxu0  ;;  %v881_v25 = vadd.f32 %v880_v35, %v4640_v12  ;;  %v1451_v48 = vpop.f32.mrf.mxu3  ;;  %v3207_v12 = vld [vmem:[%s5852_s3 + $0x18] sm:$0xff] }
 0x192   : > { %v5010_v28 = vld [vmem:[%s4411_s12 + $0x38] sm:$0xff] }
 0x193   : > { %v4987_v36 = vadd.f32 %v1809_v9, %v1501_v13  ;;  %v2538_v32 = vshll.u32 %v5010_v28, 16 }
 0x194   : > { %3257 = vperm.xlu1 %4291, %v3207_v12  }
 0x195   : > { %v2540_v4 = vrot.slane %v2538_v32, 3 }
 0x196   : > { %v1079_v45 = vpop.f32.mrf.mxu2 }
 0x197   : > { %v1138_v54 = vadd.f32 %v1079_v45, %v881_v25  ;;  %v883_v22 = vpop.f32.mrf.mxu1 }
 0x199   : > { %v1502_v58 = vadd.f32 %v4941_v16, %v1138_v54  ;;  %v1814_v9 = vpop.f32.mrf.mxu0  ;;  %v884_v16 = vadd.f32 %v883_v22, %v4655_v21  ;;  %v1453_v37 = vpop.f32.mrf.mxu3  ;;  %v2535_v21 = vshrl.u32 %v5010_v28, 16 }
 0x19a   : > { %4061 = vmatmul.msk.bf16.gmra.mxu1 %vm622_vm2, %v1895_v8  ;;  %v2261_v8 = vsel %vm1890_vm6, %v2258_v61, %v2260_v3 }
 0x19b   : > { %4147 = vmatmul.msk.bf16.gmra.mxu2 %vm622_vm2, %v2259_v29  ;;  %v5004_v56 = vadd.f32 %v1811_v5, %v1502_v58  ;;  %v4299_v5 = vld [vmem:[%s4411_s12 + $0x20] sm:$0xff]  ;;  %v2537_v29 = vrot.slane %v2535_v21, 2  ;;  %v2869_v21 = vrot.slane %v4980_v33, 3 }
 0x19c   : > { %4183 = vmatmul.msk.bf16.gmra.mxu0 %vm622_vm2, %v2866_v60  ;;  %v1896_v38 = vrot.slane %v4299_v5, 2 }
 0x19d   : > { %4167 = vmatmul.msk.bf16.gmra.mxu3 %vm622_vm2, %v2533_v6  ;;  %v2541_v24 = vor.u32 %v2540_v4, %v2537_v29 }
 0x19e   : > { %v1082_v63 = vpop.f32.mrf.mxu2  ;;  %v1897_v22 = vsel %vm1890_vm6, %v1894_v62, %v1896_v38 }
 0x19f   : > { %v1139_v57 = vadd.f32 %v1082_v63, %v884_v16  ;;  %v885_v44 = vpop.f32.mrf.mxu1  ;;  %v2542_v16 = vsel %vm2489_vm5, %v2532_v30, %v2541_v24 }
 0x1a0   : > { %v886_v50 = vadd.f32 %v885_v44, %v4666_v42  ;;  %v3210_v44 = vld [vmem:[%s5852_s3 + $0x30] sm:$0xff] }
 0x1a1   : > { %v1503_v35 = vadd.f32 %v1446_v2, %v1139_v57  ;;  %v1816_v49 = vpop.f32.mrf.mxu0  ;;  %v1456_v45 = vpop.f32.mrf.mxu3  ;;  %3272 = vperm.xlu0 %4290, %v3210_v44  }
 0x1a3   : > { %v5013_v13 = vadd.f32 %v1814_v9, %v1503_v35  ;;  %v2868_v9 = vsel %vm2861_vm7, %v2865_v18, %v2867_v52  ;;  %v5034_v18 = vld [vmem:[%s4411_s12 + $0x40] sm:$0xff] }
 0x1a4   : > { %v2544_v5 = vshrl.u32 %v5034_v18, 16  ;;  %v2547_v30 = vshll.u32 %v5034_v18, 16 }
 0x1a6   : > { %v1084_v25 = vpop.f32.mrf.mxu2  ;;  %v2549_v29 = vrot.slane %v2547_v30, 3 }
 0x1a7   : > { %v1140_v2 = vadd.f32 %v1084_v25, %v886_v50  ;;  %v888_v54 = vpop.f32.mrf.mxu1 }
 0x1a8   : > { %v889_v62 = vadd.f32 %v888_v54, %v4681_v53  ;;  %v4300_v53 = vld [vmem:[%s4411_s12 + $0x28] sm:$0xff] }
 0x1a9   : > { %v1504_v19 = vadd.f32 %v1448_v46, %v1140_v2  ;;  %v1819_v58 = vpop.f32.mrf.mxu0  ;;  %v5030_v60 = vpop.f32.mrf.mxu3  ;;  %v1898_v35 = vrot.slane %v4300_v53, 2 }
 0x1aa   : > { %4062 = vmatmul.msk.bf16.gmra.mxu1 %vm622_vm2, %v1897_v22 }
 0x1ab   : > { %4148 = vmatmul.msk.bf16.gmra.mxu2 %vm622_vm2, %v2261_v8  ;;  %v5026_v42 = vadd.f32 %v1816_v49, %v1504_v19  ;;  %v2262_v49 = vrot.slane %v4980_v33, 2  ;;  %v1899_v54 = vsel %vm1890_vm6, %v1896_v38, %v1898_v35  ;;  %v2546_v8 = vrot.slane %v2544_v5, 2  ;;  %v3211_v33 = vld [vmem:[%s5852_s3 + $0x38] sm:$0xff] }
 0x1ac   : > { %4184 = vmatmul.msk.bf16.gmra.mxu0 %vm622_vm2, %v2868_v9  ;;  %3277 = vperm.xlu1 %4291, %v3211_v33   ;;  %v2264_v5 = vrot.slane %v5010_v28, 2 }
 0x1ad   : > { %4168 = vmatmul.msk.bf16.gmra.mxu3 %vm622_vm2, %v2542_v16  ;;  %v2263_v22 = vsel %vm1890_vm6, %v2260_v3, %v2262_v49 }
 0x1ae   : > { %v1087_v61 = vpop.f32.mrf.mxu2 }
 0x1af   : > { %v1141_v12 = vadd.f32 %v1087_v61, %v889_v62  ;;  %v890_v46 = vpop.f32.mrf.mxu1 }
 0x1b1   : > { %v1505_v63 = vadd.f32 %v1451_v48, %v1141_v12  ;;  %v1821_v57 = vpop.f32.mrf.mxu0  ;;  %v891_v48 = vadd.f32 %v890_v46, %v4692_v1  ;;  %v5048_v50 = vpop.f32.mrf.mxu3  ;;  %v3208_v1 = vld [vmem:[%s5852_s3 + $0x20] sm:$0xff]  ;;  %v5069_v46 = vld [vmem:[%s4411_s12 + $0x48] sm:$0xff] }
 0x1b2   : > { %3262 = vperm.xlu2 %4292, %v3208_v1   ;;  %v2553_v30 = vshrl.u32 %v5069_v46, 16 }
 0x1b3   : > { %v5040_v6 = vadd.f32 %v1819_v58, %v1505_v63  ;;  %v2870_v58 = vsel %vm2861_vm7, %v2867_v52, %v2869_v21 }
 0x1b6   : > { %v1089_v32 = vpop.f32.mrf.mxu2 }
 0x1b7   : > { %v1142_v25 = vadd.f32 %v1089_v32, %v891_v48  ;;  %v893_v2 = vpop.f32.mrf.mxu1  ;;  %v2871_v48 = vrot.slane %v5010_v28, 3 }
 0x1b8   : > { %v894_v3 = vadd.f32 %v893_v2, %v4707_v26  ;;  %v4301_v26 = vld [vmem:[%s4411_s12 + $0x30] sm:$0xff] }
 0x1b9   : > { %v1506_v4 = vadd.f32 %v1453_v37, %v1142_v25  ;;  %v1824_v19 = vpop.f32.mrf.mxu0  ;;  %v2550_v37 = vor.u32 %v2549_v29, %v2546_v8  ;;  %v5065_v9 = vpop.f32.mrf.mxu3  ;;  %v1900_v53 = vrot.slane %v4301_v26, 2  ;;  %v2265_v8 = vsel %vm1890_vm6, %v2262_v49, %v2264_v5  ;;  %v4302_v26 = vld [vmem:[%s4411_s12 + $0x38] sm:$0xff] }
 0x1ba   : > { %4063 = vmatmul.msk.bf16.gmra.mxu1 %vm622_vm2, %v1899_v54  ;;  %v2555_v29 = vrot.slane %v2553_v30, 2  ;;  %v2872_v1 = vsel %vm2861_vm7, %v2869_v21, %v2871_v48  ;;  %v1902_v30 = vrot.slane %v4302_v26, 2 }
 0x1bb   : > { %4149 = vmatmul.msk.bf16.gmra.mxu2 %vm622_vm2, %v2263_v22  ;;  %v5061_v38 = vadd.f32 %v1821_v57, %v1506_v4  ;;  %v2551_v12 = vsel %vm2489_vm5, %v2541_v24, %v2550_v37  ;;  %v3209_v57 = vld [vmem:[%s5852_s3 + $0x28] sm:$0xff]  ;;  %v2556_v24 = vshll.u32 %v5069_v46, 16  ;;  %v1901_v22 = vsel %vm1890_vm6, %v1898_v35, %v1900_v53 }
 0x1bc   : > { %4185 = vmatmul.msk.bf16.gmra.mxu0 %vm622_vm2, %v2870_v58  ;;  %3267 = vperm.xlu2 %4292, %v3209_v57  }
 0x1bd   : > { %4169 = vmatmul.msk.bf16.gmra.mxu3 %vm622_vm2, %v2551_v12  ;;  %v2558_v4 = vrot.slane %v2556_v24, 3  ;;  %v2266_v24 = vrot.slane %v5034_v18, 2 }
 0x1be   : > { %v1092_v52 = vpop.f32.mrf.mxu2 }
 0x1bf   : > { %v1143_v62 = vadd.f32 %v1092_v52, %v894_v3  ;;  %v895_v61 = vpop.f32.mrf.mxu1  ;;  %v2559_v35 = vor.u32 %v2558_v4, %v2555_v29  ;;  %v1903_v4 = vsel %vm1890_vm6, %v1900_v53, %v1902_v30 }
 0x1c1   : > { %v1507_v16 = vadd.f32 %v1456_v45, %v1143_v62  ;;  %v1826_v63 = vpop.f32.mrf.mxu0  ;;  %v896_v45 = vadd.f32 %v895_v61, %v4718_v39  ;;  %v1466_v25 = vpop.f32.mrf.mxu3  ;;  %v3213_v39 = vld [vmem:[%s5852_s3 + $0x48] sm:$0xff]  ;;  %v2560_v62 = vsel %vm2489_vm5, %v2550_v37, %v2559_v35  ;;  %v5100_v61 = vld [vmem:[%s4411_s12 + $0x50] sm:$0xff] }
 0x1c2   : > { %3287 = vperm.xlu0 %4290, %v3213_v39   ;;  %v2562_v37 = vshrl.u32 %v5100_v61, 16 }
 0x1c3   : > { %v5075_v44 = vadd.f32 %v1824_v19, %v1507_v16 }
 0x1c6   : > { %v1094_v32 = vpop.f32.mrf.mxu2 }
 0x1c7   : > { %v1144_v2 = vadd.f32 %v1094_v32, %v896_v45  ;;  %v898_v54 = vpop.f32.mrf.mxu1  ;;  %v2565_v45 = vshll.u32 %v5100_v61, 16  ;;  %v5872_v32 = vld [vmem:[#allocation9_spill] sm:$0xff] }
 0x1c9   : > { %v1508_v19 = vadd.f32 %v5030_v60, %v1144_v2  ;;  %v1829_v58 = vpop.f32.mrf.mxu0  ;;  %v5871_v60 = vld [vmem:[#allocation8_spill] sm:$0xff]  ;;  %v5096_v3 = vpop.f32.mrf.mxu3  ;;  %v2873_v2 = vrot.slane %v5034_v18, 3  ;;  %v3212_v18 = vld [vmem:[%s5852_s3 + $0x40] sm:$0xff] }
 0x1ca   : > { %4064 = vmatmul.msk.bf16.gmra.mxu1 %vm622_vm2, %v1901_v22  ;;  %v899_v49 = vadd.f32 %v898_v54, %v5871_v60  ;;  %3282 = vperm.xlu2 %4292, %v3212_v18  }
 0x1cb   : > { %4150 = vmatmul.msk.bf16.gmra.mxu2 %vm622_vm2, %v2265_v8  ;;  %v5092_v28 = vadd.f32 %v1826_v63, %v1508_v19  ;;  %v3214_v63 = vld [vmem:[%s5852_s3 + $0x50] sm:$0xff]  ;;  %v2267_v19 = vsel %vm1890_vm6, %v2264_v5, %v2266_v24 }
 0x1cc   : > { %4186 = vmatmul.msk.bf16.gmra.mxu0 %vm622_vm2, %v2872_v1  ;;  %3292 = vperm.xlu1 %4291, %v3214_v63   ;;  %v2567_v1 = vrot.slane %v2565_v45, 3  ;;  %v5132_v63 = vld [vmem:[%s4411_s12 + $0x58] sm:$0xff] }
 0x1cd   : > { %4170 = vmatmul.msk.bf16.gmra.mxu3 %vm622_vm2, %v2560_v62 }
 0x1ce   : > { %v1097_v33 = vpop.f32.mrf.mxu2 }
 0x1cf   : > { %v1145_v21 = vadd.f32 %v1097_v33, %v899_v49  ;;  %v900_v52 = vpop.f32.mrf.mxu1  ;;  %v2874_v49 = vsel %vm2861_vm7, %v2871_v48, %v2873_v2 }
 0x1d1   : > { %v1509_v12 = vadd.f32 %v5048_v50, %v1145_v21  ;;  %v1831_v16 = vpop.f32.mrf.mxu0  ;;  %v901_v50 = vadd.f32 %v900_v52, %v5872_v32  ;;  %v1471_v22 = vpop.f32.mrf.mxu3  ;;  %v4303_v32 = vld [vmem:[%s4411_s12 + $0x40] sm:$0xff] }
 0x1d3   : > { %v5107_v57 = vadd.f32 %v1829_v58, %v1509_v12  ;;  %v2564_v58 = vrot.slane %v2562_v37, 2 }
 0x1d5   : > { %v2568_v53 = vor.u32 %v2567_v1, %v2564_v58 }
 0x1d6   : > { %v1099_v54 = vpop.f32.mrf.mxu2 }
 0x1d7   : > { %v1146_v8 = vadd.f32 %v1099_v54, %v901_v50  ;;  %v903_v29 = vpop.f32.mrf.mxu1  ;;  %v2569_v12 = vsel %vm2489_vm5, %v2559_v35, %v2568_v53  ;;  %v1904_v50 = vrot.slane %v4303_v32, 2  ;;  %v2268_v54 = vrot.slane %v5069_v46, 2 }
 0x1d8   : > { %v2574_v35 = vshll.u32 %v5132_v63, 16 }
 0x1d9   : > { %v1510_v39 = vadd.f32 %v5065_v9, %v1146_v8  ;;  %v1834_v60 = vpop.f32.mrf.mxu0  ;;  %v5873_v9 = vld [vmem:[#allocation2_spill] sm:$0xff]  ;;  %v5128_v52 = vpop.f32.mrf.mxu3  ;;  %v2571_v8 = vshrl.u32 %v5132_v63, 16 }
 0x1da   : > { %4065 = vmatmul.msk.bf16.gmra.mxu1 %vm622_vm2, %v1903_v4  ;;  %v904_v5 = vadd.f32 %v903_v29, %v5873_v9  ;;  %v5874_v29 = vld [vmem:[#allocation3_spill] sm:$0xff]  ;;  %v2875_v4 = vrot.slane %v5069_v46, 3  ;;  %v2576_v9 = vrot.slane %v2574_v35, 3 }
 0x1db   : > { %4151 = vmatmul.msk.bf16.gmra.mxu2 %vm622_vm2, %v2267_v19  ;;  %v5124_v33 = vadd.f32 %v1831_v16, %v1510_v39  ;;  %v3216_v16 = vld [vmem:[%s5852_s3 + $0x60] sm:$0xff]  ;;  %v2573_v18 = vrot.slane %v2571_v8, 2  ;;  %v3217_v46 = vld [vmem:[%s5852_s3 + $0x68] sm:$0xff] }
 0x1dc   : > { %4187 = vmatmul.msk.bf16.gmra.mxu0 %vm622_vm2, %v2874_v49  ;;  %3302 = vperm.xlu0 %4290, %v3216_v16   ;;  %v1905_v49 = vsel %vm1890_vm6, %v1902_v30, %v1904_v50  ;;  %v5163_v8 = vld [vmem:[%s4411_s12 + $0x60] sm:$0xff] }
 0x1dd   : > { %4171 = vmatmul.msk.bf16.gmra.mxu3 %vm622_vm2, %v2569_v12  ;;  %v2577_v30 = vor.u32 %v2576_v9, %v2573_v18  ;;  %3307 = vperm.xlu1 %4291, %v3217_v46   ;;  %v2877_v18 = vrot.slane %v5100_v61, 3 }
 0x1de   : > { %v1102_v21 = vpop.f32.mrf.mxu2 }
 0x1df   : > { %v1147_v48 = vadd.f32 %v1102_v21, %v904_v5  ;;  %v905_v62 = vpop.f32.mrf.mxu1  ;;  %v2578_v32 = vsel %vm2489_vm5, %v2568_v53, %v2577_v30  ;;  %v2583_v53 = vshll.u32 %v5163_v8, 16 }
 0x1e1   : > { %v1511_v26 = vadd.f32 %v1466_v25, %v1147_v48  ;;  %v1836_v37 = vpop.f32.mrf.mxu0  ;;  %v906_v25 = vadd.f32 %v905_v62, %v5874_v29  ;;  %v1476_v58 = vpop.f32.mrf.mxu3  ;;  %v2876_v48 = vsel %vm2861_vm7, %v2873_v2, %v2875_v4 }
 0x1e3   : > { %v5138_v45 = vadd.f32 %v1834_v60, %v1511_v26  ;;  %v2269_v60 = vsel %vm1890_vm6, %v2266_v24, %v2268_v54 }
 0x1e6   : > { %v1104_v19 = vpop.f32.mrf.mxu2 }
 0x1e7   : > { %v1148_v1 = vadd.f32 %v1104_v19, %v906_v25  ;;  %v908_v39 = vpop.f32.mrf.mxu1  ;;  %v4304_v19 = vld [vmem:[%s4411_s12 + $0x48] sm:$0xff] }
 0x1e9   : > { %v1512_v5 = vadd.f32 %v5096_v3, %v1148_v1  ;;  %v1839_v21 = vpop.f32.mrf.mxu0  ;;  %v5875_v3 = vld [vmem:[#allocation4_spill] sm:$0xff]  ;;  %v5159_v26 = vpop.f32.mrf.mxu3  ;;  %v1906_v1 = vrot.slane %v4304_v19, 2 }
 0x1ea   : > { %4066 = vmatmul.msk.bf16.gmra.mxu1 %vm622_vm2, %v1905_v49  ;;  %v909_v24 = vadd.f32 %v908_v39, %v5875_v3  ;;  %v2270_v39 = vrot.slane %v5100_v61, 2  ;;  %v2580_v49 = vshrl.u32 %v5163_v8, 16  ;;  %v3219_v61 = vld [vmem:[%s5852_s3 + $0x78] sm:$0xff] }
 0x1eb   : > { %4152 = vmatmul.msk.bf16.gmra.mxu2 %vm622_vm2, %v2269_v60  ;;  %v5155_v62 = vadd.f32 %v1836_v37, %v1512_v5  ;;  %v3215_v37 = vld [vmem:[%s5852_s3 + $0x58] sm:$0xff]  ;;  %v1907_v3 = vsel %vm1890_vm6, %v1904_v50, %v1906_v1  ;;  %3317 = vperm.xlu0 %4290, %v3219_v61  }
 0x1ec   : > { %4188 = vmatmul.msk.bf16.gmra.mxu0 %vm622_vm2, %v2876_v48  ;;  %3297 = vperm.xlu2 %4292, %v3215_v37   ;;  %v5876_v60 = vld [vmem:[#allocation5_spill] sm:$0xff] }
 0x1ed   : > { %4172 = vmatmul.msk.bf16.gmra.mxu3 %vm622_vm2, %v2578_v32 }
 0x1ee   : > { %v1107_v12 = vpop.f32.mrf.mxu2 }
 0x1ef   : > { %v1149_v2 = vadd.f32 %v1107_v12, %v909_v24  ;;  %v910_v16 = vpop.f32.mrf.mxu1  ;;  %v2582_v24 = vrot.slane %v2580_v49, 2  ;;  %v2585_v12 = vrot.slane %v2583_v53, 3 }
 0x1f1   : > { %v1513_v35 = vadd.f32 %v1471_v22, %v1149_v2  ;;  %v1841_v29 = vpop.f32.mrf.mxu0  ;;  %v911_v22 = vadd.f32 %v910_v16, %v5876_v60  ;;  %v2730_v5 = vpop.f32.mrf.mxu3  ;;  %v2586_v50 = vor.u32 %v2585_v12, %v2582_v24  ;;  %v5194_v60 = vld [vmem:[%s4411_s12 + $0x68] sm:$0xff] }
 0x1f2   : > { %v2589_v24 = vshrl.u32 %v5194_v60, 16  ;;  %v5878_v12 = vld [vmem:[#allocation7_spill] sm:$0xff] }
 0x1f3   : > { %v5169_v25 = vadd.f32 %v1839_v21, %v1513_v35  ;;  %v2271_v21 = vsel %vm1890_vm6, %v2268_v54, %v2270_v39  ;;  %v2878_v35 = vsel %vm2861_vm7, %v2875_v4, %v2877_v18  ;;  %v2587_v53 = vsel %vm2489_vm5, %v2577_v30, %v2586_v50 }
 0x1f4   : > { %v2592_v30 = vshll.u32 %v5194_v60, 16 }
 0x1f6   : > { %v1109_v9 = vpop.f32.mrf.mxu2 }
 0x1f7   : > { %v1150_v48 = vadd.f32 %v1109_v9, %v911_v22  ;;  %v913_v46 = vpop.f32.mrf.mxu1 }
 0x1f9   : > { %v1514_v2 = vadd.f32 %v5128_v52, %v1150_v48  ;;  %v1844_v32 = vpop.f32.mrf.mxu0  ;;  %v5877_v52 = vld [vmem:[#allocation6_spill] sm:$0xff]  ;;  %v5190_v19 = vpop.f32.mrf.mxu3 }
 0x1fa   : > { %4067 = vmatmul.msk.bf16.gmra.mxu1 %vm622_vm2, %v1907_v3  ;;  %v914_v54 = vadd.f32 %v913_v46, %v5877_v52  ;;  %v4305_v46 = vld [vmem:[%s4411_s12 + $0x50] sm:$0xff] }
 0x1fb   : > { %4153 = vmatmul.msk.bf16.gmra.mxu2 %vm622_vm2, %v2271_v21  ;;  %v5186_v16 = vadd.f32 %v1841_v29, %v1514_v2  ;;  %v3220_v29 = vld [vmem:[%s5852_s3 + $0x80] sm:$0xff]  ;;  %v1908_v3 = vrot.slane %v4305_v46, 2  ;;  %v2272_v21 = vrot.slane %v5132_v63, 2  ;;  %v2879_v2 = vrot.slane %v5132_v63, 3  ;;  %v3218_v63 = vld [vmem:[%s5852_s3 + $0x70] sm:$0xff] }
 0x1fc   : > { %4189 = vmatmul.msk.bf16.gmra.mxu0 %vm622_vm2, %v2878_v35  ;;  %3322 = vperm.xlu1 %4291, %v3220_v29  }
 0x1fd   : > { %4173 = vmatmul.msk.bf16.gmra.mxu3 %vm622_vm2, %v2587_v53  ;;  %v2594_v53 = vrot.slane %v2592_v30, 3  ;;  %v2880_v46 = vsel %vm2861_vm7, %v2877_v18, %v2879_v2  ;;  %3312 = vperm.xlu2 %4292, %v3218_v63  }
 0x1fe   : > { %v1112_v37 = vpop.f32.mrf.mxu2 }
 0x1ff   : > { %v1151_v4 = vadd.f32 %v1112_v37, %v914_v54  ;;  %v915_v49 = vpop.f32.mrf.mxu1  ;;  %v2273_v37 = vsel %vm1890_vm6, %v2270_v39, %v2272_v21 }
 0x201   : > { %v1515_v22 = vadd.f32 %v1476_v58, %v1151_v4  ;;  %v1846_v9 = vpop.f32.mrf.mxu0  ;;  %v916_v58 = vadd.f32 %v915_v49, %v5878_v12  ;;  %v5208_v61 = vpop.f32.mrf.mxu3  ;;  %v2591_v4 = vrot.slane %v2589_v24, 2 }
 0x203   : > { %v5200_v48 = vadd.f32 %v1844_v32, %v1515_v22  ;;  %v1909_v32 = vsel %vm1890_vm6, %v1906_v1, %v1908_v3  ;;  %v2595_v39 = vor.u32 %v2594_v53, %v2591_v4 }
 0x205   : > { %v2596_v12 = vsel %vm2489_vm5, %v2586_v50, %v2595_v39 }
 0x206   : > { %v1114_v35 = vpop.f32.mrf.mxu2 }
 0x207   : > { %v1152_v52 = vadd.f32 %v1114_v35, %v916_v58  ;;  %v1998_v54 = vpop.f32.mrf.mxu1  ;;  %v5227_v58 = vld [vmem:[%s4411_s12 + $0x70] sm:$0xff] }
 0x208   : > { %v2598_v4 = vshrl.u32 %v5227_v58, 16  ;;  %v2601_v53 = vshll.u32 %v5227_v58, 16 }
 0x209   : > { %v1516_v22 = vadd.f32 %v5159_v26, %v1152_v52  ;;  %v2965_v29 = vpop.f32.mrf.mxu0  ;;  %v2088_v26 = vadd.f32 %v1998_v54, %v4752_v27  ;;  %v5223_v18 = vpop.f32.mrf.mxu3  ;;  %v3222_v27 = vld [vmem:[%s5852_s3 + $0x90] sm:$0xff]  ;;  %v5240_v54 = vld [vmem:[%s4411_s12 + $0x58] sm:$0xff] }
 0x20a   : > { %4068 = vmatmul.msk.bf16.gmra.mxu1 %vm622_vm2, %v1909_v32  ;;  %v3243_v32 = vpop.permute.xlu0 %3242  ;;  %v1910_v50 = vrot.slane %v5240_v54, 2  ;;  %3332 = vperm.xlu0 %4290, %v3222_v27   ;;  %v5881_v54 = vrot.slane %v5194_v60, 3 }
 0x20b   : > { %4154 = vmatmul.msk.bf16.gmra.mxu2 %vm622_vm2, %v2273_v37  ;;  %v5219_v1 = vadd.f32 %v1846_v9, %v1516_v22  ;;  %v5232_v9 = vld [vmem:[%s5851_s2] ss:$0 sm:$0xff] }
 0x20c   : > { %4190 = vmatmul.msk.bf16.gmra.mxu0 %vm622_vm2, %v2880_v46 }
 0x20d   : > { %5879 = vst [vmem:[#allocation8_spill] sm:$0xff] %v5219_v1  ;;  %4174 = vmatmul.msk.bf16.gmra.mxu3 %vm622_vm2, %v2596_v12  ;;  %v5880_v1 = vrot.slane %v5163_v8, 3 }
 0x20e   : > { %v2358_v49 = vpop.f32.mrf.mxu2 }
 0x20f   : > { %v2448_v24 = vadd.f32 %v2358_v49, %v2088_v26  ;;  %v2000_v30 = vpop.f32.mrf.mxu1 }
 0x210   : > { %v2089_v22 = vadd.f32 %v2000_v30, %v4762_v43  ;;  %v1911_v43 = vsel %vm1890_vm6, %v1908_v3, %v1910_v50 }
 0x211   : > { %v2820_v35 = vadd.f32 %v2730_v5, %v2448_v24  ;;  %v2967_v52 = vpop.f32.mrf.mxu0  ;;  %v2274_v5 = vrot.slane %v5163_v8, 2  ;;  %v5254_v26 = vpop.f32.mrf.mxu3 }
 0x213   : > { %v3055_v37 = vadd.f32 %v2965_v29, %v2820_v35  ;;  %v2275_v30 = vsel %vm1890_vm6, %v2272_v21, %v2274_v5  ;;  %v2600_v35 = vrot.slane %v2598_v4, 2 }
 0x215   : > { %v3095_v29 = vadd.f32 %v5232_v9, %v3055_v37  ;;  %v2603_v37 = vrot.slane %v2601_v53, 3 }
 0x216   : > { %v2360_v63 = vpop.f32.mrf.mxu2 }
 0x217   : > { %v3131_v49 = vpack.c.bf16 %v3095_v29, %v3095_v29  ;;  %v2449_v24 = vadd.f32 %v2360_v63, %v2089_v22  ;;  %v2003_v12 = vpop.f32.mrf.mxu1  ;;  %v2882_v22 = vsel %vm2861_vm7, %v2879_v2, %v5880_v1  ;;  %v3223_v63 = vld [vmem:[%s5852_s3 + $0x98] sm:$0xff]  ;;  %v3420_v3 = vmul.f32 %v3243_v32, %v3095_v29 }
 0x218   : > { %3337 = vperm.xlu1 %4291, %v3223_v63   ;;  %v5274_v4 = vor.u32 %v2603_v37, %v2600_v35  ;;  %v2090_v2 = vadd.f32 %v2003_v12, %v4768_v31  ;;  %v5286_v31 = vld [vmem:[%s4411_s12 + $0x78] sm:$0xff] }
 0x219   : > { %3168 = vst.msk [vmem:[%s5252_s30] sm:$0xf] %vm3167_vm8, %v3131_v49  ;;  %v2821_v27 = vadd.f32 %v5190_v19, %v2449_v24  ;;  %v2970_v46 = vpop.f32.mrf.mxu0  ;;  %v3248_v19 = vpop.permute.xlu0 %3247  ;;  %v3536_v32 = vmul.f32 %v3420_v3, %v3420_v3  ;;  %v3457_v12 = vsel %vm3456_vm9, %v3420_v3, 0.0 }
 0x21a   : > { %4069 = vmatmul.msk.bf16.gmra.mxu1 %vm622_vm2, %v1911_v43  ;;  %v5278_v49 = vpop.f32.mrf.mxu3  ;;  %v2605_v35 = vsel %vm2489_vm5, %v2595_v39, %v5274_v4  ;;  %v3253_v39 = vpop.permute.xlu1 %3252 }
 0x21b   : > { %4155 = vmatmul.msk.bf16.gmra.mxu2 %vm622_vm2, %v2275_v30  ;;  %v3056_v21 = vadd.f32 %v2967_v52, %v2821_v27  ;;  %v3225_v52 = vld [vmem:[%s5852_s3 + $0xa8] sm:$0xff] }
 0x21c   : > { %4191 = vmatmul.msk.bf16.gmra.mxu0 %vm622_vm2, %v2882_v22  ;;  %3347 = vperm.xlu0 %4290, %v3225_v52   ;;  %v2607_v52 = vshrl.u32 %v5286_v31, 16 }
 0x21d   : > { %v3096_v1 = vadd.f32 %v5232_v9, %v3056_v21  ;;  %v3226_v21 = vld [vmem:[%s5852_s3 + $0xb0] sm:$0xff]  ;;  %4175 = vmatmul.msk.bf16.gmra.mxu3 %vm622_vm2, %v2605_v35 }
 0x21e   : > { %v2363_v53 = vpop.f32.mrf.mxu2 }
 0x21f   : > { %v3132_v29 = vpack.c.bf16 %v3096_v1, %v3096_v1  ;;  %v3421_v24 = vmul.f32 %v3248_v19, %v3096_v1  ;;  %v2450_v43 = vadd.f32 %v2363_v53, %v2090_v2  ;;  %v2005_v30 = vpop.f32.mrf.mxu1  ;;  %v3572_v2 = vsel %vm3456_vm9, %v3536_v32, 0.0  ;;  %v5299_v53 = vld [vmem:[%s4411_s12 + $0x60] sm:$0xff] }
 0x220   : > { %3352 = vperm.xlu1 %4291, %v3226_v21   ;;  %v2610_v32 = vshll.u32 %v5286_v31, 16 }
 0x221   : > { %3169 = vst.msk [vmem:[%s5252_s30 + $0x4] sm:$0xf] %vm3167_vm8, %v3132_v29  ;;  %v3458_v37 = vsel %vm3456_vm9, %v3421_v24, 0.0  ;;  %v3537_v27 = vmul.f32 %v3421_v24, %v3421_v24  ;;  %v2822_v22 = vadd.f32 %v5208_v61, %v2450_v43  ;;  %v2972_v63 = vpop.f32.mrf.mxu0  ;;  %v5858_v29 = vrot.slane %v5299_v53, 2  ;;  %v3221_v61 = vld [vmem:[%s5852_s3 + $0x88] sm:$0xff] }
 0x222   : > { %v3459_v19 = vadd.f32 %v3458_v37, %v3457_v12  ;;  %v2276_v43 = vrot.slane %v5194_v60, 2  ;;  %3327 = vperm.xlu2 %4292, %v3221_v61  }
 0x223   : > { %v3573_v1 = vsel %vm3456_vm9, %v3537_v27, 0.0  ;;  %v3057_v3 = vadd.f32 %v2970_v46, %v2822_v22  ;;  %v2091_v46 = vadd.f32 %v2005_v30, %v4778_v47  ;;  %v5312_v27 = vpop.f32.mrf.mxu3  ;;  %v1913_v47 = vsel %vm1890_vm6, %v1910_v50, %v5858_v29 }
 0x224   : > { %v3574_v24 = vadd.f32 %v3573_v1, %v3572_v2  ;;  %v3228_v1 = vld [vmem:[%s5852_s3 + $0xc0] sm:$0xff]  ;;  %v2277_v30 = vsel %vm1890_vm6, %v2274_v5, %v2276_v43  ;;  %v5882_v50 = vrot.slane %v5163_v8, 3  ;;  %v3229_v5 = vld [vmem:[%s5852_s3 + $0xc8] sm:$0xff]  ;;  %v3258_v8 = vpop.permute.xlu1 %3257 }
 0x225   : > { %v3097_v12 = vadd.f32 %v5232_v9, %v3057_v3  ;;  %v2609_v3 = vrot.slane %v2607_v52, 2  ;;  %3362 = vperm.xlu0 %4290, %v3228_v1  }
 0x226   : > { %v2365_v35 = vpop.f32.mrf.mxu2  ;;  %v2884_v29 = vsel %vm2861_vm7, %v5882_v50, %v5881_v54 }
 0x227   : > { %v3133_v22 = vpack.c.bf16 %v3097_v12, %v3097_v12  ;;  %v3422_v21 = vmul.f32 %v3253_v39, %v3097_v12  ;;  %v2451_v2 = vadd.f32 %v2365_v35, %v2091_v46  ;;  %v2008_v61 = vpop.f32.mrf.mxu1  ;;  %v2612_v39 = vrot.slane %v2610_v32, 3 }
 0x228   : > { %3367 = vperm.xlu1 %4291, %v3229_v5   ;;  %v3263_v5 = vpop.permute.xlu2 %3262 }
 0x229   : > { %3170 = vst.msk [vmem:[%s5252_s30 + $0x8] sm:$0xf] %vm3167_vm8, %v3133_v22  ;;  %v3460_v46 = vsel %vm3456_vm9, %v3422_v21, 0.0  ;;  %v3538_v12 = vmul.f32 %v3422_v21, %v3422_v21  ;;  %v2823_v35 = vadd.f32 %v5223_v18, %v2451_v2  ;;  %v2975_v37 = vpop.f32.mrf.mxu0  ;;  %v5343_v21 = vor.u32 %v2612_v39, %v2609_v3 }
 0x22a   : > { %v3461_v52 = vadd.f32 %v3460_v46, %v3459_v19  ;;  %4070 = vmatmul.msk.bf16.gmra.mxu1 %vm622_vm2, %v1913_v47  ;;  %v2092_v2 = vadd.f32 %v2008_v61, %v4784_v0  ;;  %v5356_v0 = vld [vmem:[%s4411_s12 + $0x80] sm:$0xff] }
 0x22b   : > { %v3575_v32 = vsel %vm3456_vm9, %v3538_v12, 0.0  ;;  %4156 = vmatmul.msk.bf16.gmra.mxu2 %vm622_vm2, %v2277_v30  ;;  %v3058_v18 = vadd.f32 %v2972_v63, %v2823_v35  ;;  %v5347_v46 = vpop.f32.mrf.mxu3  ;;  %v3231_v63 = vld [vmem:[%s5852_s3 + $0xd8] sm:$0xff]  ;;  %v3232_v35 = vld [vmem:[%s5852_s3 + $0xe0] sm:$0xff] }
 0x22c   : > { %v3576_v22 = vadd.f32 %v3575_v32, %v3574_v24  ;;  %4192 = vmatmul.msk.bf16.gmra.mxu0 %vm622_vm2, %v2884_v29  ;;  %v2614_v29 = vsel %vm2489_vm5, %v5274_v4, %v5343_v21 }
 0x22d   : > { %v3098_v19 = vadd.f32 %v5232_v9, %v3058_v18  ;;  %3377 = vperm.xlu0 %4290, %v3231_v63   ;;  %v5367_v18 = vld [vmem:[%s4411_s12 + $0x68] sm:$0xff]  ;;  %4176 = vmatmul.msk.bf16.gmra.mxu3 %vm622_vm2, %v2614_v29 }
 0x22e   : > { %v2368_v1 = vpop.f32.mrf.mxu2 }
 0x22f   : > { %v3134_v12 = vpack.c.bf16 %v3098_v19, %v3098_v19  ;;  %v3423_v47 = vmul.f32 %v3258_v8, %v3098_v19  ;;  %v2452_v54 = vadd.f32 %v2368_v1, %v2092_v2  ;;  %v2010_v24 = vpop.f32.mrf.mxu1  ;;  %v1914_v8 = vrot.slane %v5367_v18, 2 }
 0x230   : > { %3382 = vperm.xlu1 %4291, %v3232_v35   ;;  %v2278_v19 = vrot.slane %v5227_v58, 2  ;;  %v2619_v1 = vshll.u32 %v5356_v0, 16  ;;  %v5883_v35 = vrot.slane %v5299_v53, 2  ;;  %v5884_v53 = vrot.slane %v5194_v60, 3 }
 0x231   : > { %3171 = vst.msk [vmem:[%s5252_s30 + $0xc] sm:$0xf] %vm3167_vm8, %v3134_v12  ;;  %v3462_v61 = vsel %vm3456_vm9, %v3423_v47, 0.0  ;;  %v3539_v30 = vmul.f32 %v3423_v47, %v3423_v47  ;;  %v2824_v3 = vadd.f32 %v5254_v26, %v2452_v54  ;;  %v2977_v39 = vpop.f32.mrf.mxu0  ;;  %v3224_v26 = vld [vmem:[%s5852_s3 + $0xa0] sm:$0xff]  ;;  %v2885_v47 = vrot.slane %v5227_v58, 3  ;;  %v3278_v58 = vpop.permute.xlu1 %3277 }
 0x232   : > { %v3463_v50 = vadd.f32 %v3462_v61, %v3461_v52  ;;  %3342 = vperm.xlu2 %4292, %v3224_v26   ;;  %v2616_v52 = vshrl.u32 %v5356_v0, 16 }
 0x233   : > { %v3577_v4 = vsel %vm3456_vm9, %v3539_v30, 0.0  ;;  %v3059_v32 = vadd.f32 %v2975_v37, %v2824_v3  ;;  %v2093_v37 = vadd.f32 %v2010_v24, %v4794_v40  ;;  %v5380_v63 = vpop.f32.mrf.mxu3  ;;  %v3234_v30 = vld [vmem:[%s5852_s3 + $0xf0] sm:$0xff]  ;;  %v1915_v40 = vsel %vm1890_vm6, %v5883_v35, %v1914_v8 }
 0x234   : > { %v3578_v2 = vadd.f32 %v3577_v4, %v3576_v22  ;;  %v2279_v24 = vsel %vm1890_vm6, %v2276_v43, %v2278_v19  ;;  %v2618_v4 = vrot.slane %v2616_v52, 2  ;;  %v3235_v43 = vld [vmem:[%s5852_s3 + $0xf8] sm:$0xff] }
 0x235   : > { %v3099_v12 = vadd.f32 %v5232_v9, %v3059_v32  ;;  %3392 = vperm.xlu0 %4290, %v3234_v30  }
 0x236   : > { %v2370_v54 = vpop.f32.mrf.mxu2 }
 0x237   : > { %v3135_v29 = vpack.c.bf16 %v3099_v12, %v3099_v12  ;;  %v3424_v61 = vmul.f32 %v3263_v5, %v3099_v12  ;;  %v2453_v22 = vadd.f32 %v2370_v54, %v2093_v37  ;;  %v2013_v3 = vpop.f32.mrf.mxu1  ;;  %v2621_v5 = vrot.slane %v2619_v1, 3 }
 0x238   : > { %v2886_v54 = vsel %vm2861_vm7, %v5884_v53, %v2885_v47  ;;  %3397 = vperm.xlu1 %4291, %v3235_v43  }
 0x239   : > { %3172 = vst.msk [vmem:[%s5252_s30 + $0x10] sm:$0xf] %vm3167_vm8, %v3135_v29  ;;  %v3464_v32 = vsel %vm3456_vm9, %v3424_v61, 0.0  ;;  %v3540_v26 = vmul.f32 %v3424_v61, %v3424_v61  ;;  %v2825_v37 = vadd.f32 %v5278_v49, %v2453_v22  ;;  %v2980_v12 = vpop.f32.mrf.mxu0  ;;  %v3227_v29 = vld [vmem:[%s5852_s3 + $0xb8] sm:$0xff]  ;;  %v3268_v61 = vpop.permute.xlu2 %3267  ;;  %v5414_v22 = vor.u32 %v2621_v5, %v2618_v4 }
 0x23a   : > { %v3465_v52 = vadd.f32 %v3464_v32, %v3463_v50  ;;  %4071 = vmatmul.msk.bf16.gmra.mxu1 %vm622_vm2, %v1915_v40  ;;  %3357 = vperm.xlu2 %4292, %v3227_v29   ;;  %v2094_v50 = vadd.f32 %v2013_v3, %v4800_v11  ;;  %v5427_v11 = vld [vmem:[%s4411_s12 + $0x88] sm:$0xff] }
 0x23b   : > { %v3579_v1 = vsel %vm3456_vm9, %v3540_v26, 0.0  ;;  %4157 = vmatmul.msk.bf16.gmra.mxu2 %vm622_vm2, %v2279_v24  ;;  %v3060_v49 = vadd.f32 %v2977_v39, %v2825_v37  ;;  %v5418_v40 = vpop.f32.mrf.mxu3  ;;  %v2623_v4 = vsel %vm2489_vm5, %v5343_v21, %v5414_v22 }
 0x23c   : > { %v3580_v60 = vadd.f32 %v3579_v1, %v3578_v2  ;;  %4193 = vmatmul.msk.bf16.gmra.mxu0 %vm622_vm2, %v2886_v54  ;;  %v3237_v2 = vld [vmem:[%s5852_s3 + $0x108] sm:$0xff]  ;;  %v3238_v54 = vld [vmem:[%s5852_s3 + $0x110] sm:$0xff] }
 0x23d   : > { %v3100_v30 = vadd.f32 %v5232_v9, %v3060_v49  ;;  %3407 = vperm.xlu0 %4290, %v3237_v2   ;;  %v5438_v49 = vld [vmem:[%s4411_s12 + $0x70] sm:$0xff]  ;;  %4177 = vmatmul.msk.bf16.gmra.mxu3 %vm622_vm2, %v2623_v4 }
 0x23e   : > { %v2373_v35 = vpop.f32.mrf.mxu2  ;;  %v1916_v29 = vrot.slane %v5438_v49, 2 }
 0x23f   : > { %v3136_v39 = vpack.c.bf16 %v3100_v30, %v3100_v30  ;;  %v3425_v24 = vmul.f32 %v3268_v61, %v3100_v30  ;;  %v2454_v32 = vadd.f32 %v2373_v35, %v2094_v50  ;;  %v2015_v26 = vpop.f32.mrf.mxu1  ;;  %v3273_v50 = vpop.permute.xlu0 %3272  ;;  %v2280_v30 = vrot.slane %v5286_v31, 2 }
 0x240   : > { %3412 = vperm.xlu1 %4291, %v3238_v54   ;;  %v2095_v35 = vadd.f32 %v2015_v26, %v4810_v20 }
 0x241   : > { %3173 = vst.msk [vmem:[%s5252_s30 + $0x14] sm:$0xf] %vm3167_vm8, %v3136_v39  ;;  %v3466_v3 = vsel %vm3456_vm9, %v3425_v24, 0.0  ;;  %v3541_v5 = vmul.f32 %v3425_v24, %v3425_v24  ;;  %v2826_v37 = vadd.f32 %v5312_v27, %v2454_v32  ;;  %v2982_v53 = vpop.f32.mrf.mxu0  ;;  %v3230_v27 = vld [vmem:[%s5852_s3 + $0xd0] sm:$0xff]  ;;  %v2887_v24 = vrot.slane %v5286_v31, 3 }
 0x242   : > { %v3467_v43 = vadd.f32 %v3466_v3, %v3465_v52  ;;  %3372 = vperm.xlu2 %4292, %v3230_v27   ;;  %v2625_v52 = vshrl.u32 %v5427_v11, 16  ;;  %v2281_v20 = vsel %vm1890_vm6, %v2278_v19, %v2280_v30 }
 0x243   : > { %v3581_v1 = vsel %vm3456_vm9, %v3541_v5, 0.0  ;;  %v3061_v21 = vadd.f32 %v2980_v12, %v2826_v37  ;;  %v2628_v12 = vshll.u32 %v5427_v11, 16  ;;  %v5451_v2 = vpop.f32.mrf.mxu3  ;;  %v1917_v37 = vsel %vm1890_vm6, %v1914_v8, %v1916_v29 }
 0x244   : > { %v3582_v61 = vadd.f32 %v3581_v1, %v3580_v60  ;;  %v2627_v26 = vrot.slane %v2625_v52, 2  ;;  %v2888_v18 = vsel %vm2861_vm7, %v2885_v47, %v2887_v24 }
 0x245   : > { %v3101_v39 = vadd.f32 %v5232_v9, %v3061_v21  ;;  %v2630_v54 = vrot.slane %v2628_v12, 3 }
 0x246   : > { %v2375_v32 = vpop.f32.mrf.mxu2 }
 0x247   : > { %v3137_v4 = vpack.c.bf16 %v3101_v39, %v3101_v39  ;;  %v3426_v60 = vmul.f32 %v3273_v50, %v3101_v39  ;;  %v2455_v3 = vadd.f32 %v2375_v32, %v2095_v35  ;;  %v2018_v5 = vpop.f32.mrf.mxu1  ;;  %v5479_v12 = vor.u32 %v2630_v54, %v2627_v26  ;;  %v3288_v31 = vpop.permute.xlu0 %3287 }
 0x248   : > { %v2096_v47 = vadd.f32 %v2018_v5, %v4816_v14 }
 0x249   : > { %3174 = vst.msk [vmem:[%s5252_s30 + $0x18] sm:$0xf] %vm3167_vm8, %v3137_v4  ;;  %v3468_v1 = vsel %vm3456_vm9, %v3426_v60, 0.0  ;;  %v3542_v21 = vmul.f32 %v3426_v60, %v3426_v60  ;;  %v2827_v27 = vadd.f32 %v5347_v46, %v2455_v3  ;;  %v2985_v50 = vpop.f32.mrf.mxu0  ;;  %v3233_v46 = vld [vmem:[%s5852_s3 + $0xe8] sm:$0xff] }
 0x24a   : > { %v3469_v8 = vadd.f32 %v3468_v1, %v3467_v43  ;;  %4072 = vmatmul.msk.bf16.gmra.mxu1 %vm622_vm2, %v1917_v37  ;;  %3387 = vperm.xlu2 %4292, %v3233_v46   ;;  %v5489_v37 = vld [vmem:[%s4411_s12 + $0x90] sm:$0xff]  ;;  %v2282_v46 = vrot.slane %v5356_v0, 2 }
 0x24b   : > { %v3583_v35 = vsel %vm3456_vm9, %v3542_v21, 0.0  ;;  %4158 = vmatmul.msk.bf16.gmra.mxu2 %vm622_vm2, %v2281_v20  ;;  %v3062_v19 = vadd.f32 %v2982_v53, %v2827_v27  ;;  %v5483_v53 = vpop.f32.mrf.mxu3  ;;  %v5497_v27 = vld [vmem:[%s4411_s12 + $0x78] sm:$0xff] }
 0x24c   : > { %v3584_v52 = vadd.f32 %v3583_v35, %v3582_v61  ;;  %4194 = vmatmul.msk.bf16.gmra.mxu0 %vm622_vm2, %v2888_v18  ;;  %v2632_v61 = vsel %vm2489_vm5, %v5414_v22, %v5479_v12  ;;  %v1918_v18 = vrot.slane %v5497_v27, 2  ;;  %v3236_v22 = vld [vmem:[%s5852_s3 + $0x100] sm:$0xff] }
 0x24d   : > { %v3102_v43 = vadd.f32 %v5232_v9, %v3062_v19  ;;  %4178 = vmatmul.msk.bf16.gmra.mxu3 %vm622_vm2, %v2632_v61  ;;  %v3283_v19 = vpop.permute.xlu2 %3282 }
 0x24e   : > { %v2378_v39 = vpop.f32.mrf.mxu2  ;;  %v1919_v61 = vsel %vm1890_vm6, %v1916_v29, %v1918_v18 }
 0x24f   : > { %v3138_v32 = vpack.c.bf16 %v3102_v43, %v3102_v43  ;;  %v3427_v4 = vmul.f32 %v3278_v58, %v3102_v43  ;;  %v2456_v60 = vadd.f32 %v2378_v39, %v2096_v47  ;;  %v2020_v3 = vpop.f32.mrf.mxu1  ;;  %v2889_v47 = vrot.slane %v5356_v0, 3 }
 0x251   : > { %3175 = vst.msk [vmem:[%s5252_s30 + $0x1c] sm:$0xf] %vm3167_vm8, %v3138_v32  ;;  %v3470_v14 = vsel %vm3456_vm9, %v3427_v4, 0.0  ;;  %v3543_v5 = vmul.f32 %v3427_v4, %v3427_v4  ;;  %v2828_v20 = vadd.f32 %v5380_v63, %v2456_v60  ;;  %v2987_v26 = vpop.f32.mrf.mxu0  ;;  %v2634_v63 = vshrl.u32 %v5489_v37, 16 }
 0x252   : > { %v3471_v54 = vadd.f32 %v3470_v14, %v3469_v8  ;;  %3402 = vperm.xlu2 %4292, %v3236_v22   ;;  %v2097_v8 = vadd.f32 %v2020_v3, %v4826_v23  ;;  %v2283_v23 = vsel %vm1890_vm6, %v2280_v30, %v2282_v46  ;;  %v2890_v49 = vsel %vm2861_vm7, %v2887_v24, %v2889_v47 }
 0x253   : > { %v3585_v1 = vsel %vm3456_vm9, %v3543_v5, 0.0  ;;  %v3063_v21 = vadd.f32 %v2985_v50, %v2828_v20  ;;  %v2637_v50 = vshll.u32 %v5489_v37, 16  ;;  %v5510_v39 = vpop.f32.mrf.mxu3  ;;  %v2636_v3 = vrot.slane %v2634_v63, 2 }
 0x254   : > { %v3586_v35 = vadd.f32 %v3585_v1, %v3584_v52 }
 0x255   : > { %v3103_v58 = vadd.f32 %v5232_v9, %v3063_v21  ;;  %v2639_v14 = vrot.slane %v2637_v50, 3 }
 0x256   : > { %v2380_v43 = vpop.f32.mrf.mxu2 }
 0x257   : > { %v3139_v32 = vpack.c.bf16 %v3103_v58, %v3103_v58  ;;  %v3428_v52 = vmul.f32 %v3283_v19, %v3103_v58  ;;  %v2457_v4 = vadd.f32 %v2380_v43, %v2097_v8  ;;  %v2023_v60 = vpop.f32.mrf.mxu1  ;;  %v5538_v63 = vor.u32 %v2639_v14, %v2636_v3 }
 0x258   : > { %v2098_v24 = vadd.f32 %v2023_v60, %v4832_v41 }
 0x259   : > { %3176 = vst.msk [vmem:[%s5252_s30 + $0x20] sm:$0xf] %vm3167_vm8, %v3139_v32  ;;  %v3472_v5 = vsel %vm3456_vm9, %v3428_v52, 0.0  ;;  %v3544_v20 = vmul.f32 %v3428_v52, %v3428_v52  ;;  %v2829_v1 = vadd.f32 %v5418_v40, %v2457_v4  ;;  %v2990_v21 = vpop.f32.mrf.mxu0  ;;  %v3239_v40 = vld [vmem:[%s5852_s3 + $0x118] sm:$0xff] }
 0x25a   : > { %v3473_v29 = vadd.f32 %v3472_v5, %v3471_v54  ;;  %4073 = vmatmul.msk.bf16.gmra.mxu1 %vm622_vm2, %v1919_v61  ;;  %3417 = vperm.xlu2 %4292, %v3239_v40   ;;  %v5548_v52 = vld [vmem:[%s4411_s12 + $0x98] sm:$0xff]  ;;  %v5556_v5 = vld [vmem:[%s4411_s12 + $0x80] sm:$0xff] }
 0x25b   : > { %v3587_v22 = vsel %vm3456_vm9, %v3544_v20, 0.0  ;;  %4159 = vmatmul.msk.bf16.gmra.mxu2 %vm622_vm2, %v2283_v23  ;;  %v3064_v30 = vadd.f32 %v2987_v26, %v2829_v1  ;;  %v5542_v26 = vpop.f32.mrf.mxu3  ;;  %v1920_v20 = vrot.slane %v5556_v5, 2  ;;  %v3293_v1 = vpop.permute.xlu1 %3292 }
 0x25c   : > { %v3588_v19 = vadd.f32 %v3587_v22, %v3586_v35  ;;  %4195 = vmatmul.msk.bf16.gmra.mxu0 %vm622_vm2, %v2890_v49  ;;  %v2641_v35 = vsel %vm2489_vm5, %v5479_v12, %v5538_v63  ;;  %v2284_v49 = vrot.slane %v5427_v11, 2  ;;  %v2643_v22 = vshrl.u32 %v5548_v52, 16 }
 0x25d   : > { %v3104_v54 = vadd.f32 %v5232_v9, %v3064_v30  ;;  %4179 = vmatmul.msk.bf16.gmra.mxu3 %vm622_vm2, %v2641_v35 }
 0x25e   : > { %v2383_v50 = vpop.f32.mrf.mxu2 }
 0x25f   : > { %v3140_v8 = vpack.c.bf16 %v3104_v54, %v3104_v54  ;;  %v3429_v58 = vmul.f32 %v3288_v31, %v3104_v54  ;;  %v2458_v43 = vadd.f32 %v2383_v50, %v2098_v24  ;;  %v2025_v32 = vpop.f32.mrf.mxu1 }
 0x261   : > { %3177 = vst.msk [vmem:[%s5252_s30 + $0x24] sm:$0xf] %vm3167_vm8, %v3140_v8  ;;  %v3474_v41 = vsel %vm3456_vm9, %v3429_v58, 0.0  ;;  %v3545_v4 = vmul.f32 %v3429_v58, %v3429_v58  ;;  %v2830_v60 = vadd.f32 %v5451_v2, %v2458_v43  ;;  %v2992_v61 = vpop.f32.mrf.mxu0  ;;  %v2646_v2 = vshll.u32 %v5548_v52, 16 }
 0x262   : > { %v3475_v23 = vadd.f32 %v3474_v41, %v3473_v29  ;;  %v2099_v29 = vadd.f32 %v2025_v32, %v4842_v34  ;;  %v1921_v8 = vsel %vm1890_vm6, %v1918_v18, %v1920_v20  ;;  %v2285_v34 = vsel %vm1890_vm6, %v2282_v46, %v2284_v49  ;;  %v2484_v18 = vld [vmem:[%s4411_s12 + $0xa0] sm:$0x7] }
 0x263   : > { %v3589_v3 = vsel %vm3456_vm9, %v3545_v4, 0.0  ;;  %v3065_v14 = vadd.f32 %v2990_v21, %v2830_v60  ;;  %v2891_v21 = vrot.slane %v5427_v11, 3  ;;  %v5566_v31 = vpop.f32.mrf.mxu3  ;;  %v2645_v58 = vrot.slane %v2643_v22, 2 }
 0x264   : > { %v3590_v12 = vadd.f32 %v3589_v3, %v3588_v19  ;;  %v2648_v43 = vrot.slane %v2646_v2, 3  ;;  %v2487_v22 = vunpack.c.l.b16 %v2484_v18  ;;  %v5885_v18 = vld [vmem:[#allocation10_spill] sm:$0xff] }
 0x265   : > { %v3105_v30 = vadd.f32 %v5232_v9, %v3065_v14  ;;  %v2892_v27 = vsel %vm2861_vm7, %v2889_v47, %v2891_v21 }
 0x266   : > { %v2385_v40 = vpop.f32.mrf.mxu2 }
 0x267   : > { %v3141_v24 = vpack.c.bf16 %v3105_v30, %v3105_v30  ;;  %v3430_v19 = vmul.f32 %v3293_v1, %v3105_v30  ;;  %v2459_v54 = vadd.f32 %v2385_v40, %v2099_v29  ;;  %v2028_v50 = vpop.f32.mrf.mxu1  ;;  %v5592_v1 = vor.u32 %v2648_v43, %v2645_v58  ;;  %v5609_v43 = vld [vmem:[%s4411_s12 + $0x88] sm:$0xff] }
 0x268   : > { %v2100_v0 = vadd.f32 %v2028_v50, %v4851_v51 }
 0x269   : > { %3178 = vst.msk [vmem:[%s5252_s30 + $0x28] sm:$0xf] %vm3167_vm8, %v3141_v24  ;;  %v3476_v32 = vsel %vm3456_vm9, %v3430_v19, 0.0  ;;  %v3546_v35 = vmul.f32 %v3430_v19, %v3430_v19  ;;  %v2831_v41 = vadd.f32 %v5483_v53, %v2459_v54  ;;  %v2995_v4 = vpop.f32.mrf.mxu0  ;;  %v3298_v53 = vpop.permute.xlu2 %3297  ;;  %v5601_v24 = vpack.c.b16 %v2487_v22, %v2487_v22 }
 0x26a   : > { %v3477_v60 = vadd.f32 %v3476_v32, %v3475_v23  ;;  %4074 = vmatmul.msk.bf16.gmra.mxu1 %vm622_vm2, %v1921_v8  ;;  %v1922_v32 = vrot.slane %v5609_v43, 2 }
 0x26b   : > { %v3591_v46 = vsel %vm3456_vm9, %v3546_v35, 0.0  ;;  %4160 = vmatmul.msk.bf16.gmra.mxu2 %vm622_vm2, %v2285_v34  ;;  %v3066_v3 = vadd.f32 %v2992_v61, %v2831_v41  ;;  %v5596_v2 = vpop.f32.mrf.mxu3  ;;  %v3303_v35 = vpop.permute.xlu0 %3302  ;;  %v2286_v41 = vrot.slane %v5489_v37, 2 }
 0x26c   : > { %v3592_v14 = vadd.f32 %v3591_v46, %v3590_v12  ;;  %4196 = vmatmul.msk.bf16.gmra.mxu0 %vm622_vm2, %v2892_v27  ;;  %v2650_v12 = vsel %vm2489_vm5, %v5538_v63, %v5592_v1  ;;  %v2652_v27 = vshrl.u32 %v5601_v24, 16 }
 0x26d   : > { %v3106_v47 = vadd.f32 %v5232_v9, %v3066_v3  ;;  %4180 = vmatmul.msk.bf16.gmra.mxu3 %vm622_vm2, %v2650_v12 }
 0x26e   : > { %v2388_v23 = vpop.f32.mrf.mxu2 }
 0x26f   : > { %v3142_v29 = vpack.c.bf16 %v3106_v47, %v3106_v47  ;;  %v3431_v30 = vmul.f32 %v3298_v53, %v3106_v47  ;;  %v2460_v40 = vadd.f32 %v2388_v23, %v2100_v0  ;;  %v2030_v61 = vpop.f32.mrf.mxu1  ;;  %v1923_v23 = vsel %vm1890_vm6, %v1920_v20, %v1922_v32 }
 0x271   : > { %3179 = vst.msk [vmem:[%s5252_s30 + $0x2c] sm:$0xf] %vm3167_vm8, %v3142_v29  ;;  %v3478_v51 = vsel %vm3456_vm9, %v3431_v30, 0.0  ;;  %v3547_v19 = vmul.f32 %v3431_v30, %v3431_v30  ;;  %v2832_v54 = vadd.f32 %v5510_v39, %v2460_v40  ;;  %v2997_v50 = vpop.f32.mrf.mxu0  ;;  %v2655_v39 = vshll.u32 %v5601_v24, 16 }
 0x272   : > { %v3479_v8 = vadd.f32 %v3478_v51, %v3477_v60  ;;  %v2101_v60 = vadd.f32 %v2030_v61, %v5885_v18  ;;  %v2287_v29 = vsel %vm1890_vm6, %v2284_v49, %v2286_v41  ;;  %v2654_v30 = vrot.slane %v2652_v27, 2 }
 0x273   : > { %v3593_v34 = vsel %vm3456_vm9, %v3547_v19, 0.0  ;;  %v3067_v58 = vadd.f32 %v2995_v4, %v2832_v54  ;;  %v2893_v4 = vrot.slane %v5489_v37, 3  ;;  %v5619_v53 = vpop.f32.mrf.mxu3  ;;  %v2657_v40 = vrot.slane %v2655_v39, 3 }
 0x274   : > { %v3594_v63 = vadd.f32 %v3593_v34, %v3592_v14 }
 0x275   : > { %v3107_v46 = vadd.f32 %v5232_v9, %v3067_v58  ;;  %v2894_v5 = vsel %vm2861_vm7, %v2891_v21, %v2893_v4  ;;  %v2658_v58 = vor.u32 %v2657_v40, %v2654_v30  ;;  %v3313_v30 = vpop.permute.xlu2 %3312  ;;  %v4313_v40 = vld [vmem:[%s4411_s12 + $0x90] sm:$0xff] }
 0x276   : > { %v2390_v3 = vpop.f32.mrf.mxu2 }
 0x277   : > { %v3143_v22 = vpack.c.bf16 %v3107_v46, %v3107_v46  ;;  %v3432_v0 = vmul.f32 %v3303_v35, %v3107_v46  ;;  %v2461_v14 = vadd.f32 %v2390_v3, %v2101_v60  ;;  %v2033_v47 = vpop.f32.mrf.mxu1  ;;  %v5886_v35 = vld [vmem:[#allocation11_spill] sm:$0xff] }
 0x278   : > { %v2102_v27 = vadd.f32 %v2033_v47, %v5886_v35 }
 0x279   : > { %3180 = vst.msk [vmem:[%s5252_s30 + $0x30] sm:$0xf] %vm3167_vm8, %v3143_v22  ;;  %v3480_v61 = vsel %vm3456_vm9, %v3432_v0, 0.0  ;;  %v3548_v12 = vmul.f32 %v3432_v0, %v3432_v0  ;;  %v2833_v51 = vadd.f32 %v5542_v26, %v2461_v14  ;;  %v3000_v19 = vpop.f32.mrf.mxu0  ;;  %v3308_v26 = vpop.permute.xlu1 %3307 }
 0x27a   : > { %v3481_v20 = vadd.f32 %v3480_v61, %v3479_v8  ;;  %4075 = vmatmul.msk.bf16.gmra.mxu1 %vm622_vm2, %v1923_v23  ;;  %v1924_v61 = vrot.slane %v4313_v40, 2 }
 0x27b   : > { %v3595_v54 = vsel %vm3456_vm9, %v3548_v12, 0.0  ;;  %4161 = vmatmul.msk.bf16.gmra.mxu2 %vm622_vm2, %v2287_v29  ;;  %v3068_v49 = vadd.f32 %v2997_v50, %v2833_v51  ;;  %v5646_v21 = vpop.f32.mrf.mxu3  ;;  %v2659_v50 = vsel %vm2489_vm5, %v5592_v1, %v2658_v58  ;;  %v2288_v1 = vrot.slane %v5548_v52, 2 }
 0x27c   : > { %v3596_v34 = vadd.f32 %v3595_v54, %v3594_v63  ;;  %4197 = vmatmul.msk.bf16.gmra.mxu0 %vm622_vm2, %v2894_v5 }
 0x27d   : > { %v3108_v11 = vadd.f32 %v5232_v9, %v3068_v49  ;;  %4181 = vmatmul.msk.bf16.gmra.mxu3 %vm622_vm2, %v2659_v50 }
 0x27e   : > { %v2393_v39 = vpop.f32.mrf.mxu2 }
 0x27f   : > { %v3144_v8 = vpack.c.bf16 %v3108_v11, %v3108_v11  ;;  %v3433_v18 = vmul.f32 %v3308_v26, %v3108_v11  ;;  %v2462_v60 = vadd.f32 %v2393_v39, %v2102_v27  ;;  %v2035_v46 = vpop.f32.mrf.mxu1  ;;  %v1925_v26 = vsel %vm1890_vm6, %v1922_v32, %v1924_v61  ;;  %v2160_v39 = vld [vmem:[%s4411_s12 + $0xa0] sm:$0x3] }
 0x280   : > { %v2103_v12 = vadd.f32 %v2035_v46, %v4907_v55  ;;  %v2289_v55 = vsel %vm1890_vm6, %v2286_v41, %v2288_v1 }
 0x281   : > { %3181 = vst.msk [vmem:[%s5252_s30 + $0x34] sm:$0xf] %vm3167_vm8, %v3144_v8  ;;  %v3482_v63 = vsel %vm3456_vm9, %v3433_v18, 0.0  ;;  %v3549_v3 = vmul.f32 %v3433_v18, %v3433_v18  ;;  %v2834_v22 = vadd.f32 %v5566_v31, %v2462_v60  ;;  %v3002_v0 = vpop.f32.mrf.mxu0  ;;  %v2895_v31 = vrot.slane %v5548_v52, 3 }
 0x282   : > { %v3483_v14 = vadd.f32 %v3482_v63, %v3481_v20  ;;  %v2235_v60 = vunpack.c.l.b16 %v2160_v39 }
 0x283   : > { %v3597_v47 = vsel %vm3456_vm9, %v3549_v3, 0.0  ;;  %v3069_v23 = vadd.f32 %v3000_v19, %v2834_v22  ;;  %v5661_v20 = vpop.f32.mrf.mxu3  ;;  %v2896_v43 = vsel %vm2861_vm7, %v2893_v4, %v2895_v31 }
 0x284   : > { %v3598_v29 = vadd.f32 %v3597_v47, %v3596_v34  ;;  %v2254_v47 = vpack.c.b16 %v2235_v60, %v2235_v60 }
 0x285   : > { %v3109_v51 = vadd.f32 %v5232_v9, %v3069_v23 }
 0x286   : > { %v2395_v5 = vpop.f32.mrf.mxu2 }
 0x287   : > { %v3145_v19 = vpack.c.bf16 %v3109_v51, %v3109_v51  ;;  %v3434_v54 = vmul.f32 %v3313_v30, %v3109_v51  ;;  %v2463_v49 = vadd.f32 %v2395_v5, %v2103_v12  ;;  %v2038_v34 = vpop.f32.mrf.mxu1  ;;  %v3323_v5 = vpop.permute.xlu1 %3322 }
 0x288   : > { %v2104_v46 = vadd.f32 %v2038_v34, %v4921_v10 }
 0x289   : > { %3182 = vst.msk [vmem:[%s5252_s30 + $0x38] sm:$0xf] %vm3167_vm8, %v3145_v19  ;;  %v3484_v58 = vsel %vm3456_vm9, %v3434_v54, 0.0  ;;  %v3550_v35 = vmul.f32 %v3434_v54, %v3434_v54  ;;  %v2835_v27 = vadd.f32 %v5596_v2, %v2463_v49  ;;  %v3005_v11 = vpop.f32.mrf.mxu0  ;;  %v3318_v2 = vpop.permute.xlu0 %3317  ;;  %v1926_v19 = vrot.slane %v4902_v15, 2 }
 0x28a   : > { %v3485_v32 = vadd.f32 %v3484_v58, %v3483_v14  ;;  %4076 = vmatmul.msk.bf16.gmra.mxu1 %vm622_vm2, %v1925_v26  ;;  %v2290_v54 = vrot.slane %v2254_v47, 2  ;;  %v2897_v26 = vrot.slane %v5601_v24, 3 }
 0x28b   : > { %v3599_v8 = vsel %vm3456_vm9, %v3550_v35, 0.0  ;;  %4162 = vmatmul.msk.bf16.gmra.mxu2 %vm622_vm2, %v2289_v55  ;;  %v3070_v41 = vadd.f32 %v3002_v0, %v2835_v27  ;;  %v5685_v50 = vpop.f32.mrf.mxu3 }
 0x28c   : > { %v3600_v18 = vadd.f32 %v3599_v8, %v3598_v29  ;;  %4198 = vmatmul.msk.bf16.gmra.mxu0 %vm622_vm2, %v2896_v43  ;;  %v2291_v39 = vsel %vm1890_vm6, %v2288_v1, %v2290_v54  ;;  %v2898_v24 = vsel %vm2861_vm7, %v2895_v31, %v2897_v26 }
 0x28d   : > { %v3110_v37 = vadd.f32 %v5232_v9, %v3070_v41 }
 0x28e   : > { %v2398_v4 = vpop.f32.mrf.mxu2 }
 0x28f   : > { %v3146_v63 = vpack.c.bf16 %v3110_v37, %v3110_v37  ;;  %v3435_v3 = vmul.f32 %v3318_v2, %v3110_v37  ;;  %v2464_v22 = vadd.f32 %v2398_v4, %v2104_v46  ;;  %v2040_v14 = vpop.f32.mrf.mxu1  ;;  %v3328_v2 = vpop.permute.xlu2 %3327 }
 0x290   : > { %v2105_v49 = vadd.f32 %v2040_v14, %v4937_v59 }
 0x291   : > { %3183 = vst.msk [vmem:[%s5252_s30 + $0x3c] sm:$0xf] %vm3167_vm8, %v3146_v63  ;;  %v3486_v0 = vsel %vm3456_vm9, %v3435_v3, 0.0  ;;  %v3551_v23 = vmul.f32 %v3435_v3, %v3435_v3  ;;  %v2836_v29 = vadd.f32 %v5619_v53, %v2464_v22  ;;  %v3007_v30 = vpop.f32.mrf.mxu0 }
 0x292   : > { %v3487_v40 = vadd.f32 %v3486_v0, %v3485_v32 }
 0x293   : > { %v3601_v10 = vsel %vm3456_vm9, %v3551_v23, 0.0  ;;  %v3071_v12 = vadd.f32 %v3005_v11, %v2836_v29  ;;  %v5696_v58 = vpop.f32.mrf.mxu3  ;;  %v1927_v11 = vsel %vm1890_vm6, %v1924_v61, %v1926_v19 }
 0x294   : > { %v3602_v51 = vadd.f32 %v3601_v10, %v3600_v18 }
 0x295   : > { %v3111_v34 = vadd.f32 %v5232_v9, %v3071_v12 }
 0x296   : > { %v2400_v55 = vpop.f32.mrf.mxu2 }
 0x297   : > { %v3147_v53 = vpack.c.bf16 %v3111_v34, %v3111_v34  ;;  %v3436_v35 = vmul.f32 %v3323_v5, %v3111_v34  ;;  %v2465_v27 = vadd.f32 %v2400_v55, %v2105_v49  ;;  %v2043_v43 = vpop.f32.mrf.mxu1 }
 0x299   : > { %3184 = vst.msk [vmem:[%s5252_s30 + $0x40] sm:$0xf] %vm3167_vm8, %v3147_v53  ;;  %v3488_v15 = vsel %vm3456_vm9, %v3436_v35, 0.0  ;;  %v3552_v59 = vmul.f32 %v3436_v35, %v3436_v35  ;;  %v2837_v32 = vadd.f32 %v5646_v21, %v2465_v27  ;;  %v3010_v8 = vpop.f32.mrf.mxu0  ;;  %v2106_v21 = vadd.f32 %v2043_v43, %v4957_v17  ;;  %v5729_v43 = vld [vmem:[%s5851_s2] ss:$0 sm:$0xff] }
 0x29a   : > { %v3489_v41 = vadd.f32 %v3488_v15, %v3487_v40  ;;  %4077 = vmatmul.msk.bf16.gmra.mxu1 %vm622_vm2, %v1927_v11 }
 0x29b   : > { %v3603_v18 = vsel %vm3456_vm9, %v3552_v59, 0.0  ;;  %4163 = vmatmul.msk.bf16.gmra.mxu2 %vm622_vm2, %v2291_v39  ;;  %v3072_v61 = vadd.f32 %v3007_v30, %v2837_v32  ;;  %v2782_v46 = vpop.f32.mrf.mxu3  ;;  %v3333_v30 = vpop.permute.xlu0 %3332 }
 0x29c   : > { %v3604_v1 = vadd.f32 %v3603_v18, %v3602_v51  ;;  %4199 = vmatmul.msk.bf16.gmra.mxu0 %vm622_vm2, %v2898_v24  ;;  %v3338_v39 = vpop.permute.xlu1 %3337 }
 0x29d   : > { %v3112_v60 = vadd.f32 %v5232_v9, %v3072_v61 }
 0x29e   : > { %v2403_v52 = vpop.f32.mrf.mxu2 }
 0x29f   : > { %v3148_v31 = vpack.c.bf16 %v3112_v60, %v3112_v60  ;;  %v3437_v37 = vmul.f32 %v3328_v2, %v3112_v60  ;;  %v2466_v4 = vadd.f32 %v2403_v52, %v2106_v21  ;;  %v2045_v63 = vpop.f32.mrf.mxu1 }
 0x2a0   : > { %v2107_v40 = vadd.f32 %v2045_v63, %v4974_v7 }
 0x2a1   : > { %3185 = vst.msk [vmem:[%s5252_s30 + $0x44] sm:$0xf] %vm3167_vm8, %v3148_v31  ;;  %v3490_v3 = vsel %vm3456_vm9, %v3437_v37, 0.0  ;;  %v3553_v22 = vmul.f32 %v3437_v37, %v3437_v37  ;;  %v2838_v14 = vadd.f32 %v5661_v20, %v2466_v4  ;;  %v3012_v47 = vpop.f32.mrf.mxu0  ;;  %v3343_v37 = vpop.permute.xlu2 %3342 }
 0x2a2   : > { %v3491_v0 = vadd.f32 %v3490_v3, %v3489_v41 }
 0x2a3   : > { %v3605_v17 = vsel %vm3456_vm9, %v3553_v22, 0.0  ;;  %v3073_v23 = vadd.f32 %v3010_v8, %v2838_v14  ;;  %v2785_v51 = vpop.f32.mrf.mxu3 }
 0x2a4   : > { %v3606_v29 = vadd.f32 %v3605_v17, %v3604_v1 }
 0x2a5   : > { %v3113_v10 = vadd.f32 %v5232_v9, %v3073_v23 }
 0x2a6   : > { %v2405_v12 = vpop.f32.mrf.mxu2 }
 0x2a7   : > { %v3149_v5 = vpack.c.bf16 %v3113_v10, %v3113_v10  ;;  %v3438_v19 = vmul.f32 %v3333_v30, %v3113_v10  ;;  %v2467_v54 = vadd.f32 %v2405_v12, %v2107_v40  ;;  %v2048_v49 = vpop.f32.mrf.mxu1 }
 0x2a8   : > { %v2108_v27 = vadd.f32 %v2048_v49, %v4987_v36 }
 0x2a9   : > { %3186 = vst.msk [vmem:[%s5252_s30 + $0x48] sm:$0xf] %vm3167_vm8, %v3149_v5  ;;  %v3492_v20 = vsel %vm3456_vm9, %v3438_v19, 0.0  ;;  %v3554_v34 = vmul.f32 %v3438_v19, %v3438_v19  ;;  %v2839_v26 = vadd.f32 %v5685_v50, %v2467_v54  ;;  %v3015_v55 = vpop.f32.mrf.mxu0  ;;  %v3348_v5 = vpop.permute.xlu0 %3347 }
 0x2aa   : > { %v3493_v53 = vadd.f32 %v3492_v20, %v3491_v0 }
 0x2ab   : > { %v3607_v7 = vsel %vm3456_vm9, %v3554_v34, 0.0  ;;  %v3074_v35 = vadd.f32 %v3012_v47, %v2839_v26  ;;  %v2787_v24 = vpop.f32.mrf.mxu3 }
 0x2ac   : > { %v3608_v9 = vadd.f32 %v3607_v7, %v3606_v29 }
 0x2ad   : > { %v3114_v11 = vadd.f32 %v5729_v43, %v3074_v35 }
 0x2ae   : > { %v2408_v15 = vpop.f32.mrf.mxu2 }
 0x2af   : > { %v3150_v59 = vpack.c.bf16 %v3114_v11, %v3114_v11  ;;  %v3439_v50 = vmul.f32 %v3338_v39, %v3114_v11  ;;  %v2468_v32 = vadd.f32 %v2408_v15, %v2108_v27  ;;  %v2050_v8 = vpop.f32.mrf.mxu1  ;;  %v3353_v15 = vpop.permute.xlu1 %3352 }
 0x2b0   : > { %v2109_v31 = vadd.f32 %v2050_v8, %v5004_v56 }
 0x2b1   : > { %3187 = vst.msk [vmem:[%s5252_s30 + $0x4c] sm:$0xf] %vm3167_vm8, %v3150_v59  ;;  %v3494_v41 = vsel %vm3456_vm9, %v3439_v50, 0.0  ;;  %v3555_v36 = vmul.f32 %v3439_v50, %v3439_v50  ;;  %v2840_v18 = vadd.f32 %v5696_v58, %v2468_v32  ;;  %v3017_v61 = vpop.f32.mrf.mxu0 }
 0x2b2   : > { %v3495_v1 = vadd.f32 %v3494_v41, %v3493_v53 }
 0x2b3   : > { %v3609_v2 = vsel %vm3456_vm9, %v3555_v36, 0.0  ;;  %v3075_v21 = vadd.f32 %v3015_v55, %v2840_v18  ;;  %v2790_v29 = vpop.f32.mrf.mxu3 }
 0x2b4   : > { %v3610_v60 = vadd.f32 %v3609_v2, %v3608_v9 }
 0x2b5   : > { %v3115_v52 = vadd.f32 %v5729_v43, %v3075_v21 }
 0x2b6   : > { %v2410_v4 = vpop.f32.mrf.mxu2 }
 0x2b7   : > { %v3151_v63 = vpack.c.bf16 %v3115_v52, %v3115_v52  ;;  %v3440_v3 = vmul.f32 %v3343_v37, %v3115_v52  ;;  %v2469_v22 = vadd.f32 %v2410_v4, %v2109_v31  ;;  %v2053_v14 = vpop.f32.mrf.mxu1 }
 0x2b8   : > { %v2110_v12 = vadd.f32 %v2053_v14, %v5013_v13 }
 0x2b9   : > { %3188 = vst.msk [vmem:[%s5252_s30 + $0x50] sm:$0xf] %vm3167_vm8, %v3151_v63  ;;  %v3496_v58 = vsel %vm3456_vm9, %v3440_v3, 0.0  ;;  %v3556_v47 = vmul.f32 %v3440_v3, %v3440_v3  ;;  %v2841_v0 = vadd.f32 %v2782_v46, %v2469_v22  ;;  %v3020_v17 = vpop.f32.mrf.mxu0 }
 0x2ba   : > { %v3497_v23 = vadd.f32 %v3496_v58, %v3495_v1 }
 0x2bb   : > { %v3611_v30 = vsel %vm3456_vm9, %v3556_v47, 0.0  ;;  %v3076_v40 = vadd.f32 %v3017_v61, %v2841_v0  ;;  %v2792_v13 = vpop.f32.mrf.mxu3 }
 0x2bc   : > { %v3612_v56 = vadd.f32 %v3611_v30, %v3610_v60 }
 0x2bd   : > { %v3116_v10 = vadd.f32 %v5729_v43, %v3076_v40 }
 0x2be   : > { %v2413_v19 = vpop.f32.mrf.mxu2 }
 0x2bf   : > { %v3152_v54 = vpack.c.bf16 %v3116_v10, %v3116_v10  ;;  %v3441_v49 = vmul.f32 %v3348_v5, %v3116_v10  ;;  %v2470_v20 = vadd.f32 %v2413_v19, %v2110_v12  ;;  %v2055_v34 = vpop.f32.mrf.mxu1  ;;  %v3363_v10 = vpop.permute.xlu0 %3362 }
 0x2c0   : > { %v2111_v39 = vadd.f32 %v2055_v34, %v5026_v42  ;;  %v3358_v42 = vpop.permute.xlu2 %3357 }
 0x2c1   : > { %3189 = vst.msk [vmem:[%s5252_s30 + $0x54] sm:$0xf] %vm3167_vm8, %v3152_v54  ;;  %v3498_v46 = vsel %vm3456_vm9, %v3441_v49, 0.0  ;;  %v3557_v26 = vmul.f32 %v3441_v49, %v3441_v49  ;;  %v2842_v55 = vadd.f32 %v2785_v51, %v2470_v20  ;;  %v3022_v53 = vpop.f32.mrf.mxu0 }
 0x2c2   : > { %v3499_v7 = vadd.f32 %v3498_v46, %v3497_v23 }
 0x2c3   : > { %v3613_v35 = vsel %vm3456_vm9, %v3557_v26, 0.0  ;;  %v3077_v9 = vadd.f32 %v3020_v17, %v2842_v55  ;;  %v2795_v4 = vpop.f32.mrf.mxu3 }
 0x2c4   : > { %v3614_v27 = vadd.f32 %v3613_v35, %v3612_v56 }
 0x2c5   : > { %v3117_v11 = vadd.f32 %v5729_v43, %v3077_v9 }
 0x2c6   : > { %v2415_v59 = vpop.f32.mrf.mxu2 }
 0x2c7   : > { %v3153_v50 = vpack.c.bf16 %v3117_v11, %v3117_v11  ;;  %v3442_v32 = vmul.f32 %v3353_v15, %v3117_v11  ;;  %v2471_v8 = vadd.f32 %v2415_v59, %v2111_v39  ;;  %v2058_v41 = vpop.f32.mrf.mxu1 }
 0x2c8   : > { %v2112_v31 = vadd.f32 %v2058_v41, %v5040_v6 }
 0x2c9   : > { %3190 = vst.msk [vmem:[%s5252_s30 + $0x58] sm:$0xf] %vm3167_vm8, %v3153_v50  ;;  %v3500_v51 = vsel %vm3456_vm9, %v3442_v32, 0.0  ;;  %v3558_v36 = vmul.f32 %v3442_v32, %v3442_v32  ;;  %v2843_v18 = vadd.f32 %v2787_v24, %v2471_v8  ;;  %v3025_v61 = vpop.f32.mrf.mxu0 }
 0x2ca   : > { %v3501_v1 = vadd.f32 %v3500_v51, %v3499_v7 }
 0x2cb   : > { %v3615_v2 = vsel %vm3456_vm9, %v3558_v36, 0.0  ;;  %v3078_v21 = vadd.f32 %v3022_v53, %v2843_v18  ;;  %v2797_v20 = vpop.f32.mrf.mxu3 }
 0x2cc   : > { %v3616_v60 = vadd.f32 %v3615_v2, %v3614_v27  ;;  %v3368_v27 = vpop.permute.xlu1 %3367 }
 0x2cd   : > { %v3118_v52 = vadd.f32 %v5729_v43, %v3078_v21  ;;  %v3373_v21 = vpop.permute.xlu2 %3372 }
 0x2ce   : > { %v2418_v37 = vpop.f32.mrf.mxu2 }
 0x2cf   : > { %v3154_v63 = vpack.c.bf16 %v3118_v52, %v3118_v52  ;;  %v3443_v3 = vmul.f32 %v3358_v42, %v3118_v52  ;;  %v2472_v22 = vadd.f32 %v2418_v37, %v2112_v31  ;;  %v2060_v14 = vpop.f32.mrf.mxu1 }
 0x2d0   : > { %v2113_v56 = vadd.f32 %v2060_v14, %v5061_v38 }
 0x2d1   : > { %3191 = vst.msk [vmem:[%s5252_s30 + $0x5c] sm:$0xf] %vm3167_vm8, %v3154_v63  ;;  %v3502_v24 = vsel %vm3456_vm9, %v3443_v3, 0.0  ;;  %v3559_v58 = vmul.f32 %v3443_v3, %v3443_v3  ;;  %v2844_v47 = vadd.f32 %v2790_v29, %v2472_v22  ;;  %v3027_v0 = vpop.f32.mrf.mxu0 }
 0x2d2   : > { %v3503_v17 = vadd.f32 %v3502_v24, %v3501_v1 }
 0x2d3   : > { %v3617_v23 = vsel %vm3456_vm9, %v3559_v58, 0.0  ;;  %v3079_v30 = vadd.f32 %v3025_v61, %v2844_v47  ;;  %v2800_v36 = vpop.f32.mrf.mxu3 }
 0x2d4   : > { %v3618_v40 = vadd.f32 %v3617_v23, %v3616_v60  ;;  %v3378_v23 = vpop.permute.xlu0 %3377 }
 0x2d5   : > { %v3119_v6 = vadd.f32 %v5729_v43, %v3079_v30 }
 0x2d6   : > { %v2420_v12 = vpop.f32.mrf.mxu2 }
 0x2d7   : > { %v3155_v5 = vpack.c.bf16 %v3119_v6, %v3119_v6  ;;  %v3444_v19 = vmul.f32 %v3363_v10, %v3119_v6  ;;  %v2473_v54 = vadd.f32 %v2420_v12, %v2113_v56  ;;  %v2063_v49 = vpop.f32.mrf.mxu1 }
 0x2d8   : > { %v2114_v9 = vadd.f32 %v2063_v49, %v5075_v44 }
 0x2d9   : > { %3192 = vst.msk [vmem:[%s5252_s30 + $0x60] sm:$0xf] %vm3167_vm8, %v3155_v5  ;;  %v3504_v29 = vsel %vm3456_vm9, %v3444_v19, 0.0  ;;  %v3560_v34 = vmul.f32 %v3444_v19, %v3444_v19  ;;  %v2845_v46 = vadd.f32 %v2792_v13, %v2473_v54  ;;  %v3030_v26 = vpop.f32.mrf.mxu0 }
 0x2da   : > { %v3505_v55 = vadd.f32 %v3504_v29, %v3503_v17 }
 0x2db   : > { %v3619_v53 = vsel %vm3456_vm9, %v3560_v34, 0.0  ;;  %v3080_v7 = vadd.f32 %v3027_v0, %v2845_v46 }
 0x2dc   : > { %v3620_v38 = vadd.f32 %v3619_v53, %v3618_v40 }
 0x2dd   : > { %v3120_v35 = vadd.f32 %v5729_v43, %v3080_v7 }
 0x2de   : > { %v2423_v11 = vpop.f32.mrf.mxu2 }
 0x2df   : > { %v3156_v39 = vpack.c.bf16 %v3120_v35, %v3120_v35  ;;  %v3445_v15 = vmul.f32 %v3368_v27, %v3120_v35  ;;  %v2474_v59 = vadd.f32 %v2423_v11, %v2114_v9  ;;  %v2065_v50 = vpop.f32.mrf.mxu1 }
 0x2e0   : > { %v2115_v2 = vadd.f32 %v2065_v50, %v5092_v28  ;;  %v2802_v28 = vpop.f32.mrf.mxu3 }
 0x2e1   : > { %3193 = vst.msk [vmem:[%s5252_s30 + $0x64] sm:$0xf] %vm3167_vm8, %v3156_v39  ;;  %v3506_v13 = vsel %vm3456_vm9, %v3445_v15, 0.0  ;;  %v3561_v32 = vmul.f32 %v3445_v15, %v3445_v15  ;;  %v2846_v8 = vadd.f32 %v2795_v4, %v2474_v59  ;;  %v3032_v41 = vpop.f32.mrf.mxu0 }
 0x2e2   : > { %v3507_v51 = vadd.f32 %v3506_v13, %v3505_v55 }
 0x2e3   : > { %v3621_v18 = vsel %vm3456_vm9, %v3561_v32, 0.0  ;;  %v3081_v61 = vadd.f32 %v3030_v26, %v2846_v8 }
 0x2e4   : > { %v3622_v44 = vadd.f32 %v3621_v18, %v3620_v38 }
 0x2e5   : > { %v3121_v1 = vadd.f32 %v5729_v43, %v3081_v61 }
 0x2e6   : > { %v2425_v60 = vpop.f32.mrf.mxu2 }
 0x2e7   : > { %v3157_v42 = vpack.c.bf16 %v3121_v1, %v3121_v1  ;;  %v3446_v52 = vmul.f32 %v3373_v21, %v3121_v1  ;;  %v2475_v31 = vadd.f32 %v2425_v60, %v2115_v2  ;;  %v2068_v37 = vpop.f32.mrf.mxu1 }
 0x2e8   : > { %v2116_v17 = vadd.f32 %v2068_v37, %v5107_v57  ;;  %v3383_v57 = vpop.permute.xlu1 %3382  ;;  %v2805_v53 = vpop.f32.mrf.mxu3 }
 0x2e9   : > { %3194 = vst.msk [vmem:[%s5252_s30 + $0x68] sm:$0xf] %vm3167_vm8, %v3157_v42  ;;  %v3508_v4 = vsel %vm3456_vm9, %v3446_v52, 0.0  ;;  %v3562_v63 = vmul.f32 %v3446_v52, %v3446_v52  ;;  %v2847_v3 = vadd.f32 %v2797_v20, %v2475_v31  ;;  %v3035_v22 = vpop.f32.mrf.mxu0 }
 0x2ea   : > { %v3509_v14 = vadd.f32 %v3508_v4, %v3507_v51 }
 0x2eb   : > { %v3623_v24 = vsel %vm3456_vm9, %v3562_v63, 0.0  ;;  %v3082_v58 = vadd.f32 %v3032_v41, %v2847_v3  ;;  %v3388_v41 = vpop.permute.xlu2 %3387  ;;  %v3393_v3 = vpop.permute.xlu0 %3392 }
 0x2ec   : > { %v3624_v47 = vadd.f32 %v3623_v24, %v3622_v44 }
 0x2ed   : > { %v3122_v0 = vadd.f32 %v5729_v43, %v3082_v58 }
 0x2ee   : > { %v2428_v30 = vpop.f32.mrf.mxu2 }
 0x2ef   : > { %v3158_v40 = vpack.c.bf16 %v3122_v0, %v3122_v0  ;;  %v3447_v6 = vmul.f32 %v3378_v23, %v3122_v0  ;;  %v2476_v56 = vadd.f32 %v2428_v30, %v2116_v17  ;;  %v2070_v10 = vpop.f32.mrf.mxu1 }
 0x2f0   : > { %v2117_v26 = vadd.f32 %v2070_v10, %v5124_v33  ;;  %v2807_v1 = vpop.f32.mrf.mxu3 }
 0x2f1   : > { %3195 = vst.msk [vmem:[%s5252_s30 + $0x6c] sm:$0xf] %vm3167_vm8, %v3158_v40  ;;  %v3510_v12 = vsel %vm3456_vm9, %v3447_v6, 0.0  ;;  %v3563_v5 = vmul.f32 %v3447_v6, %v3447_v6  ;;  %v2848_v19 = vadd.f32 %v2800_v36, %v2476_v56  ;;  %v3037_v54 = vpop.f32.mrf.mxu0 }
 0x2f2   : > { %v3511_v49 = vadd.f32 %v3510_v12, %v3509_v14 }
 0x2f3   : > { %v3625_v20 = vsel %vm3456_vm9, %v3563_v5, 0.0  ;;  %v3083_v29 = vadd.f32 %v3035_v22, %v2848_v19  ;;  %v3398_v5 = vpop.permute.xlu1 %3397 }
 0x2f4   : > { %v3626_v34 = vadd.f32 %v3625_v20, %v3624_v47 }
 0x2f5   : > { %v3123_v46 = vadd.f32 %v5729_v43, %v3083_v29 }
 0x2f6   : > { %v2430_v55 = vpop.f32.mrf.mxu2 }
 0x2f7   : > { %v3159_v7 = vpack.c.bf16 %v3123_v46, %v3123_v46  ;;  %v3448_v38 = vmul.f32 %v3383_v57, %v3123_v46  ;;  %v2477_v35 = vadd.f32 %v2430_v55, %v2117_v26  ;;  %v2073_v9 = vpop.f32.mrf.mxu1 }
 0x2f8   : > { %v2118_v8 = vadd.f32 %v2073_v9, %v5138_v45  ;;  %v2810_v30 = vpop.f32.mrf.mxu3 }
 0x2f9   : > { %3196 = vst.msk [vmem:[%s5252_s30 + $0x70] sm:$0xf] %vm3167_vm8, %v3159_v7  ;;  %v3512_v27 = vsel %vm3456_vm9, %v3448_v38, 0.0  ;;  %v3564_v11 = vmul.f32 %v3448_v38, %v3448_v38  ;;  %v2849_v39 = vadd.f32 %v2802_v28, %v2477_v35  ;;  %v3040_v15 = vpop.f32.mrf.mxu0 }
 0x2fa   : > { %v3513_v59 = vadd.f32 %v3512_v27, %v3511_v49 }
 0x2fb   : > { %v3627_v50 = vsel %vm3456_vm9, %v3564_v11, 0.0  ;;  %v3084_v13 = vadd.f32 %v3037_v54, %v2849_v39 }
 0x2fc   : > { %v3628_v32 = vadd.f32 %v3627_v50, %v3626_v34 }
 0x2fd   : > { %v3124_v33 = vadd.f32 %v5729_v43, %v3084_v13 }
 0x2fe   : > { %v2433_v51 = vpop.f32.mrf.mxu2 }
 0x2ff   : > { %v3160_v36 = vpack.c.bf16 %v3124_v33, %v3124_v33  ;;  %v3449_v18 = vmul.f32 %v3388_v41, %v3124_v33  ;;  %v2478_v61 = vadd.f32 %v2433_v51, %v2118_v8  ;;  %v2075_v44 = vpop.f32.mrf.mxu1 }
 0x300   : > { %v2119_v63 = vadd.f32 %v2075_v44, %v5155_v62  ;;  %v2812_v38 = vpop.f32.mrf.mxu3 }
 0x301   : > { %3197 = vst.msk [vmem:[%s5252_s30 + $0x74] sm:$0xf] %vm3167_vm8, %v3160_v36  ;;  %v3514_v2 = vsel %vm3456_vm9, %v3449_v18, 0.0  ;;  %v3565_v21 = vmul.f32 %v3449_v18, %v3449_v18  ;;  %v2850_v60 = vadd.f32 %v2805_v53, %v2478_v61  ;;  %v3042_v52 = vpop.f32.mrf.mxu0  ;;  %v3408_v18 = vpop.permute.xlu0 %3407 }
 0x302   : > { %v3515_v42 = vadd.f32 %v3514_v2, %v3513_v59 }
 0x303   : > { %v3629_v31 = vsel %vm3456_vm9, %v3565_v21, 0.0  ;;  %v3085_v37 = vadd.f32 %v3040_v15, %v2850_v60 }
 0x304   : > { %v3630_v45 = vadd.f32 %v3629_v31, %v3628_v32 }
 0x305   : > { %v3125_v4 = vadd.f32 %v5729_v43, %v3085_v37 }
 0x306   : > { %v2435_v22 = vpop.f32.mrf.mxu2 }
 0x307   : > { %v3161_v14 = vpack.c.bf16 %v3125_v4, %v3125_v4  ;;  %v3450_v24 = vmul.f32 %v3393_v3, %v3125_v4  ;;  %v2479_v58 = vadd.f32 %v2435_v22, %v2119_v63  ;;  %v2078_v47 = vpop.f32.mrf.mxu1 }
 0x308   : > { %v2120_v12 = vadd.f32 %v2078_v47, %v5169_v25  ;;  %v3403_v25 = vpop.permute.xlu2 %3402  ;;  %v2815_v44 = vpop.f32.mrf.mxu3 }
 0x309   : > { %3198 = vst.msk [vmem:[%s5252_s30 + $0x78] sm:$0xf] %vm3167_vm8, %v3161_v14  ;;  %v3516_v28 = vsel %vm3456_vm9, %v3450_v24, 0.0  ;;  %v3566_v0 = vmul.f32 %v3450_v24, %v3450_v24  ;;  %v2851_v17 = vadd.f32 %v2807_v1, %v2479_v58  ;;  %v3045_v62 = vpop.f32.mrf.mxu0  ;;  %v5887_v14 = vld [vmem:[#allocation8_spill] sm:$0xff]  ;;  %v3413_v58 = vpop.permute.xlu1 %3412 }
 0x30a   : > { %v3517_v23 = vadd.f32 %v3516_v28, %v3515_v42 }
 0x30b   : > { %v3631_v40 = vsel %vm3456_vm9, %v3566_v0, 0.0  ;;  %v3086_v6 = vadd.f32 %v3042_v52, %v2851_v17 }
 0x30c   : > { %v3632_v56 = vadd.f32 %v3631_v40, %v3630_v45 }
 0x30d   : > { %v3126_v10 = vadd.f32 %v5729_v43, %v3086_v6 }
 0x30e   : > { %v2438_v19 = vpop.f32.mrf.mxu2 }
 0x30f   : > { %v3162_v54 = vpack.c.bf16 %v3126_v10, %v3126_v10  ;;  %v3451_v49 = vmul.f32 %v3398_v5, %v3126_v10  ;;  %v2480_v20 = vadd.f32 %v2438_v19, %v2120_v12  ;;  %v2080_v29 = vpop.f32.mrf.mxu1 }
 0x310   : > { %v2121_v9 = vadd.f32 %v2080_v29, %v5186_v16 }
 0x311   : > { %3199 = vst.msk [vmem:[%s5252_s30 + $0x7c] sm:$0xf] %vm3167_vm8, %v3162_v54  ;;  %v3518_v34 = vsel %vm3456_vm9, %v3451_v49, 0.0  ;;  %v3567_v57 = vmul.f32 %v3451_v49, %v3451_v49  ;;  %v2852_v46 = vadd.f32 %v2810_v30, %v2480_v20  ;;  %v3047_v27 = vpop.f32.mrf.mxu0  ;;  %v3418_v54 = vpop.permute.xlu2 %3417 }
 0x312   : > { %v3519_v26 = vadd.f32 %v3518_v34, %v3517_v23  ;;  %v2817_v23 = vpop.f32.mrf.mxu3 }
 0x313   : > { %v3633_v55 = vsel %vm3456_vm9, %v3567_v57, 0.0  ;;  %v3087_v53 = vadd.f32 %v3045_v62, %v2852_v46 }
 0x314   : > { %v3634_v7 = vadd.f32 %v3633_v55, %v3632_v56 }
 0x315   : > { %v3127_v35 = vadd.f32 %v5729_v43, %v3087_v53 }
 0x316   : > { %v2440_v11 = vpop.f32.mrf.mxu2 }
 0x317   : > { %v3163_v39 = vpack.c.bf16 %v3127_v35, %v3127_v35  ;;  %v3452_v15 = vmul.f32 %v3403_v25, %v3127_v35  ;;  %v2481_v59 = vadd.f32 %v2440_v11, %v2121_v9  ;;  %v2083_v50 = vpop.f32.mrf.mxu1 }
 0x318   : > { %v2122_v61 = vadd.f32 %v2083_v50, %v5200_v48 }
 0x319   : > { %3200 = vst.msk [vmem:[%s5252_s30 + $0x80] sm:$0xf] %vm3167_vm8, %v3163_v39  ;;  %v3520_v13 = vsel %vm3456_vm9, %v3452_v15, 0.0  ;;  %v3568_v32 = vmul.f32 %v3452_v15, %v3452_v15  ;;  %v2853_v33 = vadd.f32 %v2812_v38, %v2481_v59  ;;  %v3050_v42 = vpop.f32.mrf.mxu0 }
 0x31a   : > { %v3521_v8 = vadd.f32 %v3520_v13, %v3519_v26 }
 0x31b   : > { %v3635_v41 = vsel %vm3456_vm9, %v3568_v32, 0.0  ;;  %v3088_v51 = vadd.f32 %v3047_v27, %v2853_v33 }
 0x31c   : > { %v3636_v36 = vadd.f32 %v3635_v41, %v3634_v7 }
 0x31d   : > { %v3128_v16 = vadd.f32 %v5729_v43, %v3088_v51 }
 0x31e   : > { %v2443_v1 = vpop.f32.mrf.mxu2 }
 0x31f   : > { %v3164_v2 = vpack.c.bf16 %v3128_v16, %v3128_v16  ;;  %v3453_v21 = vmul.f32 %v3408_v18, %v3128_v16  ;;  %v2482_v60 = vadd.f32 %v2443_v1, %v2122_v61  ;;  %v2085_v4 = vpop.f32.mrf.mxu1 }
 0x320   : > { %v2123_v24 = vadd.f32 %v2085_v4, %v5887_v14 }
 0x321   : > { %3201 = vst.msk [vmem:[%s5252_s30 + $0x84] sm:$0xf] %vm3167_vm8, %v3164_v2  ;;  %v3522_v52 = vsel %vm3456_vm9, %v3453_v21, 0.0  ;;  %v3569_v31 = vmul.f32 %v3453_v21, %v3453_v21  ;;  %v2854_v37 = vadd.f32 %v2815_v44, %v2482_v60  ;;  %v3052_v62 = vpop.f32.mrf.mxu0 }
 0x322   : > { %v3523_v45 = vadd.f32 %v3522_v52, %v3521_v8 }
 0x323   : > { %v3637_v63 = vsel %vm3456_vm9, %v3569_v31, 0.0  ;;  %v3089_v3 = vadd.f32 %v3050_v42, %v2854_v37 }
 0x324   : > { %v3638_v22 = vadd.f32 %v3637_v63, %v3636_v36 }
 0x325   : > { %v3129_v48 = vadd.f32 %v5729_v43, %v3089_v3 }
 0x326   : > { %v2445_v47 = vpop.f32.mrf.mxu2 }
 0x327   : > { %v3165_v28 = vpack.c.bf16 %v3129_v48, %v3129_v48  ;;  %v3454_v0 = vmul.f32 %v3413_v58, %v3129_v48  ;;  %v2483_v17 = vadd.f32 %v2445_v47, %v2123_v24 }
 0x329   : > { %3202 = vst.msk [vmem:[%s5252_s30 + $0x88] sm:$0xf] %vm3167_vm8, %v3165_v28  ;;  %v3524_v30 = vsel %vm3456_vm9, %v3454_v0, 0.0  ;;  %v3570_v40 = vmul.f32 %v3454_v0, %v3454_v0  ;;  %v2855_v6 = vadd.f32 %v2817_v23, %v2483_v17 }
 0x32a   : > { %v3525_v56 = vadd.f32 %v3524_v30, %v3523_v45 }
 0x32b   : > { %v3639_v10 = vsel %vm3456_vm9, %v3570_v40, 0.0  ;;  %v3090_v12 = vadd.f32 %v3052_v62, %v2855_v6 }
 0x32c   : > { %v3640_v5 = vadd.f32 %v3639_v10, %v3638_v22 }
 0x32d   : > { %v3130_v19 = vadd.f32 %v5729_v43, %v3090_v12 }
 0x32f   : > { %v3166_v49 = vpack.c.bf16 %v3130_v19, %v3130_v19  ;;  %v3455_v20 = vmul.f32 %v3418_v54, %v3130_v19 }
 0x331   : > { %3203 = vst.msk [vmem:[%s5252_s30 + $0x8c] sm:$0xf] %vm3167_vm8, %v3166_v49  ;;  %v3526_v29 = vsel %vm3456_vm9, %v3455_v20, 0.0  ;;  %v3571_v34 = vmul.f32 %v3455_v20, %v3455_v20  ;;  %s329_s30 = scalar_lea.vmem %s5854_s5, %s5893_s21 }
 0x332   : > { %v3527_v57 = vadd.f32 %v3526_v29, %v3525_v56 }
 0x333   : > { %v3641_v46 = vsel %vm3456_vm9, %v3571_v34, 0.0 }
 0x334   : > { %v3528_v26 = vrot.slane %v3527_v57, 4  ;;  %v3642_v55 = vadd.f32 %v3641_v46, %v3640_v5 }
 0x336   : > { %v3529_v53 = vadd.f32 %v3528_v26, %v3527_v57  ;;  %v3643_v7 = vrot.slane %v3642_v55, 4 }
 0x338   : > { %v3530_v38 = vrot.slane %v3529_v53, 2  ;;  %v3644_v25 = vadd.f32 %v3643_v7, %v3642_v55 }
 0x33a   : > { %v3531_v43 = vadd.f32 %v3530_v38, %v3529_v53  ;;  %v3645_v35 = vrot.slane %v3644_v25, 2 }
 0x33c   : > { %v3532_v9 = vrot.slane %v3531_v43, 1  ;;  %v3646_v27 = vadd.f32 %v3645_v35, %v3644_v25 }
 0x33e   : > { %v3533_v11 = vadd.f32 %v3532_v9, %v3531_v43  ;;  %v3647_v39 = vrot.slane %v3646_v27, 1 }
 0x340   : > { %3535 = vst.msk [vmem:[%s329_s30] sm:$0x1] %vm3534_vm10, %v3533_v11  ;;  %v3648_v15 = vadd.f32 %v3647_v39, %v3646_v27 }
 0x342   : > { %3649 = vst.msk [vmem:[%s335_s13] sm:$0x1] %vm3534_vm10, %v3648_v15 }
 0x343 PF: > { %s17_s23 = sadd.s32 1, %s4337_s23   ;;  %s5888_s21 = smov %s4333_s22 }
 0x344   : > { %p14_p5 = scmp.ge.s32.totalorder %s17_s23, 4   ;;  %s5889_s22 = smov %s5891_s24 }
 0x346   :  { %16 = sbr.rel (!%p14_p5) target bundleno = 2 (0x2), region = 96 }

// kernel: cseblock_fwd.4
= control target key start
LH: loop header
LB: loop body
LE: loop exit
PB: predicated region body
PF: predicated region fallthrough
CT: control target
= control target key end

     0   :  { %s4558_s21 = smov 0   ;;  %s4560_s22 = smov 0   ;;  %s6050_s0 = inlined_call_operand.vmem [shape: bf16[2,342,32], index: 0, kind: input, shape index: {}]   ;;  %s6051_s1 = inlined_call_operand.vmem [shape: bf16[288,32], index: 1, kind: input, shape index: {}]   ;;  %s6052_s2 = inlined_call_operand.vmem [shape: f32[1,32], index: 2, kind: input, shape index: {}]   ;;  %s6053_s3 = inlined_call_operand.vmem [shape: f32[288,1], index: 3, kind: input, shape index: {}]   ;;  %s6054_s4 = inlined_call_operand.vmem [shape: bf16[2,288,32], index: 4, kind: output, shape index: {0}]   ;;  %s6055_s5 = inlined_call_operand.vmem [shape: f32[2,1,32], index: 5, kind: output, shape index: {1}]   ;;  %s6056_s6 = inlined_call_operand.vmem [shape: f32[2,1,32], index: 6, kind: output, shape index: {2}]  }
   0x1   :  { %s4562_s23 = smov 0  }
   0x2 LB: > { %s26_s24 = sadd.s32 1, %s4516_s22  ;;  %p3921_p0 = scmp.ge.s32.totalorder %s4520_s23, 1  ;;  %s4520_s23 = sphi %s4562_s23, %s17_s23   ;;  %s4516_s22 = sphi %s4560_s22, %s6090_s22   ;;  %s4512_s21 = sphi %s4558_s21, %s6089_s21  }
   0x3   : > { %p27_p1 = scmp.ge.s32.totalorder %s26_s24, 2  ;;  %p252_p2 = scmp.lt.s32.totalorder %s4520_s23, 3 }
   0x5   : > { %s6092_s24 = smov (%p27_p1, %s26_s24), 0  ;;  %p253_p3 = pnand %p3921_p0, %p252_p2 }
   0x7   : > { %256 = sbr.rel (%p253_p3) target bundleno = 835 (0x343), region = 36 }
   0xc   : > { %v4384_v0 = vld [vmem:[%s6051_s1 + $0x18] sm:$0xff]  ;;  %p304_p4 = scmp.lt.s32.totalorder %s4512_s21, 1  ;;  %v4383_v1 = vld [vmem:[%s6051_s1 + $0x10] sm:$0xff]  ;;  %v4386_v2 = vld [vmem:[%s6051_s1 + $0x28] sm:$0xff]  ;;  %vm475_vm0 = vsmask.f32 7424 }
   0xd   : > { %4440 = vmatpush.bf16.msra.mxu1 %v4384_v0  ;;  %4441 = vmatpush.bf16.msra.mxu2 %v4384_v0  ;;  %v4382_v3 = vld [vmem:[%s6051_s1 + $0x8] sm:$0xff]  ;;  %vm636_vm1 = vcmask 261120   ;;  %v4405_v39 = vld [vmem:[%s6051_s1 + $0x38] sm:$0xff]  ;;  %v4385_v40 = vld [vmem:[%s6051_s1 + $0x20] sm:$0xff]  ;;  %vm945_vm2 = vcmask 1046528   ;;  %vm1944_vm5 = vcmask 1045504  }
   0xe   : > { %s6094_s21 = smov (!%p304_p4, %s4512_s21), 1  ;;  %697 = vmatpush.bf16.msra.mxu0 %v4384_v0  ;;  %4442 = vmatpush.bf16.msra.mxu3 %v4384_v0  ;;  %v4407_v4 = vld [vmem:[%s6051_s1 + $0x48] sm:$0xff]  ;;  %v4381_v42 = vld [vmem:[%s6051_s1] sm:$0xff]  ;;  %vm1564_vm3 = vsmask.f32 6400  ;;  %vm2943_vm6 = vcmask 1044480  }
   0xf   : > { %s4446_s7 = smul.u32 172, %s6094_s21  ;;  %vm2563_vm4 = vsmask.f32 5376  ;;  %vm3258_vm7 = vcmask 257024   ;;  %vm3624_vm8 = vcmask 253952   ;;  %s335_s11 = scalar_lea.vmem %s6056_s6, %s6094_s21 }
  0x10   : > { %s4447_s20 = smul.u32 144, %s6094_s21 }
  0x11   : > { %4443 = vmatpush.bf16.msra.mxu1 %v4383_v1  ;;  %4444 = vmatpush.bf16.msra.mxu2 %v4383_v1  ;;  %s4597_s14 = scalar_lea.vmem %s6050_s0, %s4446_s7 }
  0x12   : > { %698 = vmatpush.bf16.msra.mxu0 %v4383_v1  ;;  %v4600_v5 = vld [vmem:[%s4597_s14 + $0x28] sm:$0xff]  ;;  %v4603_v6 = vld [vmem:[%s4597_s14 + $0x30] sm:$0xff]  ;;  %v4609_v8 = vld [vmem:[%s4597_s14 + $0x58] sm:$0xff]  ;;  %4445 = vmatpush.bf16.msra.mxu3 %v4383_v1  ;;  %s5453_s29 = scalar_lea.vmem %s6054_s4, %s4447_s20 }
  0x13   : > { %v4606_v7 = vld [vmem:[%s4597_s14 + $0x50] sm:$0xff]  ;;  %v4612_v9 = vld [vmem:[%s4597_s14] sm:$0xff]   ;;  %v4615_v10 = vld [vmem:[%s4597_s14 + $0x8] sm:$0xff]  ;;  %v516_v11 = vshll.u32 %v4600_v5, 16  ;;  %v520_v12 = vshrl.u32 %v4600_v5, 16  ;;  %v524_v13 = vshll.u32 %v4603_v6, 16 }
  0x14   : > { %v556_v14 = vshll.u32 %v4606_v7, 16  ;;  %v560_v15 = vshrl.u32 %v4606_v7, 16  ;;  %v564_v16 = vshll.u32 %v4609_v8, 16  ;;  %v477_v17 = vshrl.u32 %v4612_v9, 16  ;;  %v4633_v28 = vld [vmem:[%s4597_s14 + $0x78] sm:$0xff]  ;;  %v4379_v29 = vld [vmem:[%s4597_s14 + $0x80] sm:$0xff] }
  0x15   : > { %1055 = vmatpush.bf16.msrb.mxu2 %v4386_v2  ;;  %844 = vmatpush.bf16.msrb.mxu1 %v4382_v3  ;;  %v479_v18 = vshll.u32 %v4612_v9, 16  ;;  %v4625_v19 = vrot.slane %v516_v11, 1  ;;  %v526_v20 = vrot.slane %v524_v13, 1  ;;  %v484_v22 = vshll.u32 %v4615_v10, 16  ;;  %v4642_v34 = vld [vmem:[%s4597_s14 + $0x38] sm:$0xff]  ;;  %v4646_v35 = vld [vmem:[%s4597_s14 + $0x60] sm:$0xff] }
  0x16   : > { %1807 = vmatpush.bf16.msrb.mxu0 %v4407_v4  ;;  %v4627_v21 = vrot.slane %v556_v14, 1  ;;  %v566_v23 = vrot.slane %v564_v16, 1  ;;  %v596_v36 = vshll.u32 %v4633_v28, 16  ;;  %v600_v37 = vshrl.u32 %v4633_v28, 16  ;;  %v4657_v41 = vld [vmem:[%s4597_s14 + $0x10] sm:$0xff]  ;;  %1427 = vmatpush.bf16.msrb.mxu3 %v4405_v39  ;;  %v4380_v57 = vld [vmem:[%s4597_s14 + $0x88] sm:$0xff] }
  0x17   : > { %v481_v24 = vrot.slane %v479_v18, 1  ;;  %v522_v25 = vor.u32 %v520_v12, %v4625_v19  ;;  %v486_v27 = vrot.slane %v484_v22, 1  ;;  %v604_v38 = vshll.u32 %v4379_v29, 16  ;;  %v4675_v58 = vld [vmem:[%s4597_s14 + $0x48] sm:$0xff]  ;;  %v4684_v3 = vld [vmem:[%s4597_s14 + $0x40] sm:$0xff] }
  0x18   : > { %v562_v26 = vor.u32 %v560_v15, %v4627_v21  ;;  %v4662_v43 = vrot.slane %v596_v36, 1  ;;  %v528_v45 = vshrl.u32 %v4603_v6, 16  ;;  %v532_v46 = vshll.u32 %v4642_v34, 16  ;;  %v4687_v4 = vld [vmem:[%s4597_s14 + $0x68] sm:$0xff]  ;;  %v4406_v14 = vld [vmem:[%s6051_s1 + $0x40] sm:$0xff]  ;;  %v4404_v15 = vld [vmem:[%s6051_s1 + $0x30] sm:$0xff] }
  0x19   : > { %v482_v30 = vor.u32 %v481_v24, %v477_v17  ;;  %v527_v31 = vsel %vm475_vm0, %v522_v25, %v526_v20  ;;  %v606_v44 = vrot.slane %v604_v38, 1  ;;  %1056 = vmatpush.bf16.msrb.mxu2 %v4385_v40  ;;  %845 = vmatpush.bf16.msrb.mxu1 %v4381_v42  ;;  %v568_v47 = vshrl.u32 %v4609_v8, 16  ;;  %v4698_v17 = vld [vmem:[%s4597_s14 + $0x18] sm:$0xff]  ;;  %v377_v18 = vld [vmem:[%s4597_s14 + $0x90] sm:$0x1] }
  0x1a   : > { %v567_v32 = vsel %vm475_vm0, %v562_v26, %v566_v23  ;;  %4005 = vmatmul.msk.bf16.vlgmr.msra.gmra.mxu1 %vm636_vm1, %v527_v31  ;;  %v572_v48 = vshll.u32 %v4646_v35, 16  ;;  %v602_v49 = vor.u32 %v600_v37, %v4662_v43  ;;  %v488_v50 = vshrl.u32 %v4615_v10, 16  ;;  %1808 = vmatpush.bf16.msrb.mxu0 %v4406_v14 }
  0x1b   : > { %4010 = vmatmul.msk.bf16.vlgmr.msra.gmra.mxu2 %vm636_vm1, %v567_v32  ;;  %v487_v33 = vsel %vm475_vm0, %v482_v30, %v486_v27  ;;  %v492_v51 = vshll.u32 %v4657_v41, 16  ;;  %v530_v53 = vor.u32 %v528_v45, %v526_v20  ;;  %v534_v54 = vrot.slane %v532_v46, 1  ;;  %1428 = vmatpush.bf16.msrb.mxu3 %v4404_v15 }
  0x1c   : > { %4000 = vmatmul.msk.bf16.vlgmr.msra.gmra.mxu0 %vm636_vm1, %v487_v33  ;;  %v607_v52 = vsel %vm475_vm0, %v602_v49, %v606_v44  ;;  %v570_v55 = vor.u32 %v568_v47, %v566_v23  ;;  %v574_v56 = vrot.slane %v572_v48, 1  ;;  %v490_v59 = vor.u32 %v488_v50, %v486_v27  ;;  %v4707_v27 = vld [vmem:[%s4597_s14 + $0x20] sm:$0xff] }
  0x1d   : > { %4015 = vmatmul.msk.bf16.vlgmr.msra.gmra.mxu3 %vm636_vm1, %v607_v52  ;;  %v494_v60 = vrot.slane %v492_v51, 1  ;;  %v535_v61 = vsel %vm475_vm0, %v530_v53, %v534_v54  ;;  %v608_v63 = vshrl.u32 %v4379_v29, 16  ;;  %v612_v0 = vshll.u32 %v4380_v57, 16  ;;  %v4728_v52 = vld [vmem:[%s4597_s14 + $0x70] sm:$0xff] }
  0x1e   : > { %v575_v62 = vsel %vm475_vm0, %v570_v55, %v574_v56  ;;  %v548_v1 = vshll.u32 %v4675_v58, 16  ;;  %v552_v16 = vshrl.u32 %v4675_v58, 16  ;;  %v536_v22 = vshrl.u32 %v4642_v34, 16 }
  0x1f   : > { %v495_v2 = vsel %vm475_vm0, %v490_v59, %v494_v60  ;;  %v610_v11 = vor.u32 %v608_v63, %v606_v44  ;;  %v614_v12 = vrot.slane %v612_v0, 1  ;;  %v540_v23 = vshll.u32 %v4684_v3, 16  ;;  %v4739_v63 = vld [vmem:[%s4597_s14 + $0xc] sm:$0xf] }
  0x20   : > { %v550_v13 = vrot.slane %v548_v1, 1  ;;  %v576_v24 = vshrl.u32 %v4646_v35, 16  ;;  %v580_v25 = vshll.u32 %v4687_v4, 16  ;;  %v455_v29 = vunpack.c.l.b16 %v377_v18 }
  0x21   : > { %v615_v26 = vsel %vm475_vm0, %v610_v11, %v614_v12  ;;  %v496_v31 = vshrl.u32 %v4657_v41, 16  ;;  %v500_v32 = vshll.u32 %v4698_v17, 16  ;;  %v538_v33 = vor.u32 %v536_v22, %v534_v54  ;;  %v4428_v22 = vld [vmem:[%s6051_s1 + $0x68] sm:$0xff] }
  0x22   : > { %v554_v20 = vor.u32 %v552_v16, %v550_v13  ;;  %v542_v36 = vrot.slane %v540_v23, 1  ;;  %v578_v37 = vor.u32 %v576_v24, %v574_v56  ;;  %v582_v38 = vrot.slane %v580_v25, 1  ;;  %v4387_v16 = vld [vmem:[%s4597_s14 + $0x10] sm:$0xff]  ;;  %v4430_v24 = vld [vmem:[%s6051_s1 + $0x78] sm:$0xff]  ;;  %2426 = vmatpush.bf16.msra.mxu2 %v4428_v22 }
  0x23   : > { %v508_v39 = vshll.u32 %v4707_v27, 16  ;;  %v4717_v40 = vpack.c.b16 %v455_v29, %v455_v29  ;;  %v498_v42 = vor.u32 %v496_v31, %v494_v60  ;;  %v502_v44 = vrot.slane %v500_v32, 1  ;;  %v4409_v25 = vld [vmem:[%s6051_s1 + $0x58] sm:$0xff]  ;;  %2806 = vmatpush.bf16.msra.mxu3 %v4430_v24 }
  0x24   : > { %v4711_v30 = vsel %vm475_vm0, %v554_v20, %v4627_v21  ;;  %v543_v21 = vsel %vm475_vm0, %v538_v33, %v542_v36  ;;  %v583_v45 = vsel %vm475_vm0, %v578_v37, %v582_v38  ;;  %v616_v47 = vshrl.u32 %v4380_v57, 16  ;;  %2054 = vmatpush.bf16.msra.mxu1 %v4409_v25  ;;  %v4437_v37 = vld [vmem:[%s4597_s14] sm:$0xf0] }
  0x25   : > { %v510_v46 = vrot.slane %v508_v39, 1  ;;  %v620_v48 = vshll.u32 %v4717_v40, 16  ;;  %v512_v49 = vshrl.u32 %v4707_v27, 16  ;;  %v503_v50 = vsel %vm475_vm0, %v498_v42, %v502_v44  ;;  %v4438_v39 = vld [vmem:[%s4597_s14] sm:$0xe] }
  0x26   : > { %v618_v53 = vor.u32 %v616_v47, %v614_v12  ;;  %v544_v56 = vshrl.u32 %v4684_v3, 16  ;;  %v584_v57 = vshrl.u32 %v4687_v4, 16  ;;  %v588_v59 = vshll.u32 %v4728_v52, 16 }
  0x27   : > { %v514_v51 = vor.u32 %v512_v49, %v510_v46  ;;  %v622_v54 = vrot.slane %v620_v48, 1  ;;  %v6057_v11 = vunpack.c.l.b16 %v4739_v63  ;;  %v1319_v23 = vrot.slane %v4387_v16, 1 }
  0x28   : > { %v546_v0 = vor.u32 %v544_v56, %v542_v36  ;;  %v586_v1 = vor.u32 %v584_v57, %v582_v38  ;;  %v592_v29 = vshrl.u32 %v4728_v52, 16  ;;  %v4388_v36 = vld [vmem:[%s4597_s14 + $0x18] sm:$0xff]  ;;  %v4389_v56 = vld [vmem:[%s4597_s14 + $0x20] sm:$0xff] }
  0x29   : > { %v519_v55 = vsel %vm475_vm0, %v514_v51, %v4625_v19  ;;  %v623_v60 = vsel %vm475_vm0, %v618_v53, %v622_v54  ;;  %v1321_v38 = vrot.slane %v4388_v36, 1  ;;  %v947_v51 = vrot.slane %v4615_v10, 1 }
  0x2a   : > { %4006 = vmatmul.msk.bf16.gmra.mxu1 %vm636_vm1, %v535_v61  ;;  %v504_v61 = vshrl.u32 %v4698_v17, 16  ;;  %v551_v14 = vsel %vm475_vm0, %v546_v0, %v550_v13 }
  0x2b   : > { %4011 = vmatmul.msk.bf16.gmra.mxu2 %vm636_vm1, %v575_v62  ;;  %v1184_v62 = vld [vmem:[%s4597_s14 + $0x8] sm:$0xe]  ;;  %v1322_v47 = vsel %vm945_vm2, %v1319_v23, %v1321_v38 }
  0x2c   : > { %4001 = vmatmul.msk.bf16.gmra.mxu0 %vm636_vm1, %v495_v2  ;;  %v590_v2 = vrot.slane %v588_v59, 1  ;;  %v1262_v19 = vunpack.c.l.b16 %v1184_v62  ;;  %v506_v12 = vor.u32 %v504_v61, %v502_v44  ;;  %v1323_v59 = vrot.slane %v4389_v56, 1 }
  0x2d   : > { %4016 = vmatmul.msk.bf16.gmra.mxu3 %vm636_vm1, %v615_v26  ;;  %v4432_v26 = vld [vmem:[%s6051_s1 + $0x88] sm:$0xff]  ;;  %v1586_v61 = vshll.u32 %v4388_v36, 16 }
  0x2e   : > { %v591_v15 = vsel %vm475_vm0, %v586_v1, %v590_v2  ;;  %v1299_v18 = vpack.c.b16 %v6057_v11, %v1262_v19  ;;  %v511_v20 = vsel %vm475_vm0, %v506_v12, %v510_v46  ;;  %3053 = vmatpush.bf16.msra.mxu0 %v4432_v26  ;;  %v594_v32 = vor.u32 %v592_v29, %v590_v2  ;;  %v4391_v26 = vld [vmem:[%s4597_s14 + $0x30] sm:$0xff] }
  0x2f   : > { %v4439_v46 = vor.u32 %v4438_v39, %v4437_v37  ;;  %v1324_v62 = vsel %vm945_vm2, %v1321_v38, %v1323_v59  ;;  %v1588_v1 = vrot.slane %v1586_v61, 2  ;;  %v949_v2 = vrot.slane %v4657_v41, 1 }
  0x30   : > { %v1318_v13 = vrot.slane %v1299_v18, 1  ;;  %v599_v33 = vsel %vm475_vm0, %v594_v32, %v4662_v43  ;;  %v1566_v42 = vshrl.u32 %v1299_v18, 16  ;;  %v1569_v44 = vshll.u32 %v1299_v18, 16 }
  0x31   : > { %v950_v12 = vsel %vm945_vm2, %v947_v51, %v949_v2  ;;  %v1595_v18 = vshll.u32 %v4389_v56, 16  ;;  %v1327_v29 = vrot.slane %v4391_v26, 1  ;;  %v953_v38 = vrot.slane %v4707_v27, 1 }
  0x32   : > { %v1320_v31 = vsel %vm945_vm2, %v1318_v13, %v1319_v23  ;;  %v1568_v43 = vrot.slane %v1566_v42, 1  ;;  %v1571_v48 = vrot.slane %v1569_v44, 2  ;;  %v951_v23 = vrot.slane %v4698_v17, 1  ;;  %v4392_v44 = vld [vmem:[%s4597_s14 + $0x38] sm:$0xff] }
  0x33   : > { %v1597_v13 = vrot.slane %v1595_v18, 2  ;;  %v957_v18 = vrot.slane %v4603_v6, 1 }
  0x34   : > { %v1572_v53 = vor.u32 %v1571_v48, %v1568_v43  ;;  %v952_v25 = vsel %vm945_vm2, %v949_v2, %v951_v23  ;;  %v1613_v43 = vshll.u32 %v4391_v26, 16  ;;  %v1622_v2 = vshll.u32 %v4392_v44, 16 }
  0x3a   : > { %4007 = vmatmul.msk.bf16.gmra.mxu1 %vm636_vm1, %v543_v21  ;;  %v1574_v21 = vshrl.u32 %v4387_v16, 16 }
  0x3b   : > { %4012 = vmatmul.msk.bf16.gmra.mxu2 %vm636_vm1, %v583_v45  ;;  %v1577_v45 = vshll.u32 %v4387_v16, 16  ;;  %v1592_v16 = vshrl.u32 %v4389_v56, 16 }
  0x3c   : > { %4002 = vmatmul.msk.bf16.gmra.mxu0 %vm636_vm1, %v503_v50  ;;  %v1576_v49 = vrot.slane %v1574_v21, 1 }
  0x3d   : > { %4017 = vmatmul.msk.bf16.gmra.mxu3 %vm636_vm1, %v623_v60  ;;  %v1579_v50 = vrot.slane %v1577_v45, 2  ;;  %v1583_v60 = vshrl.u32 %v4388_v36, 16  ;;  %v1594_v22 = vrot.slane %v1592_v16, 1 }
  0x3f   : > { %v1580_v54 = vor.u32 %v1579_v50, %v1576_v49  ;;  %v1585_v0 = vrot.slane %v1583_v60, 1  ;;  %v1598_v24 = vor.u32 %v1597_v13, %v1594_v22  ;;  %v4393_v60 = vld [vmem:[%s4597_s14 + $0x40] sm:$0xff] }
  0x41   : > { %v1581_v57 = vsel %vm1564_vm3, %v1572_v53, %v1580_v54  ;;  %v1589_v19 = vor.u32 %v1588_v1, %v1585_v0  ;;  %v1615_v53 = vrot.slane %v1613_v43, 2  ;;  %v1331_v0 = vrot.slane %v4393_v60, 1 }
  0x42   : > { %v1619_v1 = vshrl.u32 %v4392_v44, 16 }
  0x44   : > { %v1621_v16 = vrot.slane %v1619_v1, 1 }
  0x4a   : > { %4008 = vmatmul.msk.bf16.gmra.mxu1 %vm636_vm1, %v551_v14  ;;  %v1590_v14 = vsel %vm1564_vm3, %v1580_v54, %v1589_v19 }
  0x4b   : > { %4013 = vmatmul.msk.bf16.gmra.mxu2 %vm636_vm1, %v591_v15 }
  0x4c   : > { %4003 = vmatmul.msk.bf16.gmra.mxu0 %vm636_vm1, %v511_v20 }
  0x4d   : > { %4146 = vmatmul.msk.bf16.vlgmr.msrb.gmra.mxu3 %vm636_vm1, %v1320_v31 }
  0x5a   : > { %4009 = vmatmul.msk.bf16.gmra.mxu1 %vm636_vm1, %v4711_v30  ;;  %v946_v30 = vrot.slane %v4439_v46, 1  ;;  %v1329_v46 = vrot.slane %v4392_v44, 1  ;;  %v959_v44 = vrot.slane %v4642_v34, 1 }
  0x5b   : > { %4014 = vmatmul.msk.bf16.gmra.mxu2 %vm636_vm1, %v599_v33 }
  0x5c   : > { %4004 = vmatmul.msk.bf16.gmra.mxu0 %vm636_vm1, %v519_v55  ;;  %v948_v55 = vsel %vm945_vm2, %v946_v30, %v947_v51  ;;  %v1330_v50 = vsel %vm945_vm2, %v1327_v29, %v1329_v46 }
  0x5d   : > { %4147 = vmatmul.msk.bf16.gmra.mxu3 %vm636_vm1, %v1322_v47  ;;  %v1610_v47 = vshrl.u32 %v4391_v26, 16 }
  0x5f   : > { %v1612_v51 = vrot.slane %v1610_v47, 1 }
  0x61   : > { %v1616_v54 = vor.u32 %v1615_v53, %v1612_v51  ;;  %v4395_v51 = vld [vmem:[%s4597_s14 + $0x50] sm:$0xff] }
  0x6a   : > { %4026 = vmatmul.msk.bf16.vlgmr.msrb.gmra.mxu1 %vm636_vm1, %v4612_v9  ;;  %v4390_v9 = vld [vmem:[%s4597_s14 + $0x28] sm:$0xff] }
  0x6b   : > { %4052 = vmatmul.msk.bf16.vlgmr.msrb.gmra.mxu2 %vm636_vm1, %v948_v55  ;;  %v1325_v15 = vrot.slane %v4390_v9, 1  ;;  %v1601_v31 = vshrl.u32 %v4390_v9, 16  ;;  %v1604_v32 = vshll.u32 %v4390_v9, 16 }
  0x6c   : > { %4172 = vmatmul.msk.bf16.vlgmr.msrb.gmra.mxu0 %vm636_vm1, %v1581_v57 }
  0x6d   : > { %4148 = vmatmul.msk.bf16.gmra.mxu3 %vm636_vm1, %v1324_v62  ;;  %v1326_v20 = vsel %vm945_vm2, %v1323_v59, %v1325_v15  ;;  %v1328_v33 = vsel %vm945_vm2, %v1325_v15, %v1327_v29  ;;  %v1603_v36 = vrot.slane %v1601_v31, 1  ;;  %v1606_v37 = vrot.slane %v1604_v32, 2 }
  0x6e   : > { %v1628_v31 = vshrl.u32 %v4393_v60, 16  ;;  %v1631_v32 = vshll.u32 %v4393_v60, 16 }
  0x6f   : > { %v1607_v39 = vor.u32 %v1606_v37, %v1603_v36 }
  0x71   : > { %v1608_v45 = vsel %vm1564_vm3, %v1598_v24, %v1607_v39  ;;  %v1617_v62 = vsel %vm1564_vm3, %v1607_v39, %v1616_v54 }
  0x7a   : > { %4027 = vmatmul.msk.bf16.gmra.mxu1 %vm636_vm1, %v4615_v10  ;;  %v1599_v10 = vsel %vm1564_vm3, %v1589_v19, %v1598_v24 }
  0x7b   : > { %4053 = vmatmul.msk.bf16.gmra.mxu2 %vm636_vm1, %v950_v12 }
  0x7c   : > { %4173 = vmatmul.msk.bf16.gmra.mxu0 %vm636_vm1, %v1590_v14  ;;  %v1332_v14 = vsel %vm945_vm2, %v1329_v46, %v1331_v0 }
  0x7d   : > { %4149 = vmatmul.msk.bf16.gmra.mxu3 %vm636_vm1, %v1326_v20 }
  0x8a   : > { %4028 = vmatmul.msk.bf16.gmra.mxu1 %vm636_vm1, %v4657_v41  ;;  %v954_v41 = vsel %vm945_vm2, %v951_v23, %v953_v38 }
  0x8b   : > { %4054 = vmatmul.msk.bf16.gmra.mxu2 %vm636_vm1, %v952_v25  ;;  %v4394_v25 = vld [vmem:[%s4597_s14 + $0x48] sm:$0xff] }
  0x8c   : > { %4174 = vmatmul.msk.bf16.gmra.mxu0 %vm636_vm1, %v1599_v10  ;;  %v1333_v29 = vrot.slane %v4394_v25, 1  ;;  %v1640_v60 = vshll.u32 %v4394_v25, 16 }
  0x8d   : > { %4150 = vmatmul.msk.bf16.gmra.mxu3 %vm636_vm1, %v1328_v33 }
  0x97   : > { %v4809_v42 = vpop.f32.mrf.mxu1 }
  0x99   : > { %v4813_v21 = vpop.f32.mrf.mxu0 }
  0x9a   : > { %4029 = vmatmul.msk.bf16.gmra.mxu1 %vm636_vm1, %v4698_v17  ;;  %v955_v17 = vrot.slane %v4600_v5, 1 }
  0x9b   : > { %4055 = vmatmul.msk.bf16.gmra.mxu2 %vm636_vm1, %v954_v41  ;;  %v1630_v41 = vrot.slane %v1628_v31, 1  ;;  %v4396_v31 = vld [vmem:[%s4597_s14 + $0x58] sm:$0xff] }
  0x9c   : > { %4175 = vmatmul.msk.bf16.gmra.mxu0 %vm636_vm1, %v1608_v45  ;;  %v956_v59 = vsel %vm945_vm2, %v953_v38, %v955_v17  ;;  %v958_v24 = vsel %vm945_vm2, %v955_v17, %v957_v18  ;;  %v1334_v38 = vsel %vm945_vm2, %v1331_v0, %v1333_v29 }
  0x9d   : > { %4151 = vmatmul.msk.bf16.gmra.mxu3 %vm636_vm1, %v1330_v50  ;;  %v960_v50 = vsel %vm945_vm2, %v957_v18, %v959_v44 }
  0x9e   : > { %v4820_v48 = vpop.f32.mrf.mxu2 }
  0x9f   : > { %v4822_v49 = vpop.f32.mrf.mxu1 }
  0xa0   : > { %v4831_v56 = vpop.f32.mrf.mxu3 }
  0xa1   : > { %v4825_v30 = vpop.f32.mrf.mxu0  ;;  %6060 = vst [vmem:[#allocation2_spill] sm:$0xff] %v4831_v56 }
  0xa6   : > { %v4829_v55 = vpop.f32.mrf.mxu2 }
  0xa7   : > { %v4833_v57 = vpop.f32.mrf.mxu1 }
  0xa8   : > { %v4846_v12 = vpop.f32.mrf.mxu3 }
  0xa9   : > { %v4837_v61 = vpop.f32.mrf.mxu0  ;;  %6061 = vst [vmem:[#allocation3_spill] sm:$0xff] %v4846_v12 }
  0xaa   : > { %4030 = vmatmul.msk.bf16.gmra.mxu1 %vm636_vm1, %v4707_v27  ;;  %v1624_v27 = vrot.slane %v1622_v2, 2 }
  0xab   : > { %4056 = vmatmul.msk.bf16.gmra.mxu2 %vm636_vm1, %v956_v59  ;;  %v1637_v59 = vshrl.u32 %v4394_v25, 16 }
  0xac   : > { %4176 = vmatmul.msk.bf16.gmra.mxu0 %vm636_vm1, %v1617_v62  ;;  %v1625_v20 = vor.u32 %v1624_v27, %v1621_v16  ;;  %v961_v27 = vrot.slane %v4684_v3, 1 }
  0xad   : > { %4152 = vmatmul.msk.bf16.gmra.mxu3 %vm636_vm1, %v1332_v14  ;;  %v1639_v16 = vrot.slane %v1637_v59, 1 }
  0xae   : > { %v4844_v19 = vpop.f32.mrf.mxu2  ;;  %v1626_v10 = vsel %vm1564_vm3, %v1616_v54, %v1625_v20  ;;  %v1335_v54 = vrot.slane %v4395_v51, 1 }
  0xaf   : > { %v4848_v9 = vpop.f32.mrf.mxu1 }
  0xb0   : > { %v4857_v13 = vpop.f32.mrf.mxu3  ;;  %v1336_v2 = vsel %vm945_vm2, %v1333_v29, %v1335_v54 }
  0xb1   : > { %v4851_v15 = vpop.f32.mrf.mxu0  ;;  %6062 = vst [vmem:[#allocation4_spill] sm:$0xff] %v4857_v13 }
  0xb6   : > { %v4855_v22 = vpop.f32.mrf.mxu2 }
  0xb7   : > { %v4859_v23 = vpop.f32.mrf.mxu1 }
  0xb8   : > { %v4872_v36 = vpop.f32.mrf.mxu3 }
  0xb9   : > { %v4863_v26 = vpop.f32.mrf.mxu0  ;;  %6063 = vst [vmem:[#allocation5_spill] sm:$0xff] %v4872_v36 }
  0xba   : > { %4031 = vmatmul.msk.bf16.gmra.mxu1 %vm636_vm1, %v4600_v5  ;;  %v1633_v5 = vrot.slane %v1631_v32, 2 }
  0xbb   : > { %4057 = vmatmul.msk.bf16.gmra.mxu2 %vm636_vm1, %v958_v24 }
  0xbc   : > { %4177 = vmatmul.msk.bf16.gmra.mxu0 %vm636_vm1, %v1626_v10  ;;  %v1634_v45 = vor.u32 %v1633_v5, %v1630_v41  ;;  %v962_v10 = vsel %vm945_vm2, %v959_v44, %v961_v27  ;;  %v1337_v41 = vrot.slane %v4396_v31, 1  ;;  %v4429_v5 = vld [vmem:[%s6051_s1 + $0x70] sm:$0xff]  ;;  %v1646_v44 = vshrl.u32 %v4395_v51, 16 }
  0xbd   : > { %4153 = vmatmul.msk.bf16.gmra.mxu3 %vm636_vm1, %v1334_v38  ;;  %v4427_v38 = vld [vmem:[%s6051_s1 + $0x60] sm:$0xff] }
  0xbe   : > { %v4870_v33 = vpop.f32.mrf.mxu2  ;;  %v1635_v17 = vsel %vm1564_vm3, %v1625_v20, %v1634_v45  ;;  %2427 = vmatpush.bf16.msra.mxu2 %v4427_v38  ;;  %2807 = vmatpush.bf16.msra.mxu3 %v4429_v5  ;;  %v1338_v59 = vsel %vm945_vm2, %v1335_v54, %v1337_v41 }
  0xbf   : > { %v4874_v37 = vpop.f32.mrf.mxu1 }
  0xc0   : > { %v4883_v47 = vpop.f32.mrf.mxu3 }
  0xc1   : > { %v4877_v39 = vpop.f32.mrf.mxu0  ;;  %6064 = vst [vmem:[#allocation6_spill] sm:$0xff] %v4883_v47 }
  0xc6   : > { %v4881_v46 = vpop.f32.mrf.mxu2 }
  0xc7   : > { %v4885_v43 = vpop.f32.mrf.mxu1 }
  0xc8   : > { %v4898_v0 = vpop.f32.mrf.mxu3 }
  0xc9   : > { %v4889_v53 = vpop.f32.mrf.mxu0  ;;  %6065 = vst [vmem:[#allocation7_spill] sm:$0xff] %v4898_v0 }
  0xca   : > { %4032 = vmatmul.msk.bf16.gmra.mxu1 %vm636_vm1, %v4603_v6  ;;  %v1642_v6 = vrot.slane %v1640_v60, 2 }
  0xcb   : > { %4058 = vmatmul.msk.bf16.gmra.mxu2 %vm636_vm1, %v960_v50  ;;  %v1649_v50 = vshll.u32 %v4395_v51, 16  ;;  %v4431_v51 = vld [vmem:[%s6051_s1 + $0x80] sm:$0xff] }
  0xcc   : > { %4178 = vmatmul.msk.bf16.gmra.mxu0 %vm636_vm1, %v1635_v17  ;;  %v1643_v18 = vor.u32 %v1642_v6, %v1639_v16  ;;  %v4408_v6 = vld [vmem:[%s6051_s1 + $0x50] sm:$0xff] }
  0xcd   : > { %4154 = vmatmul.msk.bf16.gmra.mxu3 %vm636_vm1, %v1336_v2  ;;  %v1648_v2 = vrot.slane %v1646_v44, 1  ;;  %v1651_v16 = vrot.slane %v1649_v50, 2  ;;  %2055 = vmatpush.bf16.msra.mxu1 %v4408_v6  ;;  %v4397_v50 = vld [vmem:[%s4597_s14 + $0x60] sm:$0xff]  ;;  %v1658_v6 = vshll.u32 %v4396_v31, 16 }
  0xce   : > { %v4896_v62 = vpop.f32.mrf.mxu2  ;;  %v1644_v29 = vsel %vm1564_vm3, %v1634_v45, %v1643_v18  ;;  %3054 = vmatpush.bf16.msra.mxu0 %v4431_v51 }
  0xcf   : > { %v4900_v1 = vpop.f32.mrf.mxu1 }
  0xd0   : > { %v1430_v24 = vpop.f32.mrf.mxu3 }
  0xd1   : > { %v4903_v14 = vpop.f32.mrf.mxu0 }
  0xd6   : > { %v4907_v20 = vpop.f32.mrf.mxu2 }
  0xd7   : > { %v4909_v25 = vpop.f32.mrf.mxu1 }
  0xd8   : > { %v1432_v17 = vpop.f32.mrf.mxu3 }
  0xd9   : > { %v4913_v32 = vpop.f32.mrf.mxu0 }
  0xda   : > { %4033 = vmatmul.msk.bf16.gmra.mxu1 %vm636_vm1, %v4642_v34 }
  0xdb   : > { %4059 = vmatmul.msk.bf16.gmra.mxu2 %vm636_vm1, %v962_v10  ;;  %v963_v10 = vrot.slane %v4675_v58, 1 }
  0xdc   : > { %4179 = vmatmul.msk.bf16.gmra.mxu0 %vm636_vm1, %v1644_v29  ;;  %v1652_v29 = vor.u32 %v1651_v16, %v1648_v2  ;;  %v1655_v16 = vshrl.u32 %v4396_v31, 16 }
  0xdd   : > { %4155 = vmatmul.msk.bf16.gmra.mxu3 %vm636_vm1, %v1338_v59  ;;  %v964_v44 = vsel %vm945_vm2, %v961_v27, %v963_v10  ;;  %v1339_v59 = vrot.slane %v4397_v50, 1 }
  0xde   : > { %v4926_v45 = vpop.f32.mrf.mxu2  ;;  %v1653_v0 = vsel %vm1564_vm3, %v1643_v18, %v1652_v29  ;;  %v1657_v56 = vrot.slane %v1655_v16, 1 }
  0xdf   : > { %6066 = vst [vmem:[#allocation8_spill] sm:$0xff] %v4926_v45  ;;  %v4928_v34 = vpop.f32.mrf.mxu1  ;;  %v1340_v13 = vsel %vm945_vm2, %v1337_v41, %v1339_v59  ;;  %v4398_v41 = vld [vmem:[%s4597_s14 + $0x68] sm:$0xff] }
  0xe0   : > { %v1435_v38 = vpop.f32.mrf.mxu3 }
  0xe1   : > { %v4931_v60 = vpop.f32.mrf.mxu0 }
  0xe6   : > { %v4941_v54 = vpop.f32.mrf.mxu2 }
  0xe7   : > { %6067 = vst [vmem:[#allocation9_spill] sm:$0xff] %v4941_v54  ;;  %v847_v5 = vpop.f32.mrf.mxu1 }
  0xe8   : > { %v848_v2 = vadd.f32 %v847_v5, %v4813_v21  ;;  %v1437_v47 = vpop.f32.mrf.mxu3 }
  0xe9   : > { %v1810_v11 = vpop.f32.mrf.mxu0 }
  0xea   : > { %4034 = vmatmul.msk.bf16.gmra.mxu1 %vm636_vm1, %v4684_v3  ;;  %v1660_v3 = vrot.slane %v1658_v6, 2  ;;  %v1667_v6 = vshll.u32 %v4397_v50, 16 }
  0xeb   : > { %4060 = vmatmul.msk.bf16.gmra.mxu2 %vm636_vm1, %v964_v44 }
  0xec   : > { %4180 = vmatmul.msk.bf16.gmra.mxu0 %vm636_vm1, %v1653_v0  ;;  %v965_v0 = vrot.slane %v4606_v7, 1  ;;  %v1661_v31 = vor.u32 %v1660_v3, %v1657_v56 }
  0xed   : > { %4156 = vmatmul.msk.bf16.gmra.mxu3 %vm636_vm1, %v1340_v13  ;;  %v1664_v13 = vshrl.u32 %v4397_v50, 16 }
  0xee   : > { %v1058_v51 = vpop.f32.mrf.mxu2  ;;  %v966_v45 = vsel %vm945_vm2, %v963_v10, %v965_v0  ;;  %v1662_v16 = vsel %vm1564_vm3, %v1652_v29, %v1661_v31 }
  0xef   : > { %v1148_v36 = vadd.f32 %v1058_v51, %v848_v2  ;;  %v849_v27 = vpop.f32.mrf.mxu1 }
  0xf0   : > { %v850_v21 = vadd.f32 %v849_v27, %v4825_v30  ;;  %v1440_v54 = vpop.f32.mrf.mxu3  ;;  %v1341_v30 = vrot.slane %v4398_v41, 1 }
  0xf1   : > { %v1520_v18 = vadd.f32 %v1430_v24, %v1148_v36  ;;  %v1812_v12 = vpop.f32.mrf.mxu0 }
  0xf2   : > { %v1342_v29 = vsel %vm945_vm2, %v1339_v59, %v1341_v30  ;;  %v4399_v59 = vld [vmem:[%s4597_s14 + $0x70] sm:$0xff] }
  0xf3   : > { %v4953_v44 = vadd.f32 %v1810_v11, %v1520_v18 }
  0xf6   : > { %v1060_v5 = vpop.f32.mrf.mxu2 }
  0xf7   : > { %v1149_v2 = vadd.f32 %v1060_v5, %v850_v21  ;;  %v852_v51 = vpop.f32.mrf.mxu1  ;;  %v1666_v21 = vrot.slane %v1664_v13, 1  ;;  %v967_v5 = vrot.slane %v4609_v8, 1 }
  0xf8   : > { %v853_v56 = vadd.f32 %v852_v51, %v4837_v61  ;;  %v1442_v27 = vpop.f32.mrf.mxu3 }
  0xf9   : > { %v1521_v36 = vadd.f32 %v1432_v17, %v1149_v2  ;;  %v1815_v24 = vpop.f32.mrf.mxu0 }
  0xfa   : > { %4035 = vmatmul.msk.bf16.gmra.mxu1 %vm636_vm1, %v4675_v58 }
  0xfb   : > { %4061 = vmatmul.msk.bf16.gmra.mxu2 %vm636_vm1, %v966_v45  ;;  %v4963_v11 = vadd.f32 %v1812_v12, %v1521_v36  ;;  %v1669_v45 = vrot.slane %v1667_v6, 2 }
  0xfc   : > { %4181 = vmatmul.msk.bf16.gmra.mxu0 %vm636_vm1, %v1662_v16 }
  0xfd   : > { %4157 = vmatmul.msk.bf16.gmra.mxu3 %vm636_vm1, %v1342_v29  ;;  %v1670_v50 = vor.u32 %v1669_v45, %v1666_v21 }
  0xfe   : > { %v1063_v10 = vpop.f32.mrf.mxu2 }
  0xff   : > { %v1150_v17 = vadd.f32 %v1063_v10, %v853_v56  ;;  %v854_v18 = vpop.f32.mrf.mxu1  ;;  %v968_v56 = vsel %vm945_vm2, %v965_v0, %v967_v5  ;;  %v1671_v13 = vsel %vm1564_vm3, %v1661_v31, %v1670_v50 }
 0x100   : > { %v855_v61 = vadd.f32 %v854_v18, %v4851_v15  ;;  %v1445_v51 = vpop.f32.mrf.mxu3  ;;  %v1343_v15 = vrot.slane %v4399_v59, 1  ;;  %v1676_v18 = vshll.u32 %v4398_v41, 16 }
 0x101   : > { %v1522_v3 = vadd.f32 %v1435_v38, %v1150_v17  ;;  %v1817_v58 = vpop.f32.mrf.mxu0  ;;  %v1673_v17 = vshrl.u32 %v4398_v41, 16 }
 0x102   : > { %v1344_v31 = vsel %vm945_vm2, %v1341_v30, %v1343_v15  ;;  %v4400_v30 = vld [vmem:[%s4597_s14 + $0x78] sm:$0xff] }
 0x103   : > { %v4969_v12 = vadd.f32 %v1815_v24, %v1522_v3  ;;  %v1675_v45 = vrot.slane %v1673_v17, 1 }
 0x106   : > { %v1065_v2 = vpop.f32.mrf.mxu2 }
 0x107   : > { %v1151_v36 = vadd.f32 %v1065_v2, %v855_v61  ;;  %v857_v16 = vpop.f32.mrf.mxu1  ;;  %v1678_v61 = vrot.slane %v1676_v18, 2  ;;  %v969_v2 = vrot.slane %v4646_v35, 1 }
 0x108   : > { %v858_v6 = vadd.f32 %v857_v16, %v4863_v26  ;;  %v1447_v29 = vpop.f32.mrf.mxu3 }
 0x109   : > { %v1523_v38 = vadd.f32 %v1437_v47, %v1151_v36  ;;  %v1820_v10 = vpop.f32.mrf.mxu0  ;;  %v1679_v41 = vor.u32 %v1678_v61, %v1675_v45 }
 0x10a   : > { %4036 = vmatmul.msk.bf16.gmra.mxu1 %vm636_vm1, %v4606_v7 }
 0x10b   : > { %4062 = vmatmul.msk.bf16.gmra.mxu2 %vm636_vm1, %v968_v56  ;;  %v4979_v24 = vadd.f32 %v1817_v58, %v1523_v38  ;;  %v1680_v17 = vsel %vm1564_vm3, %v1670_v50, %v1679_v41 }
 0x10c   : > { %4182 = vmatmul.msk.bf16.gmra.mxu0 %vm636_vm1, %v1671_v13  ;;  %v970_v13 = vsel %vm945_vm2, %v967_v5, %v969_v2 }
 0x10d   : > { %4158 = vmatmul.msk.bf16.gmra.mxu3 %vm636_vm1, %v1344_v31 }
 0x10e   : > { %v1068_v0 = vpop.f32.mrf.mxu2 }
 0x10f   : > { %v1152_v47 = vadd.f32 %v1068_v0, %v858_v6  ;;  %v859_v3 = vpop.f32.mrf.mxu1  ;;  %v1682_v0 = vshrl.u32 %v4399_v59, 16 }
 0x110   : > { %v860_v26 = vadd.f32 %v859_v3, %v4877_v39  ;;  %v1450_v16 = vpop.f32.mrf.mxu3  ;;  %v1345_v39 = vrot.slane %v4400_v30, 1 }
 0x111   : > { %v1524_v21 = vadd.f32 %v1440_v54, %v1152_v47  ;;  %v1822_v7 = vpop.f32.mrf.mxu0  ;;  %v1685_v47 = vshll.u32 %v4399_v59, 16  ;;  %v1684_v45 = vrot.slane %v1682_v0, 1 }
 0x112   : > { %v1346_v50 = vsel %vm945_vm2, %v1343_v15, %v1345_v39  ;;  %v4401_v15 = vld [vmem:[%s4597_s14 + $0x80] sm:$0xff] }
 0x113   : > { %v4985_v58 = vadd.f32 %v1820_v10, %v1524_v21  ;;  %v1687_v61 = vrot.slane %v1685_v47, 2  ;;  %v1691_v47 = vshrl.u32 %v4400_v30, 16 }
 0x115   : > { %v1688_v59 = vor.u32 %v1687_v61, %v1684_v45  ;;  %v973_v61 = vrot.slane %v4728_v52, 1 }
 0x116   : > { %v1070_v36 = vpop.f32.mrf.mxu2 }
 0x117   : > { %v1153_v56 = vadd.f32 %v1070_v36, %v860_v26  ;;  %v862_v38 = vpop.f32.mrf.mxu1  ;;  %v971_v26 = vrot.slane %v4687_v4, 1 }
 0x118   : > { %v863_v18 = vadd.f32 %v862_v38, %v4889_v53  ;;  %v1452_v3 = vpop.f32.mrf.mxu3 }
 0x119   : > { %v1525_v54 = vadd.f32 %v1442_v27, %v1153_v56  ;;  %v1825_v6 = vpop.f32.mrf.mxu0 }
 0x11a   : > { %4037 = vmatmul.msk.bf16.gmra.mxu1 %vm636_vm1, %v4609_v8 }
 0x11b   : > { %4063 = vmatmul.msk.bf16.gmra.mxu2 %vm636_vm1, %v970_v13  ;;  %v4995_v10 = vadd.f32 %v1822_v7, %v1525_v54  ;;  %v972_v54 = vsel %vm945_vm2, %v969_v2, %v971_v26 }
 0x11c   : > { %4183 = vmatmul.msk.bf16.gmra.mxu0 %vm636_vm1, %v1680_v17 }
 0x11d   : > { %4159 = vmatmul.msk.bf16.gmra.mxu3 %vm636_vm1, %v1346_v50 }
 0x11e   : > { %v1073_v5 = vpop.f32.mrf.mxu2 }
 0x11f   : > { %v1154_v27 = vadd.f32 %v1073_v5, %v863_v18  ;;  %v864_v31 = vpop.f32.mrf.mxu1  ;;  %v1689_v18 = vsel %vm1564_vm3, %v1679_v41, %v1688_v59  ;;  %v1694_v5 = vshll.u32 %v4400_v30, 16 }
 0x120   : > { %v865_v53 = vadd.f32 %v864_v31, %v4903_v14  ;;  %v1455_v56 = vpop.f32.mrf.mxu3  ;;  %v1347_v14 = vrot.slane %v4401_v15, 1 }
 0x121   : > { %v1526_v21 = vadd.f32 %v1445_v51, %v1154_v27  ;;  %v1827_v8 = vpop.f32.mrf.mxu0  ;;  %v1696_v45 = vrot.slane %v1694_v5, 2  ;;  %v1703_v5 = vshll.u32 %v4401_v15, 16 }
 0x122   : > { %v1348_v41 = vsel %vm945_vm2, %v1345_v39, %v1347_v14  ;;  %v4402_v39 = vld [vmem:[%s4597_s14 + $0x88] sm:$0xff] }
 0x123   : > { %v5001_v7 = vadd.f32 %v1825_v6, %v1526_v21  ;;  %v1693_v21 = vrot.slane %v1691_v47, 1  ;;  %v1700_v47 = vshrl.u32 %v4401_v15, 16 }
 0x125   : > { %v1697_v30 = vor.u32 %v1696_v45, %v1693_v21  ;;  %v975_v21 = vrot.slane %v4633_v28, 1 }
 0x126   : > { %v1075_v36 = vpop.f32.mrf.mxu2 }
 0x127   : > { %v1155_v38 = vadd.f32 %v1075_v36, %v865_v53  ;;  %v867_v13 = vpop.f32.mrf.mxu1 }
 0x128   : > { %v868_v0 = vadd.f32 %v867_v13, %v4913_v32  ;;  %v1457_v27 = vpop.f32.mrf.mxu3 }
 0x129   : > { %v1527_v51 = vadd.f32 %v1447_v29, %v1155_v38  ;;  %v1830_v17 = vpop.f32.mrf.mxu0 }
 0x12a   : > { %4038 = vmatmul.msk.bf16.gmra.mxu1 %vm636_vm1, %v4646_v35 }
 0x12b   : > { %4064 = vmatmul.msk.bf16.gmra.mxu2 %vm636_vm1, %v972_v54  ;;  %v5011_v6 = vadd.f32 %v1827_v8, %v1527_v51  ;;  %v974_v54 = vsel %vm945_vm2, %v971_v26, %v973_v61 }
 0x12c   : > { %4184 = vmatmul.msk.bf16.gmra.mxu0 %vm636_vm1, %v1689_v18  ;;  %v1698_v18 = vsel %vm1564_vm3, %v1688_v59, %v1697_v30 }
 0x12d   : > { %4160 = vmatmul.msk.bf16.gmra.mxu3 %vm636_vm1, %v1348_v41  ;;  %v1702_v41 = vrot.slane %v1700_v47, 1 }
 0x12e   : > { %v1078_v2 = vpop.f32.mrf.mxu2 }
 0x12f   : > { %v1156_v29 = vadd.f32 %v1078_v2, %v868_v0  ;;  %v869_v31 = vpop.f32.mrf.mxu1 }
 0x130   : > { %v870_v32 = vadd.f32 %v869_v31, %v4931_v60  ;;  %v1460_v36 = vpop.f32.mrf.mxu3  ;;  %v1349_v60 = vrot.slane %v4402_v39, 1 }
 0x131   : > { %v1528_v50 = vadd.f32 %v1450_v16, %v1156_v29  ;;  %v1832_v35 = vpop.f32.mrf.mxu0 }
 0x132   : > { %v1350_v59 = vsel %vm945_vm2, %v1347_v14, %v1349_v60  ;;  %v4403_v14 = vld [vmem:[%s4597_s14 + $0x90] sm:$0xff] }
 0x133   : > { %v5017_v8 = vadd.f32 %v1830_v17, %v1528_v50  ;;  %v1705_v50 = vrot.slane %v1703_v5, 2 }
 0x135   : > { %v1706_v15 = vor.u32 %v1705_v50, %v1702_v41 }
 0x136   : > { %v1080_v53 = vpop.f32.mrf.mxu2 }
 0x137   : > { %v1157_v38 = vadd.f32 %v1080_v53, %v870_v32  ;;  %v872_v13 = vpop.f32.mrf.mxu1 }
 0x138   : > { %v873_v0 = vadd.f32 %v872_v13, %v4809_v42  ;;  %v1462_v2 = vpop.f32.mrf.mxu3  ;;  %v976_v13 = vsel %vm945_vm2, %v973_v61, %v975_v21  ;;  %v1709_v61 = vshrl.u32 %v4402_v39, 16 }
 0x139   : > { %v1529_v16 = vadd.f32 %v1452_v3, %v1157_v38  ;;  %v1835_v51 = vpop.f32.mrf.mxu0 }
 0x13a   : > { %4039 = vmatmul.msk.bf16.gmra.mxu1 %vm636_vm1, %v4687_v4 }
 0x13b   : > { %4065 = vmatmul.msk.bf16.gmra.mxu2 %vm636_vm1, %v974_v54  ;;  %v5027_v17 = vadd.f32 %v1832_v35, %v1529_v16  ;;  %v1707_v16 = vsel %vm1564_vm3, %v1697_v30, %v1706_v15 }
 0x13c   : > { %4185 = vmatmul.msk.bf16.gmra.mxu0 %vm636_vm1, %v1698_v18  ;;  %v1712_v18 = vshll.u32 %v4402_v39, 16 }
 0x13d   : > { %4161 = vmatmul.msk.bf16.gmra.mxu3 %vm636_vm1, %v1350_v59  ;;  %v1220_v59 = vld [vmem:[%s4597_s14 + $0x98] sm:$0x1] }
 0x13e   : > { %v1083_v26 = vpop.f32.mrf.mxu2 }
 0x13f   : > { %v1158_v3 = vadd.f32 %v1083_v26, %v873_v0  ;;  %v874_v29 = vpop.f32.mrf.mxu1 }
 0x140   : > { %v875_v42 = vadd.f32 %v874_v29, %v4822_v49  ;;  %v1465_v32 = vpop.f32.mrf.mxu3  ;;  %v1351_v49 = vrot.slane %v4403_v14, 1  ;;  %v1714_v29 = vrot.slane %v1712_v18, 2 }
 0x141   : > { %v1530_v31 = vadd.f32 %v1455_v56, %v1158_v3  ;;  %v1837_v4 = vpop.f32.mrf.mxu0  ;;  %v1711_v3 = vrot.slane %v1709_v61, 1  ;;  %v4478_v61 = vld [vmem:[%s4597_s14 + $0x78] sm:$0xff] }
 0x143   : > { %v5033_v35 = vadd.f32 %v1835_v51, %v1530_v31 }
 0x146   : > { %v1085_v45 = vpop.f32.mrf.mxu2 }
 0x147   : > { %v1159_v53 = vadd.f32 %v1085_v45, %v875_v42  ;;  %v877_v38 = vpop.f32.mrf.mxu1 }
 0x148   : > { %v878_v51 = vadd.f32 %v877_v38, %v4833_v57  ;;  %v5047_v0 = vpop.f32.mrf.mxu3  ;;  %v5055_v57 = vld [vmem:[%s4597_s14 + $0x80] sm:$0xff] }
 0x149   : > { %v1531_v56 = vadd.f32 %v1457_v27, %v1159_v53  ;;  %v1840_v54 = vpop.f32.mrf.mxu0  ;;  %v977_v39 = vrot.slane %v5055_v57, 1 }
 0x14a   : > { %4040 = vmatmul.msk.bf16.gmra.mxu1 %vm636_vm1, %v4728_v52  ;;  %v1352_v52 = vsel %vm945_vm2, %v1349_v60, %v1351_v49  ;;  %v1715_v60 = vor.u32 %v1714_v29, %v1711_v3  ;;  %v5079_v29 = vld [vmem:[%s4597_s14 + $0x18] sm:$0xff] }
 0x14b   : > { %4066 = vmatmul.msk.bf16.gmra.mxu2 %vm636_vm1, %v976_v13  ;;  %v5043_v28 = vadd.f32 %v1837_v4, %v1531_v56  ;;  %v1298_v4 = vunpack.c.l.b16 %v1220_v59  ;;  %v978_v53 = vsel %vm945_vm2, %v975_v21, %v977_v39 }
 0x14c   : > { %4186 = vmatmul.msk.bf16.gmra.mxu0 %vm636_vm1, %v1707_v16  ;;  %v2183_v16 = vld [vmem:[%s4597_s14 + $0x10] sm:$0xc] }
 0x14d   : > { %4162 = vmatmul.msk.bf16.gmra.mxu3 %vm636_vm1, %v1352_v52  ;;  %v1317_v38 = vpack.c.b16 %v1298_v4, %v1298_v4  ;;  %v2261_v21 = vunpack.c.l.b16 %v2183_v16 }
 0x14e   : > { %v1088_v27 = vpop.f32.mrf.mxu2 }
 0x14f   : > { %v1160_v30 = vadd.f32 %v1088_v27, %v878_v51  ;;  %v879_v47 = vpop.f32.mrf.mxu1  ;;  %v5065_v51 = vld [vmem:[%s4597_s14 + $0x14] sm:$0xf]  ;;  %v1353_v18 = vrot.slane %v1317_v38, 1  ;;  %v1718_v27 = vshrl.u32 %v4403_v14, 16 }
 0x150   : > { %v880_v41 = vadd.f32 %v879_v47, %v4848_v9  ;;  %v5059_v50 = vpop.f32.mrf.mxu3 }
 0x151   : > { %v1532_v5 = vadd.f32 %v1460_v36, %v1160_v30  ;;  %v1842_v26 = vpop.f32.mrf.mxu0  ;;  %v1721_v30 = vshll.u32 %v4403_v14, 16 }
 0x153   : > { %v5052_v31 = vadd.f32 %v1840_v54, %v1532_v5  ;;  %v1716_v54 = vsel %vm1564_vm3, %v1706_v15, %v1715_v60 }
 0x156   : > { %v1090_v36 = vpop.f32.mrf.mxu2 }
 0x157   : > { %v1161_v42 = vadd.f32 %v1090_v36, %v880_v41  ;;  %v882_v45 = vpop.f32.mrf.mxu1  ;;  %v1720_v36 = vrot.slane %v1718_v27, 1 }
 0x158   : > { %v883_v15 = vadd.f32 %v882_v45, %v4859_v23  ;;  %v5075_v52 = vpop.f32.mrf.mxu3  ;;  %v1556_v23 = vld [vmem:[%s4597_s14 + $0x98] sm:$0x3]  ;;  %v5087_v45 = vld [vmem:[%s4597_s14 + $0x88] sm:$0xff] }
 0x159   : > { %v1533_v13 = vadd.f32 %v1462_v2, %v1161_v42  ;;  %v1845_v56 = vpop.f32.mrf.mxu0  ;;  %v6058_v2 = vunpack.c.l.b16 %v5065_v51  ;;  %v1723_v42 = vrot.slane %v1721_v30, 2  ;;  %v979_v14 = vrot.slane %v5087_v45, 1 }
 0x15a   : > { %4041 = vmatmul.msk.bf16.gmra.mxu1 %vm636_vm1, %v4478_v61  ;;  %v1562_v61 = vunpack.c.l.b16 %v1556_v23 }
 0x15b   : > { %4067 = vmatmul.msk.bf16.gmra.mxu2 %vm636_vm1, %v978_v53  ;;  %v5070_v9 = vadd.f32 %v1842_v26, %v1533_v13  ;;  %v1354_v26 = vsel %vm945_vm2, %v1351_v49, %v1353_v18  ;;  %v5083_v59 = vpack.c.b16 %v6058_v2, %v2261_v21  ;;  %v2573_v13 = vshrl.u32 %v5079_v29, 16 }
 0x15c   : > { %4187 = vmatmul.msk.bf16.gmra.mxu0 %vm636_vm1, %v1716_v54  ;;  %v1724_v16 = vor.u32 %v1723_v42, %v1720_v36  ;;  %v980_v27 = vsel %vm945_vm2, %v977_v39, %v979_v14 }
 0x15d   : > { %6068 = vst [vmem:[#allocation10_spill] sm:$0xff] %v5070_v9  ;;  %4163 = vmatmul.msk.bf16.gmra.mxu3 %vm636_vm1, %v1354_v26  ;;  %v2565_v49 = vshrl.u32 %v5083_v59, 16  ;;  %v2568_v38 = vshll.u32 %v5083_v59, 16  ;;  %v5103_v9 = vpack.c.b16 %v1562_v61, %v1562_v61  ;;  %v981_v61 = vrot.slane %v4717_v40, 1 }
 0x15e   : > { %v1093_v47 = vpop.f32.mrf.mxu2 }
 0x15f   : > { %v1162_v5 = vadd.f32 %v1093_v47, %v883_v15  ;;  %v884_v3 = vpop.f32.mrf.mxu1  ;;  %v2567_v30 = vrot.slane %v2565_v49, 2  ;;  %v2570_v47 = vrot.slane %v2568_v38, 3 }
 0x160   : > { %v885_v54 = vadd.f32 %v884_v3, %v4874_v37  ;;  %v5098_v21 = vpop.f32.mrf.mxu3 }
 0x161   : > { %v1534_v4 = vadd.f32 %v1465_v32, %v1162_v5  ;;  %v1847_v41 = vpop.f32.mrf.mxu0  ;;  %v2576_v32 = vshll.u32 %v5079_v29, 16  ;;  %v2575_v5 = vrot.slane %v2573_v13, 2  ;;  %v2571_v39 = vor.u32 %v2570_v47, %v2567_v30 }
 0x163   : > { %v5091_v53 = vadd.f32 %v1845_v56, %v1534_v4  ;;  %v2578_v26 = vrot.slane %v2576_v32, 3 }
 0x165   : > { %6069 = vst [vmem:[#allocation11_spill] sm:$0xff] %v5091_v53  ;;  %v1725_v53 = vsel %vm1564_vm3, %v1715_v60, %v1724_v16  ;;  %v2579_v3 = vor.u32 %v2578_v26, %v2575_v5  ;;  %v1730_v60 = vshll.u32 %v5103_v9, 16  ;;  %v982_v26 = vsel %vm945_vm2, %v979_v14, %v981_v61  ;;  %v5148_v61 = vld [vmem:[%s4597_s14 + $0x28] sm:$0xff] }
 0x166   : > { %v1095_v18 = vpop.f32.mrf.mxu2 }
 0x167   : > { %v1163_v15 = vadd.f32 %v1095_v18, %v885_v54  ;;  %v887_v56 = vpop.f32.mrf.mxu1  ;;  %v2580_v38 = vsel %vm2563_vm4, %v2571_v39, %v2579_v3 }
 0x168   : > { %v888_v36 = vadd.f32 %v887_v56, %v4885_v43  ;;  %v5114_v23 = vpop.f32.mrf.mxu3  ;;  %v1732_v43 = vrot.slane %v1730_v60, 2  ;;  %v2935_v60 = vld [vmem:[%s4597_s14 + $0x10] sm:$0x8] }
 0x169   : > { %v1535_v4 = vadd.f32 %v5047_v0, %v1163_v15  ;;  %v1850_v2 = vpop.f32.mrf.mxu0  ;;  %v1727_v0 = vshrl.u32 %v5103_v9, 16 }
 0x16a   : > { %4042 = vmatmul.msk.bf16.gmra.mxu1 %vm636_vm1, %v5055_v57 }
 0x16b   : > { %4068 = vmatmul.msk.bf16.gmra.mxu2 %vm636_vm1, %v980_v27  ;;  %v5108_v37 = vadd.f32 %v1847_v41, %v1535_v4  ;;  %v5118_v41 = vld [vmem:[%s4597_s14 + $0x20] sm:$0xff]  ;;  %v1729_v32 = vrot.slane %v1727_v0, 1  ;;  %v1936_v4 = vld [vmem:[%s4597_s14 + $0x8] sm:$0xc] }
 0x16c   : > { %4188 = vmatmul.msk.bf16.gmra.mxu0 %vm636_vm1, %v1725_v53  ;;  %v2582_v18 = vshrl.u32 %v5118_v41, 16  ;;  %v2585_v15 = vshll.u32 %v5118_v41, 16 }
 0x16d   : > { %4318 = vmatmul.msk.bf16.vlgmr.msra.gmra.mxu3 %vm636_vm1, %v2580_v38  ;;  %v1733_v56 = vor.u32 %v1732_v43, %v1729_v32 }
 0x16e   : > { %v1098_v42 = vpop.f32.mrf.mxu2  ;;  %v2587_v39 = vrot.slane %v2585_v15, 3  ;;  %v6071_v15 = vunpack.c.l.b16 %v5065_v51  ;;  %v2318_v51 = vrot.slane %v5079_v29, 2 }
 0x16f   : > { %v1164_v49 = vadd.f32 %v1098_v42, %v888_v36  ;;  %v889_v57 = vpop.f32.mrf.mxu1  ;;  %v1734_v0 = vsel %vm1564_vm3, %v1724_v16, %v1733_v56  ;;  %v4522_v56 = vmov 0  }
 0x170   : > { %v890_v27 = vadd.f32 %v889_v57, %v4900_v1  ;;  %v1942_v1 = vunpack.c.l.b16 %v1936_v4  ;;  %v2941_v57 = vunpack.c.l.b16 %v2935_v60  ;;  %4473 = vset.pattern.permute.xlu0 %v4522_v56  ;;  %4474 = vset.pattern.permute.xlu1 %v4522_v56 }
 0x171   : > { %v1536_v53 = vadd.f32 %v5059_v50, %v1164_v49  ;;  %v1852_v13 = vpop.f32.mrf.mxu0  ;;  %v5128_v50 = vpop.f32.mrf.mxu3  ;;  %4475 = vset.pattern.permute.xlu2 %v4522_v56 }
 0x173   : > { %v5122_v54 = vadd.f32 %v1850_v2, %v1536_v53  ;;  %v2584_v2 = vrot.slane %v2582_v18, 2  ;;  %v6070_v53 = vunpack.c.l.b16 %v4739_v63 }
 0x175   : > { %v2588_v14 = vor.u32 %v2587_v39, %v2584_v2  ;;  %v1943_v32 = vpack.c.b16 %v6070_v53, %v1942_v1  ;;  %v2945_v39 = vrot.slane %v5079_v29, 3  ;;  %v3296_v29 = vld [vmem:[%s6053_s3 + $0x8] sm:$0xff] }
 0x176   : > { %v1100_v30 = vpop.f32.mrf.mxu2 }
 0x177   : > { %v1165_v47 = vadd.f32 %v1100_v30, %v890_v27  ;;  %v892_v5 = vpop.f32.mrf.mxu1  ;;  %v2589_v43 = vsel %vm2563_vm4, %v2579_v3, %v2588_v14  ;;  %v3295_v27 = vld [vmem:[%s6053_s3] sm:$0xff]  ;;  %v1945_v63 = vrot.slane %v1943_v32, 2  ;;  %v4480_v30 = vld [vmem:[%s4597_s14 + $0x10] sm:$0xff] }
 0x178   : > { %v893_v49 = vadd.f32 %v892_v5, %v4909_v25  ;;  %v2942_v25 = vpack.c.b16 %v6071_v15, %v2941_v57  ;;  %3333 = vperm.xlu0 %4473, %v3295_v27   ;;  %v2591_v5 = vshrl.u32 %v5148_v61, 16  ;;  %v5181_v27 = vld [vmem:[%s4597_s14 + $0x30] sm:$0xff] }
 0x179   : > { %v1537_v40 = vadd.f32 %v5075_v52, %v1165_v47  ;;  %v1855_v36 = vpop.f32.mrf.mxu0  ;;  %v5142_v38 = vpop.f32.mrf.mxu3  ;;  %v1946_v47 = vrot.slane %v4480_v30, 2 }
 0x17a   : > { %4043 = vmatmul.msk.bf16.gmra.mxu1 %vm636_vm1, %v5087_v45  ;;  %v2944_v2 = vrot.slane %v2942_v25, 3 }
 0x17b   : > { %4069 = vmatmul.msk.bf16.gmra.mxu2 %vm636_vm1, %v982_v26  ;;  %v5138_v42 = vadd.f32 %v1852_v13, %v1537_v40  ;;  %v2594_v26 = vshll.u32 %v5148_v61, 16 }
 0x17c   : > { %4189 = vmatmul.msk.bf16.gmra.mxu0 %vm636_vm1, %v1734_v0 }
 0x17d   : > { %4319 = vmatmul.msk.bf16.gmra.mxu3 %vm636_vm1, %v2589_v43  ;;  %v2596_v57 = vrot.slane %v2594_v26, 3  ;;  %v2603_v26 = vshll.u32 %v5181_v27, 16 }
 0x17e   : > { %v1103_v52 = vpop.f32.mrf.mxu2 }
 0x17f   : > { %v1166_v16 = vadd.f32 %v1103_v52, %v893_v49  ;;  %v894_v45 = vpop.f32.mrf.mxu1  ;;  %v2593_v49 = vrot.slane %v2591_v5, 2  ;;  %v2320_v5 = vrot.slane %v5118_v41, 2 }
 0x180   : > { %v895_v4 = vadd.f32 %v894_v45, %v4928_v34  ;;  %v2946_v34 = vsel %vm2943_vm6, %v2944_v2, %v2945_v39  ;;  %3338 = vperm.xlu0 %4473, %v3296_v29  }
 0x181   : > { %v1538_v13 = vadd.f32 %v5098_v21, %v1166_v16  ;;  %v1857_v18 = vpop.f32.mrf.mxu0  ;;  %v2317_v21 = vrot.slane %v5083_v59, 2  ;;  %v1485_v0 = vpop.f32.mrf.mxu3  ;;  %v1947_v59 = vsel %vm1944_vm5, %v1945_v63, %v1946_v47  ;;  %v2597_v32 = vor.u32 %v2596_v57, %v2593_v49 }
 0x182   : > { %v2605_v57 = vrot.slane %v2603_v26, 3 }
 0x183   : > { %v5158_v3 = vadd.f32 %v1855_v36, %v1538_v13  ;;  %v2319_v1 = vsel %vm1944_vm5, %v2317_v21, %v2318_v51  ;;  %v2598_v25 = vsel %vm2563_vm4, %v2588_v14, %v2597_v32  ;;  %v2600_v14 = vshrl.u32 %v5181_v27, 16 }
 0x185   : > { %v2602_v49 = vrot.slane %v2600_v14, 2 }
 0x186   : > { %v1105_v40 = vpop.f32.mrf.mxu2 }
 0x187   : > { %v1167_v36 = vadd.f32 %v1105_v40, %v895_v4  ;;  %v897_v60 = vpop.f32.mrf.mxu1  ;;  %v2947_v4 = vrot.slane %v5118_v41, 3 }
 0x189   : > { %v1539_v52 = vadd.f32 %v5114_v23, %v1167_v36  ;;  %v1860_v16 = vpop.f32.mrf.mxu0  ;;  %v898_v23 = vadd.f32 %v897_v60, %v4820_v48  ;;  %v1487_v43 = vpop.f32.mrf.mxu3  ;;  %v4481_v48 = vld [vmem:[%s4597_s14 + $0x18] sm:$0xff] }
 0x18a   : > { %4198 = vmatmul.msk.bf16.vlgmr.msra.gmra.mxu1 %vm636_vm1, %v1947_v59  ;;  %v1948_v21 = vrot.slane %v4481_v48, 2  ;;  %v2322_v48 = vrot.slane %v5148_v61, 2 }
 0x18b   : > { %4292 = vmatmul.msk.bf16.vlgmr.msra.gmra.mxu2 %vm636_vm1, %v2319_v1  ;;  %v5175_v53 = vadd.f32 %v1857_v18, %v1539_v52  ;;  %v3297_v18 = vld [vmem:[%s6053_s3 + $0x10] sm:$0xff]  ;;  %v2321_v1 = vsel %vm1944_vm5, %v2318_v51, %v2320_v5 }
 0x18c   : > { %4344 = vmatmul.msk.bf16.vlgmr.msra.gmra.mxu0 %vm636_vm1, %v2946_v34  ;;  %3343 = vperm.xlu1 %4474, %v3297_v18   ;;  %v1949_v59 = vsel %vm1944_vm5, %v1946_v47, %v1948_v21  ;;  %v2948_v34 = vsel %vm2943_vm6, %v2945_v39, %v2947_v4  ;;  %v2606_v47 = vor.u32 %v2605_v57, %v2602_v49 }
 0x18d   : > { %4320 = vmatmul.msk.bf16.gmra.mxu3 %vm636_vm1, %v2598_v25 }
 0x18e   : > { %v1108_v45 = vpop.f32.mrf.mxu2 }
 0x18f   : > { %v1168_v13 = vadd.f32 %v1108_v45, %v898_v23  ;;  %v899_v15 = vpop.f32.mrf.mxu1  ;;  %v2607_v45 = vsel %vm2563_vm4, %v2597_v32, %v2606_v47  ;;  %v2949_v32 = vrot.slane %v5148_v61, 3 }
 0x191   : > { %v1540_v56 = vadd.f32 %v5128_v50, %v1168_v13  ;;  %v1862_v63 = vpop.f32.mrf.mxu0  ;;  %v900_v50 = vadd.f32 %v899_v15, %v4829_v55  ;;  %v1490_v40 = vpop.f32.mrf.mxu3  ;;  %v3298_v55 = vld [vmem:[%s6053_s3 + $0x18] sm:$0xff] }
 0x192   : > { %v5211_v13 = vld [vmem:[%s4597_s14 + $0x38] sm:$0xff] }
 0x193   : > { %v5188_v30 = vadd.f32 %v1860_v16, %v1540_v56  ;;  %v2612_v14 = vshll.u32 %v5211_v13, 16 }
 0x194   : > { %3348 = vperm.xlu1 %4474, %v3298_v55  }
 0x195   : > { %v2614_v49 = vrot.slane %v2612_v14, 3 }
 0x196   : > { %v1110_v2 = vpop.f32.mrf.mxu2 }
 0x197   : > { %v1169_v36 = vadd.f32 %v1110_v2, %v900_v50  ;;  %v902_v60 = vpop.f32.mrf.mxu1 }
 0x199   : > { %v1541_v52 = vadd.f32 %v5142_v38, %v1169_v36  ;;  %v1865_v16 = vpop.f32.mrf.mxu0  ;;  %v903_v38 = vadd.f32 %v902_v60, %v4844_v19  ;;  %v1492_v29 = vpop.f32.mrf.mxu3  ;;  %v2609_v19 = vshrl.u32 %v5211_v13, 16 }
 0x19a   : > { %4199 = vmatmul.msk.bf16.gmra.mxu1 %vm636_vm1, %v1949_v59  ;;  %v2323_v59 = vsel %vm1944_vm5, %v2320_v5, %v2322_v48 }
 0x19b   : > { %4293 = vmatmul.msk.bf16.gmra.mxu2 %vm636_vm1, %v2321_v1  ;;  %v5205_v41 = vadd.f32 %v1862_v63, %v1541_v52  ;;  %v4482_v63 = vld [vmem:[%s4597_s14 + $0x20] sm:$0xff]  ;;  %v2611_v1 = vrot.slane %v2609_v19, 2  ;;  %v2951_v19 = vrot.slane %v5181_v27, 3 }
 0x19c   : > { %4345 = vmatmul.msk.bf16.gmra.mxu0 %vm636_vm1, %v2948_v34  ;;  %v1950_v18 = vrot.slane %v4482_v63, 2 }
 0x19d   : > { %4321 = vmatmul.msk.bf16.gmra.mxu3 %vm636_vm1, %v2607_v45  ;;  %v2615_v61 = vor.u32 %v2614_v49, %v2611_v1 }
 0x19e   : > { %v1113_v51 = vpop.f32.mrf.mxu2  ;;  %v1951_v60 = vsel %vm1944_vm5, %v1948_v21, %v1950_v18 }
 0x19f   : > { %v1170_v39 = vadd.f32 %v1113_v51, %v903_v38  ;;  %v904_v23 = vpop.f32.mrf.mxu1  ;;  %v2616_v38 = vsel %vm2563_vm4, %v2606_v47, %v2615_v61 }
 0x1a0   : > { %v905_v26 = vadd.f32 %v904_v23, %v4855_v22  ;;  %v3301_v23 = vld [vmem:[%s6053_s3 + $0x30] sm:$0xff] }
 0x1a1   : > { %v1542_v15 = vadd.f32 %v1485_v0, %v1170_v39  ;;  %v1867_v25 = vpop.f32.mrf.mxu0  ;;  %v1495_v2 = vpop.f32.mrf.mxu3  ;;  %3363 = vperm.xlu0 %4473, %v3301_v23  }
 0x1a3   : > { %v5214_v56 = vadd.f32 %v1865_v16, %v1542_v15  ;;  %v2950_v16 = vsel %vm2943_vm6, %v2947_v4, %v2949_v32  ;;  %v5235_v4 = vld [vmem:[%s4597_s14 + $0x40] sm:$0xff] }
 0x1a4   : > { %v2618_v63 = vshrl.u32 %v5235_v4, 16  ;;  %v2621_v47 = vshll.u32 %v5235_v4, 16 }
 0x1a6   : > { %v1115_v50 = vpop.f32.mrf.mxu2  ;;  %v2623_v1 = vrot.slane %v2621_v47, 3 }
 0x1a7   : > { %v1171_v0 = vadd.f32 %v1115_v50, %v905_v26  ;;  %v907_v36 = vpop.f32.mrf.mxu1 }
 0x1a8   : > { %v908_v21 = vadd.f32 %v907_v36, %v4870_v33  ;;  %v4483_v33 = vld [vmem:[%s4597_s14 + $0x28] sm:$0xff] }
 0x1a9   : > { %v1543_v57 = vadd.f32 %v1487_v43, %v1171_v0  ;;  %v1870_v52 = vpop.f32.mrf.mxu0  ;;  %v5231_v34 = vpop.f32.mrf.mxu3  ;;  %v1952_v15 = vrot.slane %v4483_v33, 2 }
 0x1aa   : > { %4200 = vmatmul.msk.bf16.gmra.mxu1 %vm636_vm1, %v1951_v60 }
 0x1ab   : > { %4294 = vmatmul.msk.bf16.gmra.mxu2 %vm636_vm1, %v2323_v59  ;;  %v5227_v22 = vadd.f32 %v1867_v25, %v1543_v57  ;;  %v2324_v25 = vrot.slane %v5181_v27, 2  ;;  %v1953_v36 = vsel %vm1944_vm5, %v1950_v18, %v1952_v15  ;;  %v2620_v59 = vrot.slane %v2618_v63, 2  ;;  %v3302_v27 = vld [vmem:[%s6053_s3 + $0x38] sm:$0xff] }
 0x1ac   : > { %4346 = vmatmul.msk.bf16.gmra.mxu0 %vm636_vm1, %v2950_v16  ;;  %3368 = vperm.xlu1 %4474, %v3302_v27   ;;  %v2326_v63 = vrot.slane %v5211_v13, 2 }
 0x1ad   : > { %4322 = vmatmul.msk.bf16.gmra.mxu3 %vm636_vm1, %v2616_v38  ;;  %v2325_v60 = vsel %vm1944_vm5, %v2322_v48, %v2324_v25 }
 0x1ae   : > { %v1118_v5 = vpop.f32.mrf.mxu2 }
 0x1af   : > { %v1172_v55 = vadd.f32 %v1118_v5, %v908_v21  ;;  %v909_v43 = vpop.f32.mrf.mxu1 }
 0x1b1   : > { %v1544_v51 = vadd.f32 %v1490_v40, %v1172_v55  ;;  %v1872_v39 = vpop.f32.mrf.mxu0  ;;  %v910_v40 = vadd.f32 %v909_v43, %v4881_v46  ;;  %v5249_v26 = vpop.f32.mrf.mxu3  ;;  %v3299_v46 = vld [vmem:[%s6053_s3 + $0x20] sm:$0xff]  ;;  %v5270_v43 = vld [vmem:[%s4597_s14 + $0x48] sm:$0xff] }
 0x1b2   : > { %3353 = vperm.xlu2 %4475, %v3299_v46   ;;  %v2627_v47 = vshrl.u32 %v5270_v43, 16 }
 0x1b3   : > { %v5241_v45 = vadd.f32 %v1870_v52, %v1544_v51  ;;  %v2952_v52 = vsel %vm2943_vm6, %v2949_v32, %v2951_v19 }
 0x1b6   : > { %v1120_v14 = vpop.f32.mrf.mxu2 }
 0x1b7   : > { %v1173_v50 = vadd.f32 %v1120_v14, %v910_v40  ;;  %v912_v0 = vpop.f32.mrf.mxu1  ;;  %v2953_v40 = vrot.slane %v5211_v13, 3 }
 0x1b8   : > { %v913_v48 = vadd.f32 %v912_v0, %v4896_v62  ;;  %v4484_v62 = vld [vmem:[%s4597_s14 + $0x30] sm:$0xff] }
 0x1b9   : > { %v1545_v49 = vadd.f32 %v1492_v29, %v1173_v50  ;;  %v1875_v57 = vpop.f32.mrf.mxu0  ;;  %v2624_v29 = vor.u32 %v2623_v1, %v2620_v59  ;;  %v5266_v16 = vpop.f32.mrf.mxu3  ;;  %v1954_v33 = vrot.slane %v4484_v62, 2  ;;  %v2327_v59 = vsel %vm1944_vm5, %v2324_v25, %v2326_v63  ;;  %v4485_v62 = vld [vmem:[%s4597_s14 + $0x38] sm:$0xff] }
 0x1ba   : > { %4201 = vmatmul.msk.bf16.gmra.mxu1 %vm636_vm1, %v1953_v36  ;;  %v2629_v1 = vrot.slane %v2627_v47, 2  ;;  %v2954_v46 = vsel %vm2943_vm6, %v2951_v19, %v2953_v40  ;;  %v1956_v47 = vrot.slane %v4485_v62, 2 }
 0x1bb   : > { %4295 = vmatmul.msk.bf16.gmra.mxu2 %vm636_vm1, %v2325_v60  ;;  %v5262_v18 = vadd.f32 %v1872_v39, %v1545_v49  ;;  %v2625_v55 = vsel %vm2563_vm4, %v2615_v61, %v2624_v29  ;;  %v3300_v39 = vld [vmem:[%s6053_s3 + $0x28] sm:$0xff]  ;;  %v2630_v61 = vshll.u32 %v5270_v43, 16  ;;  %v1955_v60 = vsel %vm1944_vm5, %v1952_v15, %v1954_v33 }
 0x1bc   : > { %4347 = vmatmul.msk.bf16.gmra.mxu0 %vm636_vm1, %v2952_v52  ;;  %3358 = vperm.xlu2 %4475, %v3300_v39  }
 0x1bd   : > { %4323 = vmatmul.msk.bf16.gmra.mxu3 %vm636_vm1, %v2625_v55  ;;  %v2632_v49 = vrot.slane %v2630_v61, 3  ;;  %v2328_v61 = vrot.slane %v5235_v4, 2 }
 0x1be   : > { %v1123_v32 = vpop.f32.mrf.mxu2 }
 0x1bf   : > { %v1174_v21 = vadd.f32 %v1123_v32, %v913_v48  ;;  %v914_v5 = vpop.f32.mrf.mxu1  ;;  %v2633_v15 = vor.u32 %v2632_v49, %v2629_v1  ;;  %v1957_v49 = vsel %vm1944_vm5, %v1954_v33, %v1956_v47 }
 0x1c1   : > { %v1546_v38 = vadd.f32 %v1495_v2, %v1174_v21  ;;  %v1877_v51 = vpop.f32.mrf.mxu0  ;;  %v915_v2 = vadd.f32 %v914_v5, %v4907_v20  ;;  %v1505_v50 = vpop.f32.mrf.mxu3  ;;  %v3304_v20 = vld [vmem:[%s6053_s3 + $0x48] sm:$0xff]  ;;  %v2634_v21 = vsel %vm2563_vm4, %v2624_v29, %v2633_v15  ;;  %v5301_v5 = vld [vmem:[%s4597_s14 + $0x50] sm:$0xff] }
 0x1c2   : > { %3378 = vperm.xlu0 %4473, %v3304_v20   ;;  %v2636_v29 = vshrl.u32 %v5301_v5, 16 }
 0x1c3   : > { %v5276_v23 = vadd.f32 %v1875_v57, %v1546_v38 }
 0x1c6   : > { %v1125_v14 = vpop.f32.mrf.mxu2 }
 0x1c7   : > { %v1175_v0 = vadd.f32 %v1125_v14, %v915_v2  ;;  %v917_v36 = vpop.f32.mrf.mxu1  ;;  %v2639_v2 = vshll.u32 %v5301_v5, 16  ;;  %v6073_v14 = vld [vmem:[#allocation9_spill] sm:$0xff] }
 0x1c9   : > { %v1547_v57 = vadd.f32 %v5231_v34, %v1175_v0  ;;  %v1880_v52 = vpop.f32.mrf.mxu0  ;;  %v6072_v34 = vld [vmem:[#allocation8_spill] sm:$0xff]  ;;  %v5297_v48 = vpop.f32.mrf.mxu3  ;;  %v2955_v0 = vrot.slane %v5235_v4, 3  ;;  %v3303_v4 = vld [vmem:[%s6053_s3 + $0x40] sm:$0xff] }
 0x1ca   : > { %4202 = vmatmul.msk.bf16.gmra.mxu1 %vm636_vm1, %v1955_v60  ;;  %v918_v25 = vadd.f32 %v917_v36, %v6072_v34  ;;  %3373 = vperm.xlu2 %4475, %v3303_v4  }
 0x1cb   : > { %4296 = vmatmul.msk.bf16.gmra.mxu2 %vm636_vm1, %v2327_v59  ;;  %v5293_v13 = vadd.f32 %v1877_v51, %v1547_v57  ;;  %v3305_v51 = vld [vmem:[%s6053_s3 + $0x50] sm:$0xff]  ;;  %v2329_v57 = vsel %vm1944_vm5, %v2326_v63, %v2328_v61 }
 0x1cc   : > { %4348 = vmatmul.msk.bf16.gmra.mxu0 %vm636_vm1, %v2954_v46  ;;  %3383 = vperm.xlu1 %4474, %v3305_v51   ;;  %v2641_v46 = vrot.slane %v2639_v2, 3  ;;  %v5333_v51 = vld [vmem:[%s4597_s14 + $0x58] sm:$0xff] }
 0x1cd   : > { %4324 = vmatmul.msk.bf16.gmra.mxu3 %vm636_vm1, %v2634_v21 }
 0x1ce   : > { %v1128_v27 = vpop.f32.mrf.mxu2 }
 0x1cf   : > { %v1176_v19 = vadd.f32 %v1128_v27, %v918_v25  ;;  %v919_v32 = vpop.f32.mrf.mxu1  ;;  %v2956_v25 = vsel %vm2943_vm6, %v2953_v40, %v2955_v0 }
 0x1d1   : > { %v1548_v55 = vadd.f32 %v5249_v26, %v1176_v19  ;;  %v1882_v38 = vpop.f32.mrf.mxu0  ;;  %v920_v26 = vadd.f32 %v919_v32, %v6073_v14  ;;  %v1510_v60 = vpop.f32.mrf.mxu3  ;;  %v4486_v14 = vld [vmem:[%s4597_s14 + $0x40] sm:$0xff] }
 0x1d3   : > { %v5308_v39 = vadd.f32 %v1880_v52, %v1548_v55  ;;  %v2638_v52 = vrot.slane %v2636_v29, 2 }
 0x1d5   : > { %v2642_v33 = vor.u32 %v2641_v46, %v2638_v52 }
 0x1d6   : > { %v1130_v36 = vpop.f32.mrf.mxu2 }
 0x1d7   : > { %v1177_v59 = vadd.f32 %v1130_v36, %v920_v26  ;;  %v922_v1 = vpop.f32.mrf.mxu1  ;;  %v2643_v55 = vsel %vm2563_vm4, %v2633_v15, %v2642_v33  ;;  %v1958_v26 = vrot.slane %v4486_v14, 2  ;;  %v2330_v36 = vrot.slane %v5270_v43, 2 }
 0x1d8   : > { %v2648_v15 = vshll.u32 %v5333_v51, 16 }
 0x1d9   : > { %v1549_v20 = vadd.f32 %v5266_v16, %v1177_v59  ;;  %v1885_v34 = vpop.f32.mrf.mxu0  ;;  %v6074_v16 = vld [vmem:[#allocation2_spill] sm:$0xff]  ;;  %v5329_v32 = vpop.f32.mrf.mxu3  ;;  %v2645_v59 = vshrl.u32 %v5333_v51, 16 }
 0x1da   : > { %4203 = vmatmul.msk.bf16.gmra.mxu1 %vm636_vm1, %v1957_v49  ;;  %v923_v63 = vadd.f32 %v922_v1, %v6074_v16  ;;  %v6075_v1 = vld [vmem:[#allocation3_spill] sm:$0xff]  ;;  %v2957_v49 = vrot.slane %v5270_v43, 3  ;;  %v2650_v16 = vrot.slane %v2648_v15, 3 }
 0x1db   : > { %4297 = vmatmul.msk.bf16.gmra.mxu2 %vm636_vm1, %v2329_v57  ;;  %v5325_v27 = vadd.f32 %v1882_v38, %v1549_v20  ;;  %v3307_v38 = vld [vmem:[%s6053_s3 + $0x60] sm:$0xff]  ;;  %v2647_v4 = vrot.slane %v2645_v59, 2  ;;  %v3308_v43 = vld [vmem:[%s6053_s3 + $0x68] sm:$0xff] }
 0x1dc   : > { %4349 = vmatmul.msk.bf16.gmra.mxu0 %vm636_vm1, %v2956_v25  ;;  %3393 = vperm.xlu0 %4473, %v3307_v38   ;;  %v1959_v25 = vsel %vm1944_vm5, %v1956_v47, %v1958_v26  ;;  %v5364_v59 = vld [vmem:[%s4597_s14 + $0x60] sm:$0xff] }
 0x1dd   : > { %4325 = vmatmul.msk.bf16.gmra.mxu3 %vm636_vm1, %v2643_v55  ;;  %v2651_v47 = vor.u32 %v2650_v16, %v2647_v4  ;;  %3398 = vperm.xlu1 %4474, %v3308_v43   ;;  %v2959_v4 = vrot.slane %v5301_v5, 3 }
 0x1de   : > { %v1133_v19 = vpop.f32.mrf.mxu2 }
 0x1df   : > { %v1178_v40 = vadd.f32 %v1133_v19, %v923_v63  ;;  %v924_v21 = vpop.f32.mrf.mxu1  ;;  %v2652_v14 = vsel %vm2563_vm4, %v2642_v33, %v2651_v47  ;;  %v2657_v33 = vshll.u32 %v5364_v59, 16 }
 0x1e1   : > { %v1550_v62 = vadd.f32 %v1505_v50, %v1178_v40  ;;  %v1887_v29 = vpop.f32.mrf.mxu0  ;;  %v925_v50 = vadd.f32 %v924_v21, %v6075_v1  ;;  %v1515_v52 = vpop.f32.mrf.mxu3  ;;  %v2958_v40 = vsel %vm2943_vm6, %v2955_v0, %v2957_v49 }
 0x1e3   : > { %v5339_v2 = vadd.f32 %v1885_v34, %v1550_v62  ;;  %v2331_v34 = vsel %vm1944_vm5, %v2328_v61, %v2330_v36 }
 0x1e6   : > { %v1135_v57 = vpop.f32.mrf.mxu2 }
 0x1e7   : > { %v1179_v46 = vadd.f32 %v1135_v57, %v925_v50  ;;  %v927_v20 = vpop.f32.mrf.mxu1  ;;  %v4487_v57 = vld [vmem:[%s4597_s14 + $0x48] sm:$0xff] }
 0x1e9   : > { %v1551_v63 = vadd.f32 %v5297_v48, %v1179_v46  ;;  %v1890_v19 = vpop.f32.mrf.mxu0  ;;  %v6076_v48 = vld [vmem:[#allocation4_spill] sm:$0xff]  ;;  %v5360_v62 = vpop.f32.mrf.mxu3  ;;  %v1960_v46 = vrot.slane %v4487_v57, 2 }
 0x1ea   : > { %4204 = vmatmul.msk.bf16.gmra.mxu1 %vm636_vm1, %v1959_v25  ;;  %v928_v61 = vadd.f32 %v927_v20, %v6076_v48  ;;  %v2332_v20 = vrot.slane %v5301_v5, 2  ;;  %v2654_v25 = vshrl.u32 %v5364_v59, 16  ;;  %v3310_v5 = vld [vmem:[%s6053_s3 + $0x78] sm:$0xff] }
 0x1eb   : > { %4298 = vmatmul.msk.bf16.gmra.mxu2 %vm636_vm1, %v2331_v34  ;;  %v5356_v21 = vadd.f32 %v1887_v29, %v1551_v63  ;;  %v3306_v29 = vld [vmem:[%s6053_s3 + $0x58] sm:$0xff]  ;;  %v1961_v48 = vsel %vm1944_vm5, %v1958_v26, %v1960_v46  ;;  %3408 = vperm.xlu0 %4473, %v3310_v5  }
 0x1ec   : > { %4350 = vmatmul.msk.bf16.gmra.mxu0 %vm636_vm1, %v2958_v40  ;;  %3388 = vperm.xlu2 %4475, %v3306_v29   ;;  %v6077_v34 = vld [vmem:[#allocation5_spill] sm:$0xff] }
 0x1ed   : > { %4326 = vmatmul.msk.bf16.gmra.mxu3 %vm636_vm1, %v2652_v14 }
 0x1ee   : > { %v1138_v55 = vpop.f32.mrf.mxu2 }
 0x1ef   : > { %v1180_v0 = vadd.f32 %v1138_v55, %v928_v61  ;;  %v929_v38 = vpop.f32.mrf.mxu1  ;;  %v2656_v61 = vrot.slane %v2654_v25, 2  ;;  %v2659_v55 = vrot.slane %v2657_v33, 3 }
 0x1f1   : > { %v1552_v15 = vadd.f32 %v1510_v60, %v1180_v0  ;;  %v1892_v1 = vpop.f32.mrf.mxu0  ;;  %v930_v60 = vadd.f32 %v929_v38, %v6077_v34  ;;  %v2809_v63 = vpop.f32.mrf.mxu3  ;;  %v2660_v26 = vor.u32 %v2659_v55, %v2656_v61  ;;  %v5395_v34 = vld [vmem:[%s4597_s14 + $0x68] sm:$0xff] }
 0x1f2   : > { %v2663_v61 = vshrl.u32 %v5395_v34, 16  ;;  %v6079_v55 = vld [vmem:[#allocation7_spill] sm:$0xff] }
 0x1f3   : > { %v5370_v50 = vadd.f32 %v1890_v19, %v1552_v15  ;;  %v2333_v19 = vsel %vm1944_vm5, %v2330_v36, %v2332_v20  ;;  %v2960_v15 = vsel %vm2943_vm6, %v2957_v49, %v2959_v4  ;;  %v2661_v33 = vsel %vm2563_vm4, %v2651_v47, %v2660_v26 }
 0x1f4   : > { %v2666_v47 = vshll.u32 %v5395_v34, 16 }
 0x1f6   : > { %v1140_v16 = vpop.f32.mrf.mxu2 }
 0x1f7   : > { %v1181_v40 = vadd.f32 %v1140_v16, %v930_v60  ;;  %v932_v43 = vpop.f32.mrf.mxu1 }
 0x1f9   : > { %v1553_v0 = vadd.f32 %v5329_v32, %v1181_v40  ;;  %v1895_v14 = vpop.f32.mrf.mxu0  ;;  %v6078_v32 = vld [vmem:[#allocation6_spill] sm:$0xff]  ;;  %v5391_v57 = vpop.f32.mrf.mxu3 }
 0x1fa   : > { %4205 = vmatmul.msk.bf16.gmra.mxu1 %vm636_vm1, %v1961_v48  ;;  %v933_v36 = vadd.f32 %v932_v43, %v6078_v32  ;;  %v4488_v43 = vld [vmem:[%s4597_s14 + $0x50] sm:$0xff] }
 0x1fb   : > { %4299 = vmatmul.msk.bf16.gmra.mxu2 %vm636_vm1, %v2333_v19  ;;  %v5387_v38 = vadd.f32 %v1892_v1, %v1553_v0  ;;  %v3311_v1 = vld [vmem:[%s6053_s3 + $0x80] sm:$0xff]  ;;  %v1962_v48 = vrot.slane %v4488_v43, 2  ;;  %v2334_v19 = vrot.slane %v5333_v51, 2  ;;  %v2961_v0 = vrot.slane %v5333_v51, 3  ;;  %v3309_v51 = vld [vmem:[%s6053_s3 + $0x70] sm:$0xff] }
 0x1fc   : > { %4351 = vmatmul.msk.bf16.gmra.mxu0 %vm636_vm1, %v2960_v15  ;;  %3413 = vperm.xlu1 %4474, %v3311_v1  }
 0x1fd   : > { %4327 = vmatmul.msk.bf16.gmra.mxu3 %vm636_vm1, %v2661_v33  ;;  %v2668_v33 = vrot.slane %v2666_v47, 3  ;;  %v2962_v43 = vsel %vm2943_vm6, %v2959_v4, %v2961_v0  ;;  %3403 = vperm.xlu2 %4475, %v3309_v51  }
 0x1fe   : > { %v1143_v29 = vpop.f32.mrf.mxu2 }
 0x1ff   : > { %v1182_v49 = vadd.f32 %v1143_v29, %v933_v36  ;;  %v934_v25 = vpop.f32.mrf.mxu1  ;;  %v2335_v29 = vsel %vm1944_vm5, %v2332_v20, %v2334_v19 }
 0x201   : > { %v1554_v60 = vadd.f32 %v1515_v52, %v1182_v49  ;;  %v1897_v16 = vpop.f32.mrf.mxu0  ;;  %v935_v52 = vadd.f32 %v934_v25, %v6079_v55  ;;  %v5409_v5 = vpop.f32.mrf.mxu3  ;;  %v2665_v49 = vrot.slane %v2663_v61, 2 }
 0x203   : > { %v5401_v40 = vadd.f32 %v1895_v14, %v1554_v60  ;;  %v1963_v14 = vsel %vm1944_vm5, %v1960_v46, %v1962_v48  ;;  %v2669_v20 = vor.u32 %v2668_v33, %v2665_v49 }
 0x205   : > { %v2670_v55 = vsel %vm2563_vm4, %v2660_v26, %v2669_v20 }
 0x206   : > { %v1145_v15 = vpop.f32.mrf.mxu2 }
 0x207   : > { %v1183_v32 = vadd.f32 %v1145_v15, %v935_v52  ;;  %v2057_v36 = vpop.f32.mrf.mxu1  ;;  %v5428_v52 = vld [vmem:[%s4597_s14 + $0x70] sm:$0xff] }
 0x208   : > { %v2672_v49 = vshrl.u32 %v5428_v52, 16  ;;  %v2675_v33 = vshll.u32 %v5428_v52, 16 }
 0x209   : > { %v1555_v60 = vadd.f32 %v5360_v62, %v1183_v32  ;;  %v3056_v1 = vpop.f32.mrf.mxu0  ;;  %v2147_v62 = vadd.f32 %v2057_v36, %v4953_v44  ;;  %v5424_v4 = vpop.f32.mrf.mxu3  ;;  %v3313_v44 = vld [vmem:[%s6053_s3 + $0x90] sm:$0xff]  ;;  %v5441_v36 = vld [vmem:[%s4597_s14 + $0x58] sm:$0xff] }
 0x20a   : > { %4206 = vmatmul.msk.bf16.gmra.mxu1 %vm636_vm1, %v1963_v14  ;;  %v3334_v14 = vpop.permute.xlu0 %3333  ;;  %v1964_v26 = vrot.slane %v5441_v36, 2  ;;  %3423 = vperm.xlu0 %4473, %v3313_v44   ;;  %v6082_v36 = vrot.slane %v5395_v34, 3 }
 0x20b   : > { %4300 = vmatmul.msk.bf16.gmra.mxu2 %vm636_vm1, %v2335_v29  ;;  %v5420_v46 = vadd.f32 %v1897_v16, %v1555_v60  ;;  %v5433_v16 = vld [vmem:[%s6052_s2] ss:$0 sm:$0xff] }
 0x20c   : > { %4352 = vmatmul.msk.bf16.gmra.mxu0 %vm636_vm1, %v2962_v43 }
 0x20d   : > { %6080 = vst [vmem:[#allocation8_spill] sm:$0xff] %v5420_v46  ;;  %4328 = vmatmul.msk.bf16.gmra.mxu3 %vm636_vm1, %v2670_v55  ;;  %v6081_v46 = vrot.slane %v5364_v59, 3 }
 0x20e   : > { %v2429_v25 = vpop.f32.mrf.mxu2 }
 0x20f   : > { %v2519_v61 = vadd.f32 %v2429_v25, %v2147_v62  ;;  %v2059_v47 = vpop.f32.mrf.mxu1 }
 0x210   : > { %v2148_v60 = vadd.f32 %v2059_v47, %v4963_v11  ;;  %v1965_v11 = vsel %vm1944_vm5, %v1962_v48, %v1964_v26 }
 0x211   : > { %v2899_v15 = vadd.f32 %v2809_v63, %v2519_v61  ;;  %v3058_v32 = vpop.f32.mrf.mxu0  ;;  %v2336_v63 = vrot.slane %v5364_v59, 2  ;;  %v5455_v62 = vpop.f32.mrf.mxu3 }
 0x213   : > { %v3146_v29 = vadd.f32 %v3056_v1, %v2899_v15  ;;  %v2337_v47 = vsel %vm1944_vm5, %v2334_v19, %v2336_v63  ;;  %v2674_v15 = vrot.slane %v2672_v49, 2 }
 0x215   : > { %v3186_v1 = vadd.f32 %v5433_v16, %v3146_v29  ;;  %v2677_v29 = vrot.slane %v2675_v33, 3 }
 0x216   : > { %v2431_v51 = vpop.f32.mrf.mxu2 }
 0x217   : > { %v3222_v25 = vpack.c.bf16 %v3186_v1, %v3186_v1  ;;  %v2520_v61 = vadd.f32 %v2431_v51, %v2148_v60  ;;  %v2062_v55 = vpop.f32.mrf.mxu1  ;;  %v2964_v60 = vsel %vm2943_vm6, %v2961_v0, %v6081_v46  ;;  %v3314_v51 = vld [vmem:[%s6053_s3 + $0x98] sm:$0xff]  ;;  %v3511_v48 = vmul.f32 %v3334_v14, %v3186_v1 }
 0x218   : > { %3428 = vperm.xlu1 %4474, %v3314_v51   ;;  %v5475_v49 = vor.u32 %v2677_v29, %v2674_v15  ;;  %v2149_v0 = vadd.f32 %v2062_v55, %v4969_v12  ;;  %v5487_v12 = vld [vmem:[%s4597_s14 + $0x78] sm:$0xff] }
 0x219   : > { %3259 = vst.msk [vmem:[%s5453_s29] sm:$0xf] %vm3258_vm7, %v3222_v25  ;;  %v2900_v44 = vadd.f32 %v5391_v57, %v2520_v61  ;;  %v3061_v43 = vpop.f32.mrf.mxu0  ;;  %v3339_v57 = vpop.permute.xlu0 %3338  ;;  %v3626_v14 = vmul.f32 %v3511_v48, %v3511_v48  ;;  %v3547_v55 = vsel %vm636_vm1, %v3511_v48, 0.0 }
 0x21a   : > { %4207 = vmatmul.msk.bf16.gmra.mxu1 %vm636_vm1, %v1965_v11  ;;  %v5479_v25 = vpop.f32.mrf.mxu3  ;;  %v2679_v15 = vsel %vm2563_vm4, %v2669_v20, %v5475_v49  ;;  %v3344_v20 = vpop.permute.xlu1 %3343 }
 0x21b   : > { %4301 = vmatmul.msk.bf16.gmra.mxu2 %vm636_vm1, %v2337_v47  ;;  %v3147_v19 = vadd.f32 %v3058_v32, %v2900_v44  ;;  %v3316_v32 = vld [vmem:[%s6053_s3 + $0xa8] sm:$0xff] }
 0x21c   : > { %4353 = vmatmul.msk.bf16.gmra.mxu0 %vm636_vm1, %v2964_v60  ;;  %3438 = vperm.xlu0 %4473, %v3316_v32   ;;  %v2681_v32 = vshrl.u32 %v5487_v12, 16 }
 0x21d   : > { %v3187_v46 = vadd.f32 %v5433_v16, %v3147_v19  ;;  %v3317_v19 = vld [vmem:[%s6053_s3 + $0xb0] sm:$0xff]  ;;  %4329 = vmatmul.msk.bf16.gmra.mxu3 %vm636_vm1, %v2679_v15 }
 0x21e   : > { %v2434_v33 = vpop.f32.mrf.mxu2 }
 0x21f   : > { %v3223_v1 = vpack.c.bf16 %v3187_v46, %v3187_v46  ;;  %v3512_v61 = vmul.f32 %v3339_v57, %v3187_v46  ;;  %v2521_v11 = vadd.f32 %v2434_v33, %v2149_v0  ;;  %v2064_v47 = vpop.f32.mrf.mxu1  ;;  %v3662_v0 = vsel %vm636_vm1, %v3626_v14, 0.0  ;;  %v5500_v33 = vld [vmem:[%s4597_s14 + $0x60] sm:$0xff] }
 0x220   : > { %3443 = vperm.xlu1 %4474, %v3317_v19   ;;  %v2684_v14 = vshll.u32 %v5487_v12, 16 }
 0x221   : > { %3260 = vst.msk [vmem:[%s5453_s29 + $0x4] sm:$0xf] %vm3258_vm7, %v3223_v1  ;;  %v3548_v29 = vsel %vm636_vm1, %v3512_v61, 0.0  ;;  %v3627_v44 = vmul.f32 %v3512_v61, %v3512_v61  ;;  %v2901_v60 = vadd.f32 %v5409_v5, %v2521_v11  ;;  %v3063_v51 = vpop.f32.mrf.mxu0  ;;  %v6059_v1 = vrot.slane %v5500_v33, 2  ;;  %v3312_v5 = vld [vmem:[%s6053_s3 + $0x88] sm:$0xff] }
 0x222   : > { %v3549_v57 = vadd.f32 %v3548_v29, %v3547_v55  ;;  %v2338_v11 = vrot.slane %v5395_v34, 2  ;;  %3418 = vperm.xlu2 %4475, %v3312_v5  }
 0x223   : > { %v3663_v46 = vsel %vm636_vm1, %v3627_v44, 0.0  ;;  %v3148_v48 = vadd.f32 %v3061_v43, %v2901_v60  ;;  %v2150_v43 = vadd.f32 %v2064_v47, %v4979_v24  ;;  %v5513_v44 = vpop.f32.mrf.mxu3  ;;  %v1967_v24 = vsel %vm1944_vm5, %v1964_v26, %v6059_v1 }
 0x224   : > { %v3664_v61 = vadd.f32 %v3663_v46, %v3662_v0  ;;  %v3319_v46 = vld [vmem:[%s6053_s3 + $0xc0] sm:$0xff]  ;;  %v2339_v47 = vsel %vm1944_vm5, %v2336_v63, %v2338_v11  ;;  %v6083_v26 = vrot.slane %v5364_v59, 3  ;;  %v3320_v63 = vld [vmem:[%s6053_s3 + $0xc8] sm:$0xff]  ;;  %v3349_v59 = vpop.permute.xlu1 %3348 }
 0x225   : > { %v3188_v55 = vadd.f32 %v5433_v16, %v3148_v48  ;;  %v2683_v48 = vrot.slane %v2681_v32, 2  ;;  %3453 = vperm.xlu0 %4473, %v3319_v46  }
 0x226   : > { %v2436_v15 = vpop.f32.mrf.mxu2  ;;  %v2966_v1 = vsel %vm2943_vm6, %v6083_v26, %v6082_v36 }
 0x227   : > { %v3224_v60 = vpack.c.bf16 %v3188_v55, %v3188_v55  ;;  %v3513_v19 = vmul.f32 %v3344_v20, %v3188_v55  ;;  %v2522_v0 = vadd.f32 %v2436_v15, %v2150_v43  ;;  %v2067_v5 = vpop.f32.mrf.mxu1  ;;  %v2686_v20 = vrot.slane %v2684_v14, 3 }
 0x228   : > { %3458 = vperm.xlu1 %4474, %v3320_v63   ;;  %v3354_v63 = vpop.permute.xlu2 %3353 }
 0x229   : > { %3261 = vst.msk [vmem:[%s5453_s29 + $0x8] sm:$0xf] %vm3258_vm7, %v3224_v60  ;;  %v3550_v43 = vsel %vm636_vm1, %v3513_v19, 0.0  ;;  %v3628_v55 = vmul.f32 %v3513_v19, %v3513_v19  ;;  %v2902_v15 = vadd.f32 %v5424_v4, %v2522_v0  ;;  %v3066_v29 = vpop.f32.mrf.mxu0  ;;  %v5544_v19 = vor.u32 %v2686_v20, %v2683_v48 }
 0x22a   : > { %v3551_v32 = vadd.f32 %v3550_v43, %v3549_v57  ;;  %4208 = vmatmul.msk.bf16.gmra.mxu1 %vm636_vm1, %v1967_v24  ;;  %v2151_v0 = vadd.f32 %v2067_v5, %v4985_v58  ;;  %v5557_v58 = vld [vmem:[%s4597_s14 + $0x80] sm:$0xff] }
 0x22b   : > { %v3665_v14 = vsel %vm636_vm1, %v3628_v55, 0.0  ;;  %4302 = vmatmul.msk.bf16.gmra.mxu2 %vm636_vm1, %v2339_v47  ;;  %v3149_v4 = vadd.f32 %v3063_v51, %v2902_v15  ;;  %v5548_v43 = vpop.f32.mrf.mxu3  ;;  %v3322_v51 = vld [vmem:[%s6053_s3 + $0xd8] sm:$0xff]  ;;  %v3323_v15 = vld [vmem:[%s6053_s3 + $0xe0] sm:$0xff] }
 0x22c   : > { %v3666_v60 = vadd.f32 %v3665_v14, %v3664_v61  ;;  %4354 = vmatmul.msk.bf16.gmra.mxu0 %vm636_vm1, %v2966_v1  ;;  %v2688_v1 = vsel %vm2563_vm4, %v5475_v49, %v5544_v19 }
 0x22d   : > { %v3189_v57 = vadd.f32 %v5433_v16, %v3149_v4  ;;  %3468 = vperm.xlu0 %4473, %v3322_v51   ;;  %v5568_v4 = vld [vmem:[%s4597_s14 + $0x68] sm:$0xff]  ;;  %4330 = vmatmul.msk.bf16.gmra.mxu3 %vm636_vm1, %v2688_v1 }
 0x22e   : > { %v2439_v46 = vpop.f32.mrf.mxu2 }
 0x22f   : > { %v3225_v55 = vpack.c.bf16 %v3189_v57, %v3189_v57  ;;  %v3514_v24 = vmul.f32 %v3349_v59, %v3189_v57  ;;  %v2523_v36 = vadd.f32 %v2439_v46, %v2151_v0  ;;  %v2069_v61 = vpop.f32.mrf.mxu1  ;;  %v1968_v59 = vrot.slane %v5568_v4, 2 }
 0x230   : > { %3473 = vperm.xlu1 %4474, %v3323_v15   ;;  %v2340_v57 = vrot.slane %v5428_v52, 2  ;;  %v2693_v46 = vshll.u32 %v5557_v58, 16  ;;  %v6084_v15 = vrot.slane %v5500_v33, 2  ;;  %v6085_v33 = vrot.slane %v5395_v34, 3 }
 0x231   : > { %3262 = vst.msk [vmem:[%s5453_s29 + $0xc] sm:$0xf] %vm3258_vm7, %v3225_v55  ;;  %v3552_v5 = vsel %vm636_vm1, %v3514_v24, 0.0  ;;  %v3629_v47 = vmul.f32 %v3514_v24, %v3514_v24  ;;  %v2903_v48 = vadd.f32 %v5455_v62, %v2523_v36  ;;  %v3068_v20 = vpop.f32.mrf.mxu0  ;;  %v3315_v62 = vld [vmem:[%s6053_s3 + $0xa0] sm:$0xff]  ;;  %v2967_v24 = vrot.slane %v5428_v52, 3  ;;  %v3369_v52 = vpop.permute.xlu1 %3368 }
 0x232   : > { %v3553_v26 = vadd.f32 %v3552_v5, %v3551_v32  ;;  %3433 = vperm.xlu2 %4475, %v3315_v62   ;;  %v2690_v32 = vshrl.u32 %v5557_v58, 16 }
 0x233   : > { %v3667_v49 = vsel %vm636_vm1, %v3629_v47, 0.0  ;;  %v3150_v14 = vadd.f32 %v3066_v29, %v2903_v48  ;;  %v2152_v29 = vadd.f32 %v2069_v61, %v4995_v10  ;;  %v5581_v51 = vpop.f32.mrf.mxu3  ;;  %v3325_v47 = vld [vmem:[%s6053_s3 + $0xf0] sm:$0xff]  ;;  %v1969_v10 = vsel %vm1944_vm5, %v6084_v15, %v1968_v59 }
 0x234   : > { %v3668_v0 = vadd.f32 %v3667_v49, %v3666_v60  ;;  %v2341_v61 = vsel %vm1944_vm5, %v2338_v11, %v2340_v57  ;;  %v2692_v49 = vrot.slane %v2690_v32, 2  ;;  %v3326_v11 = vld [vmem:[%s6053_s3 + $0xf8] sm:$0xff] }
 0x235   : > { %v3190_v55 = vadd.f32 %v5433_v16, %v3150_v14  ;;  %3483 = vperm.xlu0 %4473, %v3325_v47  }
 0x236   : > { %v2441_v36 = vpop.f32.mrf.mxu2 }
 0x237   : > { %v3226_v1 = vpack.c.bf16 %v3190_v55, %v3190_v55  ;;  %v3515_v5 = vmul.f32 %v3354_v63, %v3190_v55  ;;  %v2524_v60 = vadd.f32 %v2441_v36, %v2152_v29  ;;  %v2072_v48 = vpop.f32.mrf.mxu1  ;;  %v2695_v63 = vrot.slane %v2693_v46, 3 }
 0x238   : > { %v2968_v36 = vsel %vm2943_vm6, %v6085_v33, %v2967_v24  ;;  %3488 = vperm.xlu1 %4474, %v3326_v11  }
 0x239   : > { %3263 = vst.msk [vmem:[%s5453_s29 + $0x10] sm:$0xf] %vm3258_vm7, %v3226_v1  ;;  %v3554_v14 = vsel %vm636_vm1, %v3515_v5, 0.0  ;;  %v3630_v62 = vmul.f32 %v3515_v5, %v3515_v5  ;;  %v2904_v29 = vadd.f32 %v5479_v25, %v2524_v60  ;;  %v3071_v55 = vpop.f32.mrf.mxu0  ;;  %v3318_v1 = vld [vmem:[%s6053_s3 + $0xb8] sm:$0xff]  ;;  %v3359_v5 = vpop.permute.xlu2 %3358  ;;  %v5615_v60 = vor.u32 %v2695_v63, %v2692_v49 }
 0x23a   : > { %v3555_v32 = vadd.f32 %v3554_v14, %v3553_v26  ;;  %4209 = vmatmul.msk.bf16.gmra.mxu1 %vm636_vm1, %v1969_v10  ;;  %3448 = vperm.xlu2 %4475, %v3318_v1   ;;  %v2153_v26 = vadd.f32 %v2072_v48, %v5001_v7  ;;  %v5628_v7 = vld [vmem:[%s4597_s14 + $0x88] sm:$0xff] }
 0x23b   : > { %v3669_v46 = vsel %vm636_vm1, %v3630_v62, 0.0  ;;  %4303 = vmatmul.msk.bf16.gmra.mxu2 %vm636_vm1, %v2341_v61  ;;  %v3151_v25 = vadd.f32 %v3068_v20, %v2904_v29  ;;  %v5619_v10 = vpop.f32.mrf.mxu3  ;;  %v2697_v49 = vsel %vm2563_vm4, %v5544_v19, %v5615_v60 }
 0x23c   : > { %v3670_v34 = vadd.f32 %v3669_v46, %v3668_v0  ;;  %4355 = vmatmul.msk.bf16.gmra.mxu0 %vm636_vm1, %v2968_v36  ;;  %v3328_v0 = vld [vmem:[%s6053_s3 + $0x108] sm:$0xff]  ;;  %v3329_v36 = vld [vmem:[%s6053_s3 + $0x110] sm:$0xff] }
 0x23d   : > { %v3191_v47 = vadd.f32 %v5433_v16, %v3151_v25  ;;  %3498 = vperm.xlu0 %4473, %v3328_v0   ;;  %v5639_v25 = vld [vmem:[%s4597_s14 + $0x70] sm:$0xff]  ;;  %4331 = vmatmul.msk.bf16.gmra.mxu3 %vm636_vm1, %v2697_v49 }
 0x23e   : > { %v2444_v15 = vpop.f32.mrf.mxu2  ;;  %v1970_v1 = vrot.slane %v5639_v25, 2 }
 0x23f   : > { %v3227_v20 = vpack.c.bf16 %v3191_v47, %v3191_v47  ;;  %v3516_v61 = vmul.f32 %v3359_v5, %v3191_v47  ;;  %v2525_v14 = vadd.f32 %v2444_v15, %v2153_v26  ;;  %v2074_v62 = vpop.f32.mrf.mxu1  ;;  %v3364_v26 = vpop.permute.xlu0 %3363  ;;  %v2342_v47 = vrot.slane %v5487_v12, 2 }
 0x240   : > { %3503 = vperm.xlu1 %4474, %v3329_v36   ;;  %v2154_v15 = vadd.f32 %v2074_v62, %v5011_v6 }
 0x241   : > { %3264 = vst.msk [vmem:[%s5453_s29 + $0x14] sm:$0xf] %vm3258_vm7, %v3227_v20  ;;  %v3556_v48 = vsel %vm636_vm1, %v3516_v61, 0.0  ;;  %v3631_v63 = vmul.f32 %v3516_v61, %v3516_v61  ;;  %v2905_v29 = vadd.f32 %v5513_v44, %v2525_v14  ;;  %v3073_v33 = vpop.f32.mrf.mxu0  ;;  %v3321_v44 = vld [vmem:[%s6053_s3 + $0xd0] sm:$0xff]  ;;  %v2969_v61 = vrot.slane %v5487_v12, 3 }
 0x242   : > { %v3557_v11 = vadd.f32 %v3556_v48, %v3555_v32  ;;  %3463 = vperm.xlu2 %4475, %v3321_v44   ;;  %v2699_v32 = vshrl.u32 %v5628_v7, 16  ;;  %v2343_v6 = vsel %vm1944_vm5, %v2340_v57, %v2342_v47 }
 0x243   : > { %v3671_v46 = vsel %vm636_vm1, %v3631_v63, 0.0  ;;  %v3152_v19 = vadd.f32 %v3071_v55, %v2905_v29  ;;  %v2702_v55 = vshll.u32 %v5628_v7, 16  ;;  %v5652_v0 = vpop.f32.mrf.mxu3  ;;  %v1971_v29 = vsel %vm1944_vm5, %v1968_v59, %v1970_v1 }
 0x244   : > { %v3672_v5 = vadd.f32 %v3671_v46, %v3670_v34  ;;  %v2701_v62 = vrot.slane %v2699_v32, 2  ;;  %v2970_v4 = vsel %vm2943_vm6, %v2967_v24, %v2969_v61 }
 0x245   : > { %v3192_v20 = vadd.f32 %v5433_v16, %v3152_v19  ;;  %v2704_v36 = vrot.slane %v2702_v55, 3 }
 0x246   : > { %v2446_v14 = vpop.f32.mrf.mxu2 }
 0x247   : > { %v3228_v49 = vpack.c.bf16 %v3192_v20, %v3192_v20  ;;  %v3517_v34 = vmul.f32 %v3364_v26, %v3192_v20  ;;  %v2526_v48 = vadd.f32 %v2446_v14, %v2154_v15  ;;  %v2077_v63 = vpop.f32.mrf.mxu1  ;;  %v5680_v55 = vor.u32 %v2704_v36, %v2701_v62  ;;  %v3379_v12 = vpop.permute.xlu0 %3378 }
 0x248   : > { %v2155_v24 = vadd.f32 %v2077_v63, %v5017_v8 }
 0x249   : > { %3265 = vst.msk [vmem:[%s5453_s29 + $0x18] sm:$0xf] %vm3258_vm7, %v3228_v49  ;;  %v3558_v46 = vsel %vm636_vm1, %v3517_v34, 0.0  ;;  %v3632_v19 = vmul.f32 %v3517_v34, %v3517_v34  ;;  %v2906_v44 = vadd.f32 %v5548_v43, %v2526_v48  ;;  %v3076_v26 = vpop.f32.mrf.mxu0  ;;  %v3324_v43 = vld [vmem:[%s6053_s3 + $0xe8] sm:$0xff] }
 0x24a   : > { %v3559_v59 = vadd.f32 %v3558_v46, %v3557_v11  ;;  %4210 = vmatmul.msk.bf16.gmra.mxu1 %vm636_vm1, %v1971_v29  ;;  %3478 = vperm.xlu2 %4475, %v3324_v43   ;;  %v5690_v29 = vld [vmem:[%s4597_s14 + $0x90] sm:$0xff]  ;;  %v2344_v43 = vrot.slane %v5557_v58, 2 }
 0x24b   : > { %v3673_v15 = vsel %vm636_vm1, %v3632_v19, 0.0  ;;  %4304 = vmatmul.msk.bf16.gmra.mxu2 %vm636_vm1, %v2343_v6  ;;  %v3153_v57 = vadd.f32 %v3073_v33, %v2906_v44  ;;  %v5684_v33 = vpop.f32.mrf.mxu3  ;;  %v5698_v44 = vld [vmem:[%s4597_s14 + $0x78] sm:$0xff] }
 0x24c   : > { %v3674_v32 = vadd.f32 %v3673_v15, %v3672_v5  ;;  %4356 = vmatmul.msk.bf16.gmra.mxu0 %vm636_vm1, %v2970_v4  ;;  %v2706_v5 = vsel %vm2563_vm4, %v5615_v60, %v5680_v55  ;;  %v1972_v4 = vrot.slane %v5698_v44, 2  ;;  %v3327_v60 = vld [vmem:[%s6053_s3 + $0x100] sm:$0xff] }
 0x24d   : > { %v3193_v11 = vadd.f32 %v5433_v16, %v3153_v57  ;;  %4332 = vmatmul.msk.bf16.gmra.mxu3 %vm636_vm1, %v2706_v5  ;;  %v3374_v57 = vpop.permute.xlu2 %3373 }
 0x24e   : > { %v2449_v20 = vpop.f32.mrf.mxu2  ;;  %v1973_v5 = vsel %vm1944_vm5, %v1970_v1, %v1972_v4 }
 0x24f   : > { %v3229_v14 = vpack.c.bf16 %v3193_v11, %v3193_v11  ;;  %v3518_v49 = vmul.f32 %v3369_v52, %v3193_v11  ;;  %v2527_v34 = vadd.f32 %v2449_v20, %v2155_v24  ;;  %v2079_v48 = vpop.f32.mrf.mxu1  ;;  %v2971_v24 = vrot.slane %v5557_v58, 3 }
 0x251   : > { %3266 = vst.msk [vmem:[%s5453_s29 + $0x1c] sm:$0xf] %vm3258_vm7, %v3229_v14  ;;  %v3560_v8 = vsel %vm636_vm1, %v3518_v49, 0.0  ;;  %v3633_v63 = vmul.f32 %v3518_v49, %v3518_v49  ;;  %v2907_v6 = vadd.f32 %v5581_v51, %v2527_v34  ;;  %v3078_v62 = vpop.f32.mrf.mxu0  ;;  %v2708_v51 = vshrl.u32 %v5690_v29, 16 }
 0x252   : > { %v3561_v36 = vadd.f32 %v3560_v8, %v3559_v59  ;;  %3493 = vperm.xlu2 %4475, %v3327_v60   ;;  %v2156_v59 = vadd.f32 %v2079_v48, %v5027_v17  ;;  %v2345_v17 = vsel %vm1944_vm5, %v2342_v47, %v2344_v43  ;;  %v2972_v25 = vsel %vm2943_vm6, %v2969_v61, %v2971_v24 }
 0x253   : > { %v3675_v46 = vsel %vm636_vm1, %v3633_v63, 0.0  ;;  %v3154_v19 = vadd.f32 %v3076_v26, %v2907_v6  ;;  %v2711_v26 = vshll.u32 %v5690_v29, 16  ;;  %v5711_v20 = vpop.f32.mrf.mxu3  ;;  %v2710_v48 = vrot.slane %v2708_v51, 2 }
 0x254   : > { %v3676_v15 = vadd.f32 %v3675_v46, %v3674_v32 }
 0x255   : > { %v3194_v52 = vadd.f32 %v5433_v16, %v3154_v19  ;;  %v2713_v8 = vrot.slane %v2711_v26, 3 }
 0x256   : > { %v2451_v11 = vpop.f32.mrf.mxu2 }
 0x257   : > { %v3230_v14 = vpack.c.bf16 %v3194_v52, %v3194_v52  ;;  %v3519_v32 = vmul.f32 %v3374_v57, %v3194_v52  ;;  %v2528_v49 = vadd.f32 %v2451_v11, %v2156_v59  ;;  %v2082_v34 = vpop.f32.mrf.mxu1  ;;  %v5739_v51 = vor.u32 %v2713_v8, %v2710_v48 }
 0x258   : > { %v2157_v61 = vadd.f32 %v2082_v34, %v5033_v35 }
 0x259   : > { %3267 = vst.msk [vmem:[%s5453_s29 + $0x20] sm:$0xf] %vm3258_vm7, %v3230_v14  ;;  %v3562_v63 = vsel %vm636_vm1, %v3519_v32, 0.0  ;;  %v3634_v6 = vmul.f32 %v3519_v32, %v3519_v32  ;;  %v2908_v46 = vadd.f32 %v5619_v10, %v2528_v49  ;;  %v3081_v19 = vpop.f32.mrf.mxu0  ;;  %v3330_v10 = vld [vmem:[%s6053_s3 + $0x118] sm:$0xff] }
 0x25a   : > { %v3563_v1 = vadd.f32 %v3562_v63, %v3561_v36  ;;  %4211 = vmatmul.msk.bf16.gmra.mxu1 %vm636_vm1, %v1973_v5  ;;  %3508 = vperm.xlu2 %4475, %v3330_v10   ;;  %v5749_v32 = vld [vmem:[%s4597_s14 + $0x98] sm:$0xff]  ;;  %v5757_v63 = vld [vmem:[%s4597_s14 + $0x80] sm:$0xff] }
 0x25b   : > { %v3677_v60 = vsel %vm636_vm1, %v3634_v6, 0.0  ;;  %4305 = vmatmul.msk.bf16.gmra.mxu2 %vm636_vm1, %v2345_v17  ;;  %v3155_v47 = vadd.f32 %v3078_v62, %v2908_v46  ;;  %v5743_v62 = vpop.f32.mrf.mxu3  ;;  %v1974_v6 = vrot.slane %v5757_v63, 2  ;;  %v3384_v46 = vpop.permute.xlu1 %3383 }
 0x25c   : > { %v3678_v57 = vadd.f32 %v3677_v60, %v3676_v15  ;;  %4357 = vmatmul.msk.bf16.gmra.mxu0 %vm636_vm1, %v2972_v25  ;;  %v2715_v15 = vsel %vm2563_vm4, %v5680_v55, %v5739_v51  ;;  %v2346_v25 = vrot.slane %v5628_v7, 2  ;;  %v2717_v60 = vshrl.u32 %v5749_v32, 16 }
 0x25d   : > { %v3195_v36 = vadd.f32 %v5433_v16, %v3155_v47  ;;  %4333 = vmatmul.msk.bf16.gmra.mxu3 %vm636_vm1, %v2715_v15 }
 0x25e   : > { %v2454_v26 = vpop.f32.mrf.mxu2 }
 0x25f   : > { %v3231_v59 = vpack.c.bf16 %v3195_v36, %v3195_v36  ;;  %v3520_v52 = vmul.f32 %v3379_v12, %v3195_v36  ;;  %v2529_v11 = vadd.f32 %v2454_v26, %v2157_v61  ;;  %v2084_v14 = vpop.f32.mrf.mxu1 }
 0x261   : > { %3268 = vst.msk [vmem:[%s5453_s29 + $0x24] sm:$0xf] %vm3258_vm7, %v3231_v59  ;;  %v3564_v35 = vsel %vm636_vm1, %v3520_v52, 0.0  ;;  %v3635_v49 = vmul.f32 %v3520_v52, %v3520_v52  ;;  %v2909_v34 = vadd.f32 %v5652_v0, %v2529_v11  ;;  %v3083_v5 = vpop.f32.mrf.mxu0  ;;  %v2720_v0 = vshll.u32 %v5749_v32, 16 }
 0x262   : > { %v3565_v17 = vadd.f32 %v3564_v35, %v3563_v1  ;;  %v2158_v1 = vadd.f32 %v2084_v14, %v5043_v28  ;;  %v1975_v59 = vsel %vm1944_vm5, %v1972_v4, %v1974_v6  ;;  %v2347_v28 = vsel %vm1944_vm5, %v2344_v43, %v2346_v25  ;;  %v2555_v4 = vld [vmem:[%s4597_s14 + $0xa0] sm:$0x7] }
 0x263   : > { %v3679_v48 = vsel %vm636_vm1, %v3635_v49, 0.0  ;;  %v3156_v8 = vadd.f32 %v3081_v19, %v2909_v34  ;;  %v2973_v19 = vrot.slane %v5628_v7, 3  ;;  %v5767_v12 = vpop.f32.mrf.mxu3  ;;  %v2719_v52 = vrot.slane %v2717_v60, 2 }
 0x264   : > { %v3680_v55 = vadd.f32 %v3679_v48, %v3678_v57  ;;  %v2722_v11 = vrot.slane %v2720_v0, 3  ;;  %v2561_v60 = vunpack.c.l.b16 %v2555_v4  ;;  %v6086_v4 = vld [vmem:[#allocation10_spill] sm:$0xff] }
 0x265   : > { %v3196_v47 = vadd.f32 %v5433_v16, %v3156_v8  ;;  %v2974_v44 = vsel %vm2943_vm6, %v2971_v24, %v2973_v19 }
 0x266   : > { %v2456_v10 = vpop.f32.mrf.mxu2 }
 0x267   : > { %v3232_v61 = vpack.c.bf16 %v3196_v47, %v3196_v47  ;;  %v3521_v57 = vmul.f32 %v3384_v46, %v3196_v47  ;;  %v2530_v36 = vadd.f32 %v2456_v10, %v2158_v1  ;;  %v2087_v26 = vpop.f32.mrf.mxu1  ;;  %v5793_v46 = vor.u32 %v2722_v11, %v2719_v52  ;;  %v5810_v11 = vld [vmem:[%s4597_s14 + $0x88] sm:$0xff] }
 0x268   : > { %v2159_v58 = vadd.f32 %v2087_v26, %v5052_v31 }
 0x269   : > { %3269 = vst.msk [vmem:[%s5453_s29 + $0x28] sm:$0xf] %vm3258_vm7, %v3232_v61  ;;  %v3566_v14 = vsel %vm636_vm1, %v3521_v57, 0.0  ;;  %v3636_v15 = vmul.f32 %v3521_v57, %v3521_v57  ;;  %v2910_v35 = vadd.f32 %v5684_v33, %v2530_v36  ;;  %v3086_v49 = vpop.f32.mrf.mxu0  ;;  %v3389_v33 = vpop.permute.xlu2 %3388  ;;  %v5802_v61 = vpack.c.b16 %v2561_v60, %v2561_v60 }
 0x26a   : > { %v3567_v34 = vadd.f32 %v3566_v14, %v3565_v17  ;;  %4212 = vmatmul.msk.bf16.gmra.mxu1 %vm636_vm1, %v1975_v59  ;;  %v1976_v14 = vrot.slane %v5810_v11, 2 }
 0x26b   : > { %v3681_v43 = vsel %vm636_vm1, %v3636_v15, 0.0  ;;  %4306 = vmatmul.msk.bf16.gmra.mxu2 %vm636_vm1, %v2347_v28  ;;  %v3157_v48 = vadd.f32 %v3083_v5, %v2910_v35  ;;  %v5797_v0 = vpop.f32.mrf.mxu3  ;;  %v3394_v15 = vpop.permute.xlu0 %3393  ;;  %v2348_v35 = vrot.slane %v5690_v29, 2 }
 0x26c   : > { %v3682_v8 = vadd.f32 %v3681_v43, %v3680_v55  ;;  %4358 = vmatmul.msk.bf16.gmra.mxu0 %vm636_vm1, %v2974_v44  ;;  %v2724_v55 = vsel %vm2563_vm4, %v5739_v51, %v5793_v46  ;;  %v2726_v44 = vshrl.u32 %v5802_v61, 16 }
 0x26d   : > { %v3197_v24 = vadd.f32 %v5433_v16, %v3157_v48  ;;  %4334 = vmatmul.msk.bf16.gmra.mxu3 %vm636_vm1, %v2724_v55 }
 0x26e   : > { %v2459_v17 = vpop.f32.mrf.mxu2 }
 0x26f   : > { %v3233_v1 = vpack.c.bf16 %v3197_v24, %v3197_v24  ;;  %v3522_v47 = vmul.f32 %v3389_v33, %v3197_v24  ;;  %v2531_v10 = vadd.f32 %v2459_v17, %v2159_v58  ;;  %v2089_v5 = vpop.f32.mrf.mxu1  ;;  %v1977_v17 = vsel %vm1944_vm5, %v1974_v6, %v1976_v14 }
 0x271   : > { %3270 = vst.msk [vmem:[%s5453_s29 + $0x2c] sm:$0xf] %vm3258_vm7, %v3233_v1  ;;  %v3568_v31 = vsel %vm636_vm1, %v3522_v47, 0.0  ;;  %v3637_v57 = vmul.f32 %v3522_v47, %v3522_v47  ;;  %v2911_v36 = vadd.f32 %v5711_v20, %v2531_v10  ;;  %v3088_v26 = vpop.f32.mrf.mxu0  ;;  %v2729_v20 = vshll.u32 %v5802_v61, 16 }
 0x272   : > { %v3569_v59 = vadd.f32 %v3568_v31, %v3567_v34  ;;  %v2160_v34 = vadd.f32 %v2089_v5, %v6086_v4  ;;  %v2349_v1 = vsel %vm1944_vm5, %v2346_v25, %v2348_v35  ;;  %v2728_v47 = vrot.slane %v2726_v44, 2 }
 0x273   : > { %v3683_v28 = vsel %vm636_vm1, %v3637_v57, 0.0  ;;  %v3158_v52 = vadd.f32 %v3086_v49, %v2911_v36  ;;  %v2975_v49 = vrot.slane %v5690_v29, 3  ;;  %v5820_v33 = vpop.f32.mrf.mxu3  ;;  %v2731_v10 = vrot.slane %v2729_v20, 3 }
 0x274   : > { %v3684_v51 = vadd.f32 %v3683_v28, %v3682_v8 }
 0x275   : > { %v3198_v43 = vadd.f32 %v5433_v16, %v3158_v52  ;;  %v2976_v63 = vsel %vm2943_vm6, %v2973_v19, %v2975_v49  ;;  %v2732_v52 = vor.u32 %v2731_v10, %v2728_v47  ;;  %v3404_v47 = vpop.permute.xlu2 %3403  ;;  %v4496_v10 = vld [vmem:[%s4597_s14 + $0x90] sm:$0xff] }
 0x276   : > { %v2461_v48 = vpop.f32.mrf.mxu2 }
 0x277   : > { %v3234_v60 = vpack.c.bf16 %v3198_v43, %v3198_v43  ;;  %v3523_v58 = vmul.f32 %v3394_v15, %v3198_v43  ;;  %v2532_v8 = vadd.f32 %v2461_v48, %v2160_v34  ;;  %v2092_v24 = vpop.f32.mrf.mxu1  ;;  %v6087_v15 = vld [vmem:[#allocation11_spill] sm:$0xff] }
 0x278   : > { %v2161_v44 = vadd.f32 %v2092_v24, %v6087_v15 }
 0x279   : > { %3271 = vst.msk [vmem:[%s5453_s29 + $0x30] sm:$0xf] %vm3258_vm7, %v3234_v60  ;;  %v3570_v5 = vsel %vm636_vm1, %v3523_v58, 0.0  ;;  %v3638_v55 = vmul.f32 %v3523_v58, %v3523_v58  ;;  %v2912_v31 = vadd.f32 %v5743_v62, %v2532_v8  ;;  %v3091_v57 = vpop.f32.mrf.mxu0  ;;  %v3399_v62 = vpop.permute.xlu1 %3398 }
 0x27a   : > { %v3571_v6 = vadd.f32 %v3570_v5, %v3569_v59  ;;  %4213 = vmatmul.msk.bf16.gmra.mxu1 %vm636_vm1, %v1977_v17  ;;  %v1978_v5 = vrot.slane %v4496_v10, 2 }
 0x27b   : > { %v3685_v36 = vsel %vm636_vm1, %v3638_v55, 0.0  ;;  %4307 = vmatmul.msk.bf16.gmra.mxu2 %vm636_vm1, %v2349_v1  ;;  %v3159_v25 = vadd.f32 %v3088_v26, %v2912_v31  ;;  %v5847_v19 = vpop.f32.mrf.mxu3  ;;  %v2733_v26 = vsel %vm2563_vm4, %v5793_v46, %v2732_v52  ;;  %v2350_v46 = vrot.slane %v5749_v32, 2 }
 0x27c   : > { %v3686_v28 = vadd.f32 %v3685_v36, %v3684_v51  ;;  %4359 = vmatmul.msk.bf16.gmra.mxu0 %vm636_vm1, %v2976_v63 }
 0x27d   : > { %v3199_v7 = vadd.f32 %v5433_v16, %v3159_v25  ;;  %4335 = vmatmul.msk.bf16.gmra.mxu3 %vm636_vm1, %v2733_v26 }
 0x27e   : > { %v2464_v20 = vpop.f32.mrf.mxu2 }
 0x27f   : > { %v3235_v59 = vpack.c.bf16 %v3199_v7, %v3199_v7  ;;  %v3524_v4 = vmul.f32 %v3399_v62, %v3199_v7  ;;  %v2533_v34 = vadd.f32 %v2464_v20, %v2161_v44  ;;  %v2094_v43 = vpop.f32.mrf.mxu1  ;;  %v1979_v62 = vsel %vm1944_vm5, %v1976_v14, %v1978_v5  ;;  %v2219_v20 = vld [vmem:[%s4597_s14 + $0xa0] sm:$0x3] }
 0x280   : > { %v2162_v55 = vadd.f32 %v2094_v43, %v5108_v37  ;;  %v2351_v37 = vsel %vm1944_vm5, %v2348_v35, %v2350_v46 }
 0x281   : > { %3272 = vst.msk [vmem:[%s5453_s29 + $0x34] sm:$0xf] %vm3258_vm7, %v3235_v59  ;;  %v3572_v51 = vsel %vm636_vm1, %v3524_v4, 0.0  ;;  %v3639_v48 = vmul.f32 %v3524_v4, %v3524_v4  ;;  %v2913_v60 = vadd.f32 %v5767_v12, %v2533_v34  ;;  %v3093_v58 = vpop.f32.mrf.mxu0  ;;  %v2977_v12 = vrot.slane %v5749_v32, 3 }
 0x282   : > { %v3573_v8 = vadd.f32 %v3572_v51, %v3571_v6  ;;  %v2297_v34 = vunpack.c.l.b16 %v2219_v20 }
 0x283   : > { %v3687_v24 = vsel %vm636_vm1, %v3639_v48, 0.0  ;;  %v3160_v17 = vadd.f32 %v3091_v57, %v2913_v60  ;;  %v5862_v6 = vpop.f32.mrf.mxu3  ;;  %v2978_v11 = vsel %vm2943_vm6, %v2975_v49, %v2977_v12 }
 0x284   : > { %v3688_v1 = vadd.f32 %v3687_v24, %v3686_v28  ;;  %v2316_v24 = vpack.c.b16 %v2297_v34, %v2297_v34 }
 0x285   : > { %v3200_v31 = vadd.f32 %v5433_v16, %v3160_v17 }
 0x286   : > { %v2466_v63 = vpop.f32.mrf.mxu2 }
 0x287   : > { %v3236_v57 = vpack.c.bf16 %v3200_v31, %v3200_v31  ;;  %v3525_v36 = vmul.f32 %v3404_v47, %v3200_v31  ;;  %v2534_v25 = vadd.f32 %v2466_v63, %v2162_v55  ;;  %v2097_v28 = vpop.f32.mrf.mxu1  ;;  %v3414_v63 = vpop.permute.xlu1 %3413 }
 0x288   : > { %v2163_v43 = vadd.f32 %v2097_v28, %v5122_v54 }
 0x289   : > { %3273 = vst.msk [vmem:[%s5453_s29 + $0x38] sm:$0xf] %vm3258_vm7, %v3236_v57  ;;  %v3574_v52 = vsel %vm636_vm1, %v3525_v36, 0.0  ;;  %v3640_v15 = vmul.f32 %v3525_v36, %v3525_v36  ;;  %v2914_v44 = vadd.f32 %v5797_v0, %v2534_v25  ;;  %v3096_v7 = vpop.f32.mrf.mxu0  ;;  %v3409_v0 = vpop.permute.xlu0 %3408  ;;  %v1980_v57 = vrot.slane %v5103_v9, 2 }
 0x28a   : > { %v3575_v14 = vadd.f32 %v3574_v52, %v3573_v8  ;;  %4214 = vmatmul.msk.bf16.gmra.mxu1 %vm636_vm1, %v1979_v62  ;;  %v2352_v36 = vrot.slane %v2316_v24, 2  ;;  %v2979_v62 = vrot.slane %v5802_v61, 3 }
 0x28b   : > { %v3689_v59 = vsel %vm636_vm1, %v3640_v15, 0.0  ;;  %4308 = vmatmul.msk.bf16.gmra.mxu2 %vm636_vm1, %v2351_v37  ;;  %v3161_v35 = vadd.f32 %v3093_v58, %v2914_v44  ;;  %v5886_v26 = vpop.f32.mrf.mxu3 }
 0x28c   : > { %v3690_v4 = vadd.f32 %v3689_v59, %v3688_v1  ;;  %4360 = vmatmul.msk.bf16.gmra.mxu0 %vm636_vm1, %v2978_v11  ;;  %v2353_v20 = vsel %vm1944_vm5, %v2350_v46, %v2352_v36  ;;  %v2980_v61 = vsel %vm2943_vm6, %v2977_v12, %v2979_v62 }
 0x28d   : > { %v3201_v29 = vadd.f32 %v5433_v16, %v3161_v35 }
 0x28e   : > { %v2469_v49 = vpop.f32.mrf.mxu2 }
 0x28f   : > { %v3237_v51 = vpack.c.bf16 %v3201_v29, %v3201_v29  ;;  %v3526_v48 = vmul.f32 %v3409_v0, %v3201_v29  ;;  %v2535_v60 = vadd.f32 %v2469_v49, %v2163_v43  ;;  %v2099_v8 = vpop.f32.mrf.mxu1  ;;  %v3419_v0 = vpop.permute.xlu2 %3418 }
 0x290   : > { %v2164_v25 = vadd.f32 %v2099_v8, %v5138_v42 }
 0x291   : > { %3274 = vst.msk [vmem:[%s5453_s29 + $0x3c] sm:$0xf] %vm3258_vm7, %v3237_v51  ;;  %v3576_v58 = vsel %vm636_vm1, %v3526_v48, 0.0  ;;  %v3641_v17 = vmul.f32 %v3526_v48, %v3526_v48  ;;  %v2915_v1 = vadd.f32 %v5820_v33, %v2535_v60  ;;  %v3098_v47 = vpop.f32.mrf.mxu0 }
 0x292   : > { %v3577_v10 = vadd.f32 %v3576_v58, %v3575_v14 }
 0x293   : > { %v3691_v54 = vsel %vm636_vm1, %v3641_v17, 0.0  ;;  %v3162_v55 = vadd.f32 %v3096_v7, %v2915_v1  ;;  %v5897_v52 = vpop.f32.mrf.mxu3  ;;  %v1981_v7 = vsel %vm1944_vm5, %v1978_v5, %v1980_v57 }
 0x294   : > { %v3692_v31 = vadd.f32 %v3691_v54, %v3690_v4 }
 0x295   : > { %v3202_v28 = vadd.f32 %v5433_v16, %v3162_v55 }
 0x296   : > { %v2471_v37 = vpop.f32.mrf.mxu2 }
 0x297   : > { %v3238_v33 = vpack.c.bf16 %v3202_v28, %v3202_v28  ;;  %v3527_v15 = vmul.f32 %v3414_v63, %v3202_v28  ;;  %v2536_v44 = vadd.f32 %v2471_v37, %v2164_v25  ;;  %v2102_v11 = vpop.f32.mrf.mxu1 }
 0x299   : > { %3275 = vst.msk [vmem:[%s5453_s29 + $0x40] sm:$0xf] %vm3258_vm7, %v3238_v33  ;;  %v3578_v9 = vsel %vm636_vm1, %v3527_v15, 0.0  ;;  %v3642_v42 = vmul.f32 %v3527_v15, %v3527_v15  ;;  %v2916_v14 = vadd.f32 %v5847_v19, %v2536_v44  ;;  %v3101_v59 = vpop.f32.mrf.mxu0  ;;  %v2165_v19 = vadd.f32 %v2102_v11, %v5158_v3  ;;  %v5930_v11 = vld [vmem:[%s6052_s2] ss:$0 sm:$0xff] }
 0x29a   : > { %v3579_v35 = vadd.f32 %v3578_v9, %v3577_v10  ;;  %4215 = vmatmul.msk.bf16.gmra.mxu1 %vm636_vm1, %v1981_v7 }
 0x29b   : > { %v3693_v4 = vsel %vm636_vm1, %v3642_v42, 0.0  ;;  %4309 = vmatmul.msk.bf16.gmra.mxu2 %vm636_vm1, %v2353_v20  ;;  %v3163_v5 = vadd.f32 %v3098_v47, %v2916_v14  ;;  %v2861_v43 = vpop.f32.mrf.mxu3  ;;  %v3424_v47 = vpop.permute.xlu0 %3423 }
 0x29c   : > { %v3694_v46 = vadd.f32 %v3693_v4, %v3692_v31  ;;  %4361 = vmatmul.msk.bf16.gmra.mxu0 %vm636_vm1, %v2980_v61  ;;  %v3429_v20 = vpop.permute.xlu1 %3428 }
 0x29d   : > { %v3203_v34 = vadd.f32 %v5433_v16, %v3163_v5 }
 0x29e   : > { %v2474_v32 = vpop.f32.mrf.mxu2 }
 0x29f   : > { %v3239_v12 = vpack.c.bf16 %v3203_v34, %v3203_v34  ;;  %v3528_v29 = vmul.f32 %v3419_v0, %v3203_v34  ;;  %v2537_v49 = vadd.f32 %v2474_v32, %v2165_v19  ;;  %v2104_v51 = vpop.f32.mrf.mxu1 }
 0x2a0   : > { %v2166_v10 = vadd.f32 %v2104_v51, %v5175_v53 }
 0x2a1   : > { %3276 = vst.msk [vmem:[%s5453_s29 + $0x44] sm:$0xf] %vm3258_vm7, %v3239_v12  ;;  %v3580_v48 = vsel %vm636_vm1, %v3528_v29, 0.0  ;;  %v3643_v60 = vmul.f32 %v3528_v29, %v3528_v29  ;;  %v2917_v8 = vadd.f32 %v5862_v6, %v2537_v49  ;;  %v3103_v24 = vpop.f32.mrf.mxu0  ;;  %v3434_v29 = vpop.permute.xlu2 %3433 }
 0x2a2   : > { %v3581_v58 = vadd.f32 %v3580_v48, %v3579_v35 }
 0x2a3   : > { %v3695_v3 = vsel %vm636_vm1, %v3643_v60, 0.0  ;;  %v3164_v17 = vadd.f32 %v3101_v59, %v2917_v8  ;;  %v2864_v31 = vpop.f32.mrf.mxu3 }
 0x2a4   : > { %v3696_v1 = vadd.f32 %v3695_v3, %v3694_v46 }
 0x2a5   : > { %v3204_v54 = vadd.f32 %v5433_v16, %v3164_v17 }
 0x2a6   : > { %v2476_v55 = vpop.f32.mrf.mxu2 }
 0x2a7   : > { %v3240_v63 = vpack.c.bf16 %v3204_v54, %v3204_v54  ;;  %v3529_v57 = vmul.f32 %v3424_v47, %v3204_v54  ;;  %v2538_v36 = vadd.f32 %v2476_v55, %v2166_v10  ;;  %v2107_v25 = vpop.f32.mrf.mxu1 }
 0x2a8   : > { %v2167_v44 = vadd.f32 %v2107_v25, %v5188_v30 }
 0x2a9   : > { %3277 = vst.msk [vmem:[%s5453_s29 + $0x48] sm:$0xf] %vm3258_vm7, %v3240_v63  ;;  %v3582_v6 = vsel %vm636_vm1, %v3529_v57, 0.0  ;;  %v3644_v28 = vmul.f32 %v3529_v57, %v3529_v57  ;;  %v2918_v62 = vadd.f32 %v5886_v26, %v2538_v36  ;;  %v3106_v37 = vpop.f32.mrf.mxu0  ;;  %v3439_v63 = vpop.permute.xlu0 %3438 }
 0x2aa   : > { %v3583_v33 = vadd.f32 %v3582_v6, %v3581_v58 }
 0x2ab   : > { %v3697_v53 = vsel %vm636_vm1, %v3644_v28, 0.0  ;;  %v3165_v15 = vadd.f32 %v3103_v24, %v2918_v62  ;;  %v2866_v61 = vpop.f32.mrf.mxu3 }
 0x2ac   : > { %v3698_v16 = vadd.f32 %v3697_v53, %v3696_v1 }
 0x2ad   : > { %v3205_v7 = vadd.f32 %v5930_v11, %v3165_v15 }
 0x2ae   : > { %v2479_v9 = vpop.f32.mrf.mxu2 }
 0x2af   : > { %v3241_v42 = vpack.c.bf16 %v3205_v7, %v3205_v7  ;;  %v3530_v26 = vmul.f32 %v3429_v20, %v3205_v7  ;;  %v2539_v14 = vadd.f32 %v2479_v9, %v2167_v44  ;;  %v2109_v59 = vpop.f32.mrf.mxu1  ;;  %v3444_v9 = vpop.permute.xlu1 %3443 }
 0x2b0   : > { %v2168_v12 = vadd.f32 %v2109_v59, %v5205_v41 }
 0x2b1   : > { %3278 = vst.msk [vmem:[%s5453_s29 + $0x4c] sm:$0xf] %vm3258_vm7, %v3241_v42  ;;  %v3584_v35 = vsel %vm636_vm1, %v3530_v26, 0.0  ;;  %v3645_v30 = vmul.f32 %v3530_v26, %v3530_v26  ;;  %v2919_v4 = vadd.f32 %v5897_v52, %v2539_v14  ;;  %v3108_v5 = vpop.f32.mrf.mxu0 }
 0x2b2   : > { %v3585_v46 = vadd.f32 %v3584_v35, %v3583_v33 }
 0x2b3   : > { %v3699_v0 = vsel %vm636_vm1, %v3645_v30, 0.0  ;;  %v3166_v19 = vadd.f32 %v3106_v37, %v2919_v4  ;;  %v2869_v1 = vpop.f32.mrf.mxu3 }
 0x2b4   : > { %v3700_v34 = vadd.f32 %v3699_v0, %v3698_v16 }
 0x2b5   : > { %v3206_v32 = vadd.f32 %v5930_v11, %v3166_v19 }
 0x2b6   : > { %v2481_v49 = vpop.f32.mrf.mxu2 }
 0x2b7   : > { %v3242_v51 = vpack.c.bf16 %v3206_v32, %v3206_v32  ;;  %v3531_v48 = vmul.f32 %v3434_v29, %v3206_v32  ;;  %v2540_v60 = vadd.f32 %v2481_v49, %v2168_v12  ;;  %v2112_v8 = vpop.f32.mrf.mxu1 }
 0x2b8   : > { %v2169_v55 = vadd.f32 %v2112_v8, %v5214_v56 }
 0x2b9   : > { %3279 = vst.msk [vmem:[%s5453_s29 + $0x50] sm:$0xf] %vm3258_vm7, %v3242_v51  ;;  %v3586_v52 = vsel %vm636_vm1, %v3531_v48, 0.0  ;;  %v3646_v24 = vmul.f32 %v3531_v48, %v3531_v48  ;;  %v2920_v58 = vadd.f32 %v2861_v43, %v2540_v60  ;;  %v3111_v3 = vpop.f32.mrf.mxu0 }
 0x2ba   : > { %v3587_v17 = vadd.f32 %v3586_v52, %v3585_v46 }
 0x2bb   : > { %v3701_v47 = vsel %vm636_vm1, %v3646_v24, 0.0  ;;  %v3167_v10 = vadd.f32 %v3108_v5, %v2920_v58  ;;  %v2871_v56 = vpop.f32.mrf.mxu3 }
 0x2bc   : > { %v3702_v41 = vadd.f32 %v3701_v47, %v3700_v34 }
 0x2bd   : > { %v3207_v54 = vadd.f32 %v5930_v11, %v3167_v10 }
 0x2be   : > { %v2484_v57 = vpop.f32.mrf.mxu2 }
 0x2bf   : > { %v3243_v36 = vpack.c.bf16 %v3207_v54, %v3207_v54  ;;  %v3532_v25 = vmul.f32 %v3439_v63, %v3207_v54  ;;  %v2541_v6 = vadd.f32 %v2484_v57, %v2169_v55  ;;  %v2114_v28 = vpop.f32.mrf.mxu1  ;;  %v3454_v54 = vpop.permute.xlu0 %3453 }
 0x2c0   : > { %v2170_v20 = vadd.f32 %v2114_v28, %v5227_v22  ;;  %v3449_v22 = vpop.permute.xlu2 %3448 }
 0x2c1   : > { %3280 = vst.msk [vmem:[%s5453_s29 + $0x54] sm:$0xf] %vm3258_vm7, %v3243_v36  ;;  %v3588_v43 = vsel %vm636_vm1, %v3532_v25, 0.0  ;;  %v3647_v62 = vmul.f32 %v3532_v25, %v3532_v25  ;;  %v2921_v37 = vadd.f32 %v2864_v31, %v2541_v6  ;;  %v3113_v33 = vpop.f32.mrf.mxu0 }
 0x2c2   : > { %v3589_v53 = vadd.f32 %v3588_v43, %v3587_v17 }
 0x2c3   : > { %v3703_v15 = vsel %vm636_vm1, %v3647_v62, 0.0  ;;  %v3168_v16 = vadd.f32 %v3111_v3, %v2921_v37  ;;  %v2874_v49 = vpop.f32.mrf.mxu3 }
 0x2c4   : > { %v3704_v44 = vadd.f32 %v3703_v15, %v3702_v41 }
 0x2c5   : > { %v3208_v7 = vadd.f32 %v5930_v11, %v3168_v16 }
 0x2c6   : > { %v2486_v42 = vpop.f32.mrf.mxu2 }
 0x2c7   : > { %v3244_v26 = vpack.c.bf16 %v3208_v7, %v3208_v7  ;;  %v3533_v14 = vmul.f32 %v3444_v9, %v3208_v7  ;;  %v2542_v59 = vadd.f32 %v2486_v42, %v2170_v20  ;;  %v2117_v35 = vpop.f32.mrf.mxu1 }
 0x2c8   : > { %v2171_v12 = vadd.f32 %v2117_v35, %v5241_v45 }
 0x2c9   : > { %3281 = vst.msk [vmem:[%s5453_s29 + $0x58] sm:$0xf] %vm3258_vm7, %v3244_v26  ;;  %v3590_v31 = vsel %vm636_vm1, %v3533_v14, 0.0  ;;  %v3648_v30 = vmul.f32 %v3533_v14, %v3533_v14  ;;  %v2922_v4 = vadd.f32 %v2866_v61, %v2542_v59  ;;  %v3116_v5 = vpop.f32.mrf.mxu0 }
 0x2ca   : > { %v3591_v46 = vadd.f32 %v3590_v31, %v3589_v53 }
 0x2cb   : > { %v3705_v0 = vsel %vm636_vm1, %v3648_v30, 0.0  ;;  %v3169_v19 = vadd.f32 %v3113_v33, %v2922_v4  ;;  %v2876_v6 = vpop.f32.mrf.mxu3 }
 0x2cc   : > { %v3706_v34 = vadd.f32 %v3705_v0, %v3704_v44  ;;  %v3459_v44 = vpop.permute.xlu1 %3458 }
 0x2cd   : > { %v3209_v32 = vadd.f32 %v5930_v11, %v3169_v19  ;;  %v3464_v19 = vpop.permute.xlu2 %3463 }
 0x2ce   : > { %v2489_v29 = vpop.f32.mrf.mxu2 }
 0x2cf   : > { %v3245_v51 = vpack.c.bf16 %v3209_v32, %v3209_v32  ;;  %v3534_v48 = vmul.f32 %v3449_v22, %v3209_v32  ;;  %v2543_v60 = vadd.f32 %v2489_v29, %v2171_v12  ;;  %v2119_v8 = vpop.f32.mrf.mxu1 }
 0x2d0   : > { %v2172_v41 = vadd.f32 %v2119_v8, %v5262_v18 }
 0x2d1   : > { %3282 = vst.msk [vmem:[%s5453_s29 + $0x5c] sm:$0xf] %vm3258_vm7, %v3245_v51  ;;  %v3592_v61 = vsel %vm636_vm1, %v3534_v48, 0.0  ;;  %v3649_v52 = vmul.f32 %v3534_v48, %v3534_v48  ;;  %v2923_v24 = vadd.f32 %v2869_v1, %v2543_v60  ;;  %v3118_v58 = vpop.f32.mrf.mxu0 }
 0x2d2   : > { %v3593_v3 = vadd.f32 %v3592_v61, %v3591_v46 }
 0x2d3   : > { %v3707_v17 = vsel %vm636_vm1, %v3649_v52, 0.0  ;;  %v3170_v47 = vadd.f32 %v3116_v5, %v2923_v24  ;;  %v2879_v30 = vpop.f32.mrf.mxu3 }
 0x2d4   : > { %v3708_v10 = vadd.f32 %v3707_v17, %v3706_v34  ;;  %v3469_v17 = vpop.permute.xlu0 %3468 }
 0x2d5   : > { %v3210_v45 = vadd.f32 %v5930_v11, %v3170_v47 }
 0x2d6   : > { %v2491_v55 = vpop.f32.mrf.mxu2 }
 0x2d7   : > { %v3246_v63 = vpack.c.bf16 %v3210_v45, %v3210_v45  ;;  %v3535_v57 = vmul.f32 %v3454_v54, %v3210_v45  ;;  %v2544_v36 = vadd.f32 %v2491_v55, %v2172_v41  ;;  %v2122_v25 = vpop.f32.mrf.mxu1 }
 0x2d8   : > { %v2173_v16 = vadd.f32 %v2122_v25, %v5276_v23 }
 0x2d9   : > { %3283 = vst.msk [vmem:[%s5453_s29 + $0x60] sm:$0xf] %vm3258_vm7, %v3246_v63  ;;  %v3594_v1 = vsel %vm636_vm1, %v3535_v57, 0.0  ;;  %v3650_v28 = vmul.f32 %v3535_v57, %v3535_v57  ;;  %v2924_v43 = vadd.f32 %v2871_v56, %v2544_v36  ;;  %v3121_v62 = vpop.f32.mrf.mxu0 }
 0x2da   : > { %v3595_v37 = vadd.f32 %v3594_v1, %v3593_v3 }
 0x2db   : > { %v3709_v33 = vsel %vm636_vm1, %v3650_v28, 0.0  ;;  %v3171_v53 = vadd.f32 %v3118_v58, %v2924_v43 }
 0x2dc   : > { %v3710_v18 = vadd.f32 %v3709_v33, %v3708_v10 }
 0x2dd   : > { %v3211_v15 = vadd.f32 %v5930_v11, %v3171_v53 }
 0x2de   : > { %v2494_v7 = vpop.f32.mrf.mxu2 }
 0x2df   : > { %v3247_v20 = vpack.c.bf16 %v3211_v15, %v3211_v15  ;;  %v3536_v9 = vmul.f32 %v3459_v44, %v3211_v15  ;;  %v2545_v42 = vadd.f32 %v2494_v7, %v2173_v16  ;;  %v2124_v26 = vpop.f32.mrf.mxu1 }
 0x2e0   : > { %v2174_v0 = vadd.f32 %v2124_v26, %v5293_v13  ;;  %v2881_v13 = vpop.f32.mrf.mxu3 }
 0x2e1   : > { %3284 = vst.msk [vmem:[%s5453_s29 + $0x64] sm:$0xf] %vm3258_vm7, %v3247_v20  ;;  %v3596_v56 = vsel %vm636_vm1, %v3536_v9, 0.0  ;;  %v3651_v14 = vmul.f32 %v3536_v9, %v3536_v9  ;;  %v2925_v59 = vadd.f32 %v2874_v49, %v2545_v42  ;;  %v3123_v35 = vpop.f32.mrf.mxu0 }
 0x2e2   : > { %v3597_v31 = vadd.f32 %v3596_v56, %v3595_v37 }
 0x2e3   : > { %v3711_v4 = vsel %vm636_vm1, %v3651_v14, 0.0  ;;  %v3172_v5 = vadd.f32 %v3121_v62, %v2925_v59 }
 0x2e4   : > { %v3712_v23 = vadd.f32 %v3711_v4, %v3710_v18 }
 0x2e5   : > { %v3212_v46 = vadd.f32 %v5930_v11, %v3172_v5 }
 0x2e6   : > { %v2496_v34 = vpop.f32.mrf.mxu2 }
 0x2e7   : > { %v3248_v22 = vpack.c.bf16 %v3212_v46, %v3212_v46  ;;  %v3537_v32 = vmul.f32 %v3464_v19, %v3212_v46  ;;  %v2546_v12 = vadd.f32 %v2496_v34, %v2174_v0  ;;  %v2127_v29 = vpop.f32.mrf.mxu1 }
 0x2e8   : > { %v2175_v3 = vadd.f32 %v2127_v29, %v5308_v39  ;;  %v3474_v39 = vpop.permute.xlu1 %3473  ;;  %v2884_v33 = vpop.f32.mrf.mxu3 }
 0x2e9   : > { %3285 = vst.msk [vmem:[%s5453_s29 + $0x68] sm:$0xf] %vm3258_vm7, %v3248_v22  ;;  %v3598_v49 = vsel %vm636_vm1, %v3537_v32, 0.0  ;;  %v3652_v51 = vmul.f32 %v3537_v32, %v3537_v32  ;;  %v2926_v48 = vadd.f32 %v2876_v6, %v2546_v12  ;;  %v3126_v60 = vpop.f32.mrf.mxu0 }
 0x2ea   : > { %v3599_v8 = vadd.f32 %v3598_v49, %v3597_v31 }
 0x2eb   : > { %v3713_v61 = vsel %vm636_vm1, %v3652_v51, 0.0  ;;  %v3173_v52 = vadd.f32 %v3123_v35, %v2926_v48  ;;  %v3479_v35 = vpop.permute.xlu2 %3478  ;;  %v3484_v48 = vpop.permute.xlu0 %3483 }
 0x2ec   : > { %v3714_v24 = vadd.f32 %v3713_v61, %v3712_v23 }
 0x2ed   : > { %v3213_v58 = vadd.f32 %v5930_v11, %v3173_v52 }
 0x2ee   : > { %v2499_v47 = vpop.f32.mrf.mxu2 }
 0x2ef   : > { %v3249_v10 = vpack.c.bf16 %v3213_v58, %v3213_v58  ;;  %v3538_v45 = vmul.f32 %v3469_v17, %v3213_v58  ;;  %v2547_v41 = vadd.f32 %v2499_v47, %v2175_v3  ;;  %v2129_v54 = vpop.f32.mrf.mxu1 }
 0x2f0   : > { %v2176_v62 = vadd.f32 %v2129_v54, %v5325_v27  ;;  %v2886_v46 = vpop.f32.mrf.mxu3 }
 0x2f1   : > { %3286 = vst.msk [vmem:[%s5453_s29 + $0x6c] sm:$0xf] %vm3258_vm7, %v3249_v10  ;;  %v3600_v55 = vsel %vm636_vm1, %v3538_v45, 0.0  ;;  %v3653_v63 = vmul.f32 %v3538_v45, %v3538_v45  ;;  %v2927_v57 = vadd.f32 %v2879_v30, %v2547_v41  ;;  %v3128_v36 = vpop.f32.mrf.mxu0 }
 0x2f2   : > { %v3601_v25 = vadd.f32 %v3600_v55, %v3599_v8 }
 0x2f3   : > { %v3715_v6 = vsel %vm636_vm1, %v3653_v63, 0.0  ;;  %v3174_v1 = vadd.f32 %v3126_v60, %v2927_v57  ;;  %v3489_v63 = vpop.permute.xlu1 %3488 }
 0x2f4   : > { %v3716_v28 = vadd.f32 %v3715_v6, %v3714_v24 }
 0x2f5   : > { %v3214_v43 = vadd.f32 %v5930_v11, %v3174_v1 }
 0x2f6   : > { %v2501_v37 = vpop.f32.mrf.mxu2 }
 0x2f7   : > { %v3250_v53 = vpack.c.bf16 %v3214_v43, %v3214_v43  ;;  %v3539_v18 = vmul.f32 %v3474_v39, %v3214_v43  ;;  %v2548_v15 = vadd.f32 %v2501_v37, %v2176_v62  ;;  %v2132_v16 = vpop.f32.mrf.mxu1 }
 0x2f8   : > { %v2177_v59 = vadd.f32 %v2132_v16, %v5339_v2  ;;  %v2889_v47 = vpop.f32.mrf.mxu3 }
 0x2f9   : > { %3287 = vst.msk [vmem:[%s5453_s29 + $0x70] sm:$0xf] %vm3258_vm7, %v3250_v53  ;;  %v3602_v44 = vsel %vm636_vm1, %v3539_v18, 0.0  ;;  %v3654_v7 = vmul.f32 %v3539_v18, %v3539_v18  ;;  %v2928_v20 = vadd.f32 %v2881_v13, %v2548_v15  ;;  %v3131_v9 = vpop.f32.mrf.mxu0 }
 0x2fa   : > { %v3603_v42 = vadd.f32 %v3602_v44, %v3601_v25 }
 0x2fb   : > { %v3717_v26 = vsel %vm636_vm1, %v3654_v7, 0.0  ;;  %v3175_v56 = vadd.f32 %v3128_v36, %v2928_v20 }
 0x2fc   : > { %v3718_v14 = vadd.f32 %v3717_v26, %v3716_v28 }
 0x2fd   : > { %v3215_v27 = vadd.f32 %v5930_v11, %v3175_v56 }
 0x2fe   : > { %v2504_v31 = vpop.f32.mrf.mxu2 }
 0x2ff   : > { %v3251_v30 = vpack.c.bf16 %v3215_v27, %v3215_v27  ;;  %v3540_v4 = vmul.f32 %v3479_v35, %v3215_v27  ;;  %v2549_v5 = vadd.f32 %v2504_v31, %v2177_v59  ;;  %v2134_v23 = vpop.f32.mrf.mxu1 }
 0x300   : > { %v2178_v51 = vadd.f32 %v2134_v23, %v5356_v21  ;;  %v2891_v18 = vpop.f32.mrf.mxu3 }
 0x301   : > { %3288 = vst.msk [vmem:[%s5453_s29 + $0x74] sm:$0xf] %vm3258_vm7, %v3251_v30  ;;  %v3604_v0 = vsel %vm636_vm1, %v3540_v4, 0.0  ;;  %v3655_v19 = vmul.f32 %v3540_v4, %v3540_v4  ;;  %v2929_v34 = vadd.f32 %v2884_v33, %v2549_v5  ;;  %v3133_v32 = vpop.f32.mrf.mxu0  ;;  %v3499_v4 = vpop.permute.xlu0 %3498 }
 0x302   : > { %v3605_v22 = vadd.f32 %v3604_v0, %v3603_v42 }
 0x303   : > { %v3719_v12 = vsel %vm636_vm1, %v3655_v19, 0.0  ;;  %v3176_v29 = vadd.f32 %v3131_v9, %v2929_v34 }
 0x304   : > { %v3720_v2 = vadd.f32 %v3719_v12, %v3718_v14 }
 0x305   : > { %v3216_v49 = vadd.f32 %v5930_v11, %v3176_v29 }
 0x306   : > { %v2506_v60 = vpop.f32.mrf.mxu2 }
 0x307   : > { %v3252_v8 = vpack.c.bf16 %v3216_v49, %v3216_v49  ;;  %v3541_v61 = vmul.f32 %v3484_v48, %v3216_v49  ;;  %v2550_v52 = vadd.f32 %v2506_v60, %v2178_v51  ;;  %v2137_v24 = vpop.f32.mrf.mxu1 }
 0x308   : > { %v2179_v55 = vadd.f32 %v2137_v24, %v5370_v50  ;;  %v3494_v50 = vpop.permute.xlu2 %3493  ;;  %v2894_v23 = vpop.f32.mrf.mxu3 }
 0x309   : > { %3289 = vst.msk [vmem:[%s5453_s29 + $0x78] sm:$0xf] %vm3258_vm7, %v3252_v8  ;;  %v3606_v13 = vsel %vm636_vm1, %v3541_v61, 0.0  ;;  %v3656_v58 = vmul.f32 %v3541_v61, %v3541_v61  ;;  %v2930_v3 = vadd.f32 %v2886_v46, %v2550_v52  ;;  %v3136_v21 = vpop.f32.mrf.mxu0  ;;  %v6088_v8 = vld [vmem:[#allocation8_spill] sm:$0xff]  ;;  %v3504_v52 = vpop.permute.xlu1 %3503 }
 0x30a   : > { %v3607_v17 = vadd.f32 %v3606_v13, %v3605_v22 }
 0x30b   : > { %v3721_v10 = vsel %vm636_vm1, %v3656_v58, 0.0  ;;  %v3177_v45 = vadd.f32 %v3133_v32, %v2930_v3 }
 0x30c   : > { %v3722_v41 = vadd.f32 %v3721_v10, %v3720_v2 }
 0x30d   : > { %v3217_v54 = vadd.f32 %v5930_v11, %v3177_v45 }
 0x30e   : > { %v2509_v57 = vpop.f32.mrf.mxu2 }
 0x30f   : > { %v3253_v36 = vpack.c.bf16 %v3217_v54, %v3217_v54  ;;  %v3542_v25 = vmul.f32 %v3489_v63, %v3217_v54  ;;  %v2551_v6 = vadd.f32 %v2509_v57, %v2179_v55  ;;  %v2139_v1 = vpop.f32.mrf.mxu1 }
 0x310   : > { %v2180_v16 = vadd.f32 %v2139_v1, %v5387_v38 }
 0x311   : > { %3290 = vst.msk [vmem:[%s5453_s29 + $0x7c] sm:$0xf] %vm3258_vm7, %v3253_v36  ;;  %v3608_v28 = vsel %vm636_vm1, %v3542_v25, 0.0  ;;  %v3657_v39 = vmul.f32 %v3542_v25, %v3542_v25  ;;  %v2931_v43 = vadd.f32 %v2889_v47, %v2551_v6  ;;  %v3138_v44 = vpop.f32.mrf.mxu0  ;;  %v3509_v36 = vpop.permute.xlu2 %3508 }
 0x312   : > { %v3609_v62 = vadd.f32 %v3608_v28, %v3607_v17  ;;  %v2896_v17 = vpop.f32.mrf.mxu3 }
 0x313   : > { %v3723_v37 = vsel %vm636_vm1, %v3657_v39, 0.0  ;;  %v3178_v33 = vadd.f32 %v3136_v21, %v2931_v43 }
 0x314   : > { %v3724_v53 = vadd.f32 %v3723_v37, %v3722_v41 }
 0x315   : > { %v3218_v15 = vadd.f32 %v5930_v11, %v3178_v33 }
 0x316   : > { %v2511_v7 = vpop.f32.mrf.mxu2 }
 0x317   : > { %v3254_v20 = vpack.c.bf16 %v3218_v15, %v3218_v15  ;;  %v3543_v9 = vmul.f32 %v3494_v50, %v3218_v15  ;;  %v2552_v42 = vadd.f32 %v2511_v7, %v2180_v16  ;;  %v2142_v26 = vpop.f32.mrf.mxu1 }
 0x318   : > { %v2181_v5 = vadd.f32 %v2142_v26, %v5401_v40 }
 0x319   : > { %3291 = vst.msk [vmem:[%s5453_s29 + $0x80] sm:$0xf] %vm3258_vm7, %v3254_v20  ;;  %v3610_v56 = vsel %vm636_vm1, %v3543_v9, 0.0  ;;  %v3658_v14 = vmul.f32 %v3543_v9, %v3543_v9  ;;  %v2932_v27 = vadd.f32 %v2891_v18, %v2552_v42  ;;  %v3141_v22 = vpop.f32.mrf.mxu0 }
 0x31a   : > { %v3611_v59 = vadd.f32 %v3610_v56, %v3609_v62 }
 0x31b   : > { %v3725_v35 = vsel %vm636_vm1, %v3658_v14, 0.0  ;;  %v3179_v31 = vadd.f32 %v3138_v44, %v2932_v27 }
 0x31c   : > { %v3726_v30 = vadd.f32 %v3725_v35, %v3724_v53 }
 0x31d   : > { %v3219_v38 = vadd.f32 %v5930_v11, %v3179_v31 }
 0x31e   : > { %v2514_v46 = vpop.f32.mrf.mxu2 }
 0x31f   : > { %v3255_v0 = vpack.c.bf16 %v3219_v38, %v3219_v38  ;;  %v3544_v19 = vmul.f32 %v3499_v4, %v3219_v38  ;;  %v2553_v34 = vadd.f32 %v2514_v46, %v2181_v5  ;;  %v2144_v49 = vpop.f32.mrf.mxu1 }
 0x320   : > { %v2182_v61 = vadd.f32 %v2144_v49, %v6088_v8 }
 0x321   : > { %3292 = vst.msk [vmem:[%s5453_s29 + $0x84] sm:$0xf] %vm3258_vm7, %v3255_v0  ;;  %v3612_v32 = vsel %vm636_vm1, %v3544_v19, 0.0  ;;  %v3659_v12 = vmul.f32 %v3544_v19, %v3544_v19  ;;  %v2933_v29 = vadd.f32 %v2894_v23, %v2553_v34  ;;  %v3143_v21 = vpop.f32.mrf.mxu0 }
 0x322   : > { %v3613_v2 = vadd.f32 %v3612_v32, %v3611_v59 }
 0x323   : > { %v3727_v51 = vsel %vm636_vm1, %v3659_v12, 0.0  ;;  %v3180_v48 = vadd.f32 %v3141_v22, %v2933_v29 }
 0x324   : > { %v3728_v60 = vadd.f32 %v3727_v51, %v3726_v30 }
 0x325   : > { %v3220_v40 = vadd.f32 %v5930_v11, %v3180_v48 }
 0x326   : > { %v2516_v24 = vpop.f32.mrf.mxu2 }
 0x327   : > { %v3256_v13 = vpack.c.bf16 %v3220_v40, %v3220_v40  ;;  %v3545_v58 = vmul.f32 %v3504_v52, %v3220_v40  ;;  %v2554_v3 = vadd.f32 %v2516_v24, %v2182_v61 }
 0x329   : > { %3293 = vst.msk [vmem:[%s5453_s29 + $0x88] sm:$0xf] %vm3258_vm7, %v3256_v13  ;;  %v3614_v47 = vsel %vm636_vm1, %v3545_v58, 0.0  ;;  %v3660_v10 = vmul.f32 %v3545_v58, %v3545_v58  ;;  %v2934_v45 = vadd.f32 %v2896_v17, %v2554_v3 }
 0x32a   : > { %v3615_v41 = vadd.f32 %v3614_v47, %v3613_v2 }
 0x32b   : > { %v3729_v54 = vsel %vm636_vm1, %v3660_v10, 0.0  ;;  %v3181_v55 = vadd.f32 %v3143_v21, %v2934_v45 }
 0x32c   : > { %v3730_v63 = vadd.f32 %v3729_v54, %v3728_v60 }
 0x32d   : > { %v3221_v57 = vadd.f32 %v5930_v11, %v3181_v55 }
 0x32f   : > { %v3257_v25 = vpack.c.bf16 %v3221_v57, %v3221_v57  ;;  %v3546_v6 = vmul.f32 %v3509_v36, %v3221_v57 }
 0x331   : > { %3294 = vst.msk [vmem:[%s5453_s29 + $0x8c] sm:$0xf] %vm3258_vm7, %v3257_v25  ;;  %v3616_v1 = vsel %vm636_vm1, %v3546_v6, 0.0  ;;  %v3661_v28 = vmul.f32 %v3546_v6, %v3546_v6  ;;  %s329_s29 = scalar_lea.vmem %s6055_s5, %s6094_s21 }
 0x332   : > { %v3617_v39 = vadd.f32 %v3616_v1, %v3615_v41 }
 0x333   : > { %v3731_v43 = vsel %vm636_vm1, %v3661_v28, 0.0 }
 0x334   : > { %v3618_v62 = vrot.slane %v3617_v39, 4  ;;  %v3732_v37 = vadd.f32 %v3731_v43, %v3730_v63 }
 0x336   : > { %v3619_v33 = vadd.f32 %v3618_v62, %v3617_v39  ;;  %v3733_v53 = vrot.slane %v3732_v37, 4 }
 0x338   : > { %v3620_v18 = vrot.slane %v3619_v33, 2  ;;  %v3734_v50 = vadd.f32 %v3733_v53, %v3732_v37 }
 0x33a   : > { %v3621_v11 = vadd.f32 %v3620_v18, %v3619_v33  ;;  %v3735_v15 = vrot.slane %v3734_v50, 2 }
 0x33c   : > { %v3622_v16 = vrot.slane %v3621_v11, 1  ;;  %v3736_v44 = vadd.f32 %v3735_v15, %v3734_v50 }
 0x33e   : > { %v3623_v7 = vadd.f32 %v3622_v16, %v3621_v11  ;;  %v3737_v20 = vrot.slane %v3736_v44, 1 }
 0x340   : > { %3625 = vst.msk [vmem:[%s329_s29] sm:$0x1] %vm3624_vm8, %v3623_v7  ;;  %v3738_v9 = vadd.f32 %v3737_v20, %v3736_v44 }
 0x342   : > { %3739 = vst.msk [vmem:[%s335_s11] sm:$0x1] %vm3624_vm8, %v3738_v9 }
 0x343 PF: > { %s17_s23 = sadd.s32 1, %s4520_s23   ;;  %s6089_s21 = smov %s4516_s22 }
 0x344   : > { %p14_p5 = scmp.ge.s32.totalorder %s17_s23, 4   ;;  %s6090_s22 = smov %s6092_s24 }
 0x346   :  { %16 = sbr.rel (!%p14_p5) target bundleno = 2 (0x2), region = 96 }

</bundles_post_ra>
